<compile_context>
chip_gen: v7x
topology: tpu7x:2x2x1
jax: 0.10.0
libtpu: 0.0.40
codegen_flags: <defaults>
</compile_context>

<pallas_src>
import math

import jax
import jax.numpy as jnp
from jax.experimental import pallas as pl
from jax.experimental.pallas import tpu as pltpu

_H = 8  # hidden width of the rain/res scalar MLPs
_SQRT_HALF = 0.7071067811865476


def _erf(x):
    # Abramowitz & Stegun 7.1.26 polynomial (abs err ~1.5e-7), exact divide.
    p = 0.3275911
    a1, a2, a3, a4, a5 = (0.254829592, -0.284496736, 1.421413741,
                          -1.453152027, 1.061405429)
    ax = jnp.abs(x)
    t = 1.0 / (1.0 + p * ax)
    poly = ((((a5 * t + a4) * t + a3) * t + a2) * t + a1) * t
    y = 1.0 - poly * jnp.exp(-ax * ax)
    return jnp.where(x >= 0.0, y, -y)


def _gelu(x):
    # exact (erf-based) GELU, matching torch.nn.GELU() default
    return 0.5 * x * (1.0 + _erf(x * _SQRT_HALF))


def _sigmoid(x):
    # exact sigmoid (review correctness concern: no approx reciprocal here)
    return 1.0 / (1.0 + jnp.exp(-x))


def _gat_rain_kernel(src_col_ref, src_row_ref, dst_row_ref, nodes_ref,
                     valid_ref, edge_attr_ref, r_ref,
                     le_w1_ref, le_b1_ref, le_w2_ref, le_b2_ref,
                     gru_w_ref, gru_b_ref, wm_w_ref,
                     rain_w1_ref, rain_b1_ref, rain_w2_ref, rain_b2_ref,
                     rain_w3_ref,
                     res_w1_ref, res_b1_ref, res_w2_ref, res_b2_ref,
                     res_w3_ref,
                     misc_ref,
                     out_ref, rf_ref):
    f32 = jnp.float32
    N, L = nodes_ref.shape                      # (16, 48)
    E = src_col_ref.shape[0]                    # 64

    # ---- SMEM scalar reads, once per invocation (never in the loop) -------
    fw0 = misc_ref[0]
    fw1 = misc_ref[1]
    fw2 = misc_ref[2]
    fb = misc_ref[3]
    wm_b = misc_ref[4]
    rain_b3 = misc_ref[5]
    res_b3 = misc_ref[6]

    def scalar_mlp(x, w1_ref, b1_ref, w2_ref, b2_ref, w3_ref, b3):
        # Block-diagonal expanded scalar MLP: 3 MXU dots, dense-lane GELUs.
        h1 = _gelu(jnp.dot(x, w1_ref[...], preferred_element_type=f32)
                   + b1_ref[...])                                   # (N, 8L)
        h2 = _gelu(jnp.dot(h1, w2_ref[...], preferred_element_type=f32)
                   + b2_ref[...])                                   # (N, 8L)
        return jnp.dot(h2, w3_ref[...], preferred_element_type=f32) + b3

    valid0 = valid_ref[...]                     # (N, 48)
    not_valid = 1.0 - valid0                    # fixed not_valid_mask
    nodes = nodes_ref[...] * valid0             # nodes * valid

    # rain_mlp applied elementwise to r (via block-diag MXU form)
    rf = scalar_mlp(r_ref[...], rain_w1_ref, rain_b1_ref, rain_w2_ref,
                    rain_b2_ref, rain_w3_ref, rain_b3)              # (N, 48)
    rf_ref[...] = rf[0:1, :]                    # wrapper only uses row 0

    residual = nodes - rf
    col = jax.lax.broadcasted_iota(jnp.int32, (N, L), 1)
    residual = jnp.where(col == 0, 0.0, residual)   # residual[:, 0] = 0
    orig_residual = residual

    # ---- edge-attr chain: lin_edge -> gru -> weight_mlp (loop invariant) ---
    ea = edge_attr_ref[...]
    h = _gelu(jnp.dot(ea, le_w1_ref[...], preferred_element_type=f32)
              + le_b1_ref[...])
    h = jnp.maximum(jnp.dot(h, le_w2_ref[...], preferred_element_type=f32)
                    + le_b2_ref[...], 0.0)
    g = _gelu(jnp.dot(h, gru_w_ref[...], preferred_element_type=f32)
              + gru_b_ref[...])
    edge_w_col = (jnp.dot(g, wm_w_ref[...], preferred_element_type=f32)
                  + wm_b)                                           # (E, 1)

    # (E,1) -> (1,E) once, via select + sublane reduce (no transpose relayout)
    eidx = jax.lax.broadcasted_iota(jnp.int32, (E, E), 0)
    lidx = jax.lax.broadcasted_iota(jnp.int32, (E, E), 1)
    edge_w_row = jnp.sum(jnp.where(eidx == lidx, edge_w_col, 0.0),
                         axis=0, keepdims=True)                     # (1, E)
    ewr_scaled = edge_w_row * (1.0 / L)         # fold the /48 of the mean

    # one-hot gather (E,N) and scatter/src-scatter (N,E) matrices
    gather = (src_col_ref[...] ==
              jax.lax.broadcasted_iota(jnp.int32, (E, N), 1)).astype(f32)
    src_sc = (src_row_ref[...] ==
              jax.lax.broadcasted_iota(jnp.int32, (N, E), 0)).astype(f32)
    scatter = (dst_row_ref[...] ==
               jax.lax.broadcasted_iota(jnp.int32, (N, E), 0)).astype(f32)

    def body(_, carry):
        res_cur, valid_cur = carry
        # gather residual by source node
        x_j_res = jnp.dot(gather, res_cur, preferred_element_type=f32)  # (E,L)
        # per-edge valid-mean, kept in a (1,E) row layout
        vsum = jnp.sum(valid_cur, axis=-1, keepdims=True)               # (N,1)
        vsum_row = jnp.sum(src_sc * vsum, axis=0, keepdims=True)        # (1,E)
        w_row = _sigmoid(vsum_row * ewr_scaled)                         # (1,E)
        # fold edge weight into the scatter matrix: one MXU dot, no msg mul
        nrv = jnp.dot(scatter * w_row, x_j_res,
                      preferred_element_type=f32)                       # (N,L)

        # fuse_mlp on cat([new_residual, residual, not_valid], -1), Linear(3,1)
        mask = _sigmoid(fw0 * nrv + fw1 * res_cur + fw2 * not_valid + fb)
        res_new = (1.0 - mask) * res_cur + not_valid * mask * nrv
        res_new = res_new + scalar_mlp(res_new, res_w1_ref, res_b1_ref,
                                       res_w2_ref, res_b2_ref, res_w3_ref,
                                       res_b3)
        valid_new = jnp.logical_or(orig_residual != res_new,
                                   valid_cur > 0.0).astype(f32)
        return res_new, valid_new

    residual_final, _ = jax.lax.fori_loop(0, 3, body, (residual, valid0),
                                          unroll=True)

    out_ref[...] = residual_final[0:1, :] + rf[0:1, :]


def _init_linear(key, fan_in, fan_out):
    kw, kb = jax.random.split(key)
    bound = 1.0 / math.sqrt(fan_in)
    w = jax.random.uniform(kw, (fan_in, fan_out), jnp.float32, -bound, bound)
    b = jax.random.uniform(kb, (fan_out,), jnp.float32, -bound, bound)
    return w, b


def init_params(key):
    hidden = 48
    edge_dim = 17
    ed_pad = 32
    H = _H
    keys = jax.random.split(key, 7)
    le_w1, le_b1 = _init_linear(keys[0], edge_dim, hidden)
    le_w2, le_b2 = _init_linear(keys[1], hidden, hidden)
    gru_w, gru_b = _init_linear(keys[2], hidden, hidden)
    wm_w, wm_b = _init_linear(keys[3], hidden, 1)
    fuse_w, fuse_b = _init_linear(keys[4], 3, 1)

    eye = jnp.eye(hidden, dtype=jnp.float32)

    def scalar_mlp_expand(k):
        # Expand Linear(1,8)/Linear(8,8)/Linear(8,1) (stored (in,out)) into
        # block-diagonal matrices acting on the (N, 48)-state so the MLP can
        # run as 3 MXU matmuls with the 8 hidden channels laid out on lanes.
        k1, k2, k3 = jax.random.split(k, 3)
        w1, b1 = _init_linear(k1, 1, H)          # (1,8), (8,)
        w2, b2 = _init_linear(k2, H, H)          # (8,8), (8,)
        w3, b3 = _init_linear(k3, H, 1)          # (8,1), (1,)
        w1v = w1.reshape(H)
        w3v = w3.reshape(H)
        # W1[l, k*48+l2] = w1[k] * delta(l, l2)
        W1 = (eye[:, None, :] * w1v[None, :, None]).reshape(hidden, H * hidden)
        B1 = jnp.repeat(b1, hidden).reshape(1, H * hidden)
        # W2[k*48+l, j*48+l2] = w2[k,j] * delta(l, l2)
        W2 = (w2[:, None, :, None] * eye[None, :, None, :]
              ).reshape(H * hidden, H * hidden)
        B2 = jnp.repeat(b2, hidden).reshape(1, H * hidden)
        # W3[j*48+l, l2] = w3[j] * delta(l, l2)
        W3 = (w3v[:, None, None] * eye[None, :, :]).reshape(H * hidden, hidden)
        return W1, B1, W2, B2, W3, b3[0]

    rW1, rB1, rW2, rB2, rW3, rain_b3 = scalar_mlp_expand(keys[5])
    sW1, sB1, sW2, sB2, sW3, res_b3 = scalar_mlp_expand(keys[6])

    misc = jnp.stack([fuse_w[0, 0], fuse_w[1, 0], fuse_w[2, 0], fuse_b[0],
                      wm_b[0], rain_b3, res_b3]).astype(jnp.float32)

    # zero-pad lin_edge first-layer K dim (17 -> 32) for aligned MXU matmul
    le_w1p = jnp.zeros((ed_pad, hidden), jnp.float32).at[:edge_dim].set(le_w1)

    return dict(
        le_w1=le_w1p, le_b1=le_b1.reshape(1, hidden),
        le_w2=le_w2, le_b2=le_b2.reshape(1, hidden),
        gru_w=gru_w, gru_b=gru_b.reshape(1, hidden),
        wm_w=wm_w,
        rain_w1=rW1, rain_b1=rB1, rain_w2=rW2, rain_b2=rB2, rain_w3=rW3,
        res_w1=sW1, res_b1=sB1, res_w2=sW2, res_b2=sB2, res_w3=sW3,
        misc=misc,
        hidden=hidden, edge_dim=edge_dim, ed_pad=ed_pad)


def gat_with_edge_attr_rain_batched(params, nodes, edge_index, edge_attr,
                                    valid, r, fx=None, loc=None):
    """Batched (B graphs per pallas_call) forward. fx/loc unused (as in torch).

    Shapes: nodes (B,N,L,C), edge_index (B,2,E), edge_attr (B,E,17),
            valid (B,1,N,L), r (B,1,N,L).  Returns (out (B,48), rf (B,48))."""
    f32 = jnp.float32
    B, N, L, C = nodes.shape
    E = edge_index.shape[-1]
    hidden = params["hidden"]
    assert L * C == hidden

    x = nodes.reshape(B, N, hidden).astype(f32)
    v = valid.reshape(B, N, hidden).astype(f32)
    rr = r.reshape(B, N, hidden).astype(f32)
    src = edge_index[:, 0, :].astype(jnp.int32)
    dst = edge_index[:, 1, :].astype(jnp.int32)
    src_col = src.reshape(B, E, 1)
    src_row = src.reshape(B, 1, E)
    dst_row = dst.reshape(B, 1, E)
    ea = jnp.zeros((B, E, params["ed_pad"]), f32)
    ea = ea.at[:, :, :params["edge_dim"]].set(edge_attr.astype(f32))

    def batched(arr):
        nd = arr.ndim
        return pl.BlockSpec((None,) + arr.shape[1:],
                            lambda b, nd=nd: (b,) + (0,) * (nd - 1))

    def shared(arr):
        nd = arr.ndim
        return pl.BlockSpec(arr.shape, lambda b, nd=nd: (0,) * nd)

    smem = pl.BlockSpec(memory_space=pltpu.MemorySpace.SMEM)

    weight_args = (params["le_w1"], params["le_b1"], params["le_w2"],
                   params["le_b2"], params["gru_w"], params["gru_b"],
                   params["wm_w"],
                   params["rain_w1"], params["rain_b1"], params["rain_w2"],
                   params["rain_b2"], params["rain_w3"],
                   params["res_w1"], params["res_b1"], params["res_w2"],
                   params["res_b2"], params["res_w3"])

    batched_args = (src_col, src_row, dst_row, x, v, ea, rr)

    in_specs = ([batched(a) for a in batched_args]
                + [shared(w) for w in weight_args]
                + [smem])

    out_specs = (pl.BlockSpec((None, 1, hidden), lambda b: (b, 0, 0)),
                 pl.BlockSpec((None, 1, hidden), lambda b: (b, 0, 0)))

    out_nodes, rf = pl.pallas_call(
        _gat_rain_kernel,
        grid=(B,),
        out_shape=(jax.ShapeDtypeStruct((B, 1, hidden), f32),
                   jax.ShapeDtypeStruct((B, 1, hidden), f32)),
        in_specs=in_specs,
        out_specs=out_specs,
        compiler_params=pltpu.CompilerParams(
            dimension_semantics=("parallel",)),
    )(*batched_args, *weight_args, params["misc"])

    return out_nodes.reshape(B, hidden), rf.reshape(B, hidden)


def gat_with_edge_attr_rain(params, nodes, edge_index, edge_attr, valid, r,
                            fx=None, loc=None):
    """Single-graph forward matching GATWithEdgeAttrRain.forward semantics."""
    out, rf = gat_with_edge_attr_rain_batched(
        params, nodes[None], edge_index[None], edge_attr[None], valid[None],
        r[None], fx, loc)
    # torch: (nodes[0].unsqueeze(0).squeeze(-1), rf[:1]) -> both (1, 48)
    return out[0:1], rf[0:1]


if __name__ == "__main__":
    key = jax.random.PRNGKey(0)
    kp, kn, ke, kea, kv, kr = jax.random.split(key, 6)

    B, N, L, C, E, EDGE_DIM = 2, 16, 48, 1, 64, 17

    params = init_params(kp)
    nodes = jax.random.normal(kn, (B, N, L, C), jnp.float32)
    edge_index = jax.random.randint(ke, (B, 2, E), 0, N, jnp.int32)
    edge_attr = jax.random.normal(kea, (B, E, EDGE_DIM), jnp.float32)
    valid = (jax.random.uniform(kv, (B, 1, N, L)) > 0.3).astype(jnp.float32)
    r = jax.random.normal(kr, (B, 1, N, L), jnp.float32)
    fx = jnp.zeros((1,), jnp.float32)   # unused by forward
    loc = jnp.zeros((1,), jnp.float32)  # unused by forward

    # batched call: grid=(B,), batch axis "parallel" (2 TCs on v7x)
    out_b, rf_b = gat_with_edge_attr_rain_batched(params, nodes, edge_index,
                                                  edge_attr, valid, r, fx, loc)
    jax.block_until_ready((out_b, rf_b))
    assert out_b.shape == (B, L) and rf_b.shape == (B, L)

    # single-graph call with the original torch-forward signature
    out, rf = gat_with_edge_attr_rain(params, nodes[0], edge_index[0],
                                      edge_attr[0], valid[0], r[0], fx, loc)
    jax.block_until_ready((out, rf))
    assert out.shape == (1, L) and rf.shape == (1, L)
    print("KERNEL_OK")
</pallas_src>

<mosaic_0001>
module attributes {stable_mosaic.version = 11 : i64} {
  func.func @_gat_rain_kernel(%arg0: i32, %arg1: memref<1x64x1xi32, #tpu.memory_space<vmem>>, %arg2: memref<1x1x64xi32, #tpu.memory_space<vmem>>, %arg3: memref<1x1x64xi32, #tpu.memory_space<vmem>>, %arg4: memref<1x16x48xf32, #tpu.memory_space<vmem>>, %arg5: memref<1x16x48xf32, #tpu.memory_space<vmem>>, %arg6: memref<1x64x32xf32, #tpu.memory_space<vmem>>, %arg7: memref<1x16x48xf32, #tpu.memory_space<vmem>>, %arg8: memref<32x48xf32, #tpu.memory_space<vmem>>, %arg9: memref<1x48xf32, #tpu.memory_space<vmem>>, %arg10: memref<48x48xf32, #tpu.memory_space<vmem>>, %arg11: memref<1x48xf32, #tpu.memory_space<vmem>>, %arg12: memref<48x48xf32, #tpu.memory_space<vmem>>, %arg13: memref<1x48xf32, #tpu.memory_space<vmem>>, %arg14: memref<48x1xf32, #tpu.memory_space<vmem>>, %arg15: memref<48x384xf32, #tpu.memory_space<vmem>>, %arg16: memref<1x384xf32, #tpu.memory_space<vmem>>, %arg17: memref<384x384xf32, #tpu.memory_space<vmem>>, %arg18: memref<1x384xf32, #tpu.memory_space<vmem>>, %arg19: memref<384x48xf32, #tpu.memory_space<vmem>>, %arg20: memref<48x384xf32, #tpu.memory_space<vmem>>, %arg21: memref<1x384xf32, #tpu.memory_space<vmem>>, %arg22: memref<384x384xf32, #tpu.memory_space<vmem>>, %arg23: memref<1x384xf32, #tpu.memory_space<vmem>>, %arg24: memref<384x48xf32, #tpu.memory_space<vmem>>, %arg25: memref<7xf32, #tpu.memory_space<smem>>, %arg26: memref<1x1x48xf32, #tpu.memory_space<vmem>>, %arg27: memref<1x1x48xf32, #tpu.memory_space<vmem>>) attributes {dimension_semantics = [#tpu.dimension_semantics<parallel>], iteration_bounds = array<i64: 2>, scalar_prefetch = 0 : i64, scratch_operands = 0 : i64, tpu.core_type = #tpu.core_type<tc>, window_params = [{transform_indices = @transform_0, window_bounds = array<i64: 1, 64, 1>}, {transform_indices = @transform_1, window_bounds = array<i64: 1, 1, 64>}, {transform_indices = @transform_2, window_bounds = array<i64: 1, 1, 64>}, {transform_indices = @transform_3, window_bounds = array<i64: 1, 16, 48>}, {transform_indices = @transform_4, window_bounds = array<i64: 1, 16, 48>}, {transform_indices = @transform_5, window_bounds = array<i64: 1, 64, 32>}, {transform_indices = @transform_6, window_bounds = array<i64: 1, 16, 48>}, {pipeline_mode = #tpu.pipeline_mode<synchronous>, transform_indices = @transform_7, window_bounds = array<i64: 32, 48>}, {pipeline_mode = #tpu.pipeline_mode<synchronous>, transform_indices = @transform_8, window_bounds = array<i64: 1, 48>}, {pipeline_mode = #tpu.pipeline_mode<synchronous>, transform_indices = @transform_9, window_bounds = array<i64: 48, 48>}, {pipeline_mode = #tpu.pipeline_mode<synchronous>, transform_indices = @transform_10, window_bounds = array<i64: 1, 48>}, {pipeline_mode = #tpu.pipeline_mode<synchronous>, transform_indices = @transform_11, window_bounds = array<i64: 48, 48>}, {pipeline_mode = #tpu.pipeline_mode<synchronous>, transform_indices = @transform_12, window_bounds = array<i64: 1, 48>}, {pipeline_mode = #tpu.pipeline_mode<synchronous>, transform_indices = @transform_13, window_bounds = array<i64: 48, 1>}, {pipeline_mode = #tpu.pipeline_mode<synchronous>, transform_indices = @transform_14, window_bounds = array<i64: 48, 384>}, {pipeline_mode = #tpu.pipeline_mode<synchronous>, transform_indices = @transform_15, window_bounds = array<i64: 1, 384>}, {pipeline_mode = #tpu.pipeline_mode<synchronous>, transform_indices = @transform_16, window_bounds = array<i64: 384, 384>}, {pipeline_mode = #tpu.pipeline_mode<synchronous>, transform_indices = @transform_17, window_bounds = array<i64: 1, 384>}, {pipeline_mode = #tpu.pipeline_mode<synchronous>, transform_indices = @transform_18, window_bounds = array<i64: 384, 48>}, {pipeline_mode = #tpu.pipeline_mode<synchronous>, transform_indices = @transform_19, window_bounds = array<i64: 48, 384>}, {pipeline_mode = #tpu.pipeline_mode<synchronous>, transform_indices = @transform_20, window_bounds = array<i64: 1, 384>}, {pipeline_mode = #tpu.pipeline_mode<synchronous>, transform_indices = @transform_21, window_bounds = array<i64: 384, 384>}, {pipeline_mode = #tpu.pipeline_mode<synchronous>, transform_indices = @transform_22, window_bounds = array<i64: 1, 384>}, {pipeline_mode = #tpu.pipeline_mode<synchronous>, transform_indices = @transform_23, window_bounds = array<i64: 384, 48>}, {transform_indices = @transform_24, window_bounds = array<i64: 7>}, {transform_indices = @transform_25, window_bounds = array<i64: 1, 1, 48>}, {transform_indices = @transform_26, window_bounds = array<i64: 1, 1, 48>}]} {
    %c0 = arith.constant 0 : index
    %0 = memref.load %arg25[%c0] : memref<7xf32, #tpu.memory_space<smem>>
    %c1 = arith.constant 1 : index
    %1 = memref.load %arg25[%c1] : memref<7xf32, #tpu.memory_space<smem>>
    %c2 = arith.constant 2 : index
    %2 = memref.load %arg25[%c2] : memref<7xf32, #tpu.memory_space<smem>>
    %c3 = arith.constant 3 : index
    %3 = memref.load %arg25[%c3] : memref<7xf32, #tpu.memory_space<smem>>
    %c4 = arith.constant 4 : index
    %4 = memref.load %arg25[%c4] : memref<7xf32, #tpu.memory_space<smem>>
    %c5 = arith.constant 5 : index
    %5 = memref.load %arg25[%c5] : memref<7xf32, #tpu.memory_space<smem>>
    %c6 = arith.constant 6 : index
    %6 = memref.load %arg25[%c6] : memref<7xf32, #tpu.memory_space<smem>>
    %c0_0 = arith.constant 0 : index
    %c0_1 = arith.constant 0 : index
    %c0_2 = arith.constant 0 : index
    %7 = vector.load %arg5[%c0_0, %c0_1, %c0_2] : memref<1x16x48xf32, #tpu.memory_space<vmem>>, vector<1x16x48xf32>
    %8 = vector.shape_cast %7 : vector<1x16x48xf32> to vector<16x48xf32>
    %cst = arith.constant 1.000000e+00 : f32
    %9 = vector.broadcast %cst : f32 to vector<16x48xf32>
    %10 = arith.subf %9, %8 : vector<16x48xf32>
    %c0_3 = arith.constant 0 : index
    %c0_4 = arith.constant 0 : index
    %c0_5 = arith.constant 0 : index
    %11 = vector.load %arg4[%c0_3, %c0_4, %c0_5] : memref<1x16x48xf32, #tpu.memory_space<vmem>>, vector<1x16x48xf32>
    %12 = vector.shape_cast %11 : vector<1x16x48xf32> to vector<16x48xf32>
    %13 = arith.mulf %12, %8 : vector<16x48xf32>
    %c0_6 = arith.constant 0 : index
    %c0_7 = arith.constant 0 : index
    %c0_8 = arith.constant 0 : index
    %14 = vector.load %arg7[%c0_6, %c0_7, %c0_8] : memref<1x16x48xf32, #tpu.memory_space<vmem>>, vector<1x16x48xf32>
    %15 = vector.shape_cast %14 : vector<1x16x48xf32> to vector<16x48xf32>
    %c0_9 = arith.constant 0 : index
    %c0_10 = arith.constant 0 : index
    %16 = vector.load %arg15[%c0_9, %c0_10] : memref<48x384xf32, #tpu.memory_space<vmem>>, vector<48x384xf32>
    %cst_11 = arith.constant dense<0.000000e+00> : vector<16x384xf32>
    %17 = tpu.matmul %15, %16, %cst_11 {dimension_numbers = #tpu.dot_dimension_numbers<[1], [0], [0], [1], [0, 0, 1, 1], [], []>} : vector<16x48xf32>, vector<48x384xf32>, vector<16x384xf32> -> vector<16x384xf32>
    %c0_12 = arith.constant 0 : index
    %c0_13 = arith.constant 0 : index
    %18 = vector.load %arg16[%c0_12, %c0_13] : memref<1x384xf32, #tpu.memory_space<vmem>>, vector<1x384xf32>
    %19 = vector.broadcast %18 : vector<1x384xf32> to vector<16x384xf32>
    %20 = arith.addf %17, %19 : vector<16x384xf32>
    %cst_14 = arith.constant 5.000000e-01 : f32
    %21 = vector.broadcast %cst_14 : f32 to vector<16x384xf32>
    %22 = arith.mulf %21, %20 : vector<16x384xf32>
    %cst_15 = arith.constant 0.707106769 : f32
    %23 = vector.broadcast %cst_15 : f32 to vector<16x384xf32>
    %24 = arith.mulf %20, %23 : vector<16x384xf32>
    %25 = math.absf %24 : vector<16x384xf32>
    %cst_16 = arith.constant 0.327591091 : f32
    %26 = vector.broadcast %cst_16 : f32 to vector<16x384xf32>
    %27 = arith.mulf %26, %25 : vector<16x384xf32>
    %cst_17 = arith.constant 1.000000e+00 : f32
    %28 = vector.broadcast %cst_17 : f32 to vector<16x384xf32>
    %29 = arith.addf %28, %27 : vector<16x384xf32>
    %cst_18 = arith.constant 1.000000e+00 : f32
    %30 = vector.broadcast %cst_18 : f32 to vector<16x384xf32>
    %31 = arith.divf %30, %29 : vector<16x384xf32>
    %cst_19 = arith.constant 1.06140542 : f32
    %32 = vector.broadcast %cst_19 : f32 to vector<16x384xf32>
    %33 = arith.mulf %32, %31 : vector<16x384xf32>
    %cst_20 = arith.constant -1.45315206 : f32
    %34 = vector.broadcast %cst_20 : f32 to vector<16x384xf32>
    %35 = arith.addf %33, %34 : vector<16x384xf32>
    %36 = arith.mulf %35, %31 : vector<16x384xf32>
    %cst_21 = arith.constant 1.42141378 : f32
    %37 = vector.broadcast %cst_21 : f32 to vector<16x384xf32>
    %38 = arith.addf %36, %37 : vector<16x384xf32>
    %39 = arith.mulf %38, %31 : vector<16x384xf32>
    %cst_22 = arith.constant -0.284496725 : f32
    %40 = vector.broadcast %cst_22 : f32 to vector<16x384xf32>
    %41 = arith.addf %39, %40 : vector<16x384xf32>
    %42 = arith.mulf %41, %31 : vector<16x384xf32>
    %cst_23 = arith.constant 0.254829586 : f32
    %43 = vector.broadcast %cst_23 : f32 to vector<16x384xf32>
    %44 = arith.addf %42, %43 : vector<16x384xf32>
    %45 = arith.mulf %44, %31 : vector<16x384xf32>
    %cst_24 = arith.constant 0.000000e+00 : f32
    %46 = vector.broadcast %cst_24 : f32 to vector<16x384xf32>
    %47 = arith.subf %46, %25 : vector<16x384xf32>
    %48 = arith.mulf %47, %25 : vector<16x384xf32>
    %49 = math.exp %48 : vector<16x384xf32>
    %50 = arith.mulf %45, %49 : vector<16x384xf32>
    %cst_25 = arith.constant 1.000000e+00 : f32
    %51 = vector.broadcast %cst_25 : f32 to vector<16x384xf32>
    %52 = arith.subf %51, %50 : vector<16x384xf32>
    %cst_26 = arith.constant 0.000000e+00 : f32
    %53 = vector.broadcast %cst_26 : f32 to vector<16x384xf32>
    %54 = arith.cmpf oge, %24, %53 : vector<16x384xf32>
    %cst_27 = arith.constant 0.000000e+00 : f32
    %55 = vector.broadcast %cst_27 : f32 to vector<16x384xf32>
    %56 = arith.subf %55, %52 : vector<16x384xf32>
    %57 = arith.select %54, %52, %56 : vector<16x384xi1>, vector<16x384xf32>
    %cst_28 = arith.constant 1.000000e+00 : f32
    %58 = vector.broadcast %cst_28 : f32 to vector<16x384xf32>
    %59 = arith.addf %58, %57 : vector<16x384xf32>
    %60 = arith.mulf %22, %59 : vector<16x384xf32>
    %c0_29 = arith.constant 0 : index
    %c0_30 = arith.constant 0 : index
    %61 = vector.load %arg17[%c0_29, %c0_30] : memref<384x384xf32, #tpu.memory_space<vmem>>, vector<384x384xf32>
    %cst_31 = arith.constant dense<0.000000e+00> : vector<16x384xf32>
    %62 = tpu.matmul %60, %61, %cst_31 {dimension_numbers = #tpu.dot_dimension_numbers<[1], [0], [0], [1], [0, 0, 1, 1], [], []>} : vector<16x384xf32>, vector<384x384xf32>, vector<16x384xf32> -> vector<16x384xf32>
    %c0_32 = arith.constant 0 : index
    %c0_33 = arith.constant 0 : index
    %63 = vector.load %arg18[%c0_32, %c0_33] : memref<1x384xf32, #tpu.memory_space<vmem>>, vector<1x384xf32>
    %64 = vector.broadcast %63 : vector<1x384xf32> to vector<16x384xf32>
    %65 = arith.addf %62, %64 : vector<16x384xf32>
    %cst_34 = arith.constant 5.000000e-01 : f32
    %66 = vector.broadcast %cst_34 : f32 to vector<16x384xf32>
    %67 = arith.mulf %66, %65 : vector<16x384xf32>
    %cst_35 = arith.constant 0.707106769 : f32
    %68 = vector.broadcast %cst_35 : f32 to vector<16x384xf32>
    %69 = arith.mulf %65, %68 : vector<16x384xf32>
    %70 = math.absf %69 : vector<16x384xf32>
    %cst_36 = arith.constant 0.327591091 : f32
    %71 = vector.broadcast %cst_36 : f32 to vector<16x384xf32>
    %72 = arith.mulf %71, %70 : vector<16x384xf32>
    %cst_37 = arith.constant 1.000000e+00 : f32
    %73 = vector.broadcast %cst_37 : f32 to vector<16x384xf32>
    %74 = arith.addf %73, %72 : vector<16x384xf32>
    %cst_38 = arith.constant 1.000000e+00 : f32
    %75 = vector.broadcast %cst_38 : f32 to vector<16x384xf32>
    %76 = arith.divf %75, %74 : vector<16x384xf32>
    %cst_39 = arith.constant 1.06140542 : f32
    %77 = vector.broadcast %cst_39 : f32 to vector<16x384xf32>
    %78 = arith.mulf %77, %76 : vector<16x384xf32>
    %cst_40 = arith.constant -1.45315206 : f32
    %79 = vector.broadcast %cst_40 : f32 to vector<16x384xf32>
    %80 = arith.addf %78, %79 : vector<16x384xf32>
    %81 = arith.mulf %80, %76 : vector<16x384xf32>
    %cst_41 = arith.constant 1.42141378 : f32
    %82 = vector.broadcast %cst_41 : f32 to vector<16x384xf32>
    %83 = arith.addf %81, %82 : vector<16x384xf32>
    %84 = arith.mulf %83, %76 : vector<16x384xf32>
    %cst_42 = arith.constant -0.284496725 : f32
    %85 = vector.broadcast %cst_42 : f32 to vector<16x384xf32>
    %86 = arith.addf %84, %85 : vector<16x384xf32>
    %87 = arith.mulf %86, %76 : vector<16x384xf32>
    %cst_43 = arith.constant 0.254829586 : f32
    %88 = vector.broadcast %cst_43 : f32 to vector<16x384xf32>
    %89 = arith.addf %87, %88 : vector<16x384xf32>
    %90 = arith.mulf %89, %76 : vector<16x384xf32>
    %cst_44 = arith.constant 0.000000e+00 : f32
    %91 = vector.broadcast %cst_44 : f32 to vector<16x384xf32>
    %92 = arith.subf %91, %70 : vector<16x384xf32>
    %93 = arith.mulf %92, %70 : vector<16x384xf32>
    %94 = math.exp %93 : vector<16x384xf32>
    %95 = arith.mulf %90, %94 : vector<16x384xf32>
    %cst_45 = arith.constant 1.000000e+00 : f32
    %96 = vector.broadcast %cst_45 : f32 to vector<16x384xf32>
    %97 = arith.subf %96, %95 : vector<16x384xf32>
    %cst_46 = arith.constant 0.000000e+00 : f32
    %98 = vector.broadcast %cst_46 : f32 to vector<16x384xf32>
    %99 = arith.cmpf oge, %69, %98 : vector<16x384xf32>
    %cst_47 = arith.constant 0.000000e+00 : f32
    %100 = vector.broadcast %cst_47 : f32 to vector<16x384xf32>
    %101 = arith.subf %100, %97 : vector<16x384xf32>
    %102 = arith.select %99, %97, %101 : vector<16x384xi1>, vector<16x384xf32>
    %cst_48 = arith.constant 1.000000e+00 : f32
    %103 = vector.broadcast %cst_48 : f32 to vector<16x384xf32>
    %104 = arith.addf %103, %102 : vector<16x384xf32>
    %105 = arith.mulf %67, %104 : vector<16x384xf32>
    %c0_49 = arith.constant 0 : index
    %c0_50 = arith.constant 0 : index
    %106 = vector.load %arg19[%c0_49, %c0_50] : memref<384x48xf32, #tpu.memory_space<vmem>>, vector<384x48xf32>
    %cst_51 = arith.constant dense<0.000000e+00> : vector<16x48xf32>
    %107 = tpu.matmul %105, %106, %cst_51 {dimension_numbers = #tpu.dot_dimension_numbers<[1], [0], [0], [1], [0, 0, 1, 1], [], []>} : vector<16x384xf32>, vector<384x48xf32>, vector<16x48xf32> -> vector<16x48xf32>
    %108 = vector.broadcast %5 : f32 to vector<16x48xf32>
    %109 = arith.addf %107, %108 : vector<16x48xf32>
    %110 = vector.extract_strided_slice %109 {offsets = [0, 0], sizes = [1, 48], strides = [1, 1]} : vector<16x48xf32> to vector<1x48xf32>
    %c0_52 = arith.constant 0 : index
    %c0_53 = arith.constant 0 : index
    %c0_54 = arith.constant 0 : index
    %111 = vector.load %arg27[%c0_52, %c0_53, %c0_54] : memref<1x1x48xf32, #tpu.memory_space<vmem>>, vector<1x1x48xf32>
    %112 = vector.shape_cast %111 : vector<1x1x48xf32> to vector<1x48xf32>
    %113 = vector.shape_cast %110 : vector<1x48xf32> to vector<1x1x48xf32>
    tpu.vector_store %arg27[%c0_52, %c0_53, %c0_54], %113 {strides = array<i32>} : memref<1x1x48xf32, #tpu.memory_space<vmem>>, vector<1x1x48xf32>,
    %114 = arith.subf %13, %109 : vector<16x48xf32>
    %115 = tpu.iota {dimensions = array<i32: 1>} : vector<16x48xi32>
    %c0_i32 = arith.constant 0 : i32
    %116 = vector.broadcast %c0_i32 : i32 to vector<16x48xi32>
    %117 = arith.cmpi eq, %115, %116 : vector<16x48xi32>
    %cst_55 = arith.constant 0.000000e+00 : f32
    %118 = vector.broadcast %cst_55 : f32 to vector<16x48xf32>
    %119 = arith.select %117, %118, %114 : vector<16x48xi1>, vector<16x48xf32>
    %c0_56 = arith.constant 0 : index
    %c0_57 = arith.constant 0 : index
    %c0_58 = arith.constant 0 : index
    %120 = vector.load %arg6[%c0_56, %c0_57, %c0_58] : memref<1x64x32xf32, #tpu.memory_space<vmem>>, vector<1x64x32xf32>
    %121 = vector.shape_cast %120 : vector<1x64x32xf32> to vector<64x32xf32>
    %c0_59 = arith.constant 0 : index
    %c0_60 = arith.constant 0 : index
    %122 = vector.load %arg8[%c0_59, %c0_60] : memref<32x48xf32, #tpu.memory_space<vmem>>, vector<32x48xf32>
    %cst_61 = arith.constant dense<0.000000e+00> : vector<64x48xf32>
    %123 = tpu.matmul %121, %122, %cst_61 {dimension_numbers = #tpu.dot_dimension_numbers<[1], [0], [0], [1], [0, 0, 1, 1], [], []>} : vector<64x32xf32>, vector<32x48xf32>, vector<64x48xf32> -> vector<64x48xf32>
    %c0_62 = arith.constant 0 : index
    %c0_63 = arith.constant 0 : index
    %124 = vector.load %arg9[%c0_62, %c0_63] : memref<1x48xf32, #tpu.memory_space<vmem>>, vector<1x48xf32>
    %125 = vector.broadcast %124 : vector<1x48xf32> to vector<64x48xf32>
    %126 = arith.addf %123, %125 : vector<64x48xf32>
    %cst_64 = arith.constant 5.000000e-01 : f32
    %127 = vector.broadcast %cst_64 : f32 to vector<64x48xf32>
    %128 = arith.mulf %127, %126 : vector<64x48xf32>
    %cst_65 = arith.constant 0.707106769 : f32
    %129 = vector.broadcast %cst_65 : f32 to vector<64x48xf32>
    %130 = arith.mulf %126, %129 : vector<64x48xf32>
    %131 = math.absf %130 : vector<64x48xf32>
    %cst_66 = arith.constant 0.327591091 : f32
    %132 = vector.broadcast %cst_66 : f32 to vector<64x48xf32>
    %133 = arith.mulf %132, %131 : vector<64x48xf32>
    %cst_67 = arith.constant 1.000000e+00 : f32
    %134 = vector.broadcast %cst_67 : f32 to vector<64x48xf32>
    %135 = arith.addf %134, %133 : vector<64x48xf32>
    %cst_68 = arith.constant 1.000000e+00 : f32
    %136 = vector.broadcast %cst_68 : f32 to vector<64x48xf32>
    %137 = arith.divf %136, %135 : vector<64x48xf32>
    %cst_69 = arith.constant 1.06140542 : f32
    %138 = vector.broadcast %cst_69 : f32 to vector<64x48xf32>
    %139 = arith.mulf %138, %137 : vector<64x48xf32>
    %cst_70 = arith.constant -1.45315206 : f32
    %140 = vector.broadcast %cst_70 : f32 to vector<64x48xf32>
    %141 = arith.addf %139, %140 : vector<64x48xf32>
    %142 = arith.mulf %141, %137 : vector<64x48xf32>
    %cst_71 = arith.constant 1.42141378 : f32
    %143 = vector.broadcast %cst_71 : f32 to vector<64x48xf32>
    %144 = arith.addf %142, %143 : vector<64x48xf32>
    %145 = arith.mulf %144, %137 : vector<64x48xf32>
    %cst_72 = arith.constant -0.284496725 : f32
    %146 = vector.broadcast %cst_72 : f32 to vector<64x48xf32>
    %147 = arith.addf %145, %146 : vector<64x48xf32>
    %148 = arith.mulf %147, %137 : vector<64x48xf32>
    %cst_73 = arith.constant 0.254829586 : f32
    %149 = vector.broadcast %cst_73 : f32 to vector<64x48xf32>
    %150 = arith.addf %148, %149 : vector<64x48xf32>
    %151 = arith.mulf %150, %137 : vector<64x48xf32>
    %cst_74 = arith.constant 0.000000e+00 : f32
    %152 = vector.broadcast %cst_74 : f32 to vector<64x48xf32>
    %153 = arith.subf %152, %131 : vector<64x48xf32>
    %154 = arith.mulf %153, %131 : vector<64x48xf32>
    %155 = math.exp %154 : vector<64x48xf32>
    %156 = arith.mulf %151, %155 : vector<64x48xf32>
    %cst_75 = arith.constant 1.000000e+00 : f32
    %157 = vector.broadcast %cst_75 : f32 to vector<64x48xf32>
    %158 = arith.subf %157, %156 : vector<64x48xf32>
    %cst_76 = arith.constant 0.000000e+00 : f32
    %159 = vector.broadcast %cst_76 : f32 to vector<64x48xf32>
    %160 = arith.cmpf oge, %130, %159 : vector<64x48xf32>
    %cst_77 = arith.constant 0.000000e+00 : f32
    %161 = vector.broadcast %cst_77 : f32 to vector<64x48xf32>
    %162 = arith.subf %161, %158 : vector<64x48xf32>
    %163 = arith.select %160, %158, %162 : vector<64x48xi1>, vector<64x48xf32>
    %cst_78 = arith.constant 1.000000e+00 : f32
    %164 = vector.broadcast %cst_78 : f32 to vector<64x48xf32>
    %165 = arith.addf %164, %163 : vector<64x48xf32>
    %166 = arith.mulf %128, %165 : vector<64x48xf32>
    %c0_79 = arith.constant 0 : index
    %c0_80 = arith.constant 0 : index
    %167 = vector.load %arg10[%c0_79, %c0_80] : memref<48x48xf32, #tpu.memory_space<vmem>>, vector<48x48xf32>
    %cst_81 = arith.constant dense<0.000000e+00> : vector<64x48xf32>
    %168 = tpu.matmul %166, %167, %cst_81 {dimension_numbers = #tpu.dot_dimension_numbers<[1], [0], [0], [1], [0, 0, 1, 1], [], []>} : vector<64x48xf32>, vector<48x48xf32>, vector<64x48xf32> -> vector<64x48xf32>
    %c0_82 = arith.constant 0 : index
    %c0_83 = arith.constant 0 : index
    %169 = vector.load %arg11[%c0_82, %c0_83] : memref<1x48xf32, #tpu.memory_space<vmem>>, vector<1x48xf32>
    %170 = vector.broadcast %169 : vector<1x48xf32> to vector<64x48xf32>
    %171 = arith.addf %168, %170 : vector<64x48xf32>
    %cst_84 = arith.constant 0.000000e+00 : f32
    %172 = vector.broadcast %cst_84 : f32 to vector<64x48xf32>
    %173 = arith.maximumf %171, %172 : vector<64x48xf32>
    %c0_85 = arith.constant 0 : index
    %c0_86 = arith.constant 0 : index
    %174 = vector.load %arg12[%c0_85, %c0_86] : memref<48x48xf32, #tpu.memory_space<vmem>>, vector<48x48xf32>
    %cst_87 = arith.constant dense<0.000000e+00> : vector<64x48xf32>
    %175 = tpu.matmul %173, %174, %cst_87 {dimension_numbers = #tpu.dot_dimension_numbers<[1], [0], [0], [1], [0, 0, 1, 1], [], []>} : vector<64x48xf32>, vector<48x48xf32>, vector<64x48xf32> -> vector<64x48xf32>
    %c0_88 = arith.constant 0 : index
    %c0_89 = arith.constant 0 : index
    %176 = vector.load %arg13[%c0_88, %c0_89] : memref<1x48xf32, #tpu.memory_space<vmem>>, vector<1x48xf32>
    %177 = vector.broadcast %176 : vector<1x48xf32> to vector<64x48xf32>
    %178 = arith.addf %175, %177 : vector<64x48xf32>
    %cst_90 = arith.constant 5.000000e-01 : f32
    %179 = vector.broadcast %cst_90 : f32 to vector<64x48xf32>
    %180 = arith.mulf %179, %178 : vector<64x48xf32>
    %cst_91 = arith.constant 0.707106769 : f32
    %181 = vector.broadcast %cst_91 : f32 to vector<64x48xf32>
    %182 = arith.mulf %178, %181 : vector<64x48xf32>
    %183 = math.absf %182 : vector<64x48xf32>
    %cst_92 = arith.constant 0.327591091 : f32
    %184 = vector.broadcast %cst_92 : f32 to vector<64x48xf32>
    %185 = arith.mulf %184, %183 : vector<64x48xf32>
    %cst_93 = arith.constant 1.000000e+00 : f32
    %186 = vector.broadcast %cst_93 : f32 to vector<64x48xf32>
    %187 = arith.addf %186, %185 : vector<64x48xf32>
    %cst_94 = arith.constant 1.000000e+00 : f32
    %188 = vector.broadcast %cst_94 : f32 to vector<64x48xf32>
    %189 = arith.divf %188, %187 : vector<64x48xf32>
    %cst_95 = arith.constant 1.06140542 : f32
    %190 = vector.broadcast %cst_95 : f32 to vector<64x48xf32>
    %191 = arith.mulf %190, %189 : vector<64x48xf32>
    %cst_96 = arith.constant -1.45315206 : f32
    %192 = vector.broadcast %cst_96 : f32 to vector<64x48xf32>
    %193 = arith.addf %191, %192 : vector<64x48xf32>
    %194 = arith.mulf %193, %189 : vector<64x48xf32>
    %cst_97 = arith.constant 1.42141378 : f32
    %195 = vector.broadcast %cst_97 : f32 to vector<64x48xf32>
    %196 = arith.addf %194, %195 : vector<64x48xf32>
    %197 = arith.mulf %196, %189 : vector<64x48xf32>
    %cst_98 = arith.constant -0.284496725 : f32
    %198 = vector.broadcast %cst_98 : f32 to vector<64x48xf32>
    %199 = arith.addf %197, %198 : vector<64x48xf32>
    %200 = arith.mulf %199, %189 : vector<64x48xf32>
    %cst_99 = arith.constant 0.254829586 : f32
    %201 = vector.broadcast %cst_99 : f32 to vector<64x48xf32>
    %202 = arith.addf %200, %201 : vector<64x48xf32>
    %203 = arith.mulf %202, %189 : vector<64x48xf32>
    %cst_100 = arith.constant 0.000000e+00 : f32
    %204 = vector.broadcast %cst_100 : f32 to vector<64x48xf32>
    %205 = arith.subf %204, %183 : vector<64x48xf32>
    %206 = arith.mulf %205, %183 : vector<64x48xf32>
    %207 = math.exp %206 : vector<64x48xf32>
    %208 = arith.mulf %203, %207 : vector<64x48xf32>
    %cst_101 = arith.constant 1.000000e+00 : f32
    %209 = vector.broadcast %cst_101 : f32 to vector<64x48xf32>
    %210 = arith.subf %209, %208 : vector<64x48xf32>
    %cst_102 = arith.constant 0.000000e+00 : f32
    %211 = vector.broadcast %cst_102 : f32 to vector<64x48xf32>
    %212 = arith.cmpf oge, %182, %211 : vector<64x48xf32>
    %cst_103 = arith.constant 0.000000e+00 : f32
    %213 = vector.broadcast %cst_103 : f32 to vector<64x48xf32>
    %214 = arith.subf %213, %210 : vector<64x48xf32>
    %215 = arith.select %212, %210, %214 : vector<64x48xi1>, vector<64x48xf32>
    %cst_104 = arith.constant 1.000000e+00 : f32
    %216 = vector.broadcast %cst_104 : f32 to vector<64x48xf32>
    %217 = arith.addf %216, %215 : vector<64x48xf32>
    %218 = arith.mulf %180, %217 : vector<64x48xf32>
    %c0_105 = arith.constant 0 : index
    %c0_106 = arith.constant 0 : index
    %219 = vector.load %arg14[%c0_105, %c0_106] : memref<48x1xf32, #tpu.memory_space<vmem>>, vector<48x1xf32>
    %cst_107 = arith.constant dense<0.000000e+00> : vector<64x1xf32>
    %220 = tpu.matmul %218, %219, %cst_107 {dimension_numbers = #tpu.dot_dimension_numbers<[1], [0], [0], [1], [0, 0, 1, 1], [], []>} : vector<64x48xf32>, vector<48x1xf32>, vector<64x1xf32> -> vector<64x1xf32>
    %221 = vector.broadcast %4 : f32 to vector<64x1xf32>
    %222 = arith.addf %220, %221 : vector<64x1xf32>
    %223 = tpu.iota {dimensions = array<i32: 0>} : vector<64x64xi32>
    %224 = tpu.iota {dimensions = array<i32: 1>} : vector<64x64xi32>
    %225 = arith.cmpi eq, %223, %224 : vector<64x64xi32>
    %cst_108 = arith.constant 0.000000e+00 : f32
    %226 = vector.shape_cast %222 : vector<64x1xf32> to vector<64x1xf32>
    %227 = vector.broadcast %226 : vector<64x1xf32> to vector<64x64xf32>
    %228 = vector.broadcast %cst_108 : f32 to vector<64x64xf32>
    %229 = arith.select %225, %227, %228 : vector<64x64xi1>, vector<64x64xf32>
    %cst_109 = arith.constant dense<0.000000e+00> : vector<64xf32>
    %230 = vector.multi_reduction <add>, %229, %cst_109 [0] : vector<64x64xf32> to vector<64xf32>
    %231 = vector.shape_cast %230 : vector<64xf32> to vector<1x64xf32>
    %cst_110 = arith.constant 0.020833334 : f32
    %232 = vector.broadcast %cst_110 : f32 to vector<1x64xf32>
    %233 = arith.mulf %231, %232 : vector<1x64xf32>
    %c0_111 = arith.constant 0 : index
    %c0_112 = arith.constant 0 : index
    %c0_113 = arith.constant 0 : index
    %234 = vector.load %arg1[%c0_111, %c0_112, %c0_113] : memref<1x64x1xi32, #tpu.memory_space<vmem>>, vector<1x64x1xi32>
    %235 = vector.shape_cast %234 : vector<1x64x1xi32> to vector<64x1xi32>
    %236 = tpu.iota {dimensions = array<i32: 1>} : vector<64x16xi32>
    %237 = vector.broadcast %235 : vector<64x1xi32> to vector<64x16xi32>
    %238 = arith.cmpi eq, %237, %236 : vector<64x16xi32>
    %239 = arith.extui %238 : vector<64x16xi1> to vector<64x16xi32>
    %240 = arith.sitofp %239 : vector<64x16xi32> to vector<64x16xf32>
    %c0_114 = arith.constant 0 : index
    %c0_115 = arith.constant 0 : index
    %c0_116 = arith.constant 0 : index
    %241 = vector.load %arg2[%c0_114, %c0_115, %c0_116] : memref<1x1x64xi32, #tpu.memory_space<vmem>>, vector<1x1x64xi32>
    %242 = vector.shape_cast %241 : vector<1x1x64xi32> to vector<1x64xi32>
    %243 = tpu.iota {dimensions = array<i32: 0>} : vector<16x64xi32>
    %244 = vector.broadcast %242 : vector<1x64xi32> to vector<16x64xi32>
    %245 = arith.cmpi eq, %244, %243 : vector<16x64xi32>
    %246 = arith.extui %245 : vector<16x64xi1> to vector<16x64xi32>
    %247 = arith.sitofp %246 : vector<16x64xi32> to vector<16x64xf32>
    %c0_117 = arith.constant 0 : index
    %c0_118 = arith.constant 0 : index
    %c0_119 = arith.constant 0 : index
    %248 = vector.load %arg3[%c0_117, %c0_118, %c0_119] : memref<1x1x64xi32, #tpu.memory_space<vmem>>, vector<1x1x64xi32>
    %249 = vector.shape_cast %248 : vector<1x1x64xi32> to vector<1x64xi32>
    %250 = tpu.iota {dimensions = array<i32: 0>} : vector<16x64xi32>
    %251 = vector.broadcast %249 : vector<1x64xi32> to vector<16x64xi32>
    %252 = arith.cmpi eq, %251, %250 : vector<16x64xi32>
    %253 = arith.extui %252 : vector<16x64xi1> to vector<16x64xi32>
    %254 = arith.sitofp %253 : vector<16x64xi32> to vector<16x64xf32>
    %c0_i32_120 = arith.constant 0 : i32
    %cst_121 = arith.constant dense<0.000000e+00> : vector<64x48xf32>
    %255 = tpu.matmul %240, %119, %cst_121 {dimension_numbers = #tpu.dot_dimension_numbers<[1], [0], [0], [1], [0, 0, 1, 1], [], []>} : vector<64x16xf32>, vector<16x48xf32>, vector<64x48xf32> -> vector<64x48xf32>
    %cst_122 = arith.constant dense<0.000000e+00> : vector<16xf32>
    %256 = vector.multi_reduction <add>, %8, %cst_122 [1] : vector<16x48xf32> to vector<16xf32>
    %257 = vector.shape_cast %256 : vector<16xf32> to vector<16x1xf32>
    %258 = vector.broadcast %257 : vector<16x1xf32> to vector<16x64xf32>
    %259 = arith.mulf %247, %258 : vector<16x64xf32>
    %cst_123 = arith.constant dense<0.000000e+00> : vector<64xf32>
    %260 = vector.multi_reduction <add>, %259, %cst_123 [0] : vector<16x64xf32> to vector<64xf32>
    %261 = vector.shape_cast %260 : vector<64xf32> to vector<1x64xf32>
    %262 = arith.mulf %261, %233 : vector<1x64xf32>
    %cst_124 = arith.constant 0.000000e+00 : f32
    %263 = vector.broadcast %cst_124 : f32 to vector<1x64xf32>
    %264 = arith.subf %263, %262 : vector<1x64xf32>
    %265 = math.exp %264 : vector<1x64xf32>
    %cst_125 = arith.constant 1.000000e+00 : f32
    %266 = vector.broadcast %cst_125 : f32 to vector<1x64xf32>
    %267 = arith.addf %266, %265 : vector<1x64xf32>
    %cst_126 = arith.constant 1.000000e+00 : f32
    %268 = vector.broadcast %cst_126 : f32 to vector<1x64xf32>
    %269 = arith.divf %268, %267 : vector<1x64xf32>
    %270 = vector.broadcast %269 : vector<1x64xf32> to vector<16x64xf32>
    %271 = arith.mulf %254, %270 : vector<16x64xf32>
    %cst_127 = arith.constant dense<0.000000e+00> : vector<16x48xf32>
    %272 = tpu.matmul %271, %255, %cst_127 {dimension_numbers = #tpu.dot_dimension_numbers<[1], [0], [0], [1], [0, 0, 1, 1], [], []>} : vector<16x64xf32>, vector<64x48xf32>, vector<16x48xf32> -> vector<16x48xf32>
    %273 = vector.broadcast %0 : f32 to vector<16x48xf32>
    %274 = arith.mulf %273, %272 : vector<16x48xf32>
    %275 = vector.broadcast %1 : f32 to vector<16x48xf32>
    %276 = arith.mulf %275, %119 : vector<16x48xf32>
    %277 = arith.addf %274, %276 : vector<16x48xf32>
    %278 = vector.broadcast %2 : f32 to vector<16x48xf32>
    %279 = arith.mulf %278, %10 : vector<16x48xf32>
    %280 = arith.addf %277, %279 : vector<16x48xf32>
    %281 = vector.broadcast %3 : f32 to vector<16x48xf32>
    %282 = arith.addf %280, %281 : vector<16x48xf32>
    %cst_128 = arith.constant 0.000000e+00 : f32
    %283 = vector.broadcast %cst_128 : f32 to vector<16x48xf32>
    %284 = arith.subf %283, %282 : vector<16x48xf32>
    %285 = math.exp %284 : vector<16x48xf32>
    %cst_129 = arith.constant 1.000000e+00 : f32
    %286 = vector.broadcast %cst_129 : f32 to vector<16x48xf32>
    %287 = arith.addf %286, %285 : vector<16x48xf32>
    %cst_130 = arith.constant 1.000000e+00 : f32
    %288 = vector.broadcast %cst_130 : f32 to vector<16x48xf32>
    %289 = arith.divf %288, %287 : vector<16x48xf32>
    %cst_131 = arith.constant 1.000000e+00 : f32
    %290 = vector.broadcast %cst_131 : f32 to vector<16x48xf32>
    %291 = arith.subf %290, %289 : vector<16x48xf32>
    %292 = arith.mulf %291, %119 : vector<16x48xf32>
    %293 = arith.mulf %10, %289 : vector<16x48xf32>
    %294 = arith.mulf %293, %272 : vector<16x48xf32>
    %295 = arith.addf %292, %294 : vector<16x48xf32>
    %c0_132 = arith.constant 0 : index
    %c0_133 = arith.constant 0 : index
    %296 = vector.load %arg20[%c0_132, %c0_133] : memref<48x384xf32, #tpu.memory_space<vmem>>, vector<48x384xf32>
    %cst_134 = arith.constant dense<0.000000e+00> : vector<16x384xf32>
    %297 = tpu.matmul %295, %296, %cst_134 {dimension_numbers = #tpu.dot_dimension_numbers<[1], [0], [0], [1], [0, 0, 1, 1], [], []>} : vector<16x48xf32>, vector<48x384xf32>, vector<16x384xf32> -> vector<16x384xf32>
    %c0_135 = arith.constant 0 : index
    %c0_136 = arith.constant 0 : index
    %298 = vector.load %arg21[%c0_135, %c0_136] : memref<1x384xf32, #tpu.memory_space<vmem>>, vector<1x384xf32>
    %299 = vector.broadcast %298 : vector<1x384xf32> to vector<16x384xf32>
    %300 = arith.addf %297, %299 : vector<16x384xf32>
    %cst_137 = arith.constant 5.000000e-01 : f32
    %301 = vector.broadcast %cst_137 : f32 to vector<16x384xf32>
    %302 = arith.mulf %301, %300 : vector<16x384xf32>
    %cst_138 = arith.constant 0.707106769 : f32
    %303 = vector.broadcast %cst_138 : f32 to vector<16x384xf32>
    %304 = arith.mulf %300, %303 : vector<16x384xf32>
    %305 = math.absf %304 : vector<16x384xf32>
    %cst_139 = arith.constant 0.327591091 : f32
    %306 = vector.broadcast %cst_139 : f32 to vector<16x384xf32>
    %307 = arith.mulf %306, %305 : vector<16x384xf32>
    %cst_140 = arith.constant 1.000000e+00 : f32
    %308 = vector.broadcast %cst_140 : f32 to vector<16x384xf32>
    %309 = arith.addf %308, %307 : vector<16x384xf32>
    %cst_141 = arith.constant 1.000000e+00 : f32
    %310 = vector.broadcast %cst_141 : f32 to vector<16x384xf32>
    %311 = arith.divf %310, %309 : vector<16x384xf32>
    %cst_142 = arith.constant 1.06140542 : f32
    %312 = vector.broadcast %cst_142 : f32 to vector<16x384xf32>
    %313 = arith.mulf %312, %311 : vector<16x384xf32>
    %cst_143 = arith.constant -1.45315206 : f32
    %314 = vector.broadcast %cst_143 : f32 to vector<16x384xf32>
    %315 = arith.addf %313, %314 : vector<16x384xf32>
    %316 = arith.mulf %315, %311 : vector<16x384xf32>
    %cst_144 = arith.constant 1.42141378 : f32
    %317 = vector.broadcast %cst_144 : f32 to vector<16x384xf32>
    %318 = arith.addf %316, %317 : vector<16x384xf32>
    %319 = arith.mulf %318, %311 : vector<16x384xf32>
    %cst_145 = arith.constant -0.284496725 : f32
    %320 = vector.broadcast %cst_145 : f32 to vector<16x384xf32>
    %321 = arith.addf %319, %320 : vector<16x384xf32>
    %322 = arith.mulf %321, %311 : vector<16x384xf32>
    %cst_146 = arith.constant 0.254829586 : f32
    %323 = vector.broadcast %cst_146 : f32 to vector<16x384xf32>
    %324 = arith.addf %322, %323 : vector<16x384xf32>
    %325 = arith.mulf %324, %311 : vector<16x384xf32>
    %cst_147 = arith.constant 0.000000e+00 : f32
    %326 = vector.broadcast %cst_147 : f32 to vector<16x384xf32>
    %327 = arith.subf %326, %305 : vector<16x384xf32>
    %328 = arith.mulf %327, %305 : vector<16x384xf32>
    %329 = math.exp %328 : vector<16x384xf32>
    %330 = arith.mulf %325, %329 : vector<16x384xf32>
    %cst_148 = arith.constant 1.000000e+00 : f32
    %331 = vector.broadcast %cst_148 : f32 to vector<16x384xf32>
    %332 = arith.subf %331, %330 : vector<16x384xf32>
    %cst_149 = arith.constant 0.000000e+00 : f32
    %333 = vector.broadcast %cst_149 : f32 to vector<16x384xf32>
    %334 = arith.cmpf oge, %304, %333 : vector<16x384xf32>
    %cst_150 = arith.constant 0.000000e+00 : f32
    %335 = vector.broadcast %cst_150 : f32 to vector<16x384xf32>
    %336 = arith.subf %335, %332 : vector<16x384xf32>
    %337 = arith.select %334, %332, %336 : vector<16x384xi1>, vector<16x384xf32>
    %cst_151 = arith.constant 1.000000e+00 : f32
    %338 = vector.broadcast %cst_151 : f32 to vector<16x384xf32>
    %339 = arith.addf %338, %337 : vector<16x384xf32>
    %340 = arith.mulf %302, %339 : vector<16x384xf32>
    %c0_152 = arith.constant 0 : index
    %c0_153 = arith.constant 0 : index
    %341 = vector.load %arg22[%c0_152, %c0_153] : memref<384x384xf32, #tpu.memory_space<vmem>>, vector<384x384xf32>
    %cst_154 = arith.constant dense<0.000000e+00> : vector<16x384xf32>
    %342 = tpu.matmul %340, %341, %cst_154 {dimension_numbers = #tpu.dot_dimension_numbers<[1], [0], [0], [1], [0, 0, 1, 1], [], []>} : vector<16x384xf32>, vector<384x384xf32>, vector<16x384xf32> -> vector<16x384xf32>
    %c0_155 = arith.constant 0 : index
    %c0_156 = arith.constant 0 : index
    %343 = vector.load %arg23[%c0_155, %c0_156] : memref<1x384xf32, #tpu.memory_space<vmem>>, vector<1x384xf32>
    %344 = vector.broadcast %343 : vector<1x384xf32> to vector<16x384xf32>
    %345 = arith.addf %342, %344 : vector<16x384xf32>
    %cst_157 = arith.constant 5.000000e-01 : f32
    %346 = vector.broadcast %cst_157 : f32 to vector<16x384xf32>
    %347 = arith.mulf %346, %345 : vector<16x384xf32>
    %cst_158 = arith.constant 0.707106769 : f32
    %348 = vector.broadcast %cst_158 : f32 to vector<16x384xf32>
    %349 = arith.mulf %345, %348 : vector<16x384xf32>
    %350 = math.absf %349 : vector<16x384xf32>
    %cst_159 = arith.constant 0.327591091 : f32
    %351 = vector.broadcast %cst_159 : f32 to vector<16x384xf32>
    %352 = arith.mulf %351, %350 : vector<16x384xf32>
    %cst_160 = arith.constant 1.000000e+00 : f32
    %353 = vector.broadcast %cst_160 : f32 to vector<16x384xf32>
    %354 = arith.addf %353, %352 : vector<16x384xf32>
    %cst_161 = arith.constant 1.000000e+00 : f32
    %355 = vector.broadcast %cst_161 : f32 to vector<16x384xf32>
    %356 = arith.divf %355, %354 : vector<16x384xf32>
    %cst_162 = arith.constant 1.06140542 : f32
    %357 = vector.broadcast %cst_162 : f32 to vector<16x384xf32>
    %358 = arith.mulf %357, %356 : vector<16x384xf32>
    %cst_163 = arith.constant -1.45315206 : f32
    %359 = vector.broadcast %cst_163 : f32 to vector<16x384xf32>
    %360 = arith.addf %358, %359 : vector<16x384xf32>
    %361 = arith.mulf %360, %356 : vector<16x384xf32>
    %cst_164 = arith.constant 1.42141378 : f32
    %362 = vector.broadcast %cst_164 : f32 to vector<16x384xf32>
    %363 = arith.addf %361, %362 : vector<16x384xf32>
    %364 = arith.mulf %363, %356 : vector<16x384xf32>
    %cst_165 = arith.constant -0.284496725 : f32
    %365 = vector.broadcast %cst_165 : f32 to vector<16x384xf32>
    %366 = arith.addf %364, %365 : vector<16x384xf32>
    %367 = arith.mulf %366, %356 : vector<16x384xf32>
    %cst_166 = arith.constant 0.254829586 : f32
    %368 = vector.broadcast %cst_166 : f32 to vector<16x384xf32>
    %369 = arith.addf %367, %368 : vector<16x384xf32>
    %370 = arith.mulf %369, %356 : vector<16x384xf32>
    %cst_167 = arith.constant 0.000000e+00 : f32
    %371 = vector.broadcast %cst_167 : f32 to vector<16x384xf32>
    %372 = arith.subf %371, %350 : vector<16x384xf32>
    %373 = arith.mulf %372, %350 : vector<16x384xf32>
    %374 = math.exp %373 : vector<16x384xf32>
    %375 = arith.mulf %370, %374 : vector<16x384xf32>
    %cst_168 = arith.constant 1.000000e+00 : f32
    %376 = vector.broadcast %cst_168 : f32 to vector<16x384xf32>
    %377 = arith.subf %376, %375 : vector<16x384xf32>
    %cst_169 = arith.constant 0.000000e+00 : f32
    %378 = vector.broadcast %cst_169 : f32 to vector<16x384xf32>
    %379 = arith.cmpf oge, %349, %378 : vector<16x384xf32>
    %cst_170 = arith.constant 0.000000e+00 : f32
    %380 = vector.broadcast %cst_170 : f32 to vector<16x384xf32>
    %381 = arith.subf %380, %377 : vector<16x384xf32>
    %382 = arith.select %379, %377, %381 : vector<16x384xi1>, vector<16x384xf32>
    %cst_171 = arith.constant 1.000000e+00 : f32
    %383 = vector.broadcast %cst_171 : f32 to vector<16x384xf32>
    %384 = arith.addf %383, %382 : vector<16x384xf32>
    %385 = arith.mulf %347, %384 : vector<16x384xf32>
    %c0_172 = arith.constant 0 : index
    %c0_173 = arith.constant 0 : index
    %386 = vector.load %arg24[%c0_172, %c0_173] : memref<384x48xf32, #tpu.memory_space<vmem>>, vector<384x48xf32>
    %cst_174 = arith.constant dense<0.000000e+00> : vector<16x48xf32>
    %387 = tpu.matmul %385, %386, %cst_174 {dimension_numbers = #tpu.dot_dimension_numbers<[1], [0], [0], [1], [0, 0, 1, 1], [], []>} : vector<16x384xf32>, vector<384x48xf32>, vector<16x48xf32> -> vector<16x48xf32>
    %388 = vector.broadcast %6 : f32 to vector<16x48xf32>
    %389 = arith.addf %387, %388 : vector<16x48xf32>
    %390 = arith.addf %295, %389 : vector<16x48xf32>
    %391 = arith.cmpf one, %119, %390 : vector<16x48xf32>
    %cst_175 = arith.constant 0.000000e+00 : f32
    %392 = vector.broadcast %cst_175 : f32 to vector<16x48xf32>
    %393 = arith.cmpf ogt, %8, %392 : vector<16x48xf32>
    %394 = arith.ori %391, %393 : vector<16x48xi1>
    %395 = arith.extui %394 : vector<16x48xi1> to vector<16x48xi32>
    %396 = arith.sitofp %395 : vector<16x48xi32> to vector<16x48xf32>
    %c1_i32 = arith.constant 1 : i32
    %cst_176 = arith.constant dense<0.000000e+00> : vector<64x48xf32>
    %397 = tpu.matmul %240, %390, %cst_176 {dimension_numbers = #tpu.dot_dimension_numbers<[1], [0], [0], [1], [0, 0, 1, 1], [], []>} : vector<64x16xf32>, vector<16x48xf32>, vector<64x48xf32> -> vector<64x48xf32>
    %cst_177 = arith.constant dense<0.000000e+00> : vector<16xf32>
    %398 = vector.multi_reduction <add>, %396, %cst_177 [1] : vector<16x48xf32> to vector<16xf32>
    %399 = vector.shape_cast %398 : vector<16xf32> to vector<16x1xf32>
    %400 = vector.broadcast %399 : vector<16x1xf32> to vector<16x64xf32>
    %401 = arith.mulf %247, %400 : vector<16x64xf32>
    %cst_178 = arith.constant dense<0.000000e+00> : vector<64xf32>
    %402 = vector.multi_reduction <add>, %401, %cst_178 [0] : vector<16x64xf32> to vector<64xf32>
    %403 = vector.shape_cast %402 : vector<64xf32> to vector<1x64xf32>
    %404 = arith.mulf %403, %233 : vector<1x64xf32>
    %cst_179 = arith.constant 0.000000e+00 : f32
    %405 = vector.broadcast %cst_179 : f32 to vector<1x64xf32>
    %406 = arith.subf %405, %404 : vector<1x64xf32>
    %407 = math.exp %406 : vector<1x64xf32>
    %cst_180 = arith.constant 1.000000e+00 : f32
    %408 = vector.broadcast %cst_180 : f32 to vector<1x64xf32>
    %409 = arith.addf %408, %407 : vector<1x64xf32>
    %cst_181 = arith.constant 1.000000e+00 : f32
    %410 = vector.broadcast %cst_181 : f32 to vector<1x64xf32>
    %411 = arith.divf %410, %409 : vector<1x64xf32>
    %412 = vector.broadcast %411 : vector<1x64xf32> to vector<16x64xf32>
    %413 = arith.mulf %254, %412 : vector<16x64xf32>
    %cst_182 = arith.constant dense<0.000000e+00> : vector<16x48xf32>
    %414 = tpu.matmul %413, %397, %cst_182 {dimension_numbers = #tpu.dot_dimension_numbers<[1], [0], [0], [1], [0, 0, 1, 1], [], []>} : vector<16x64xf32>, vector<64x48xf32>, vector<16x48xf32> -> vector<16x48xf32>
    %415 = vector.broadcast %0 : f32 to vector<16x48xf32>
    %416 = arith.mulf %415, %414 : vector<16x48xf32>
    %417 = vector.broadcast %1 : f32 to vector<16x48xf32>
    %418 = arith.mulf %417, %390 : vector<16x48xf32>
    %419 = arith.addf %416, %418 : vector<16x48xf32>
    %420 = vector.broadcast %2 : f32 to vector<16x48xf32>
    %421 = arith.mulf %420, %10 : vector<16x48xf32>
    %422 = arith.addf %419, %421 : vector<16x48xf32>
    %423 = vector.broadcast %3 : f32 to vector<16x48xf32>
    %424 = arith.addf %422, %423 : vector<16x48xf32>
    %cst_183 = arith.constant 0.000000e+00 : f32
    %425 = vector.broadcast %cst_183 : f32 to vector<16x48xf32>
    %426 = arith.subf %425, %424 : vector<16x48xf32>
    %427 = math.exp %426 : vector<16x48xf32>
    %cst_184 = arith.constant 1.000000e+00 : f32
    %428 = vector.broadcast %cst_184 : f32 to vector<16x48xf32>
    %429 = arith.addf %428, %427 : vector<16x48xf32>
    %cst_185 = arith.constant 1.000000e+00 : f32
    %430 = vector.broadcast %cst_185 : f32 to vector<16x48xf32>
    %431 = arith.divf %430, %429 : vector<16x48xf32>
    %cst_186 = arith.constant 1.000000e+00 : f32
    %432 = vector.broadcast %cst_186 : f32 to vector<16x48xf32>
    %433 = arith.subf %432, %431 : vector<16x48xf32>
    %434 = arith.mulf %433, %390 : vector<16x48xf32>
    %435 = arith.mulf %10, %431 : vector<16x48xf32>
    %436 = arith.mulf %435, %414 : vector<16x48xf32>
    %437 = arith.addf %434, %436 : vector<16x48xf32>
    %c0_187 = arith.constant 0 : index
    %c0_188 = arith.constant 0 : index
    %438 = vector.load %arg20[%c0_187, %c0_188] : memref<48x384xf32, #tpu.memory_space<vmem>>, vector<48x384xf32>
    %cst_189 = arith.constant dense<0.000000e+00> : vector<16x384xf32>
    %439 = tpu.matmul %437, %438, %cst_189 {dimension_numbers = #tpu.dot_dimension_numbers<[1], [0], [0], [1], [0, 0, 1, 1], [], []>} : vector<16x48xf32>, vector<48x384xf32>, vector<16x384xf32> -> vector<16x384xf32>
    %c0_190 = arith.constant 0 : index
    %c0_191 = arith.constant 0 : index
    %440 = vector.load %arg21[%c0_190, %c0_191] : memref<1x384xf32, #tpu.memory_space<vmem>>, vector<1x384xf32>
    %441 = vector.broadcast %440 : vector<1x384xf32> to vector<16x384xf32>
    %442 = arith.addf %439, %441 : vector<16x384xf32>
    %cst_192 = arith.constant 5.000000e-01 : f32
    %443 = vector.broadcast %cst_192 : f32 to vector<16x384xf32>
    %444 = arith.mulf %443, %442 : vector<16x384xf32>
    %cst_193 = arith.constant 0.707106769 : f32
    %445 = vector.broadcast %cst_193 : f32 to vector<16x384xf32>
    %446 = arith.mulf %442, %445 : vector<16x384xf32>
    %447 = math.absf %446 : vector<16x384xf32>
    %cst_194 = arith.constant 0.327591091 : f32
    %448 = vector.broadcast %cst_194 : f32 to vector<16x384xf32>
    %449 = arith.mulf %448, %447 : vector<16x384xf32>
    %cst_195 = arith.constant 1.000000e+00 : f32
    %450 = vector.broadcast %cst_195 : f32 to vector<16x384xf32>
    %451 = arith.addf %450, %449 : vector<16x384xf32>
    %cst_196 = arith.constant 1.000000e+00 : f32
    %452 = vector.broadcast %cst_196 : f32 to vector<16x384xf32>
    %453 = arith.divf %452, %451 : vector<16x384xf32>
    %cst_197 = arith.constant 1.06140542 : f32
    %454 = vector.broadcast %cst_197 : f32 to vector<16x384xf32>
    %455 = arith.mulf %454, %453 : vector<16x384xf32>
    %cst_198 = arith.constant -1.45315206 : f32
    %456 = vector.broadcast %cst_198 : f32 to vector<16x384xf32>
    %457 = arith.addf %455, %456 : vector<16x384xf32>
    %458 = arith.mulf %457, %453 : vector<16x384xf32>
    %cst_199 = arith.constant 1.42141378 : f32
    %459 = vector.broadcast %cst_199 : f32 to vector<16x384xf32>
    %460 = arith.addf %458, %459 : vector<16x384xf32>
    %461 = arith.mulf %460, %453 : vector<16x384xf32>
    %cst_200 = arith.constant -0.284496725 : f32
    %462 = vector.broadcast %cst_200 : f32 to vector<16x384xf32>
    %463 = arith.addf %461, %462 : vector<16x384xf32>
    %464 = arith.mulf %463, %453 : vector<16x384xf32>
    %cst_201 = arith.constant 0.254829586 : f32
    %465 = vector.broadcast %cst_201 : f32 to vector<16x384xf32>
    %466 = arith.addf %464, %465 : vector<16x384xf32>
    %467 = arith.mulf %466, %453 : vector<16x384xf32>
    %cst_202 = arith.constant 0.000000e+00 : f32
    %468 = vector.broadcast %cst_202 : f32 to vector<16x384xf32>
    %469 = arith.subf %468, %447 : vector<16x384xf32>
    %470 = arith.mulf %469, %447 : vector<16x384xf32>
    %471 = math.exp %470 : vector<16x384xf32>
    %472 = arith.mulf %467, %471 : vector<16x384xf32>
    %cst_203 = arith.constant 1.000000e+00 : f32
    %473 = vector.broadcast %cst_203 : f32 to vector<16x384xf32>
    %474 = arith.subf %473, %472 : vector<16x384xf32>
    %cst_204 = arith.constant 0.000000e+00 : f32
    %475 = vector.broadcast %cst_204 : f32 to vector<16x384xf32>
    %476 = arith.cmpf oge, %446, %475 : vector<16x384xf32>
    %cst_205 = arith.constant 0.000000e+00 : f32
    %477 = vector.broadcast %cst_205 : f32 to vector<16x384xf32>
    %478 = arith.subf %477, %474 : vector<16x384xf32>
    %479 = arith.select %476, %474, %478 : vector<16x384xi1>, vector<16x384xf32>
    %cst_206 = arith.constant 1.000000e+00 : f32
    %480 = vector.broadcast %cst_206 : f32 to vector<16x384xf32>
    %481 = arith.addf %480, %479 : vector<16x384xf32>
    %482 = arith.mulf %444, %481 : vector<16x384xf32>
    %c0_207 = arith.constant 0 : index
    %c0_208 = arith.constant 0 : index
    %483 = vector.load %arg22[%c0_207, %c0_208] : memref<384x384xf32, #tpu.memory_space<vmem>>, vector<384x384xf32>
    %cst_209 = arith.constant dense<0.000000e+00> : vector<16x384xf32>
    %484 = tpu.matmul %482, %483, %cst_209 {dimension_numbers = #tpu.dot_dimension_numbers<[1], [0], [0], [1], [0, 0, 1, 1], [], []>} : vector<16x384xf32>, vector<384x384xf32>, vector<16x384xf32> -> vector<16x384xf32>
    %c0_210 = arith.constant 0 : index
    %c0_211 = arith.constant 0 : index
    %485 = vector.load %arg23[%c0_210, %c0_211] : memref<1x384xf32, #tpu.memory_space<vmem>>, vector<1x384xf32>
    %486 = vector.broadcast %485 : vector<1x384xf32> to vector<16x384xf32>
    %487 = arith.addf %484, %486 : vector<16x384xf32>
    %cst_212 = arith.constant 5.000000e-01 : f32
    %488 = vector.broadcast %cst_212 : f32 to vector<16x384xf32>
    %489 = arith.mulf %488, %487 : vector<16x384xf32>
    %cst_213 = arith.constant 0.707106769 : f32
    %490 = vector.broadcast %cst_213 : f32 to vector<16x384xf32>
    %491 = arith.mulf %487, %490 : vector<16x384xf32>
    %492 = math.absf %491 : vector<16x384xf32>
    %cst_214 = arith.constant 0.327591091 : f32
    %493 = vector.broadcast %cst_214 : f32 to vector<16x384xf32>
    %494 = arith.mulf %493, %492 : vector<16x384xf32>
    %cst_215 = arith.constant 1.000000e+00 : f32
    %495 = vector.broadcast %cst_215 : f32 to vector<16x384xf32>
    %496 = arith.addf %495, %494 : vector<16x384xf32>
    %cst_216 = arith.constant 1.000000e+00 : f32
    %497 = vector.broadcast %cst_216 : f32 to vector<16x384xf32>
    %498 = arith.divf %497, %496 : vector<16x384xf32>
    %cst_217 = arith.constant 1.06140542 : f32
    %499 = vector.broadcast %cst_217 : f32 to vector<16x384xf32>
    %500 = arith.mulf %499, %498 : vector<16x384xf32>
    %cst_218 = arith.constant -1.45315206 : f32
    %501 = vector.broadcast %cst_218 : f32 to vector<16x384xf32>
    %502 = arith.addf %500, %501 : vector<16x384xf32>
    %503 = arith.mulf %502, %498 : vector<16x384xf32>
    %cst_219 = arith.constant 1.42141378 : f32
    %504 = vector.broadcast %cst_219 : f32 to vector<16x384xf32>
    %505 = arith.addf %503, %504 : vector<16x384xf32>
    %506 = arith.mulf %505, %498 : vector<16x384xf32>
    %cst_220 = arith.constant -0.284496725 : f32
    %507 = vector.broadcast %cst_220 : f32 to vector<16x384xf32>
    %508 = arith.addf %506, %507 : vector<16x384xf32>
    %509 = arith.mulf %508, %498 : vector<16x384xf32>
    %cst_221 = arith.constant 0.254829586 : f32
    %510 = vector.broadcast %cst_221 : f32 to vector<16x384xf32>
    %511 = arith.addf %509, %510 : vector<16x384xf32>
    %512 = arith.mulf %511, %498 : vector<16x384xf32>
    %cst_222 = arith.constant 0.000000e+00 : f32
    %513 = vector.broadcast %cst_222 : f32 to vector<16x384xf32>
    %514 = arith.subf %513, %492 : vector<16x384xf32>
    %515 = arith.mulf %514, %492 : vector<16x384xf32>
    %516 = math.exp %515 : vector<16x384xf32>
    %517 = arith.mulf %512, %516 : vector<16x384xf32>
    %cst_223 = arith.constant 1.000000e+00 : f32
    %518 = vector.broadcast %cst_223 : f32 to vector<16x384xf32>
    %519 = arith.subf %518, %517 : vector<16x384xf32>
    %cst_224 = arith.constant 0.000000e+00 : f32
    %520 = vector.broadcast %cst_224 : f32 to vector<16x384xf32>
    %521 = arith.cmpf oge, %491, %520 : vector<16x384xf32>
    %cst_225 = arith.constant 0.000000e+00 : f32
    %522 = vector.broadcast %cst_225 : f32 to vector<16x384xf32>
    %523 = arith.subf %522, %519 : vector<16x384xf32>
    %524 = arith.select %521, %519, %523 : vector<16x384xi1>, vector<16x384xf32>
    %cst_226 = arith.constant 1.000000e+00 : f32
    %525 = vector.broadcast %cst_226 : f32 to vector<16x384xf32>
    %526 = arith.addf %525, %524 : vector<16x384xf32>
    %527 = arith.mulf %489, %526 : vector<16x384xf32>
    %c0_227 = arith.constant 0 : index
    %c0_228 = arith.constant 0 : index
    %528 = vector.load %arg24[%c0_227, %c0_228] : memref<384x48xf32, #tpu.memory_space<vmem>>, vector<384x48xf32>
    %cst_229 = arith.constant dense<0.000000e+00> : vector<16x48xf32>
    %529 = tpu.matmul %527, %528, %cst_229 {dimension_numbers = #tpu.dot_dimension_numbers<[1], [0], [0], [1], [0, 0, 1, 1], [], []>} : vector<16x384xf32>, vector<384x48xf32>, vector<16x48xf32> -> vector<16x48xf32>
    %530 = vector.broadcast %6 : f32 to vector<16x48xf32>
    %531 = arith.addf %529, %530 : vector<16x48xf32>
    %532 = arith.addf %437, %531 : vector<16x48xf32>
    %533 = arith.cmpf one, %119, %532 : vector<16x48xf32>
    %cst_230 = arith.constant 0.000000e+00 : f32
    %534 = vector.broadcast %cst_230 : f32 to vector<16x48xf32>
    %535 = arith.cmpf ogt, %396, %534 : vector<16x48xf32>
    %536 = arith.ori %533, %535 : vector<16x48xi1>
    %537 = arith.extui %536 : vector<16x48xi1> to vector<16x48xi32>
    %538 = arith.sitofp %537 : vector<16x48xi32> to vector<16x48xf32>
    %c2_i32 = arith.constant 2 : i32
    %cst_231 = arith.constant dense<0.000000e+00> : vector<64x48xf32>
    %539 = tpu.matmul %240, %532, %cst_231 {dimension_numbers = #tpu.dot_dimension_numbers<[1], [0], [0], [1], [0, 0, 1, 1], [], []>} : vector<64x16xf32>, vector<16x48xf32>, vector<64x48xf32> -> vector<64x48xf32>
    %cst_232 = arith.constant dense<0.000000e+00> : vector<16xf32>
    %540 = vector.multi_reduction <add>, %538, %cst_232 [1] : vector<16x48xf32> to vector<16xf32>
    %541 = vector.shape_cast %540 : vector<16xf32> to vector<16x1xf32>
    %542 = vector.broadcast %541 : vector<16x1xf32> to vector<16x64xf32>
    %543 = arith.mulf %247, %542 : vector<16x64xf32>
    %cst_233 = arith.constant dense<0.000000e+00> : vector<64xf32>
    %544 = vector.multi_reduction <add>, %543, %cst_233 [0] : vector<16x64xf32> to vector<64xf32>
    %545 = vector.shape_cast %544 : vector<64xf32> to vector<1x64xf32>
    %546 = arith.mulf %545, %233 : vector<1x64xf32>
    %cst_234 = arith.constant 0.000000e+00 : f32
    %547 = vector.broadcast %cst_234 : f32 to vector<1x64xf32>
    %548 = arith.subf %547, %546 : vector<1x64xf32>
    %549 = math.exp %548 : vector<1x64xf32>
    %cst_235 = arith.constant 1.000000e+00 : f32
    %550 = vector.broadcast %cst_235 : f32 to vector<1x64xf32>
    %551 = arith.addf %550, %549 : vector<1x64xf32>
    %cst_236 = arith.constant 1.000000e+00 : f32
    %552 = vector.broadcast %cst_236 : f32 to vector<1x64xf32>
    %553 = arith.divf %552, %551 : vector<1x64xf32>
    %554 = vector.broadcast %553 : vector<1x64xf32> to vector<16x64xf32>
    %555 = arith.mulf %254, %554 : vector<16x64xf32>
    %cst_237 = arith.constant dense<0.000000e+00> : vector<16x48xf32>
    %556 = tpu.matmul %555, %539, %cst_237 {dimension_numbers = #tpu.dot_dimension_numbers<[1], [0], [0], [1], [0, 0, 1, 1], [], []>} : vector<16x64xf32>, vector<64x48xf32>, vector<16x48xf32> -> vector<16x48xf32>
    %557 = vector.broadcast %0 : f32 to vector<16x48xf32>
    %558 = arith.mulf %557, %556 : vector<16x48xf32>
    %559 = vector.broadcast %1 : f32 to vector<16x48xf32>
    %560 = arith.mulf %559, %532 : vector<16x48xf32>
    %561 = arith.addf %558, %560 : vector<16x48xf32>
    %562 = vector.broadcast %2 : f32 to vector<16x48xf32>
    %563 = arith.mulf %562, %10 : vector<16x48xf32>
    %564 = arith.addf %561, %563 : vector<16x48xf32>
    %565 = vector.broadcast %3 : f32 to vector<16x48xf32>
    %566 = arith.addf %564, %565 : vector<16x48xf32>
    %cst_238 = arith.constant 0.000000e+00 : f32
    %567 = vector.broadcast %cst_238 : f32 to vector<16x48xf32>
    %568 = arith.subf %567, %566 : vector<16x48xf32>
    %569 = math.exp %568 : vector<16x48xf32>
    %cst_239 = arith.constant 1.000000e+00 : f32
    %570 = vector.broadcast %cst_239 : f32 to vector<16x48xf32>
    %571 = arith.addf %570, %569 : vector<16x48xf32>
    %cst_240 = arith.constant 1.000000e+00 : f32
    %572 = vector.broadcast %cst_240 : f32 to vector<16x48xf32>
    %573 = arith.divf %572, %571 : vector<16x48xf32>
    %cst_241 = arith.constant 1.000000e+00 : f32
    %574 = vector.broadcast %cst_241 : f32 to vector<16x48xf32>
    %575 = arith.subf %574, %573 : vector<16x48xf32>
    %576 = arith.mulf %575, %532 : vector<16x48xf32>
    %577 = arith.mulf %10, %573 : vector<16x48xf32>
    %578 = arith.mulf %577, %556 : vector<16x48xf32>
    %579 = arith.addf %576, %578 : vector<16x48xf32>
    %c0_242 = arith.constant 0 : index
    %c0_243 = arith.constant 0 : index
    %580 = vector.load %arg20[%c0_242, %c0_243] : memref<48x384xf32, #tpu.memory_space<vmem>>, vector<48x384xf32>
    %cst_244 = arith.constant dense<0.000000e+00> : vector<16x384xf32>
    %581 = tpu.matmul %579, %580, %cst_244 {dimension_numbers = #tpu.dot_dimension_numbers<[1], [0], [0], [1], [0, 0, 1, 1], [], []>} : vector<16x48xf32>, vector<48x384xf32>, vector<16x384xf32> -> vector<16x384xf32>
    %c0_245 = arith.constant 0 : index
    %c0_246 = arith.constant 0 : index
    %582 = vector.load %arg21[%c0_245, %c0_246] : memref<1x384xf32, #tpu.memory_space<vmem>>, vector<1x384xf32>
    %583 = vector.broadcast %582 : vector<1x384xf32> to vector<16x384xf32>
    %584 = arith.addf %581, %583 : vector<16x384xf32>
    %cst_247 = arith.constant 5.000000e-01 : f32
    %585 = vector.broadcast %cst_247 : f32 to vector<16x384xf32>
    %586 = arith.mulf %585, %584 : vector<16x384xf32>
    %cst_248 = arith.constant 0.707106769 : f32
    %587 = vector.broadcast %cst_248 : f32 to vector<16x384xf32>
    %588 = arith.mulf %584, %587 : vector<16x384xf32>
    %589 = math.absf %588 : vector<16x384xf32>
    %cst_249 = arith.constant 0.327591091 : f32
    %590 = vector.broadcast %cst_249 : f32 to vector<16x384xf32>
    %591 = arith.mulf %590, %589 : vector<16x384xf32>
    %cst_250 = arith.constant 1.000000e+00 : f32
    %592 = vector.broadcast %cst_250 : f32 to vector<16x384xf32>
    %593 = arith.addf %592, %591 : vector<16x384xf32>
    %cst_251 = arith.constant 1.000000e+00 : f32
    %594 = vector.broadcast %cst_251 : f32 to vector<16x384xf32>
    %595 = arith.divf %594, %593 : vector<16x384xf32>
    %cst_252 = arith.constant 1.06140542 : f32
    %596 = vector.broadcast %cst_252 : f32 to vector<16x384xf32>
    %597 = arith.mulf %596, %595 : vector<16x384xf32>
    %cst_253 = arith.constant -1.45315206 : f32
    %598 = vector.broadcast %cst_253 : f32 to vector<16x384xf32>
    %599 = arith.addf %597, %598 : vector<16x384xf32>
    %600 = arith.mulf %599, %595 : vector<16x384xf32>
    %cst_254 = arith.constant 1.42141378 : f32
    %601 = vector.broadcast %cst_254 : f32 to vector<16x384xf32>
    %602 = arith.addf %600, %601 : vector<16x384xf32>
    %603 = arith.mulf %602, %595 : vector<16x384xf32>
    %cst_255 = arith.constant -0.284496725 : f32
    %604 = vector.broadcast %cst_255 : f32 to vector<16x384xf32>
    %605 = arith.addf %603, %604 : vector<16x384xf32>
    %606 = arith.mulf %605, %595 : vector<16x384xf32>
    %cst_256 = arith.constant 0.254829586 : f32
    %607 = vector.broadcast %cst_256 : f32 to vector<16x384xf32>
    %608 = arith.addf %606, %607 : vector<16x384xf32>
    %609 = arith.mulf %608, %595 : vector<16x384xf32>
    %cst_257 = arith.constant 0.000000e+00 : f32
    %610 = vector.broadcast %cst_257 : f32 to vector<16x384xf32>
    %611 = arith.subf %610, %589 : vector<16x384xf32>
    %612 = arith.mulf %611, %589 : vector<16x384xf32>
    %613 = math.exp %612 : vector<16x384xf32>
    %614 = arith.mulf %609, %613 : vector<16x384xf32>
    %cst_258 = arith.constant 1.000000e+00 : f32
    %615 = vector.broadcast %cst_258 : f32 to vector<16x384xf32>
    %616 = arith.subf %615, %614 : vector<16x384xf32>
    %cst_259 = arith.constant 0.000000e+00 : f32
    %617 = vector.broadcast %cst_259 : f32 to vector<16x384xf32>
    %618 = arith.cmpf oge, %588, %617 : vector<16x384xf32>
    %cst_260 = arith.constant 0.000000e+00 : f32
    %619 = vector.broadcast %cst_260 : f32 to vector<16x384xf32>
    %620 = arith.subf %619, %616 : vector<16x384xf32>
    %621 = arith.select %618, %616, %620 : vector<16x384xi1>, vector<16x384xf32>
    %cst_261 = arith.constant 1.000000e+00 : f32
    %622 = vector.broadcast %cst_261 : f32 to vector<16x384xf32>
    %623 = arith.addf %622, %621 : vector<16x384xf32>
    %624 = arith.mulf %586, %623 : vector<16x384xf32>
    %c0_262 = arith.constant 0 : index
    %c0_263 = arith.constant 0 : index
    %625 = vector.load %arg22[%c0_262, %c0_263] : memref<384x384xf32, #tpu.memory_space<vmem>>, vector<384x384xf32>
    %cst_264 = arith.constant dense<0.000000e+00> : vector<16x384xf32>
    %626 = tpu.matmul %624, %625, %cst_264 {dimension_numbers = #tpu.dot_dimension_numbers<[1], [0], [0], [1], [0, 0, 1, 1], [], []>} : vector<16x384xf32>, vector<384x384xf32>, vector<16x384xf32> -> vector<16x384xf32>
    %c0_265 = arith.constant 0 : index
    %c0_266 = arith.constant 0 : index
    %627 = vector.load %arg23[%c0_265, %c0_266] : memref<1x384xf32, #tpu.memory_space<vmem>>, vector<1x384xf32>
    %628 = vector.broadcast %627 : vector<1x384xf32> to vector<16x384xf32>
    %629 = arith.addf %626, %628 : vector<16x384xf32>
    %cst_267 = arith.constant 5.000000e-01 : f32
    %630 = vector.broadcast %cst_267 : f32 to vector<16x384xf32>
    %631 = arith.mulf %630, %629 : vector<16x384xf32>
    %cst_268 = arith.constant 0.707106769 : f32
    %632 = vector.broadcast %cst_268 : f32 to vector<16x384xf32>
    %633 = arith.mulf %629, %632 : vector<16x384xf32>
    %634 = math.absf %633 : vector<16x384xf32>
    %cst_269 = arith.constant 0.327591091 : f32
    %635 = vector.broadcast %cst_269 : f32 to vector<16x384xf32>
    %636 = arith.mulf %635, %634 : vector<16x384xf32>
    %cst_270 = arith.constant 1.000000e+00 : f32
    %637 = vector.broadcast %cst_270 : f32 to vector<16x384xf32>
    %638 = arith.addf %637, %636 : vector<16x384xf32>
    %cst_271 = arith.constant 1.000000e+00 : f32
    %639 = vector.broadcast %cst_271 : f32 to vector<16x384xf32>
    %640 = arith.divf %639, %638 : vector<16x384xf32>
    %cst_272 = arith.constant 1.06140542 : f32
    %641 = vector.broadcast %cst_272 : f32 to vector<16x384xf32>
    %642 = arith.mulf %641, %640 : vector<16x384xf32>
    %cst_273 = arith.constant -1.45315206 : f32
    %643 = vector.broadcast %cst_273 : f32 to vector<16x384xf32>
    %644 = arith.addf %642, %643 : vector<16x384xf32>
    %645 = arith.mulf %644, %640 : vector<16x384xf32>
    %cst_274 = arith.constant 1.42141378 : f32
    %646 = vector.broadcast %cst_274 : f32 to vector<16x384xf32>
    %647 = arith.addf %645, %646 : vector<16x384xf32>
    %648 = arith.mulf %647, %640 : vector<16x384xf32>
    %cst_275 = arith.constant -0.284496725 : f32
    %649 = vector.broadcast %cst_275 : f32 to vector<16x384xf32>
    %650 = arith.addf %648, %649 : vector<16x384xf32>
    %651 = arith.mulf %650, %640 : vector<16x384xf32>
    %cst_276 = arith.constant 0.254829586 : f32
    %652 = vector.broadcast %cst_276 : f32 to vector<16x384xf32>
    %653 = arith.addf %651, %652 : vector<16x384xf32>
    %654 = arith.mulf %653, %640 : vector<16x384xf32>
    %cst_277 = arith.constant 0.000000e+00 : f32
    %655 = vector.broadcast %cst_277 : f32 to vector<16x384xf32>
    %656 = arith.subf %655, %634 : vector<16x384xf32>
    %657 = arith.mulf %656, %634 : vector<16x384xf32>
    %658 = math.exp %657 : vector<16x384xf32>
    %659 = arith.mulf %654, %658 : vector<16x384xf32>
    %cst_278 = arith.constant 1.000000e+00 : f32
    %660 = vector.broadcast %cst_278 : f32 to vector<16x384xf32>
    %661 = arith.subf %660, %659 : vector<16x384xf32>
    %cst_279 = arith.constant 0.000000e+00 : f32
    %662 = vector.broadcast %cst_279 : f32 to vector<16x384xf32>
    %663 = arith.cmpf oge, %633, %662 : vector<16x384xf32>
    %cst_280 = arith.constant 0.000000e+00 : f32
    %664 = vector.broadcast %cst_280 : f32 to vector<16x384xf32>
    %665 = arith.subf %664, %661 : vector<16x384xf32>
    %666 = arith.select %663, %661, %665 : vector<16x384xi1>, vector<16x384xf32>
    %cst_281 = arith.constant 1.000000e+00 : f32
    %667 = vector.broadcast %cst_281 : f32 to vector<16x384xf32>
    %668 = arith.addf %667, %666 : vector<16x384xf32>
    %669 = arith.mulf %631, %668 : vector<16x384xf32>
    %c0_282 = arith.constant 0 : index
    %c0_283 = arith.constant 0 : index
    %670 = vector.load %arg24[%c0_282, %c0_283] : memref<384x48xf32, #tpu.memory_space<vmem>>, vector<384x48xf32>
    %cst_284 = arith.constant dense<0.000000e+00> : vector<16x48xf32>
    %671 = tpu.matmul %669, %670, %cst_284 {dimension_numbers = #tpu.dot_dimension_numbers<[1], [0], [0], [1], [0, 0, 1, 1], [], []>} : vector<16x384xf32>, vector<384x48xf32>, vector<16x48xf32> -> vector<16x48xf32>
    %672 = vector.broadcast %6 : f32 to vector<16x48xf32>
    %673 = arith.addf %671, %672 : vector<16x48xf32>
    %674 = arith.addf %579, %673 : vector<16x48xf32>
    %675 = arith.cmpf one, %119, %674 : vector<16x48xf32>
    %cst_285 = arith.constant 0.000000e+00 : f32
    %676 = vector.broadcast %cst_285 : f32 to vector<16x48xf32>
    %677 = arith.cmpf ogt, %538, %676 : vector<16x48xf32>
    %678 = arith.ori %675, %677 : vector<16x48xi1>
    %679 = arith.extui %678 : vector<16x48xi1> to vector<16x48xi32>
    %680 = arith.sitofp %679 : vector<16x48xi32> to vector<16x48xf32>
    %681 = vector.extract_strided_slice %674 {offsets = [0, 0], sizes = [1, 48], strides = [1, 1]} : vector<16x48xf32> to vector<1x48xf32>
    %682 = vector.extract_strided_slice %109 {offsets = [0, 0], sizes = [1, 48], strides = [1, 1]} : vector<16x48xf32> to vector<1x48xf32>
    %683 = arith.addf %681, %682 : vector<1x48xf32>
    %c0_286 = arith.constant 0 : index
    %c0_287 = arith.constant 0 : index
    %c0_288 = arith.constant 0 : index
    %684 = vector.load %arg26[%c0_286, %c0_287, %c0_288] : memref<1x1x48xf32, #tpu.memory_space<vmem>>, vector<1x1x48xf32>
    %685 = vector.shape_cast %684 : vector<1x1x48xf32> to vector<1x48xf32>
    %686 = vector.shape_cast %683 : vector<1x48xf32> to vector<1x1x48xf32>
    tpu.vector_store %arg26[%c0_286, %c0_287, %c0_288], %686 {strides = array<i32>} : memref<1x1x48xf32, #tpu.memory_space<vmem>>, vector<1x1x48xf32>,
    return
  }
  func.func @transform_0(%arg0: i32) -> (i32, i32, i32) {
    %c0_i32 = arith.constant 0 : i32
    %c0_i32_0 = arith.constant 0 : i32
    %c0_i32_1 = arith.constant 0 : i32
    return %arg0, %c0_i32, %c0_i32_0 : i32, i32, i32
  }
  func.func @transform_1(%arg0: i32) -> (i32, i32, i32) {
    %c0_i32 = arith.constant 0 : i32
    %c0_i32_0 = arith.constant 0 : i32
    %c0_i32_1 = arith.constant 0 : i32
    return %arg0, %c0_i32, %c0_i32_0 : i32, i32, i32
  }
  func.func @transform_2(%arg0: i32) -> (i32, i32, i32) {
    %c0_i32 = arith.constant 0 : i32
    %c0_i32_0 = arith.constant 0 : i32
    %c0_i32_1 = arith.constant 0 : i32
    return %arg0, %c0_i32, %c0_i32_0 : i32, i32, i32
  }
  func.func @transform_3(%arg0: i32) -> (i32, i32, i32) {
    %c0_i32 = arith.constant 0 : i32
    %c0_i32_0 = arith.constant 0 : i32
    %c0_i32_1 = arith.constant 0 : i32
    return %arg0, %c0_i32, %c0_i32_0 : i32, i32, i32
  }
  func.func @transform_4(%arg0: i32) -> (i32, i32, i32) {
    %c0_i32 = arith.constant 0 : i32
    %c0_i32_0 = arith.constant 0 : i32
    %c0_i32_1 = arith.constant 0 : i32
    return %arg0, %c0_i32, %c0_i32_0 : i32, i32, i32
  }
  func.func @transform_5(%arg0: i32) -> (i32, i32, i32) {
    %c0_i32 = arith.constant 0 : i32
    %c0_i32_0 = arith.constant 0 : i32
    %c0_i32_1 = arith.constant 0 : i32
    return %arg0, %c0_i32, %c0_i32_0 : i32, i32, i32
  }
  func.func @transform_6(%arg0: i32) -> (i32, i32, i32) {
    %c0_i32 = arith.constant 0 : i32
    %c0_i32_0 = arith.constant 0 : i32
    %c0_i32_1 = arith.constant 0 : i32
    return %arg0, %c0_i32, %c0_i32_0 : i32, i32, i32
  }
  func.func @transform_7(%arg0: i32) -> (i32, i32) {
    %c0_i32 = arith.constant 0 : i32
    %c0_i32_0 = arith.constant 0 : i32
    %c0_i32_1 = arith.constant 0 : i32
    return %c0_i32, %c0_i32_0 : i32, i32
  }
  func.func @transform_8(%arg0: i32) -> (i32, i32) {
    %c0_i32 = arith.constant 0 : i32
    %c0_i32_0 = arith.constant 0 : i32
    %c0_i32_1 = arith.constant 0 : i32
    return %c0_i32, %c0_i32_0 : i32, i32
  }
  func.func @transform_9(%arg0: i32) -> (i32, i32) {
    %c0_i32 = arith.constant 0 : i32
    %c0_i32_0 = arith.constant 0 : i32
    %c0_i32_1 = arith.constant 0 : i32
    return %c0_i32, %c0_i32_0 : i32, i32
  }
  func.func @transform_10(%arg0: i32) -> (i32, i32) {
    %c0_i32 = arith.constant 0 : i32
    %c0_i32_0 = arith.constant 0 : i32
    %c0_i32_1 = arith.constant 0 : i32
    return %c0_i32, %c0_i32_0 : i32, i32
  }
  func.func @transform_11(%arg0: i32) -> (i32, i32) {
    %c0_i32 = arith.constant 0 : i32
    %c0_i32_0 = arith.constant 0 : i32
    %c0_i32_1 = arith.constant 0 : i32
    return %c0_i32, %c0_i32_0 : i32, i32
  }
  func.func @transform_12(%arg0: i32) -> (i32, i32) {
    %c0_i32 = arith.constant 0 : i32
    %c0_i32_0 = arith.constant 0 : i32
    %c0_i32_1 = arith.constant 0 : i32
    return %c0_i32, %c0_i32_0 : i32, i32
  }
  func.func @transform_13(%arg0: i32) -> (i32, i32) {
    %c0_i32 = arith.constant 0 : i32
    %c0_i32_0 = arith.constant 0 : i32
    %c0_i32_1 = arith.constant 0 : i32
    return %c0_i32, %c0_i32_0 : i32, i32
  }
  func.func @transform_14(%arg0: i32) -> (i32, i32) {
    %c0_i32 = arith.constant 0 : i32
    %c0_i32_0 = arith.constant 0 : i32
    %c0_i32_1 = arith.constant 0 : i32
    return %c0_i32, %c0_i32_0 : i32, i32
  }
  func.func @transform_15(%arg0: i32) -> (i32, i32) {
    %c0_i32 = arith.constant 0 : i32
    %c0_i32_0 = arith.constant 0 : i32
    %c0_i32_1 = arith.constant 0 : i32
    return %c0_i32, %c0_i32_0 : i32, i32
  }
  func.func @transform_16(%arg0: i32) -> (i32, i32) {
    %c0_i32 = arith.constant 0 : i32
    %c0_i32_0 = arith.constant 0 : i32
    %c0_i32_1 = arith.constant 0 : i32
    return %c0_i32, %c0_i32_0 : i32, i32
  }
  func.func @transform_17(%arg0: i32) -> (i32, i32) {
    %c0_i32 = arith.constant 0 : i32
    %c0_i32_0 = arith.constant 0 : i32
    %c0_i32_1 = arith.constant 0 : i32
    return %c0_i32, %c0_i32_0 : i32, i32
  }
  func.func @transform_18(%arg0: i32) -> (i32, i32) {
    %c0_i32 = arith.constant 0 : i32
    %c0_i32_0 = arith.constant 0 : i32
    %c0_i32_1 = arith.constant 0 : i32
    return %c0_i32, %c0_i32_0 : i32, i32
  }
  func.func @transform_19(%arg0: i32) -> (i32, i32) {
    %c0_i32 = arith.constant 0 : i32
    %c0_i32_0 = arith.constant 0 : i32
    %c0_i32_1 = arith.constant 0 : i32
    return %c0_i32, %c0_i32_0 : i32, i32
  }
  func.func @transform_20(%arg0: i32) -> (i32, i32) {
    %c0_i32 = arith.constant 0 : i32
    %c0_i32_0 = arith.constant 0 : i32
    %c0_i32_1 = arith.constant 0 : i32
    return %c0_i32, %c0_i32_0 : i32, i32
  }
  func.func @transform_21(%arg0: i32) -> (i32, i32) {
    %c0_i32 = arith.constant 0 : i32
    %c0_i32_0 = arith.constant 0 : i32
    %c0_i32_1 = arith.constant 0 : i32
    return %c0_i32, %c0_i32_0 : i32, i32
  }
  func.func @transform_22(%arg0: i32) -> (i32, i32) {
    %c0_i32 = arith.constant 0 : i32
    %c0_i32_0 = arith.constant 0 : i32
    %c0_i32_1 = arith.constant 0 : i32
    return %c0_i32, %c0_i32_0 : i32, i32
  }
  func.func @transform_23(%arg0: i32) -> (i32, i32) {
    %c0_i32 = arith.constant 0 : i32
    %c0_i32_0 = arith.constant 0 : i32
    %c0_i32_1 = arith.constant 0 : i32
    return %c0_i32, %c0_i32_0 : i32, i32
  }
  func.func @transform_24(%arg0: i32) -> i32 {
    %c0_i32 = arith.constant 0 : i32
    %c0_i32_0 = arith.constant 0 : i32
    return %c0_i32 : i32
  }
  func.func @transform_25(%arg0: i32) -> (i32, i32, i32) {
    %c0_i32 = arith.constant 0 : i32
    %c0_i32_0 = arith.constant 0 : i32
    %c0_i32_1 = arith.constant 0 : i32
    return %arg0, %c0_i32, %c0_i32_0 : i32, i32, i32
  }
  func.func @transform_26(%arg0: i32) -> (i32, i32, i32) {
    %c0_i32 = arith.constant 0 : i32
    %c0_i32_0 = arith.constant 0 : i32
    %c0_i32_1 = arith.constant 0 : i32
    return %arg0, %c0_i32, %c0_i32_0 : i32, i32, i32
  }
}

</mosaic_0001>

<bundles_post_ra>
// kernel: tpu_custom_call.1
= control target key start
LH: loop header
LB: loop body
LE: loop exit
PB: predicated region body
PF: predicated region fallthrough
CT: control target
= control target key end

     0   :  { %s14271_s0 = inlined_call_operand.vmem [shape: s32[2,64,1], index: 0, kind: input, shape index: {}]   ;;  %s14272_s1 = inlined_call_operand.vmem [shape: s32[2,1,64], index: 1, kind: input, shape index: {}]   ;;  %s14273_s2 = inlined_call_operand.hbm [shape: s32[2,1,64], index: 2, kind: input, shape index: {}]   ;;  %s14274_s3 = inlined_call_operand.vmem [shape: f32[2,16,48], index: 3, kind: input, shape index: {}]   ;;  %s14275_s4 = inlined_call_operand.hbm [shape: f32[2,16,48], index: 4, kind: input, shape index: {}]   ;;  %s14276_s5 = inlined_call_operand.vmem [shape: f32[2,64,32], index: 5, kind: input, shape index: {}]   ;;  %s14277_s6 = inlined_call_operand.hbm [shape: f32[2,16,48], index: 6, kind: input, shape index: {}]   ;;  %s14278_s7 = inlined_call_operand.hbm [shape: f32[32,48], index: 7, kind: input, shape index: {}]   ;;  %s14279_s8 = inlined_call_operand.vmem [shape: f32[1,48], index: 8, kind: input, shape index: {}]   ;;  %s14280_s9 = inlined_call_operand.hbm [shape: f32[48,48], index: 9, kind: input, shape index: {}]   ;;  %s14281_s10 = inlined_call_operand.hbm [shape: f32[1,48], index: 10, kind: input, shape index: {}]   ;;  %s14282_s11 = inlined_call_operand.hbm [shape: f32[48,48], index: 11, kind: input, shape index: {}]   ;;  %s14283_s12 = inlined_call_operand.hbm [shape: f32[1,48], index: 12, kind: input, shape index: {}]   ;;  %s14284_s13 = inlined_call_operand.vmem [shape: f32[48,1], index: 13, kind: input, shape index: {}]   ;;  %s14285_s14 = inlined_call_operand.vmem [shape: f32[48,384], index: 14, kind: input, shape index: {}]   ;;  %s14286_s15 = inlined_call_operand.vmem [shape: f32[1,384], index: 15, kind: input, shape index: {}]   ;;  %s14287_s16 = inlined_call_operand.vmem [shape: f32[384,384], index: 16, kind: input, shape index: {}]   ;;  %s14288_s17 = inlined_call_operand.vmem [shape: f32[1,384], index: 17, kind: input, shape index: {}]   ;;  %s14289_s18 = inlined_call_operand.vmem [shape: f32[384,48], index: 18, kind: input, shape index: {}]   ;;  %s14290_s19 = inlined_call_operand.vmem [shape: f32[48,384], index: 19, kind: input, shape index: {}]   ;;  %s14291_s20 = inlined_call_operand.vmem [shape: f32[1,384], index: 20, kind: input, shape index: {}]   ;;  %s14292_s21 = inlined_call_operand.hbm [shape: f32[384,384], index: 21, kind: input, shape index: {}]   ;;  %s14293_s22 = inlined_call_operand.vmem [shape: f32[1,384], index: 22, kind: input, shape index: {}]   ;;  %s14294_s23 = inlined_call_operand.vmem [shape: f32[384,48], index: 23, kind: input, shape index: {}]   ;;  %s14295_s24 = inlined_call_operand.vmem [shape: f32[7], index: 24, kind: input, shape index: {}]   ;;  %s14296_s25 = inlined_call_operand.hbm [shape: f32[2,1,48], index: 25, kind: output, shape index: {0}]   ;;  %s14297_s26 = inlined_call_operand.hbm [shape: f32[2,1,48], index: 26, kind: output, shape index: {1}]  }
   0x1   :  { %14603 = sst [smem:[#allocation159_spill]] %s14271_s0 }
   0x2   :  { %14604 = sst [smem:[#allocation160_spill]] %s14272_s1 }
   0x3   :  { %14605 = sst [smem:[#allocation161_spill]] %s14273_s2 }
   0x4   :  { %14606 = sst [smem:[#allocation162_spill]] %s14274_s3 }
   0x5   :  { %14607 = sst [smem:[#allocation163_spill]] %s14275_s4 }
   0x6   :  { %14608 = sst [smem:[#allocation164_spill]] %s14276_s5 }
   0x7   :  { %14609 = sst [smem:[#allocation165_spill]] %s14277_s6 }
   0x8   :  { %14610 = sst [smem:[#allocation166_spill]] %s14278_s7 }
   0x9   :  { %14611 = sst [smem:[#allocation167_spill]] %s14279_s8 }
   0xa   :  { %14612 = sst [smem:[#allocation168_spill]] %s14280_s9 }
   0xb   :  { %14613 = sst [smem:[#allocation169_spill]] %s14281_s10 }
   0xc   :  { %14614 = sst [smem:[#allocation170_spill]] %s14283_s12 }
   0xd   :  { %14615 = sst [smem:[#allocation171_spill]] %s14284_s13 }
   0xe   :  { %14616 = sst [smem:[#allocation172_spill]] %s14285_s14 }
   0xf   :  { %14617 = sst [smem:[#allocation173_spill]] %s14286_s15 }
  0x10   :  { %14618 = sst [smem:[#allocation174_spill]] %s14287_s16 }
  0x11   :  { %14619 = sst [smem:[#allocation175_spill]] %s14288_s17 }
  0x12   :  { %14620 = sst [smem:[#allocation176_spill]] %s14289_s18 }
  0x13   :  { %14621 = sst [smem:[#allocation177_spill]] %s14290_s19 }
  0x14   :  { %14622 = sst [smem:[#allocation178_spill]] %s14291_s20 }
  0x15   :  { %14623 = sst [smem:[#allocation179_spill]] %s14293_s22 }
  0x16   :  { %14624 = sst [smem:[#allocation180_spill]] %s14294_s23 }
  0x17   :  { %14625 = sst [smem:[#allocation181_spill]] %s14296_s25 }
  0x18   :  { %14626 = sst [smem:[#allocation182_spill]] %s14297_s26 }
  0x19   :  { %32 = vsyncpa [#allocation3], 0 }
  0x1a   :  { %34 = vsyncpa [#allocation3 + $0x1], 0 }
  0x1b   :  { %35 = vsyncpa [#allocation7], 0 }
  0x1c   :  { %37 = vsyncpa [#allocation7 + $0x1], 0 }
  0x1d   :  { %38 = vsyncpa [#allocation10], 0 }
  0x1e   :  { %39 = vsyncpa [#allocation13], 0 }
  0x1f   :  { %40 = vsyncpa [#allocation16], 0 }
  0x20   :  { %41 = vsyncpa [#allocation5], 0 }
  0x21   :  { %42 = vsyncpa [#allocation4], 0 }
  0x22   :  { %44 = vsyncpa [#allocation4 + $0x1], 0 }
  0x23   :  { %45 = vsyncpa [#allocation21], 0 }
  0x24   :  { %47 = vsyncpa [#allocation21 + $0x1], 0  ;;  %s10957_s27 = smov 0   ;;  %s10959_s3 = smov 0  }
  0x25   :  { %s10961_s7 = smov 0   ;;  %s10963_s28 = smov 0  }
  0x26 LB: > { %14627 = sst [smem:[#allocation30_spill]] %s10790_s27  ;;  %s10804_s8 = smov [#allocation9]   ;;  %s10802_s28 = sphi %s10963_s28, %s15051_s28   ;;  %s10798_s7 = sphi %s10961_s7, %s15054_s7   ;;  %s10794_s3 = sphi %s10959_s3, %s15053_s3   ;;  %s10790_s27 = sphi %s10957_s27, %s15052_s27  }
  0x27   : > { %14628 = sst [smem:[#allocation31_spill]] %s10794_s3  ;;  %s682_s4 = sshll.u32 %s10804_s8, 4  ;;  %s10983_s4 = int_to_ptr.vmem [resolvable:$true] %s682_s4 }
  0x28   : > { %14629 = sst [smem:[#allocation32_spill]] %s10798_s7  ;;  %s10978_s29 = sadd.s32 4294967295, %s10802_s28  }
  0x29   : > { %14630 = sst [smem:[#allocation33_spill]] %s10978_s29  ;;  %p7564_p0 = scmp.ge.s32.totalorder %s10802_s28, 1 }
  0x2a   : > { %p14320_p1 = scmp.eq.s32.totalorder %s10978_s29, 0  ;;  %p670_p2 = scmp.lt.s32.totalorder %s10802_s28, 3 }
  0x2b   : > { %s10805_s9 = smov [#allocation12]   ;;  %s10806_s5 = smov [#allocation15]  }
  0x2c   : > { %p10985_p3 = pnand %p7564_p0, %p670_p2  ;;  %s712_s30 = sshll.u32 %s10805_s9, 4  ;;  %s10998_s30 = int_to_ptr.vmem [resolvable:$true] %s712_s30 }
  0x2d   : > { %s736_s10 = sshll.u32 %s10806_s5, 4  ;;  %s14633_s8 = sld [smem:[#allocation166_spill]]  ;;  %s11000_s10 = int_to_ptr.vmem [resolvable:$true] %s736_s10 }
  0x2e   : > { %s14631_s0 = scalar_select %p10985_p3, 1, 0 }
  0x2f   : > { %p10013_p5 = pneg %p10985_p3 }
  0x31   : > { %p10994_p6 = pnand %p10013_p5, %p14320_p1 }
  0x33   : > { %s14632_s2 = scalar_select %p10994_p6, 1, 0 }
  0x34   : > { %s10411_s25 = scalar_lea.hbm %s14633_s8, 512  ;;  %p11010_p8 = pneg %p10994_p6 }
  0x35   : > { %p10412_p7 = scmp.ne.s32.totalorder %s14633_s8, %s10411_s25  ;;  %p10418_p11 = scmp.lt.u32.totalorder %s10411_s25, %s14633_s8 }
  0x36   : > { %s14634_s9 = scalar_select %p11010_p8, 1, 0 }
  0x37   : > { %p10414_p9 = pnand %p11010_p8, %p10412_p7 }
  0x39   : > { %p10415_p10 = pneg %p10414_p9 }
  0x3b   : > { %p10420_p12 = pnand %p10418_p11, %p10415_p10 }
  0x3d   : > { %10423 = shalt.err (!%p10420_p12)
}
  0x3e   : > { %s10424_s22 = scalar_lea.vmem %s10983_s4, 512  ;;  %p10432_p5 = scmp.lt.s32.totalorder %s10983_s4, %s10983_s4 }
  0x3f   : > { %p10425_p13 = scmp.ne.s32.totalorder %s10983_s4, %s10424_s22  ;;  %p10433_p4 = scmp.lt.s32.totalorder %s10424_s22, %s10424_s22 }
  0x41   : > { %p10427_p0 = pnand %p10425_p13, %p11010_p8  ;;  %p10434_p7 = por %p10433_p4, %p10432_p5 }
  0x43   : > { %p10428_p2 = pneg %p10427_p0 }
  0x45   : > { %p10435_p9 = pnand %p10434_p7, %p10428_p2 }
  0x47   : > { %10438 = shalt.err (!%p10435_p9)
}
  0x48   : > { %s14311_s26 = smov 128   ;;  %s14313_s23 = smov 8  }
  0x49   : > { %10016 = dma.hbm_to_vmem [thread:$0]  (!%p10994_p6), %s14633_s8, 512, %s10983_s4, [#allocation10], %s14311_s26, %s14311_s26, %s14313_s23  }
  0x4a   : > { %s14635_s20 = sld [smem:[#allocation169_spill]] }
  0x50   : > { %s10439_s22 = scalar_lea.hbm %s14635_s20, 16 }
  0x51   : > { %p10440_p4 = scmp.ne.s32.totalorder %s14635_s20, %s10439_s22  ;;  %p10446_p12 = scmp.lt.u32.totalorder %s10439_s22, %s14635_s20 }
  0x53   : > { %p10442_p10 = pnand %p10440_p4, %p11010_p8 }
  0x55   : > { %p10443_p11 = pneg %p10442_p10 }
  0x57   : > { %p10448_p13 = pnand %p10446_p12, %p10443_p11 }
  0x59   : > { %10451 = shalt.err (!%p10448_p13)
}
  0x5a   : > { %s10452_s4 = scalar_lea.vmem %s10998_s30, 16  ;;  %s10459_s13 = scalar_lea.vmem %s10998_s30, 32 }
  0x5b   : > { %p10453_p0 = scmp.ne.s32.totalorder %s10998_s30, %s10452_s4  ;;  %p10460_p7 = scmp.lt.s32.totalorder %s10998_s30, %s10998_s30 }
  0x5c   : > { %p10461_p9 = scmp.lt.s32.totalorder %s10459_s13, %s10452_s4 }
  0x5d   : > { %p10455_p2 = pnand %p10453_p0, %p11010_p8 }
  0x5e   : > { %p10462_p4 = por %p10461_p9, %p10460_p7 }
  0x5f   : > { %p10456_p5 = pneg %p10455_p2 }
  0x61   : > { %p10463_p10 = pnand %p10462_p4, %p10456_p5 }
  0x63   : > { %10466 = shalt.err (!%p10463_p10)
}
  0x64   : > { %10022 = dma.hbm_to_vmem [thread:$0]  (!%p10994_p6), %s14635_s20, 16, %s10998_s30, [#allocation13]  }
  0x65   : > { %s14636_s12 = sld [smem:[#allocation170_spill]] }
  0x6b   : > { %s10467_s6 = scalar_lea.hbm %s14636_s12, 16 }
  0x6c   : > { %p10468_p11 = scmp.ne.s32.totalorder %s14636_s12, %s10467_s6  ;;  %p10474_p0 = scmp.lt.u32.totalorder %s10467_s6, %s14636_s12 }
  0x6e   : > { %p10470_p12 = pnand %p10468_p11, %p11010_p8 }
  0x70   : > { %p10471_p13 = pneg %p10470_p12 }
  0x72   : > { %p10476_p2 = pnand %p10474_p0, %p10471_p13 }
  0x74   : > { %10479 = shalt.err (!%p10476_p2)
}
  0x75   : > { %s10480_s30 = scalar_lea.vmem %s11000_s10, 16  ;;  %s10487_s13 = scalar_lea.vmem %s11000_s10, 32 }
  0x76   : > { %p10481_p5 = scmp.ne.s32.totalorder %s11000_s10, %s10480_s30  ;;  %p10488_p4 = scmp.lt.s32.totalorder %s11000_s10, %s11000_s10 }
  0x77   : > { %p10489_p10 = scmp.lt.s32.totalorder %s10487_s13, %s10480_s30 }
  0x78   : > { %p10483_p7 = pnand %p10481_p5, %p11010_p8 }
  0x79   : > { %p10490_p11 = por %p10489_p10, %p10488_p4 }
  0x7a   : > { %p10484_p9 = pneg %p10483_p7 }
  0x7c   : > { %p10491_p12 = pnand %p10490_p11, %p10484_p9 }
  0x7e   : > { %10494 = shalt.err (!%p10491_p12)
}
  0x7f   : > { %10028 = dma.hbm_to_vmem [thread:$0]  (!%p10994_p6), %s14636_s12, 16, %s11000_s10, [#allocation16]  }
  0x80   : > { %s7563_s19 = sadd.s32 4294967294, %s10802_s28   ;;  %s11084_s25 = sadd.s32 1, %s10802_s28  }
  0x81   : > { %14637 = sst [smem:[#allocation34_spill]] %s11084_s25  ;;  %s112_s6 = sadd.s32 1, %s10798_s7 }
  0x82   : > { %s109_s1 = ssub.s32 %s10802_s28, %s11084_s25  ;;  %p119_p13 = scmp.ne.s32.totalorder %s10798_s7, %s10794_s3 }
  0x83   : > { %p110_p0 = scmp.eq.s32.totalorder %s109_s1, 0  ;;  %p120_p2 = scmp.eq.s32.totalorder %s10802_s28, 0 }
  0x84   : > { %p125_p5 = scmp.ne.s32.totalorder %s10794_s3, %s10790_s27  ;;  %p631_p7 = scmp.eq.s32.totalorder %s10978_s29, 1 }
  0x85   : > { %s11096_s5 = scalar_select %p110_p0, %s10798_s7, %s112_s6  }
  0x86   : > { %p121_p9 = por %p120_p2, %p119_p13  ;;  %p11100_p4 = por %p14320_p1, %p125_p5 }
  0x87   : > { %14638 = sst [smem:[#allocation35_spill]] %s11096_s5  ;;  %p11104_p10 = por %p631_p7, %p119_p13 }
  0x88   : > { %s14639_s10 = scalar_select %p11100_p4, 1, 0 }
  0x89   : > { %s14641_s22 = scalar_select %p11104_p10, 1, 0 }
  0x8a   : > { %14640 = sst [smem:[#allocation36_spill]] %s14639_s10  ;;  %p637_p11 = scmp.eq.s32.totalorder %s7563_s19, 1 }
  0x8b   : > { %14642 = sst [smem:[#allocation37_spill]] %s14641_s22  ;;  %p10059_p12 = scmp.lt.s32.totalorder %s10802_s28, 2 }
  0x8c   : > { %s11110_s4 = sand.u32 1, %s10798_s7   ;;  %p11112_p3 = por %p637_p11, %p125_p5 }
  0x8d   : > { %s840_s13 = sand.u32 1, %s10802_s28   ;;  %p11117_p0 = pnand %p10059_p12, %p121_p9 }
  0x8e   : > { %s14643_s30 = scalar_select %p11112_p3, 1, 0 }
  0x8f   : > { %s14645_s17 = scalar_select %p11117_p0, 1, 0 }
  0x90   : > { %14644 = sst [smem:[#allocation38_spill]] %s14643_s30  ;;  %s14318_s18 = sshll.u32 %s11110_s4, 4 }
  0x91   : > { %s14319_s6 = sshll.u32 %s10802_s28, 8  ;;  %s14646_s26 = sld [smem:[#allocation163_spill]] }
  0x92   : > { %s844_s8 = scalar_lea.vmem [#allocation6], %s14318_s18  ;;  %s11134_s20 = scalar_lea.sflag [#allocation7], %s840_s13 }
  0x93   : > { %s851_s12 = sshll.u32 %s844_s8, 4  ;;  %p11140_p2 = pneg %p11117_p0  ;;  %s11132_s12 = int_to_ptr.vmem [resolvable:$true] %s851_s12 }
  0x95   : > { %s14647_s7 = scalar_select %p11140_p2, 1, 0 }
  0x97   : > { %s11128_s23 = scalar_lea.hbm %s14646_s26, %s14319_s6  ;;  %s10500_s18 = scalar_lea.hbm %s14646_s26, 512 }
  0x98   : > { %s10495_s5 = scalar_lea.hbm %s11128_s23, 256  ;;  %p10501_p9 = scmp.lt.u32.totalorder %s11128_s23, %s14646_s26 }
  0x99   : > { %p10496_p13 = scmp.ne.s32.totalorder %s11128_s23, %s10495_s5  ;;  %p10502_p11 = scmp.lt.u32.totalorder %s10500_s18, %s10495_s5 }
  0x9a   : > { %p10504_p1 = scmp.lt.u32.totalorder %s10495_s5, %s11128_s23 }
  0x9b   : > { %p10498_p5 = pnand %p11140_p2, %p10496_p13  ;;  %p10503_p12 = por %p10502_p11, %p10501_p9 }
  0x9d   : > { %p10499_p7 = pneg %p10498_p5  ;;  %p10505_p3 = por %p10504_p1, %p10503_p12 }
  0x9f   : > { %p10506_p10 = pnand %p10505_p3, %p10499_p7 }
  0xa1   : > { %10509 = shalt.err (!%p10506_p10)
}
  0xa2   : > { %s10510_s13 = scalar_lea.vmem %s11132_s12, 256  ;;  %s10809_s1 = smov [#allocation6]  }
  0xa3   : > { %p10511_p13 = scmp.ne.s32.totalorder %s11132_s12, %s10510_s13  ;;  %s10515_s19 = sshll.u32 %s10809_s1, 4  ;;  %s10516_s19 = int_to_ptr.vmem [resolvable:$false] %s10515_s19 }
  0xa4   : > { %s10517_s6 = scalar_lea.vmem %s10516_s19, 512  ;;  %p10518_p6 = scmp.lt.s32.totalorder %s11132_s12, %s10516_s19 }
  0xa5   : > { %p10513_p5 = pnand %p10511_p13, %p11140_p2  ;;  %p10519_p8 = scmp.lt.s32.totalorder %s10517_s6, %s10510_s13 }
  0xa7   : > { %p10514_p4 = pneg %p10513_p5  ;;  %p10520_p9 = por %p10519_p8, %p10518_p6 }
  0xa9   : > { %p10521_p11 = pnand %p10520_p9, %p10514_p4 }
  0xab   : > { %10524 = shalt.err (!%p10521_p11)
}
  0xac   : > { %s14648_s5 = smov 8   ;;  %s14649_s18 = smov 128  }
  0xad   : > { %10041 = dma.hbm_to_vmem [thread:$0]  (!%p11117_p0), %s11128_s23, 256, %s11132_s12, %s11134_s20, %s14649_s18, %s14649_s18, %s14648_s5  }
  0xae   : > { %s14650_s8 = sshll.u32 %s10802_s28, 8  ;;  %s14651_s19 = sld [smem:[#allocation165_spill]] }
  0xaf   : > { %s14652_s6 = sshll.u32 %s11110_s4, 4  ;;  %s10810_s27 = smov [#allocation11]  }
  0xb0   : > { %s873_s25 = scalar_lea.vmem [#allocation8], %s14652_s6  ;;  %s698_s22 = sshll.u32 %s10810_s27, 4  ;;  %s699_s22 = int_to_ptr.vmem [resolvable:$true] %s698_s22 }
  0xb1   : > { %s880_s30 = sshll.u32 %s873_s25, 4  ;;  %s10811_s15 = smov [#allocation14]   ;;  %s11176_s30 = int_to_ptr.vmem [resolvable:$true] %s880_s30 }
  0xb2   : > { %s722_s16 = sshll.u32 %s10811_s15, 4  ;;  %s14653_s10 = sld [smem:[#allocation168_spill]]  ;;  %s723_s16 = int_to_ptr.vmem [resolvable:$true] %s722_s16 }
  0xb3   : > { %p14654_p3 = scmp.ne.s32.totalorder %s14634_s9, 0 }
  0xb4   : > { %s11172_s13 = scalar_lea.hbm %s14651_s19, %s14650_s8 }
  0xb8   : > { %s10525_s12 = scalar_lea.hbm %s14653_s10, 768 }
  0xb9   : > { %p10526_p1 = scmp.ne.s32.totalorder %s14653_s10, %s10525_s12  ;;  %p10532_p4 = scmp.lt.u32.totalorder %s10525_s12, %s14653_s10 }
  0xbb   : > { %p10528_p6 = pnand %p10526_p1, %p14654_p3 }
  0xbd   : > { %p10529_p8 = pneg %p10528_p6 }
  0xbf   : > { %p10534_p10 = pnand %p10532_p4, %p10529_p8 }
  0xc1   : > { %10537 = shalt.err (!%p10534_p10)
}
  0xc2   : > { %s10538_s27 = scalar_lea.vmem %s699_s22, 768  ;;  %p10546_p5 = scmp.lt.s32.totalorder %s699_s22, %s699_s22 }
  0xc3   : > { %p10539_p7 = scmp.ne.s32.totalorder %s699_s22, %s10538_s27  ;;  %p10547_p9 = scmp.lt.s32.totalorder %s10538_s27, %s10538_s27 }
  0xc5   : > { %p10541_p12 = pnand %p10539_p7, %p14654_p3  ;;  %p10548_p11 = por %p10547_p9, %p10546_p5 }
  0xc7   : > { %p10542_p13 = pneg %p10541_p12 }
  0xc9   : > { %p10549_p0 = pnand %p10548_p11, %p10542_p13 }
  0xcb   : > { %10552 = shalt.err (!%p10549_p0)
}
  0xcc   : > { %p14655_p1 = scmp.ne.s32.totalorder %s14632_s2, 0  ;;  %s10553_s8 = scalar_lea.hbm %s14282_s11, 768 }
  0xcd   : > { %p10554_p6 = scmp.ne.s32.totalorder %s14282_s11, %s10553_s8  ;;  %p10560_p4 = scmp.lt.u32.totalorder %s10553_s8, %s14282_s11 }
  0xce   : > { %10019 = dma.hbm_to_vmem [thread:$0]  (!%p14655_p1), %s14653_s10, 768, %s699_s22, [#allocation10], %s14649_s18, %s14649_s18, %s14648_s5  }
  0xcf   : > { %p10556_p0 = pnand %p10554_p6, %p14654_p3 }
  0xd1   : > { %p10557_p8 = pneg %p10556_p0 }
  0xd3   : > { %p10562_p10 = pnand %p10560_p4, %p10557_p8 }
  0xd5   : > { %10565 = shalt.err (!%p10562_p10)
}
  0xd6   : > { %s10566_s26 = scalar_lea.vmem %s723_s16, 768  ;;  %p10574_p5 = scmp.lt.s32.totalorder %s723_s16, %s723_s16 }
  0xd7   : > { %p10567_p7 = scmp.ne.s32.totalorder %s723_s16, %s10566_s26  ;;  %p10575_p9 = scmp.lt.s32.totalorder %s10566_s26, %s10566_s26 }
  0xd9   : > { %p10569_p12 = pnand %p10567_p7, %p14654_p3  ;;  %p10576_p11 = por %p10575_p9, %p10574_p5 }
  0xdb   : > { %p10570_p13 = pneg %p10569_p12 }
  0xdd   : > { %p10577_p2 = pnand %p10576_p11, %p10570_p13 }
  0xdf   : > { %10580 = shalt.err (!%p10577_p2)
}
  0xe0   : > { %10025 = dma.hbm_to_vmem [thread:$0]  (!%p14655_p1), %s14282_s11, 768, %s723_s16, [#allocation13], %s14649_s18, %s14649_s18, %s14648_s5  }
  0xe1   : > { %s10812_s27 = smov [#allocation17]   ;;  %s10581_s29 = scalar_lea.hbm %s14292_s21, 18432 }
  0xe2   : > { %s770_s14 = sshll.u32 %s10812_s27, 4  ;;  %p10582_p2 = scmp.ne.s32.totalorder %s14292_s21, %s10581_s29  ;;  %s771_s14 = int_to_ptr.vmem [resolvable:$true] %s770_s14 }
  0xe3   : > { %p10588_p8 = scmp.lt.u32.totalorder %s10581_s29, %s14292_s21 }
  0xe4   : > { %p10584_p6 = pnand %p10582_p2, %p14654_p3 }
  0xe6   : > { %p10585_p0 = pneg %p10584_p6 }
  0xe8   : > { %p10590_p4 = pnand %p10588_p8, %p10585_p0 }
  0xea   : > { %10593 = shalt.err (!%p10590_p4)
}
  0xeb   : > { %s10594_s16 = scalar_lea.vmem %s771_s14, 18432  ;;  %p10602_p13 = scmp.lt.s32.totalorder %s771_s14, %s771_s14 }
  0xec   : > { %p10595_p10 = scmp.ne.s32.totalorder %s771_s14, %s10594_s16  ;;  %p10603_p5 = scmp.lt.s32.totalorder %s10594_s16, %s10594_s16 }
  0xee   : > { %p10597_p7 = pnand %p10595_p10, %p14654_p3  ;;  %p10604_p9 = por %p10603_p5, %p10602_p13 }
  0xf0   : > { %p10598_p12 = pneg %p10597_p7 }
  0xf2   : > { %p10605_p11 = pnand %p10604_p9, %p10598_p12 }
  0xf4   : > { %10608 = shalt.err (!%p10605_p11)
}
  0xf5   : > { %s10813_s23 = smov 384   ;;  %s10814_s26 = smov 24  }
  0xf6   : > { %10031 = dma.hbm_to_vmem [thread:$0]  (!%p14655_p1), %s14292_s21, 18432, %s771_s14, [#allocation16], %s10813_s23, %s10813_s23, %s10814_s26  }
  0xf7   : > { %s790_s3 = sshll.u32 %s14295_s24, 4  ;;  %s791_s3 = int_to_ptr.vmem [resolvable:$true] %s790_s3 }
  0xf8   : > { %s10609_s29 = scalar_lea.vmem %s791_s3, 16  ;;  %p10617_p8 = scmp.lt.s32.totalorder %s791_s3, %s791_s3 }
  0xf9   : > { %p10610_p2 = scmp.ne.s32.totalorder %s791_s3, %s10609_s29  ;;  %p10618_p4 = scmp.lt.s32.totalorder %s10609_s29, %s10609_s29 }
  0xfb   : > { %p10612_p6 = pnand %p10610_p2, %p14654_p3  ;;  %p10619_p10 = por %p10618_p4, %p10617_p8 }
  0xfd   : > { %p10613_p0 = pneg %p10612_p6 }
  0xff   : > { %p10620_p7 = pnand %p10619_p10, %p10613_p0 }
 0x101   : > { %10623 = shalt.err (!%p10620_p7)
}
 0x102   : > { %s10815_s8 = smov [#allocation18]   ;;  %s7573_s14 = sshll.u32 %s10802_s28, 4 }
 0x103   : > { %10034 = dma.vmem_to_smem (!%p14655_p1), %s791_s3, 16, %s10815_s8, [#allocation5]  }
 0x104   : > { %s14656_s12 = sld [smem:[#allocation161_spill]]  ;;  %s818_s16 = scalar_lea.vmem [#allocation2], %s11110_s4 }
 0x105   : > { %s825_s23 = sshll.u32 %s818_s16, 4  ;;  %s816_s26 = scalar_lea.sflag [#allocation3], %s11110_s4  ;;  %s826_s23 = int_to_ptr.vmem [resolvable:$true] %s825_s23 }
 0x106   : > { %p14657_p12 = scmp.ne.s32.totalorder %s14647_s7, 0 }
 0x10a   : > { %s11249_s9 = scalar_lea.hbm %s14656_s12, %s7573_s14  ;;  %s10629_s27 = scalar_lea.hbm %s14656_s12, 32 }
 0x10b   : > { %s10624_s2 = scalar_lea.hbm %s11249_s9, 16  ;;  %p10630_p1 = scmp.lt.u32.totalorder %s11249_s9, %s14656_s12 }
 0x10c   : > { %p10625_p3 = scmp.ne.s32.totalorder %s11249_s9, %s10624_s2  ;;  %p10631_p9 = scmp.lt.u32.totalorder %s10629_s27, %s10624_s2 }
 0x10d   : > { %p10633_p2 = scmp.lt.u32.totalorder %s10624_s2, %s11249_s9 }
 0x10e   : > { %p10627_p13 = pnand %p10625_p3, %p14657_p12  ;;  %p10632_p11 = por %p10631_p9, %p10630_p1 }
 0x110   : > { %p10628_p5 = pneg %p10627_p13  ;;  %p10634_p6 = por %p10633_p2, %p10632_p11 }
 0x112   : > { %p10635_p0 = pnand %p10634_p6, %p10628_p5 }
 0x114   : > { %10638 = shalt.err (!%p10635_p0)
}
 0x115   : > { %s10639_s4 = scalar_lea.vmem %s826_s23, 16  ;;  %s10816_s29 = smov [#allocation2]  }
 0x116   : > { %p10640_p8 = scmp.ne.s32.totalorder %s826_s23, %s10639_s4  ;;  %s10644_s8 = sshll.u32 %s10816_s29, 4  ;;  %s10645_s8 = int_to_ptr.vmem [resolvable:$false] %s10644_s8 }
 0x117   : > { %s10646_s14 = scalar_lea.vmem %s10645_s8, 32  ;;  %p10647_p7 = scmp.lt.s32.totalorder %s826_s23, %s10645_s8 }
 0x118   : > { %p10642_p4 = pnand %p10640_p8, %p14657_p12  ;;  %p10648_p3 = scmp.lt.s32.totalorder %s10646_s14, %s10639_s4 }
 0x11a   : > { %p10643_p10 = pneg %p10642_p4  ;;  %p10649_p13 = por %p10648_p3, %p10647_p7 }
 0x11c   : > { %p10650_p1 = pnand %p10649_p13, %p10643_p10 }
 0x11e   : > { %10653 = shalt.err (!%p10650_p1)
}
 0x11f   : > { %p14658_p9 = scmp.ne.s32.totalorder %s14645_s17, 0  ;;  %s10654_s1 = scalar_lea.hbm %s11172_s13, 256 }
 0x120   : > { %p10655_p5 = scmp.ne.s32.totalorder %s11172_s13, %s10654_s1  ;;  %s10659_s2 = scalar_lea.hbm %s14651_s19, 512 }
 0x121   : > { %10038 = dma.hbm_to_vmem [thread:$0]  (!%p14658_p9), %s11249_s9, 16, %s826_s23, %s816_s26  }
 0x122   : > { %p10657_p11 = pnand %p10655_p5, %p14657_p12  ;;  %p10660_p6 = scmp.lt.u32.totalorder %s11172_s13, %s14651_s19 }
 0x123   : > { %p10661_p0 = scmp.lt.u32.totalorder %s10659_s2, %s10654_s1  ;;  %p10663_p4 = scmp.lt.u32.totalorder %s10654_s1, %s11172_s13 }
 0x124   : > { %p10658_p2 = pneg %p10657_p11 }
 0x125   : > { %p10662_p8 = por %p10661_p0, %p10660_p6 }
 0x127   : > { %p10664_p10 = por %p10663_p4, %p10662_p8 }
 0x129   : > { %p10665_p7 = pnand %p10664_p10, %p10658_p2 }
 0x12b   : > { %10668 = shalt.err (!%p10665_p7)
}
 0x12c   : > { %s10669_s9 = scalar_lea.vmem %s11176_s30, 256  ;;  %s10817_s23 = smov [#allocation8]  }
 0x12d   : > { %p10670_p3 = scmp.ne.s32.totalorder %s11176_s30, %s10669_s9  ;;  %s10674_s26 = sshll.u32 %s10817_s23, 4  ;;  %s10675_s26 = int_to_ptr.vmem [resolvable:$false] %s10674_s26 }
 0x12e   : > { %s10676_s27 = scalar_lea.vmem %s10675_s26, 512  ;;  %p10677_p5 = scmp.lt.s32.totalorder %s11176_s30, %s10675_s26 }
 0x12f   : > { %p10672_p13 = pnand %p10670_p3, %p14657_p12  ;;  %p10678_p11 = scmp.lt.s32.totalorder %s10676_s27, %s10669_s9 }
 0x131   : > { %p10673_p1 = pneg %p10672_p13  ;;  %p10679_p6 = por %p10678_p11, %p10677_p5 }
 0x133   : > { %p10680_p0 = pnand %p10679_p6, %p10673_p1 }
 0x135   : > { %10683 = shalt.err (!%p10680_p0)
}
 0x136   : > { %10044 = dma.hbm_to_vmem [thread:$0]  (!%p14658_p9), %s11172_s13, 256, %s11176_s30, %s11134_s20, %s14649_s18, %s14649_s18, %s14648_s5  }
 0x137   : > { %p14659_p12 = scmp.ne.s32.totalorder %s14631_s0, 0 }
 0x139   : > { %892 = sbr.rel (%p14659_p12) target bundleno = 5726 (0x165e), region = 120 }
 0x140   : > { %s14660_s7 = sld [smem:[#allocation31_spill]]  ;;  %s14661_s15 = sld [smem:[#allocation36_spill]] }
 0x146   : > { %s11298_s3 = sand.u32 1, %s14660_s7   ;;  %p14662_p2 = scmp.ne.s32.totalorder %s14661_s15, 0 }
 0x147   : > { %s895_s4 = scalar_lea.sflag [#allocation3], %s11298_s3  ;;  %s897_s29 = scalar_lea.vmem [#allocation2], %s11298_s3 }
 0x148   : > { %10757 = dma.done.wait (%p14662_p2), %s895_s4, 16  }
 0x149   : > { %10759 = vsyncadd (%p14662_p2), %s895_s4, 4294967280  ;;  %s14663_s17 = sld [smem:[#allocation33_spill]]  ;;  %s7581_s30 = sshll.u32 %s11298_s3, 4 }
 0x14a   : > { %s11308_s5 = scalar_lea.vmem [#allocation6], %s7581_s30 }
 0x14f   : > { %s902_s20 = sand.u32 1, %s14663_s17  }
 0x150   : > { %s903_s0 = scalar_lea.sflag [#allocation7], %s902_s20 }
 0x151   : > { %10761 = dma.done.wait (%p14662_p2), %s903_s0, 512  }
 0x152   : > { %10763 = vsyncadd (%p14662_p2), %s903_s0, 4294966784  ;;  %s11314_s18 = scalar_lea.vmem [#allocation8], %s7581_s30  ;;  %p14664_p9 = scmp.eq.s32.totalorder %s14663_s17, 0 }
 0x154   : > { %10765 = dma.done.wait (%p14664_p9), [#allocation10], 1280   ;;  %p14665_p8 = pmov %p14664_p9 }
 0x156   : > { %10767 = vsyncadd (%p14665_p8), [#allocation10], 4294966016  ;;  %p14666_p4 = pmov %p14665_p8 }
 0x158   : > { %10769 = dma.done.wait (%p14666_p4), [#allocation13], 784   ;;  %p14667_p10 = pmov %p14666_p4 }
 0x159   : > { %p14668_p7 = pmov %p14666_p4 }
 0x15a   : > { %10771 = vsyncadd (%p14667_p10), [#allocation13], 4294966512 }
 0x15b   : > { %10773 = dma.done.wait (%p14668_p7), [#allocation16], 18448   ;;  %p14669_p3 = pmov %p14666_p4 }
 0x15d   : > { %10775 = vsyncadd (%p14669_p3), [#allocation16], 4294948848  ;;  %p14670_p13 = pmov %p14669_p3 }
 0x15e   : > { %p14671_p1 = pmov %p14669_p3 }
 0x15f   : > { %10777 = dma.done.wait (%p14670_p13), [#allocation5], 16  }
 0x160   : > { %10779 = vsyncadd (%p14671_p1), [#allocation5], 4294967280 }
 0x161   : > { %948 = sfence }
 0x162   : > { %s14672_s14 = sld [smem:[#allocation172_spill]]  ;;  %v14345_v7 = vmov 0.0   ;;  %s14673_s7 = sld [smem:[#allocation174_spill]]  ;;  %v1076_v38 = vld [vmem:[%s11314_s18] sm:$0xff]  ;;  %vm1113_vm0 = vcmask 392192   ;;  %v1077_v46 = vld [vmem:[%s11314_s18 + $0x8] sm:$0xff] }
 0x163   : > { %1184 = vmatprep.mubr.f32.mxu1 %v14345_v7  ;;  %s14675_s25 = sld [smem:[#allocation173_spill]]  ;;  %s14676_s9 = sld [smem:[#allocation176_spill]]  ;;  %vm2288_vm13 = vcmask 261120   ;;  %vm2260_vm14 = vcmask 385024  }
 0x164   : > { %s14677_s1 = sld [smem:[#allocation175_spill]]  ;;  %p1043_p5 = scmp.lt.s32.totalorder %s14663_s17, 1 }
 0x165   : > { %s7600_s26 = sld [smem:[#allocation18 + $0x5]]  ;;  %s14679_s4 = sld [smem:[#allocation162_spill]] }
 0x166   : > { %s12184_s6 = scalar_select %p1043_p5, %s14663_s17, 1 }
 0x167   : > { %s1042_s30 = scalar_lea.vmem [#allocation20], %s11298_s3  ;;  %s14681_s8 = sld [smem:[#allocation167_spill]] }
 0x168   : > { %v1079_v0 = vld [vmem:[%s14672_s14 + $0x8] sm:$0xff]  ;;  %v1082_v1 = vld [vmem:[%s14672_s14 + $0x20] sm:$0xff]  ;;  %v1081_v4 = vld [vmem:[%s14672_s14 + $0x18] sm:$0xff]  ;;  %s14674_s15 = smov %s14673_s7  ;;  %s7711_s16 = sshll.u32 %s12184_s6, 6 }
 0x169   : > { %v1078_v2 = vld [vmem:[%s14672_s14] sm:$0xff]  ;;  %v8845_v3 = vpack.c.bf16 %v1082_v1, %v1079_v0  ;;  %v1085_v5 = vld [vmem:[%s14672_s14 + $0x38] sm:$0xff]  ;;  %v1088_v6 = vld [vmem:[%s14672_s14 + $0x50] sm:$0xff]  ;;  %s7712_s27 = sshll.u32 %s12184_s6, 4  ;;  %s14684_s22 = sld [smem:[#allocation171_spill]] }
 0x16a   : > { %v8847_v8 = vpack.c.bf16 %v1081_v4, %v1078_v2  ;;  %v8849_v9 = vpack.c.bf16 %v1088_v6, %v1085_v5  ;;  %v1084_v10 = vld [vmem:[%s14672_s14 + $0x30] sm:$0xff]  ;;  %v1087_v11 = vld [vmem:[%s14672_s14 + $0x48] sm:$0xff]  ;;  %v1094_v13 = vld [vmem:[%s14672_s14 + $0x80] sm:$0xff]  ;;  %s14685_s2 = sld [smem:[#allocation159_spill]]  ;;  %s14697_s18 = sld [smem:[#allocation177_spill]] }
 0x16b   : > { %v1091_v12 = vld [vmem:[%s14672_s14 + $0x68] sm:$0xff]  ;;  %8846 = vmatprep.subr.bf16.mxu1 %v8845_v3  ;;  %v8851_v14 = vpack.c.bf16 %v1087_v11, %v1084_v10  ;;  %v1090_v16 = vld [vmem:[%s14672_s14 + $0x60] sm:$0xff]  ;;  %v1093_v17 = vld [vmem:[%s14672_s14 + $0x78] sm:$0xff]  ;;  %s1055_s20 = scalar_lea.vmem %s14679_s4, %s7712_s27  ;;  %s14691_s27 = sld [smem:[#allocation160_spill]] }
 0x16c   : > { %8848 = vmatpush1.bf16.msra.mxu1 %v8847_v8  ;;  %v8853_v15 = vpack.c.bf16 %v1094_v13, %v1091_v12  ;;  %v1080_v18 = vld [vmem:[%s14672_s14 + $0x10] sm:$0xff]  ;;  %v1083_v19 = vld [vmem:[%s14672_s14 + $0x28] sm:$0xff]  ;;  %v1438_v21 = vld [vmem:[%s14674_s15 + $0x20] sm:$0xff]  ;;  %v8855_v24 = vpack.c.bf16 %v1093_v17, %v1090_v16  ;;  %s15043_s0 = sld [smem:[#allocation182_spill]] }
 0x16d   : > { %8850 = vmatprep.subr.bf16.mxu1 %v8849_v9  ;;  %v1435_v20 = vld [vmem:[%s14673_s7 + $0x8] sm:$0xff]  ;;  %v1434_v22 = vld [vmem:[%s14674_s15] sm:$0xff]  ;;  %v1437_v23 = vld [vmem:[%s14674_s15 + $0x18] sm:$0xff]  ;;  %v8857_v30 = vpack.c.bf16 %v1083_v19, %v1080_v18 }
 0x16e   : > { %v8869_v25 = vpack.c.bf16 %v1438_v21, %v1435_v20  ;;  %v8871_v26 = vpack.c.bf16 %v1437_v23, %v1434_v22  ;;  %v1441_v27 = vld [vmem:[%s14674_s15 + $0x38] sm:$0xff]  ;;  %v1444_v28 = vld [vmem:[%s14674_s15 + $0x50] sm:$0xff]  ;;  %v1086_v31 = vld [vmem:[%s14672_s14 + $0x40] sm:$0xff] }
 0x16f   : > { %v1440_v29 = vld [vmem:[%s14674_s15 + $0x30] sm:$0xff]  ;;  %v8873_v32 = vpack.c.bf16 %v1444_v28, %v1441_v27  ;;  %v1443_v33 = vld [vmem:[%s14674_s15 + $0x48] sm:$0xff]  ;;  %v1089_v34 = vld [vmem:[%s14672_s14 + $0x58] sm:$0xff] }
 0x170   : > { %8852 = vmatpush1.bf16.msra.mxu1 %v8851_v14  ;;  %8870 = vmatprep.subr.bf16.mxu0 %v8869_v25  ;;  %v1447_v35 = vld [vmem:[%s14674_s15 + $0x68] sm:$0xff]  ;;  %v1450_v36 = vld [vmem:[%s14674_s15 + $0x80] sm:$0xff]  ;;  %v8875_v37 = vpack.c.bf16 %v1443_v33, %v1440_v29  ;;  %v1449_v40 = vld [vmem:[%s14674_s15 + $0x78] sm:$0xff]  ;;  %v8861_v41 = vpack.c.bf16 %v1089_v34, %v1086_v31 }
 0x171   : > { %8854 = vmatprep.subr.bf16.mxu1 %v8853_v15  ;;  %8872 = vmatpush1.bf16.msra.mxu0 %v8871_v26  ;;  %v1446_v39 = vld [vmem:[%s14674_s15 + $0x60] sm:$0xff]  ;;  %v8877_v42 = vpack.c.bf16 %v1450_v36, %v1447_v35  ;;  %v1092_v43 = vld [vmem:[%s14672_s14 + $0x70] sm:$0xff]  ;;  %v1095_v44 = vld [vmem:[%s14672_s14 + $0x88] sm:$0xff]  ;;  %s1050_s7 = scalar_lea.vmem %s14691_s27, %s12184_s6  ;;  %s14807_s27 = sld [smem:[#allocation179_spill]] }
 0x172   : > { %8874 = vmatprep.subr.bf16.mxu0 %v8873_v32  ;;  %v8879_v45 = vpack.c.bf16 %v1449_v40, %v1446_v39  ;;  %v8865_v47 = vpack.c.bf16 %v1095_v44, %v1092_v43  ;;  %v1453_v48 = vld [vmem:[%s14674_s15 + $0x98] sm:$0xff]  ;;  %v1456_v49 = vld [vmem:[%s14674_s15 + $0xb0] sm:$0xff]  ;;  %v1455_v52 = vld [vmem:[%s14674_s15 + $0xa8] sm:$0xff]  ;;  %s7705_s6 = sshll.u32 %s14663_s17, 4 }
 0x173   : > { %v8881_v50 = vpack.c.bf16 %v1456_v49, %v1453_v48  ;;  %v1452_v51 = vld [vmem:[%s14674_s15 + $0x90] sm:$0xff]  ;;  %v1459_v54 = vld [vmem:[%s14674_s15 + $0xc8] sm:$0xff]  ;;  %v1462_v55 = vld [vmem:[%s14674_s15 + $0xe0] sm:$0xff]  ;;  %s14195_s13 = scalar_lea.hbm %s15043_s0, %s7705_s6 }
 0x174   : > { %8856 = vmatpush1.bf16.msra.mxu1 %v8855_v24  ;;  %v8883_v53 = vpack.c.bf16 %v1455_v52, %v1452_v51  ;;  %v8885_v56 = vpack.c.bf16 %v1462_v55, %v1459_v54  ;;  %v1458_v57 = vld [vmem:[%s14674_s15 + $0xc0] sm:$0xff]  ;;  %v1461_v58 = vld [vmem:[%s14674_s15 + $0xd8] sm:$0xff]  ;;  %v1468_v61 = vld [vmem:[%s14674_s15 + $0x110] sm:$0xff] }
 0x175   : > { %8858 = vmatprep.subr.bf16.mxu1 %v8857_v30  ;;  %8876 = vmatpush1.bf16.msra.mxu0 %v8875_v37  ;;  %v8887_v59 = vpack.c.bf16 %v1461_v58, %v1458_v57  ;;  %v1465_v60 = vld [vmem:[%s14674_s15 + $0xf8] sm:$0xff]  ;;  %v1464_v63 = vld [vmem:[%s14674_s15 + $0xf0] sm:$0xff]  ;;  %v1467_v0 = vld [vmem:[%s14674_s15 + $0x108] sm:$0xff] }
 0x176   : > { %8878 = vmatprep.subr.bf16.mxu0 %v8877_v42  ;;  %v8889_v62 = vpack.c.bf16 %v1468_v61, %v1465_v60  ;;  %v8891_v1 = vpack.c.bf16 %v1467_v0, %v1464_v63  ;;  %v1471_v2 = vld [vmem:[%s14674_s15 + $0x128] sm:$0xff]  ;;  %v1474_v3 = vld [vmem:[%s14674_s15 + $0x140] sm:$0xff]  ;;  %v1473_v6 = vld [vmem:[%s14674_s15 + $0x138] sm:$0xff] }
 0x177   : > { %7602 = vmatmul.mubr.msk.f32.vlgmr.msra.gmra.mrb[0].mxu1 %vm1113_vm0, %v1076_v38  ;;  %v8893_v4 = vpack.c.bf16 %v1474_v3, %v1471_v2  ;;  %v1470_v5 = vld [vmem:[%s14674_s15 + $0x120] sm:$0xff]  ;;  %v1477_v9 = vld [vmem:[%s14674_s15 + $0x158] sm:$0xff]  ;;  %v1480_v10 = vld [vmem:[%s14674_s15 + $0x170] sm:$0xff] }
 0x178   : > { %8860 = vmatpush3.bf16.msra.mxu1 %v8857_v30  ;;  %1190 = vmatprep.mubr.f32.mxu1 %v14345_v7  ;;  %v8895_v8 = vpack.c.bf16 %v1473_v6, %v1470_v5  ;;  %v8897_v11 = vpack.c.bf16 %v1480_v10, %v1477_v9  ;;  %v1476_v12 = vld [vmem:[%s14674_s15 + $0x150] sm:$0xff]  ;;  %v1479_v13 = vld [vmem:[%s14674_s15 + $0x168] sm:$0xff]  ;;  %v1486_v16 = vld [vmem:[%s14674_s15 + $0x1a0] sm:$0xff] }
 0x179   : > { %8862 = vmatprep.subr.bf16.mxu1 %v8861_v41  ;;  %8880 = vmatpush1.bf16.msra.mxu0 %v8879_v45  ;;  %v8899_v14 = vpack.c.bf16 %v1479_v13, %v1476_v12  ;;  %v1483_v15 = vld [vmem:[%s14674_s15 + $0x188] sm:$0xff]  ;;  %v1484_v17 = vld [vmem:[%s14674_s15 + $0x190] sm:$0xff]  ;;  %v1482_v20 = vld [vmem:[%s14674_s15 + $0x180] sm:$0xff] }
 0x17a   : > { %8882 = vmatprep.subr.bf16.mxu0 %v8881_v50  ;;  %v8901_v18 = vpack.c.bf16 %v1486_v16, %v1483_v15  ;;  %v1487_v19 = vld [vmem:[%s14674_s15 + $0x1a8] sm:$0xff]  ;;  %v1485_v21 = vld [vmem:[%s14674_s15 + $0x198] sm:$0xff]  ;;  %v1436_v24 = vld [vmem:[%s14674_s15 + $0x10] sm:$0xff] }
 0x17b   : > { %7603 = vmatmul.mubr.msk.f32.gmra.mrb[2].mxu1 %vm1113_vm0, %v1077_v46  ;;  %v8965_v22 = vpack.c.bf16 %v1487_v19, %v1484_v17  ;;  %v8903_v23 = vpack.c.bf16 %v1485_v21, %v1482_v20  ;;  %v1439_v25 = vld [vmem:[%s14674_s15 + $0x28] sm:$0xff]  ;;  %v1489_v27 = vld [vmem:[%s14674_s15 + $0x1b8] sm:$0xff]  ;;  %v1492_v28 = vld [vmem:[%s14674_s15 + $0x1d0] sm:$0xff] }
 0x17c   : > { %8864 = vmatpush3.bf16.msra.mxu1 %v8861_v41  ;;  %8320 = vmatprep.mubr.msk.f32.mxu1 %vm1113_vm0, %v1076_v38  ;;  %v8967_v26 = vpack.c.bf16 %v1439_v25, %v1436_v24  ;;  %v1490_v29 = vld [vmem:[%s14674_s15 + $0x1c0] sm:$0xff]  ;;  %v8905_v30 = vpack.c.bf16 %v1492_v28, %v1489_v27  ;;  %v1493_v31 = vld [vmem:[%s14674_s15 + $0x1d8] sm:$0xff]  ;;  %v1488_v32 = vld [vmem:[%s14674_s15 + $0x1b0] sm:$0xff] }
 0x17d   : > { %8866 = vmatprep.subr.bf16.mxu1 %v8865_v47  ;;  %8884 = vmatpush1.bf16.msra.mxu0 %v8883_v53  ;;  %v1491_v33 = vld [vmem:[%s14674_s15 + $0x1c8] sm:$0xff]  ;;  %v8969_v34 = vpack.c.bf16 %v1493_v31, %v1490_v29  ;;  %v1442_v36 = vld [vmem:[%s14674_s15 + $0x40] sm:$0xff]  ;;  %v1445_v37 = vld [vmem:[%s14674_s15 + $0x58] sm:$0xff] }
 0x17e   : > { %8886 = vmatprep.subr.bf16.mxu0 %v8885_v56  ;;  %v8907_v35 = vpack.c.bf16 %v1491_v33, %v1488_v32  ;;  %v8971_v38 = vpack.c.bf16 %v1445_v37, %v1442_v36  ;;  %v1495_v39 = vld [vmem:[%s14674_s15 + $0x1e8] sm:$0xff]  ;;  %v1498_v40 = vld [vmem:[%s14674_s15 + $0x200] sm:$0xff]  ;;  %v1496_v41 = vld [vmem:[%s14674_s15 + $0x1f0] sm:$0xff] }
 0x17f   : > { %v8909_v42 = vpack.c.bf16 %v1498_v40, %v1495_v39  ;;  %v1499_v43 = vld [vmem:[%s14674_s15 + $0x208] sm:$0xff]  ;;  %v1494_v44 = vld [vmem:[%s14674_s15 + $0x1e0] sm:$0xff]  ;;  %v1497_v45 = vld [vmem:[%s14674_s15 + $0x1f8] sm:$0xff] }
 0x180   : > { %8868 = vmatpush3.bf16.msra.mxu1 %v8865_v47  ;;  %v8911_v47 = vpack.c.bf16 %v1497_v45, %v1494_v44  ;;  %v1448_v48 = vld [vmem:[%s14674_s15 + $0x70] sm:$0xff]  ;;  %v1451_v49 = vld [vmem:[%s14674_s15 + $0x88] sm:$0xff]  ;;  %v1501_v51 = vld [vmem:[%s14674_s15 + $0x218] sm:$0xff] }
 0x181   : > { %8888 = vmatpush1.bf16.msra.mxu0 %v8887_v59  ;;  %8966 = vmatprep.subr.bf16.mxu1 %v8965_v22  ;;  %v8975_v50 = vpack.c.bf16 %v1451_v49, %v1448_v48  ;;  %v1504_v52 = vld [vmem:[%s14674_s15 + $0x230] sm:$0xff]  ;;  %v1502_v53 = vld [vmem:[%s14674_s15 + $0x220] sm:$0xff]  ;;  %v1505_v55 = vld [vmem:[%s14674_s15 + $0x238] sm:$0xff] }
 0x182   : > { %8890 = vmatprep.subr.bf16.mxu0 %v8889_v62  ;;  %v8913_v54 = vpack.c.bf16 %v1504_v52, %v1501_v51  ;;  %v1500_v56 = vld [vmem:[%s14674_s15 + $0x210] sm:$0xff]  ;;  %v1503_v57 = vld [vmem:[%s14674_s15 + $0x228] sm:$0xff]  ;;  %v8977_v58 = vpack.c.bf16 %v1505_v55, %v1502_v53  ;;  %v1454_v60 = vld [vmem:[%s14674_s15 + $0xa0] sm:$0xff] }
 0x183   : > { %8321 = vmatmul.mubr.msk.f32.vlgmr.msra.gmra.mrb[4].mxu1 %vm1113_vm0, %v1077_v46  ;;  %v8973_v46 = vpack.c.bf16 %v1499_v43, %v1496_v41  ;;  %v8915_v59 = vpack.c.bf16 %v1503_v57, %v1500_v56  ;;  %v1457_v61 = vld [vmem:[%s14674_s15 + $0xb8] sm:$0xff]  ;;  %v1507_v63 = vld [vmem:[%s14674_s15 + $0x248] sm:$0xff]  ;;  %v1510_v0 = vld [vmem:[%s14674_s15 + $0x260] sm:$0xff] }
 0x184   : > { %8968 = vmatpush3.bf16.msra.mxu1 %v8967_v26  ;;  %v8979_v62 = vpack.c.bf16 %v1457_v61, %v1454_v60  ;;  %v8917_v2 = vpack.c.bf16 %v1510_v0, %v1507_v63  ;;  %v1511_v3 = vld [vmem:[%s14674_s15 + $0x268] sm:$0xff]  ;;  %v1509_v5 = vld [vmem:[%s14674_s15 + $0x258] sm:$0xff]  ;;  %v1460_v9 = vld [vmem:[%s14674_s15 + $0xd0] sm:$0xff] }
 0x185   : > { %8892 = vmatpush1.bf16.msra.mxu0 %v8891_v1  ;;  %8970 = vmatprep.subr.bf16.mxu1 %v8969_v34  ;;  %v1508_v1 = vld [vmem:[%s14674_s15 + $0x250] sm:$0xff]  ;;  %v1463_v10 = vld [vmem:[%s14674_s15 + $0xe8] sm:$0xff]  ;;  %v1513_v12 = vld [vmem:[%s14674_s15 + $0x278] sm:$0xff] }
 0x186   : > { %8894 = vmatprep.subr.bf16.mxu0 %v8893_v4  ;;  %v1506_v4 = vld [vmem:[%s14674_s15 + $0x240] sm:$0xff]  ;;  %v8981_v6 = vpack.c.bf16 %v1511_v3, %v1508_v1  ;;  %v1516_v13 = vld [vmem:[%s14674_s15 + $0x290] sm:$0xff]  ;;  %v1517_v16 = vld [vmem:[%s14674_s15 + $0x298] sm:$0xff] }
 0x187   : > { %v8921_v15 = vpack.c.bf16 %v1516_v13, %v1513_v12  ;;  %v1512_v17 = vld [vmem:[%s14674_s15 + $0x270] sm:$0xff]  ;;  %v1466_v21 = vld [vmem:[%s14674_s15 + $0x100] sm:$0xff]  ;;  %v1469_v22 = vld [vmem:[%s14674_s15 + $0x118] sm:$0xff] }
 0x188   : > { %8972 = vmatpush3.bf16.msra.mxu1 %v8971_v38  ;;  %v1519_v24 = vld [vmem:[%s14674_s15 + $0x2a8] sm:$0xff]  ;;  %v1522_v25 = vld [vmem:[%s14674_s15 + $0x2c0] sm:$0xff]  ;;  %v1520_v26 = vld [vmem:[%s14674_s15 + $0x2b0] sm:$0xff] }
 0x189   : > { %8896 = vmatpush1.bf16.msra.mxu0 %v8895_v8  ;;  %8974 = vmatprep.subr.bf16.mxu1 %v8973_v46  ;;  %v8919_v8 = vpack.c.bf16 %v1509_v5, %v1506_v4  ;;  %v8925_v27 = vpack.c.bf16 %v1522_v25, %v1519_v24  ;;  %v1523_v28 = vld [vmem:[%s14674_s15 + $0x2c8] sm:$0xff]  ;;  %v1518_v29 = vld [vmem:[%s14674_s15 + $0x2a0] sm:$0xff]  ;;  %v1472_v33 = vld [vmem:[%s14674_s15 + $0x130] sm:$0xff] }
 0x18a   : > { %8898 = vmatprep.subr.bf16.mxu0 %v8897_v11  ;;  %v8983_v11 = vpack.c.bf16 %v1463_v10, %v1460_v9  ;;  %v8989_v31 = vpack.c.bf16 %v1523_v28, %v1520_v26  ;;  %v1475_v34 = vld [vmem:[%s14674_s15 + $0x148] sm:$0xff]  ;;  %v1525_v36 = vld [vmem:[%s14674_s15 + $0x2d8] sm:$0xff]  ;;  %v1528_v37 = vld [vmem:[%s14674_s15 + $0x2f0] sm:$0xff] }
 0x18b   : > { %v1526_v38 = vld [vmem:[%s14674_s15 + $0x2e0] sm:$0xff]  ;;  %v8929_v39 = vpack.c.bf16 %v1528_v37, %v1525_v36  ;;  %v1529_v40 = vld [vmem:[%s14674_s15 + $0x2f8] sm:$0xff]  ;;  %v1524_v41 = vld [vmem:[%s14674_s15 + $0x2d0] sm:$0xff] }
 0x18c   : > { %8976 = vmatpush3.bf16.msra.mxu1 %v8975_v50  ;;  %v8993_v43 = vpack.c.bf16 %v1529_v40, %v1526_v38  ;;  %v1478_v45 = vld [vmem:[%s14674_s15 + $0x160] sm:$0xff]  ;;  %v1481_v46 = vld [vmem:[%s14674_s15 + $0x178] sm:$0xff]  ;;  %v1531_v48 = vld [vmem:[%s14674_s15 + $0x308] sm:$0xff] }
 0x18d   : > { %8900 = vmatpush1.bf16.msra.mxu0 %v8899_v14  ;;  %8978 = vmatprep.subr.bf16.mxu1 %v8977_v58  ;;  %v1514_v14 = vld [vmem:[%s14674_s15 + $0x280] sm:$0xff]  ;;  %v1532_v50 = vld [vmem:[%s14674_s15 + $0x310] sm:$0xff]  ;;  %v1535_v52 = vld [vmem:[%s14674_s15 + $0x328] sm:$0xff] }
 0x18e   : > { %8902 = vmatprep.subr.bf16.mxu0 %v8901_v18  ;;  %v1515_v18 = vld [vmem:[%s14674_s15 + $0x288] sm:$0xff]  ;;  %v8985_v19 = vpack.c.bf16 %v1517_v16, %v1514_v14  ;;  %v1534_v49 = vld [vmem:[%s14674_s15 + $0x320] sm:$0xff]  ;;  %v11694_v53 = vpack.c.bf16 %v1535_v52, %v1532_v50 }
 0x18f   : > { %v8923_v20 = vpack.c.bf16 %v1515_v18, %v1512_v17  ;;  %v8933_v51 = vpack.c.bf16 %v1534_v49, %v1531_v48  ;;  %v1096_v57 = vld [vmem:[%s14675_s25] sm:$0x7]  ;;  %s14678_s25 = sld [smem:[#allocation164_spill]] }
 0x190   : > { %8980 = vmatpush3.bf16.msra.mxu1 %v8979_v62 }
 0x191   : > { %8904 = vmatpush1.bf16.msra.mxu0 %v8903_v23  ;;  %8982 = vmatprep.subr.bf16.mxu1 %v8981_v6  ;;  %v8987_v23 = vpack.c.bf16 %v1469_v22, %v1466_v21 }
 0x192   : > { %8906 = vmatprep.subr.bf16.mxu0 %v8905_v30  ;;  %v1521_v30 = vld [vmem:[%s14674_s15 + $0x2b8] sm:$0xff] }
 0x193   : > { %v8927_v32 = vpack.c.bf16 %v1521_v30, %v1518_v29 }
 0x194   : > { %8984 = vmatpush3.bf16.msra.mxu1 %v8983_v11 }
 0x195   : > { %8908 = vmatpush1.bf16.msra.mxu0 %v8907_v35  ;;  %8986 = vmatprep.subr.bf16.mxu1 %v8985_v19  ;;  %v8991_v35 = vpack.c.bf16 %v1475_v34, %v1472_v33  ;;  %s1060_s23 = scalar_lea.vmem %s14678_s25, %s7711_s16  ;;  %s1047_s25 = scalar_lea.vmem %s14685_s2, %s7711_s16 }
 0x196   : > { %8910 = vmatprep.subr.bf16.mxu0 %v8909_v42  ;;  %v1527_v42 = vld [vmem:[%s14674_s15 + $0x2e8] sm:$0xff]  ;;  %s7599_s16 = sld [smem:[#allocation18 + $0x4]]  ;;  %s7596_s2 = sld [smem:[#allocation18 + $0x1]] }
 0x197   : > { %v8931_v44 = vpack.c.bf16 %v1527_v42, %v1524_v41 }
 0x198   : > { %8988 = vmatpush3.bf16.msra.mxu1 %v8987_v23 }
 0x199   : > { %8912 = vmatpush1.bf16.msra.mxu0 %v8911_v47  ;;  %8990 = vmatprep.subr.bf16.mxu1 %v8989_v31  ;;  %v8995_v47 = vpack.c.bf16 %v1481_v46, %v1478_v45 }
 0x19a   : > { %8914 = vmatprep.subr.bf16.mxu0 %v8913_v54  ;;  %v1098_v54 = vlaneseq }
 0x19c   : > { %8992 = vmatpush3.bf16.msra.mxu1 %v8991_v35  ;;  %v11698_v55 = vshrl.u32 %v1098_v54, 7 }
 0x19d   : > { %8916 = vmatpush1.bf16.msra.mxu0 %v8915_v59  ;;  %8994 = vmatprep.subr.bf16.mxu1 %v8993_v43 }
 0x19e   : > { %8918 = vmatprep.subr.bf16.mxu0 %v8917_v2  ;;  %v11701_v56 = vsub.s32 0, %v11698_v55  ;;  %v11707_v58 = vsub.s32 1, %v11698_v55 }
 0x1a0   : > { %8996 = vmatpush3.bf16.msra.mxu1 %v8995_v47  ;;  %v1101_v59 = vrot.slane %v1096_v57, %v11701_v56  ;;  %v1105_v60 = vrot.slane %v1096_v57, %v11707_v58 }
 0x1a1   : > { %8920 = vmatpush1.bf16.msra.mxu0 %v8919_v8  ;;  %8998 = vmatprep.subr.bf16.mxu1 %v11694_v53  ;;  %v11725_v8 = vsub.s32 2, %v11698_v55 }
 0x1a2   : > { %8922 = vmatprep.subr.bf16.mxu0 %v8921_v15 }
 0x1a3   : > { %v1109_v17 = vrot.slane %v1096_v57, %v11725_v8 }
 0x1a5   : > { %8924 = vmatpush1.bf16.msra.mxu0 %v8923_v20 }
 0x1a6   : > { %8926 = vmatprep.subr.bf16.mxu0 %v8925_v27 }
 0x1a9   : > { %8928 = vmatpush1.bf16.msra.mxu0 %v8927_v32 }
 0x1aa   : > { %8930 = vmatprep.subr.bf16.mxu0 %v8929_v39 }
 0x1ad   : > { %8932 = vmatpush1.bf16.msra.mxu0 %v8931_v44 }
 0x1ae   : > { %8934 = vmatprep.subr.bf16.mxu0 %v8933_v51 }
 0x24a   : > { %v1186_v61 = vpop.f32.mrb[0].mxu1 }
 0x24b   : > { %v11711_v62 = vadd.f32 %v1186_v61, %v1101_v59  ;;  %v1188_v63 = vpop.f32.mrb[1].mxu1 }
 0x24c   : > { %v11713_v0 = vadd.f32 %v1188_v63, %v1105_v60 }
 0x24d   : > { %v11716_v1 = vmul.f32 0.70710677, %v11711_v62 }
 0x24e   : > { %v11719_v2 = vmul.f32 0.70710677, %v11713_v0  ;;  %v1192_v3 = vpop.f32.mrb[2].mxu1 }
 0x24f   : > { %v1284_v4 = vand.u32 2147483647, %v11716_v1  ;;  %v11722_v5 = vadd.f32 %v1192_v3, %v1101_v59  ;;  %v1194_v6 = vpop.f32.mrb[3].mxu1  ;;  %vm1404_vm1 = vcmp.ge.f32.partialorder %v11716_v1, 0.0  ;;  %v1272_v1 = vmul.f32 0.5, %v11711_v62  ;;  %v1539_v62 = vld [vmem:[%s14674_s15 + $0x348] sm:$0xff] }
 0x250   : > { %v1285_v9 = vand.u32 2147483647, %v11719_v2  ;;  %v11728_v10 = vadd.f32 %v1194_v6, %v1105_v60  ;;  %vm1405_vm2 = vcmp.ge.f32.partialorder %v11719_v2, 0.0 }
 0x251   : > { %v1290_v11 = vmul.f32 0.3275911, %v1284_v4  ;;  %v11731_v12 = vmul.f32 0.70710677, %v11722_v5  ;;  %v1368_v30 = vsub.f32 0.0, %v1284_v4 }
 0x252   : > { %v1291_v13 = vmul.f32 0.3275911, %v1285_v9  ;;  %v11734_v14 = vmul.f32 0.70710677, %v11728_v10  ;;  %v1369_v32 = vsub.f32 0.0, %v1285_v9 }
 0x253   : > { %v1296_v15 = vadd.f32 1.0, %v1290_v11  ;;  %v1287_v16 = vand.u32 2147483647, %v11731_v12  ;;  %v1374_v39 = vmul.f32 %v1368_v30, %v1284_v4  ;;  %vm1407_vm3 = vcmp.ge.f32.partialorder %v11731_v12, 0.0  ;;  %v1543_v12 = vld [vmem:[%s14674_s15 + $0x368] sm:$0xff] }
 0x254   : > { %v1297_v18 = vadd.f32 1.0, %v1291_v13  ;;  %v1288_v19 = vand.u32 2147483647, %v11734_v14  ;;  %v1375_v42 = vmul.f32 %v1369_v32, %v1285_v9  ;;  %vm1408_vm4 = vcmp.ge.f32.partialorder %v11734_v14, 0.0 }
 0x255   : > { %10115 = vrcp.f32 %v1296_v15  ;;  %v1293_v20 = vmul.f32 0.3275911, %v1287_v16  ;;  %v1371_v34 = vsub.f32 0.0, %v1287_v16  ;;  %v1380_v50 = vmul.f32 1.442695, %v1374_v39 }
 0x256   : > { %10117 = vrcp.f32 %v1297_v18  ;;  %v1294_v21 = vmul.f32 0.3275911, %v1288_v19  ;;  %v8322_v22 = vpop.f32.mrb[4].mxu1  ;;  %v1372_v36 = vsub.f32 0.0, %v1288_v19  ;;  %v1382_v57 = vmul.f32 1.442695, %v1375_v42 }
 0x257   : > { %v1299_v23 = vadd.f32 1.0, %v1293_v20  ;;  %v11739_v24 = vadd.f32 %v8322_v22, %v1109_v17  ;;  %v1263_v25 = vpop.f32.mrb[5].mxu1  ;;  %v1377_v45 = vmul.f32 %v1371_v34, %v1287_v16 }
 0x258   : > { %v1300_v26 = vadd.f32 1.0, %v1294_v21  ;;  %v11741_v27 = vadd.f32 %v1263_v25, %v1109_v17  ;;  %v1378_v47 = vmul.f32 %v1372_v36, %v1288_v19 }
 0x259   : > { %10119 = vrcp.f32 %v1299_v23  ;;  %v11744_v28 = vmul.f32 0.70710677, %v11739_v24  ;;  %v1386_v61 = vmul.f32 1.442695, %v1377_v45 }
 0x25a   : > { %10121 = vrcp.f32 %v1300_v26  ;;  %v11747_v29 = vmul.f32 0.70710677, %v11741_v27  ;;  %v1388_v6 = vmul.f32 1.442695, %v1378_v47 }
 0x25b   : > { %v11750_v31 = vand.u32 2147483647, %v11744_v28  ;;  %vm1409_vm6 = vcmp.ge.f32.partialorder %v11744_v28, 0.0  ;;  %v1277_v28 = vmul.f32 0.5, %v11739_v24  ;;  %v2093_v24 = vld [vmem:[%s14676_s9 + $0x100] sm:$0xff] }
 0x25c   : > { %v1286_v33 = vand.u32 2147483647, %v11747_v29  ;;  %vm1406_vm5 = vcmp.ge.f32.partialorder %v11747_v29, 0.0  ;;  %v1555_v29 = vld [vmem:[%s14674_s15 + $0x3c8] sm:$0xff] }
 0x25d   : > { %v1295_v35 = vmul.f32 0.3275911, %v11750_v31 }
 0x25e   : > { %v1292_v37 = vmul.f32 0.3275911, %v1286_v33  ;;  %v1370_v63 = vsub.f32 0.0, %v1286_v33 }
 0x25f   : > { %v10116_v38 = vpop.eup %10115  ;;  %v1301_v40 = vadd.f32 1.0, %v1295_v35 }
 0x260   : > { %v10118_v41 = vpop.eup %10117  ;;  %v1298_v43 = vadd.f32 1.0, %v1292_v37  ;;  %v1314_v44 = vmul.f32 1.0614054, %v10116_v38  ;;  %v1376_v18 = vmul.f32 %v1370_v63, %v1286_v33 }
 0x261   : > { %10123 = vrcp.f32 %v1301_v40  ;;  %v1315_v46 = vmul.f32 1.0614054, %v10118_v41 }
 0x262   : > { %10125 = vrcp.f32 %v1298_v43  ;;  %v1320_v48 = vadd.f32 -1.4531521, %v1314_v44  ;;  %v1384_v36 = vmul.f32 1.442695, %v1376_v18  ;;  %v1541_v18 = vld [vmem:[%s14674_s15 + $0x358] sm:$0xff] }
 0x263   : > { %v11754_v49 = vpop.eup %10119  ;;  %v1321_v51 = vadd.f32 -1.4531521, %v1315_v46  ;;  %10127 = vpow2.f32 %v1380_v50 }
 0x264   : > { %v11756_v52 = vpop.eup %10121  ;;  %v1326_v59 = vmul.f32 %v10116_v38, %v1320_v48  ;;  %v1317_v60 = vmul.f32 1.0614054, %v11754_v49  ;;  %10129 = vpow2.f32 %v1382_v57  ;;  %v1373_v48 = vsub.f32 0.0, %v11750_v31 }
 0x265   : > { %v1327_v3 = vmul.f32 %v10118_v41, %v1321_v51  ;;  %v1318_v4 = vmul.f32 1.0614054, %v11756_v52  ;;  %10131 = vpow2.f32 %v1386_v61  ;;  %v11781_v61 = vld [vmem:[%s14674_s15 + $0x318] sm:$0xff] }
 0x266   : > { %v1332_v9 = vadd.f32 1.4214138, %v1326_v59  ;;  %v1323_v11 = vadd.f32 -1.4531521, %v1317_v60  ;;  %10133 = vpow2.f32 %v1388_v6  ;;  %v11776_v60 = vld [vmem:[%s14674_s15 + $0x300] sm:$0xff] }
 0x267   : > { %v1333_v13 = vadd.f32 1.4214138, %v1327_v3  ;;  %v1324_v15 = vadd.f32 -1.4531521, %v1318_v4  ;;  %10135 = vpow2.f32 %v1384_v36 }
 0x268   : > { %v1338_v16 = vmul.f32 %v10116_v38, %v1332_v9  ;;  %v1329_v17 = vmul.f32 %v11754_v49, %v1323_v11  ;;  %v11793_v9 = vld [vmem:[%s14674_s15 + $0x350] sm:$0xff] }
 0x269   : > { %v1339_v19 = vmul.f32 %v10118_v41, %v1333_v13  ;;  %v1330_v20 = vmul.f32 %v11756_v52, %v1324_v15 }
 0x26a   : > { %v1344_v21 = vadd.f32 -0.28449672, %v1338_v16  ;;  %v1335_v22 = vadd.f32 1.4214138, %v1329_v17  ;;  %v1538_v17 = vld [vmem:[%s14674_s15 + $0x340] sm:$0xff] }
 0x26b   : > { %v11762_v23 = vpop.eup %10123  ;;  %v1345_v25 = vadd.f32 -0.28449672, %v1339_v19  ;;  %v1336_v26 = vadd.f32 1.4214138, %v1330_v20 }
 0x26c   : > { %v11764_v30 = vpop.eup %10125  ;;  %v1319_v32 = vmul.f32 1.0614054, %v11762_v23  ;;  %v1350_v34 = vmul.f32 %v10116_v38, %v1344_v21  ;;  %v1341_v35 = vmul.f32 %v11754_v49, %v1335_v22  ;;  %v1379_v21 = vmul.f32 %v1373_v48, %v11750_v31 }
 0x26d   : > { %v1351_v37 = vmul.f32 %v10118_v41, %v1345_v25  ;;  %v1342_v33 = vmul.f32 %v11756_v52, %v1336_v26  ;;  %v1316_v39 = vmul.f32 1.0614054, %v11764_v30  ;;  %v10128_v57 = vpop.eup %10127  ;;  %v8935_v25 = vpack.c.bf16 %v11781_v61, %v11776_v60 }
 0x26e   : > { %v1325_v40 = vadd.f32 -1.4531521, %v1319_v32  ;;  %v1356_v42 = vadd.f32 0.2548296, %v1350_v34  ;;  %v1347_v43 = vadd.f32 -0.28449672, %v1341_v35  ;;  %v10130_v4 = vpop.eup %10129 }
 0x26f   : > { %v1357_v44 = vadd.f32 0.2548296, %v1351_v37  ;;  %v1348_v45 = vadd.f32 -0.28449672, %v1342_v33  ;;  %v1322_v46 = vadd.f32 -1.4531521, %v1316_v39  ;;  %v10132_v13 = vpop.eup %10131  ;;  %v11810_v39 = vpack.c.bf16 %v1541_v18, %v1538_v17 }
 0x270   : > { %v1331_v47 = vmul.f32 %v11762_v23, %v1325_v40  ;;  %v1362_v50 = vmul.f32 %v10116_v38, %v1356_v42  ;;  %v1353_v51 = vmul.f32 %v11754_v49, %v1347_v43  ;;  %v10134_v20 = vpop.eup %10133 }
 0x271   : > { %v1363_v59 = vmul.f32 %v10118_v41, %v1357_v44  ;;  %v1354_v63 = vmul.f32 %v11756_v52, %v1348_v45  ;;  %v1328_v3 = vmul.f32 %v11764_v30, %v1322_v46  ;;  %v11788_v41 = vld [vmem:[%s14674_s15 + $0x338] sm:$0xff]  ;;  %v10136_v2 = vpop.eup %10135 }
 0x272   : > { %v1337_v38 = vadd.f32 1.4214138, %v1331_v47  ;;  %v1392_v6 = vmul.f32 %v10128_v57, %v1362_v50  ;;  %v1359_v11 = vadd.f32 0.2548296, %v1353_v51  ;;  %v8937_v35 = vpack.c.bf16 %v11793_v9, %v11788_v41 }
 0x273   : > { %v1393_v15 = vmul.f32 %v10130_v4, %v1363_v59  ;;  %v1360_v16 = vadd.f32 0.2548296, %v1354_v63  ;;  %v1334_v19 = vadd.f32 1.4214138, %v1328_v3  ;;  %v1273_v50 = vmul.f32 0.5, %v11713_v0  ;;  %v1536_v0 = vld [vmem:[%s14674_s15 + $0x330] sm:$0xff] }
 0x274   : > { %v1398_v22 = vsub.f32 1.0, %v1392_v6  ;;  %v1365_v26 = vmul.f32 %v11754_v49, %v1359_v11  ;;  %v1343_v37 = vmul.f32 %v11762_v23, %v1337_v38  ;;  %v1390_v49 = vmul.f32 1.442695, %v1379_v21 }
 0x275   : > { %v1399_v32 = vsub.f32 1.0, %v1393_v15  ;;  %v1366_v34 = vmul.f32 %v11756_v52, %v1360_v16  ;;  %v1340_v36 = vmul.f32 %v11764_v30, %v1334_v19  ;;  %v1276_v41 = vmul.f32 0.5, %v11728_v10  ;;  %v1544_v15 = vld [vmem:[%s14674_s15 + $0x370] sm:$0xff]  ;;  %v1547_v16 = vld [vmem:[%s14674_s15 + $0x388] sm:$0xff] }
 0x276   : > { %v1410_v33 = vsub.f32 0.0, %v1398_v22  ;;  %v1395_v31 = vmul.f32 %v10132_v13, %v1365_v26  ;;  %v1349_v51 = vadd.f32 -0.28449672, %v1343_v37  ;;  %10137 = vpow2.f32 %v1390_v49  ;;  %v1546_v13 = vld [vmem:[%s14674_s15 + $0x380] sm:$0xff] }
 0x277   : > { %v1411_v40 = vsub.f32 0.0, %v1399_v32  ;;  %v1396_v42 = vmul.f32 %v10134_v20, %v1366_v34  ;;  %v1346_v43 = vadd.f32 -0.28449672, %v1340_v36  ;;  %v8939_v18 = vpack.c.bf16 %v1539_v62, %v1536_v0  ;;  %v1550_v34 = vld [vmem:[%s14674_s15 + $0x3a0] sm:$0xff]  ;;  %v1567_v0 = vld [vmem:[%s14674_s15 + $0x428] sm:$0xff] }
 0x278   : > { %v1416_v52 = vsel %vm1404_vm1, %v1398_v22, %v1410_v33  ;;  %v1401_v44 = vsub.f32 1.0, %v1395_v31  ;;  %v1355_v9 = vmul.f32 %v11762_v23, %v1349_v51  ;;  %v8941_v20 = vpack.c.bf16 %v1546_v13, %v1543_v12  ;;  %v1542_v22 = vld [vmem:[%s14674_s15 + $0x360] sm:$0xff] }
 0x279   : > { %v1417_v45 = vsel %vm1405_vm2, %v1399_v32, %v1411_v40  ;;  %v1422_v46 = vadd.f32 1.0, %v1416_v52  ;;  %v1402_v47 = vsub.f32 1.0, %v1396_v42  ;;  %v1352_v48 = vmul.f32 %v11764_v30, %v1346_v43  ;;  %v1552_v32 = vld [vmem:[%s14674_s15 + $0x3b0] sm:$0xff]  ;;  %v1551_v43 = vld [vmem:[%s14674_s15 + $0x3a8] sm:$0xff]  ;;  %v1554_v51 = vld [vmem:[%s14674_s15 + $0x3c0] sm:$0xff] }
 0x27a   : > { %v1423_v57 = vadd.f32 1.0, %v1417_v45  ;;  %v1413_v59 = vsub.f32 0.0, %v1401_v44  ;;  %v9005_v21 = vpack.c.bf16 %v1547_v16, %v1544_v15  ;;  %v1361_v26 = vadd.f32 0.2548296, %v1355_v9  ;;  %v1548_v42 = vld [vmem:[%s14674_s15 + $0x390] sm:$0xff]  ;;  %v1558_v45 = vld [vmem:[%s14674_s15 + $0x3e0] sm:$0xff] }
 0x27b   : > { %v1414_v60 = vsub.f32 0.0, %v1402_v47  ;;  %v1358_v61 = vadd.f32 0.2548296, %v1352_v48  ;;  %v1428_v4 = vmul.f32 %v1422_v46, %v1272_v1  ;;  %v1274_v52 = vmul.f32 0.5, %v11741_v27  ;;  %v1556_v46 = vld [vmem:[%s14674_s15 + $0x3d0] sm:$0xff]  ;;  %v1570_v12 = vld [vmem:[%s14674_s15 + $0x440] sm:$0xff] }
 0x27c   : > { %v1429_v63 = vmul.f32 %v1423_v57, %v1273_v50  ;;  %v1419_v3 = vsel %vm1407_vm3, %v1401_v44, %v1413_v59  ;;  %v8947_v27 = vpack.c.bf16 %v1551_v43, %v1548_v42  ;;  %v8949_v48 = vpack.c.bf16 %v1558_v45, %v1555_v29  ;;  %v1557_v57 = vld [vmem:[%s14674_s15 + $0x3d8] sm:$0xff]  ;;  %v1566_v15 = vld [vmem:[%s14674_s15 + $0x420] sm:$0xff]  ;;  %v2079_v29 = vld [vmem:[%s14676_s9 + $0x90] sm:$0xff] }
 0x27d   : > { %v1420_v38 = vsel %vm1408_vm4, %v1402_v47, %v1414_v60  ;;  %v1425_v6 = vadd.f32 1.0, %v1419_v3  ;;  %v1364_v14 = vmul.f32 %v11764_v30, %v1358_v61  ;;  %v1275_v30 = vmul.f32 0.5, %v11722_v5  ;;  %v1545_v5 = vld [vmem:[%s14674_s15 + $0x378] sm:$0xff]  ;;  %v1559_v47 = vld [vmem:[%s14674_s15 + $0x3e8] sm:$0xff]  ;;  %v1564_v60 = vld [vmem:[%s14674_s15 + $0x410] sm:$0xff] }
 0x27e   : > { %1659 = vmatprep.mubr.f32.mxu0 %v1429_v63  ;;  %1813 = vmatprep.mubr.f32.mxu1 %v1429_v63  ;;  %v1426_v11 = vadd.f32 1.0, %v1420_v38  ;;  %v8943_v37 = vpack.c.bf16 %v1545_v5, %v1542_v22  ;;  %v9013_v50 = vpack.c.bf16 %v1559_v47, %v1556_v46  ;;  %v1561_v59 = vld [vmem:[%s14674_s15 + $0x3f8] sm:$0xff]  ;;  %v1562_v61 = vld [vmem:[%s14674_s15 + $0x400] sm:$0xff]  ;;  %v8951_v63 = vpack.c.bf16 %v1557_v57, %v1554_v51  ;;  %v1560_v38 = vld [vmem:[%s14674_s15 + $0x3f0] sm:$0xff] }
 0x27f   : > { %1660 = vmatmul.mubr.f32.vlgmr.msra.gmra.mrb[0].mxu0 %v1428_v4  ;;  %1814 = vmatmul.mubr.f32.vlgmr.msra.gmra.mrb[6].mxu1 %v1428_v4  ;;  %v1394_v10 = vmul.f32 %v10136_v2, %v1364_v14  ;;  %v1431_v19 = vmul.f32 %v1425_v6, %v1275_v30  ;;  %v1565_v2 = vld [vmem:[%s14674_s15 + $0x418] sm:$0xff]  ;;  %v8953_v3 = vpack.c.bf16 %v1564_v60, %v1561_v59  ;;  %v1563_v6 = vld [vmem:[%s14674_s15 + $0x408] sm:$0xff]  ;;  %v1568_v14 = vld [vmem:[%s14674_s15 + $0x430] sm:$0xff] }
 0x280   : > { %8936 = vmatpush1.bf16.msra.mxu0 %v8935_v25  ;;  %9000 = vmatpush3.bf16.msra.mxu1 %v11694_v53  ;;  %v1432_v17 = vmul.f32 %v1426_v11, %v1276_v41  ;;  %v1549_v53 = vld [vmem:[%s14674_s15 + $0x398] sm:$0xff]  ;;  %v10138_v49 = vpop.eup %10137  ;;  %v9017_v4 = vpack.c.bf16 %v1565_v2, %v1562_v61  ;;  %v1571_v41 = vld [vmem:[%s14674_s15 + $0x448] sm:$0xff]  ;;  %v8955_v9 = vpack.c.bf16 %v1563_v6, %v1560_v38  ;;  %v1572_v5 = vld [vmem:[%s14674_s15 + $0x450] sm:$0xff] }
 0x281   : > { %8938 = vmatprep.subr.bf16.mxu0 %v8937_v35  ;;  %9002 = vmatprep.subr.bf16.mxu1 %v11810_v39  ;;  %v1400_v25 = vsub.f32 1.0, %v1394_v10  ;;  %v1553_v35 = vld [vmem:[%s14674_s15 + $0x3b8] sm:$0xff]  ;;  %v8945_v33 = vpack.c.bf16 %v1552_v32, %v1549_v53  ;;  %v8957_v11 = vpack.c.bf16 %v1570_v12, %v1567_v0  ;;  %v9021_v13 = vpack.c.bf16 %v1571_v41, %v1568_v14  ;;  %v1575_v53 = vld [vmem:[%s14674_s15 + $0x468] sm:$0xff]  ;;  %v2063_v45 = vld [vmem:[%s14676_s9 + $0x10] sm:$0xff] }
 0x282   : > { %1665 = vmatprep.mubr.f32.mxu0 %v1432_v17  ;;  %1818 = vmatprep.mubr.f32.mxu1 %v1432_v17  ;;  %v9009_v31 = vpack.c.bf16 %v1553_v35, %v1550_v34  ;;  %v1569_v16 = vld [vmem:[%s14674_s15 + $0x438] sm:$0xff]  ;;  %v1576_v17 = vld [vmem:[%s14674_s15 + $0x470] sm:$0xff]  ;;  %v2077_v35 = vld [vmem:[%s14676_s9 + $0x80] sm:$0xff] }
 0x283   : > { %1666 = vmatmul.mubr.f32.gmra.mrb[2].mxu0 %v1431_v19  ;;  %1819 = vmatmul.mubr.f32.gmra.mrb[8].mxu1 %v1431_v19  ;;  %v1412_v36 = vsub.f32 0.0, %v1400_v25  ;;  %v1573_v30 = vld [vmem:[%s14674_s15 + $0x458] sm:$0xff]  ;;  %v2098_v57 = vld [vmem:[%s14676_s9 + $0x128] sm:$0xff]  ;;  %v2065_v59 = vld [vmem:[%s14676_s9 + $0x20] sm:$0xff] }
 0x284   : > { %8940 = vmatpush1.bf16.msra.mxu0 %v8939_v18  ;;  %9004 = vmatpush3.bf16.msra.mxu1 %v11810_v39  ;;  %v1367_v39 = vmul.f32 %v11762_v23, %v1361_v26  ;;  %v1574_v18 = vld [vmem:[%s14674_s15 + $0x460] sm:$0xff]  ;;  %v1577_v19 = vld [vmem:[%s14674_s15 + $0x478] sm:$0xff]  ;;  %v8963_v26 = vpack.c.bf16 %v1575_v53, %v1572_v5  ;;  %v2083_v2 = vld [vmem:[%s14676_s9 + $0xb0] sm:$0xff] }
 0x285   : > { %8942 = vmatprep.subr.bf16.mxu0 %v8941_v20  ;;  %9006 = vmatprep.subr.bf16.mxu1 %v9005_v21  ;;  %v1418_v40 = vsel %vm1406_vm5, %v1400_v25, %v1412_v36  ;;  %v8959_v20 = vpack.c.bf16 %v1569_v16, %v1566_v15  ;;  %v9025_v22 = vpack.c.bf16 %v1577_v19, %v1574_v18  ;;  %v2078_v36 = vld [vmem:[%s14676_s9 + $0x88] sm:$0xff]  ;;  %v2064_v46 = vld [vmem:[%s14676_s9 + $0x18] sm:$0xff]  ;;  %v2067_v6 = vld [vmem:[%s14676_s9 + $0x30] sm:$0xff] }
 0x286   : > { %v1424_v44 = vadd.f32 1.0, %v1418_v40  ;;  %1736 = vmatprep.mubr.f32.mxu0 %v14345_v7  ;;  %v1397_v1 = vmul.f32 %v10138_v49, %v1367_v39  ;;  %v2062_v40 = vld [vmem:[%s14676_s9 + $0x8] sm:$0xff]  ;;  %v2080_v49 = vld [vmem:[%s14676_s9 + $0x98] sm:$0xff]  ;;  %v2095_v39 = vld [vmem:[%s14676_s9 + $0x110] sm:$0xff] }
 0x287   : > { %v2100_v38 = vld [vmem:[%s14676_s9 + $0x138] sm:$0xff]  ;;  %v2085_v14 = vld [vmem:[%s14676_s9 + $0xc0] sm:$0xff]  ;;  %v2086_v41 = vld [vmem:[%s14676_s9 + $0xc8] sm:$0xff] }
 0x288   : > { %8944 = vmatpush1.bf16.msra.mxu0 %v8943_v37  ;;  %9008 = vmatpush3.bf16.msra.mxu1 %v9005_v21  ;;  %v11884_v23 = vmul.f32 %v1424_v44, %v1274_v52  ;;  %v1403_v62 = vsub.f32 1.0, %v1397_v1  ;;  %v8961_v21 = vpack.c.bf16 %v1576_v17, %v1573_v30  ;;  %v9029_v37 = vpack.c.bf16 %v2078_v36, %v2077_v35  ;;  %v2096_v44 = vld [vmem:[%s14676_s9 + $0x118] sm:$0xff]  ;;  %v2066_v1 = vld [vmem:[%s14676_s9 + $0x28] sm:$0xff]  ;;  %v2069_v15 = vld [vmem:[%s14676_s9 + $0x40] sm:$0xff] }
 0x289   : > { %8946 = vmatprep.subr.bf16.mxu0 %v8945_v33  ;;  %9010 = vmatprep.subr.bf16.mxu1 %v9009_v31  ;;  %v2094_v33 = vld [vmem:[%s14676_s9 + $0x108] sm:$0xff]  ;;  %v9033_v52 = vpack.c.bf16 %v2080_v49, %v2079_v29  ;;  %v9065_v47 = vpack.c.bf16 %v2096_v44, %v2095_v39  ;;  %v9039_v61 = vpack.c.bf16 %v2066_v1, %v2065_v59  ;;  %v2068_v0 = vld [vmem:[%s14676_s9 + $0x38] sm:$0xff]  ;;  %v2087_v17 = vld [vmem:[%s14676_s9 + $0xd0] sm:$0xff] }
 0x28a   : > { %8355 = vmatprep.mubr.f32.mxu1 %v11884_v23  ;;  %v1415_v10 = vsub.f32 0.0, %v1403_v62  ;;  %v9061_v42 = vpack.c.bf16 %v2094_v33, %v2093_v24  ;;  %v9043_v12 = vpack.c.bf16 %v2068_v0, %v2067_v6  ;;  %v2070_v16 = vld [vmem:[%s14676_s9 + $0x48] sm:$0xff]  ;;  %v2088_v18 = vld [vmem:[%s14676_s9 + $0xd8] sm:$0xff]  ;;  %v2103_v19 = vld [vmem:[%s14676_s9 + $0x150] sm:$0xff] }
 0x28b   : > { %v2072_v5 = vld [vmem:[%s14676_s9 + $0x58] sm:$0xff]  ;;  %v2106_v35 = vld [vmem:[%s14676_s9 + $0x168] sm:$0xff]  ;;  %v2073_v36 = vld [vmem:[%s14676_s9 + $0x60] sm:$0xff] }
 0x28c   : > { %8948 = vmatpush1.bf16.msra.mxu0 %v8947_v27  ;;  %9012 = vmatpush3.bf16.msra.mxu1 %v9009_v31  ;;  %v1421_v25 = vsel %vm1409_vm6, %v1403_v62, %v1415_v10  ;;  %v2061_v31 = vld [vmem:[%s14676_s9] sm:$0xff]  ;;  %v9047_v10 = vpack.c.bf16 %v2070_v16, %v2069_v15  ;;  %v2074_v24 = vld [vmem:[%s14676_s9 + $0x68] sm:$0xff]  ;;  %v2108_v29 = vld [vmem:[%s14676_s9 + $0x178] sm:$0xff] }
 0x28d   : > { %8950 = vmatprep.subr.bf16.mxu0 %v8949_v48  ;;  %9014 = vmatprep.subr.bf16.mxu1 %v9013_v50  ;;  %v1427_v32 = vadd.f32 1.0, %v1421_v25  ;;  %v9031_v43 = vpack.c.bf16 %v2062_v40, %v2061_v31  ;;  %v2081_v27 = vld [vmem:[%s14676_s9 + $0xa0] sm:$0xff]  ;;  %v2082_v48 = vld [vmem:[%s14676_s9 + $0xa8] sm:$0xff]  ;;  %v9055_v33 = vpack.c.bf16 %v2074_v24, %v2073_v36  ;;  %v2091_v31 = vld [vmem:[%s14676_s9 + $0xf0] sm:$0xff] }
 0x28e   : > { %v9037_v51 = vpack.c.bf16 %v2082_v48, %v2081_v27  ;;  %v2092_v40 = vld [vmem:[%s14676_s9 + $0xf8] sm:$0xff]  ;;  %v2075_v49 = vld [vmem:[%s14676_s9 + $0x70] sm:$0xff]  ;;  %v1578_v59 = vld [vmem:[%s14677_s1] sm:$0x7]  ;;  %s7597_s1 = sld [smem:[#allocation18 + $0x2]] }
 0x28f   : > { %v1433_v34 = vmul.f32 %v1427_v32, %v1277_v28  ;;  %v2090_v32 = vld [vmem:[%s14676_s9 + $0xe8] sm:$0xff]  ;;  %v2105_v28 = vld [vmem:[%s14676_s9 + $0x160] sm:$0xff]  ;;  %v2076_v39 = vld [vmem:[%s14676_s9 + $0x78] sm:$0xff]  ;;  %v1591_v1 = vrot.slane %v1578_v59, %v11725_v8 }
 0x290   : > { %8952 = vmatpush1.bf16.msra.mxu0 %v8951_v63  ;;  %9016 = vmatpush3.bf16.msra.mxu1 %v9013_v50  ;;  %v2097_v50 = vld [vmem:[%s14676_s9 + $0x120] sm:$0xff]  ;;  %v2084_v63 = vld [vmem:[%s14676_s9 + $0xb8] sm:$0xff]  ;;  %v9059_v44 = vpack.c.bf16 %v2076_v39, %v2075_v49 }
 0x291   : > { %8954 = vmatprep.subr.bf16.mxu0 %v8953_v3  ;;  %9018 = vmatprep.subr.bf16.mxu1 %v9017_v4  ;;  %v9069_v60 = vpack.c.bf16 %v2098_v57, %v2097_v50  ;;  %v2099_v3 = vld [vmem:[%s14676_s9 + $0x130] sm:$0xff] }
 0x292   : > { %v9073_v62 = vpack.c.bf16 %v2100_v38, %v2099_v3 }
 0x294   : > { %8956 = vmatpush1.bf16.msra.mxu0 %v8955_v9  ;;  %9020 = vmatpush3.bf16.msra.mxu1 %v9017_v4  ;;  %v9041_v4 = vpack.c.bf16 %v2084_v63, %v2083_v2  ;;  %v2101_v9 = vld [vmem:[%s14676_s9 + $0x140] sm:$0xff] }
 0x295   : > { %8958 = vmatprep.subr.bf16.mxu0 %v8957_v11  ;;  %9022 = vmatprep.subr.bf16.mxu1 %v9021_v13  ;;  %v9045_v11 = vpack.c.bf16 %v2086_v41, %v2085_v14 }
 0x298   : > { %8960 = vmatpush1.bf16.msra.mxu0 %v8959_v20  ;;  %9024 = vmatpush3.bf16.msra.mxu1 %v9021_v13  ;;  %v2102_v13 = vld [vmem:[%s14676_s9 + $0x148] sm:$0xff]  ;;  %v9049_v20 = vpack.c.bf16 %v2088_v18, %v2087_v17 }
 0x299   : > { %8962 = vmatprep.subr.bf16.mxu0 %v8961_v21  ;;  %9026 = vmatprep.subr.bf16.mxu1 %v9025_v22  ;;  %v9077_v30 = vpack.c.bf16 %v2102_v13, %v2101_v9  ;;  %v2104_v21 = vld [vmem:[%s14676_s9 + $0x158] sm:$0xff] }
 0x29a   : > { %v9081_v53 = vpack.c.bf16 %v2104_v21, %v2103_v19 }
 0x29c   : > { %8964 = vmatpush1.bf16.msra.mxu0 %v8963_v26  ;;  %9028 = vmatpush3.bf16.msra.mxu1 %v9025_v22  ;;  %v2071_v22 = vld [vmem:[%s14676_s9 + $0x50] sm:$0xff]  ;;  %v2089_v26 = vld [vmem:[%s14676_s9 + $0xe0] sm:$0xff] }
 0x29d   : > { %9030 = vmatprep.subr.bf16.mxu1 %v9029_v37  ;;  %9062 = vmatprep.subr.bf16.mxu0 %v9061_v42  ;;  %v9051_v25 = vpack.c.bf16 %v2072_v5, %v2071_v22  ;;  %v9085_v37 = vpack.c.bf16 %v2106_v35, %v2105_v28 }
 0x29f   : > { %1737 = vmatmul.mubr.f32.vlgmr.msra.gmra.mrb[0].mxu0 %v11884_v23  ;;  %8356 = vmatmul.mubr.f32.vlgmr.msra.gmra.mrb[10].mxu1 %v1433_v34  ;;  %v9035_v23 = vpack.c.bf16 %v2064_v46, %v2063_v45  ;;  %v2277_v45 = vld [vmem:[#allocation9] sm:$0xff]  ;;  %v2278_v46 = vld [vmem:[#allocation9 + $0x8] sm:$0xff] }
 0x2a0   : > { %1742 = vmatprep.mubr.f32.mxu0 %v14345_v7  ;;  %9032 = vmatpush3.bf16.msra.mxu1 %v9031_v43  ;;  %v9057_v43 = vpack.c.bf16 %v2092_v40, %v2091_v31 }
 0x2a1   : > { %9064 = vmatpush3.bf16.msra.mxu0 %v9061_v42  ;;  %9034 = vmatprep.subr.bf16.mxu1 %v9033_v52  ;;  %v2107_v42 = vld [vmem:[%s14676_s9 + $0x170] sm:$0xff] }
 0x2a2   : > { %9066 = vmatprep.subr.bf16.mxu0 %v9065_v47  ;;  %v9089_v52 = vpack.c.bf16 %v2108_v29, %v2107_v42 }
 0x2a3   : > { %1743 = vmatmul.mubr.f32.gmra.mrb[2].mxu0 %v1433_v34  ;;  %v9053_v34 = vpack.c.bf16 %v2090_v32, %v2089_v26 }
 0x2a4   : > { %9036 = vmatpush3.bf16.msra.mxu1 %v9035_v23 }
 0x2a5   : > { %9068 = vmatpush3.bf16.msra.mxu0 %v9065_v47  ;;  %9038 = vmatprep.subr.bf16.mxu1 %v9037_v51  ;;  %v12095_v47 = vpack.c.bf16 %v2278_v46, %v2277_v45 }
 0x2a6   : > { %9070 = vmatprep.subr.bf16.mxu0 %v9069_v60 }
 0x2a8   : > { %9040 = vmatpush3.bf16.msra.mxu1 %v9039_v61  ;;  %v1587_v61 = vrot.slane %v1578_v59, %v11707_v58 }
 0x2a9   : > { %9072 = vmatpush3.bf16.msra.mxu0 %v9069_v60  ;;  %9042 = vmatprep.subr.bf16.mxu1 %v9041_v4  ;;  %v1583_v60 = vrot.slane %v1578_v59, %v11701_v56 }
 0x2aa   : > { %9074 = vmatprep.subr.bf16.mxu0 %v9073_v62 }
 0x2ac   : > { %9044 = vmatpush3.bf16.msra.mxu1 %v9043_v12 }
 0x2ad   : > { %9076 = vmatpush3.bf16.msra.mxu0 %v9073_v62  ;;  %9046 = vmatprep.subr.bf16.mxu1 %v9045_v11 }
 0x2ae   : > { %9078 = vmatprep.subr.bf16.mxu0 %v9077_v30 }
 0x2b0   : > { %9048 = vmatpush3.bf16.msra.mxu1 %v9047_v10 }
 0x2b1   : > { %9080 = vmatpush3.bf16.msra.mxu0 %v9077_v30  ;;  %9050 = vmatprep.subr.bf16.mxu1 %v9049_v20 }
 0x2b2   : > { %9082 = vmatprep.subr.bf16.mxu0 %v9081_v53 }
 0x2b4   : > { %9052 = vmatpush3.bf16.msra.mxu1 %v9051_v25 }
 0x2b5   : > { %9084 = vmatpush3.bf16.msra.mxu0 %v9081_v53  ;;  %9054 = vmatprep.subr.bf16.mxu1 %v9053_v34 }
 0x2b6   : > { %9086 = vmatprep.subr.bf16.mxu0 %v9085_v37 }
 0x2b8   : > { %9056 = vmatpush3.bf16.msra.mxu1 %v9055_v33 }
 0x2b9   : > { %9088 = vmatpush3.bf16.msra.mxu0 %v9085_v37  ;;  %9058 = vmatprep.subr.bf16.mxu1 %v9057_v43 }
 0x2ba   : > { %9090 = vmatprep.subr.bf16.mxu0 %v9089_v52 }
 0x2bc   : > { %9060 = vmatpush3.bf16.msra.mxu1 %v9059_v44 }
 0x2bd   : > { %9092 = vmatpush3.bf16.msra.mxu0 %v9089_v52  ;;  %9094 = vmatprep.subr.bf16.mxu1 %v12095_v47 }
 0x352   : > { %v7754_v23 = vpop.f32.mrb[6].mxu1 }
 0x353   : > { %v7755_v27 = vpop.f32.mrb[7].mxu1 }
 0x354   : > { %v7756_v48 = vadd.f32 %v7755_v27, %v7754_v23 }
 0x356   : > { %v7757_v50 = vpop.f32.mrb[8].mxu1  ;;  %v1816_v4 = vadd.f32 %v7756_v48, %v1591_v1 }
 0x357   : > { %v7758_v51 = vpop.f32.mrb[9].mxu1 }
 0x358   : > { %v7759_v57 = vadd.f32 %v7758_v51, %v7757_v50 }
 0x35a   : > { %v1821_v2 = vadd.f32 %v7759_v57, %v1591_v1 }
 0x372   : > { %v1738_v63 = vpop.f32.mrb[0].mxu0  ;;  %v8357_v3 = vpop.f32.mrb[10].mxu1 }
 0x373   : > { %v12104_v38 = vadd.f32 %v1738_v63, %v1583_v60  ;;  %v12106_v6 = vadd.f32 %v8357_v3, %v1821_v2  ;;  %v1740_v0 = vpop.f32.mrb[1].mxu0  ;;  %v1890_v62 = vpop.f32.mrb[11].mxu1 }
 0x374   : > { %v12108_v12 = vadd.f32 %v1740_v0, %v1587_v61  ;;  %v12110_v14 = vadd.f32 %v1890_v62, %v1816_v4 }
 0x375   : > { %v12113_v41 = vmul.f32 0.70710677, %v12104_v38  ;;  %v12116_v9 = vmul.f32 0.70710677, %v12106_v6 }
 0x376   : > { %v12119_v11 = vmul.f32 0.70710677, %v12108_v12  ;;  %v12122_v13 = vmul.f32 0.70710677, %v12110_v14  ;;  %v1744_v5 = vpop.f32.mrb[2].mxu0 }
 0x377   : > { %v1911_v15 = vand.u32 2147483647, %v12113_v41  ;;  %v1916_v16 = vand.u32 2147483647, %v12116_v9  ;;  %v1746_v53 = vpop.f32.mrb[3].mxu0  ;;  %v12128_v26 = vadd.f32 %v1744_v5, %v1583_v60  ;;  %vm2031_vm7 = vcmp.ge.f32.partialorder %v12113_v41, 0.0 }
 0x378   : > { %v1912_v30 = vand.u32 2147483647, %v12119_v11  ;;  %v1913_v10 = vand.u32 2147483647, %v12122_v13  ;;  %v12130_v32 = vadd.f32 %v1746_v53, %v1587_v61  ;;  %vm2036_vm8 = vcmp.ge.f32.partialorder %v12116_v9, 0.0 }
 0x379   : > { %v1917_v17 = vmul.f32 0.3275911, %v1911_v15  ;;  %v1922_v18 = vmul.f32 0.3275911, %v1916_v16  ;;  %v12133_v34 = vmul.f32 0.70710677, %v12128_v26 }
 0x37a   : > { %v1918_v19 = vmul.f32 0.3275911, %v1912_v30  ;;  %v1919_v22 = vmul.f32 0.3275911, %v1913_v10  ;;  %v12136_v35 = vmul.f32 0.70710677, %v12130_v32 }
 0x37b   : > { %v1923_v20 = vadd.f32 1.0, %v1917_v17  ;;  %v1928_v21 = vadd.f32 1.0, %v1922_v18  ;;  %v1914_v36 = vand.u32 2147483647, %v12133_v34  ;;  %v1995_v37 = vsub.f32 0.0, %v1911_v15 }
 0x37c   : > { %v1924_v25 = vadd.f32 1.0, %v1918_v19  ;;  %v1925_v28 = vadd.f32 1.0, %v1919_v22  ;;  %v1915_v24 = vand.u32 2147483647, %v12136_v35  ;;  %v2000_v31 = vsub.f32 0.0, %v1916_v16 }
 0x37d   : > { %10139 = vrcp.f32 %v1923_v20  ;;  %v1920_v33 = vmul.f32 0.3275911, %v1914_v36  ;;  %v2001_v49 = vmul.f32 %v1995_v37, %v1911_v15  ;;  %v1996_v39 = vsub.f32 0.0, %v1912_v30 }
 0x37e   : > { %10141 = vrcp.f32 %v1928_v21  ;;  %v1921_v40 = vmul.f32 0.3275911, %v1915_v24  ;;  %v2006_v45 = vmul.f32 %v2000_v31, %v1916_v16  ;;  %v1997_v23 = vsub.f32 0.0, %v1913_v10 }
 0x37f   : > { %10143 = vrcp.f32 %v1924_v25  ;;  %v1926_v42 = vadd.f32 1.0, %v1920_v33  ;;  %v2007_v50 = vmul.f32 1.442695, %v2001_v49  ;;  %v2002_v57 = vmul.f32 %v1996_v39, %v1912_v30 }
 0x380   : > { %10145 = vrcp.f32 %v1925_v28  ;;  %v1927_v43 = vadd.f32 1.0, %v1921_v40  ;;  %v1998_v59 = vsub.f32 0.0, %v1914_v36  ;;  %v2017_v60 = vmul.f32 1.442695, %v2006_v45 }
 0x381   : > { %10147 = vrcp.f32 %v1926_v42  ;;  %v2003_v3 = vmul.f32 %v1997_v23, %v1913_v10  ;;  %v1999_v4 = vsub.f32 0.0, %v1915_v24  ;;  %v2009_v17 = vmul.f32 1.442695, %v2002_v57 }
 0x382   : > { %10149 = vrcp.f32 %v1927_v43  ;;  %v2004_v18 = vmul.f32 %v1998_v59, %v1914_v36  ;;  %vm2032_vm9 = vcmp.ge.f32.partialorder %v12119_v11, 0.0  ;;  %vm2033_vm10 = vcmp.ge.f32.partialorder %v12122_v13, 0.0 }
 0x383   : > { %10151 = vpow2.f32 %v2007_v50  ;;  %v2011_v5 = vmul.f32 1.442695, %v2003_v3  ;;  %v2005_v10 = vmul.f32 %v1999_v4, %v1915_v24  ;;  %v1904_v13 = vmul.f32 0.5, %v12106_v6 }
 0x384   : > { %10153 = vpow2.f32 %v2017_v60  ;;  %v2013_v31 = vmul.f32 1.442695, %v2004_v18  ;;  %vm2034_vm11 = vcmp.ge.f32.partialorder %v12133_v34, 0.0  ;;  %vm2035_vm12 = vcmp.ge.f32.partialorder %v12136_v35, 0.0 }
 0x385   : > { %10155 = vpow2.f32 %v2009_v17  ;;  %v1903_v6 = vmul.f32 0.5, %v12130_v32  ;;  %v1902_v34 = vmul.f32 0.5, %v12128_v26  ;;  %v2271_v32 = vld [vmem:[%s1060_s23 + $0x10] sm:$0xff]  ;;  %v2274_v26 = vld [vmem:[%s1060_s23 + $0x28] sm:$0xff] }
 0x386   : > { %10157 = vpow2.f32 %v2011_v5 }
 0x387   : > { %v10140_v29 = vpop.eup %10139  ;;  %10159 = vpow2.f32 %v2013_v31 }
 0x388   : > { %v12140_v52 = vpop.eup %10141  ;;  %v1941_v44 = vmul.f32 1.0614054, %v10140_v29 }
 0x389   : > { %v1946_v46 = vmul.f32 1.0614054, %v12140_v52  ;;  %v12143_v48 = vpop.eup %10143 }
 0x38a   : > { %v1947_v27 = vadd.f32 -1.4531521, %v1941_v44  ;;  %v1942_v61 = vmul.f32 1.0614054, %v12143_v48  ;;  %v12146_v2 = vpop.eup %10145  ;;  %v2015_v44 = vmul.f32 1.442695, %v2005_v10 }
 0x38b   : > { %v1952_v51 = vadd.f32 -1.4531521, %v1946_v46  ;;  %v1943_v15 = vmul.f32 1.0614054, %v12146_v2  ;;  %v12151_v21 = vpop.eup %10147 }
 0x38c   : > { %v1953_v1 = vmul.f32 %v10140_v29, %v1947_v27  ;;  %v1948_v62 = vadd.f32 -1.4531521, %v1942_v61  ;;  %v12154_v53 = vpop.eup %10149  ;;  %v1944_v33 = vmul.f32 1.0614054, %v12151_v21  ;;  %10161 = vpow2.f32 %v2015_v44 }
 0x38d   : > { %v1958_v63 = vmul.f32 %v12140_v52, %v1952_v51  ;;  %v1949_v20 = vadd.f32 -1.4531521, %v1943_v15  ;;  %v1945_v40 = vmul.f32 1.0614054, %v12154_v53 }
 0x38e   : > { %v1959_v0 = vadd.f32 1.4214138, %v1953_v1  ;;  %v1954_v19 = vmul.f32 %v12143_v48, %v1948_v62  ;;  %v1950_v39 = vadd.f32 -1.4531521, %v1944_v33 }
 0x38f   : > { %v1964_v16 = vadd.f32 1.4214138, %v1958_v63  ;;  %v1955_v37 = vmul.f32 %v12146_v2, %v1949_v20  ;;  %v1951_v45 = vadd.f32 -1.4531521, %v1945_v40  ;;  %v10152_v63 = vpop.eup %10151 }
 0x390   : > { %v1965_v30 = vmul.f32 %v10140_v29, %v1959_v0  ;;  %v1960_v28 = vadd.f32 1.4214138, %v1954_v19  ;;  %v1956_v50 = vmul.f32 %v12151_v21, %v1950_v39  ;;  %v10154_v0 = vpop.eup %10153 }
 0x391   : > { %v1970_v22 = vmul.f32 %v12140_v52, %v1964_v16  ;;  %v1961_v49 = vadd.f32 1.4214138, %v1955_v37  ;;  %v1957_v57 = vmul.f32 %v12154_v53, %v1951_v45  ;;  %v10156_v5 = vpop.eup %10155 }
 0x392   : > { %v1971_v25 = vadd.f32 -0.28449672, %v1965_v30  ;;  %v1966_v43 = vmul.f32 %v12143_v48, %v1960_v28  ;;  %v1962_v61 = vadd.f32 1.4214138, %v1956_v50 }
 0x393   : > { %v1976_v36 = vadd.f32 -0.28449672, %v1970_v22  ;;  %v1967_v27 = vmul.f32 %v12146_v2, %v1961_v49  ;;  %v1963_v4 = vadd.f32 1.4214138, %v1957_v57 }
 0x394   : > { %v1977_v42 = vmul.f32 %v10140_v29, %v1971_v25  ;;  %v1972_v23 = vadd.f32 -0.28449672, %v1966_v43  ;;  %v1968_v17 = vmul.f32 %v12151_v21, %v1962_v61  ;;  %v2280_v61 = vld [vmem:[#allocation9 + $0x18] sm:$0xff] }
 0x395   : > { %v1982_v24 = vmul.f32 %v12140_v52, %v1976_v36  ;;  %v1973_v60 = vadd.f32 -0.28449672, %v1967_v27  ;;  %v1969_v30 = vmul.f32 %v12154_v53, %v1963_v4  ;;  %v10158_v36 = vpop.eup %10157 }
 0x396   : > { %v1983_v46 = vadd.f32 0.2548296, %v1977_v42  ;;  %v1978_v1 = vmul.f32 %v12143_v48, %v1972_v23  ;;  %v1974_v22 = vadd.f32 -0.28449672, %v1968_v17  ;;  %v10160_v49 = vpop.eup %10159 }
 0x397   : > { %v1988_v51 = vadd.f32 0.2548296, %v1982_v24  ;;  %v1979_v16 = vmul.f32 %v12146_v2, %v1973_v60  ;;  %v2279_v60 = vld [vmem:[#allocation9 + $0x10] sm:$0xff] }
 0x398   : > { %v1989_v59 = vmul.f32 %v10140_v29, %v1983_v46  ;;  %v1984_v15 = vadd.f32 0.2548296, %v1978_v1  ;;  %v1980_v33 = vmul.f32 %v12151_v21, %v1974_v22  ;;  %v10162_v46 = vpop.eup %10161  ;;  %v2269_v22 = vld [vmem:[%s1060_s23] sm:$0xff] }
 0x399   : > { %v1994_v3 = vmul.f32 %v12140_v52, %v1988_v51  ;;  %v1985_v20 = vadd.f32 0.2548296, %v1979_v16  ;;  %v1975_v52 = vadd.f32 -0.28449672, %v1969_v30  ;;  %v9097_v16 = vpack.c.bf16 %v2280_v61, %v2279_v60  ;;  %v12229_v61 = vld [vmem:[%s11308_s5 + $0x8] sm:$0xff] }
 0x39a   : > { %v2019_v62 = vmul.f32 %v10152_v63, %v1989_v59  ;;  %v1990_v19 = vmul.f32 %v12143_v48, %v1984_v15  ;;  %v1986_v43 = vadd.f32 0.2548296, %v1980_v33  ;;  %v1900_v59 = vmul.f32 0.5, %v12108_v12 }
 0x39b   : > { %v2024_v18 = vmul.f32 %v10154_v0, %v1994_v3  ;;  %v1991_v37 = vmul.f32 %v12146_v2, %v1985_v20  ;;  %v1981_v40 = vmul.f32 %v12154_v53, %v1975_v52  ;;  %v1901_v3 = vmul.f32 0.5, %v12110_v14  ;;  %v2275_v52 = vld [vmem:[%s1060_s23 + $0x30] sm:$0xff] }
 0x39c   : > { %v2025_v29 = vsub.f32 1.0, %v2019_v62  ;;  %v2020_v28 = vmul.f32 %v10156_v5, %v1990_v19  ;;  %v1992_v2 = vmul.f32 %v12151_v21, %v1986_v43  ;;  %v1899_v21 = vmul.f32 0.5, %v12104_v38  ;;  %v2272_v5 = vld [vmem:[%s1060_s23 + $0x18] sm:$0xff] }
 0x39d   : > { %v2030_v10 = vsub.f32 1.0, %v2024_v18  ;;  %v2021_v48 = vmul.f32 %v10158_v36, %v1991_v37  ;;  %v1987_v24 = vadd.f32 0.2548296, %v1981_v40  ;;  %v2635_v37 = vld [vmem:[#allocation11 + $0x8] sm:$0xff]  ;;  %v2636_v36 = vld [vmem:[#allocation11 + $0x10] sm:$0xff] }
 0x39e   : > { %v2037_v25 = vsub.f32 0.0, %v2025_v29  ;;  %v2026_v42 = vsub.f32 1.0, %v2020_v28  ;;  %v2022_v57 = vmul.f32 %v10160_v49, %v1992_v2  ;;  %v2634_v28 = vld [vmem:[#allocation11] sm:$0xff]  ;;  %v2784_v49 = vld [vmem:[#allocation14] sm:$0xff] }
 0x39f   : > { %v2042_v31 = vsub.f32 0.0, %v2030_v10  ;;  %v2027_v45 = vsub.f32 1.0, %v2021_v48  ;;  %v1993_v41 = vmul.f32 %v12154_v53, %v1987_v24  ;;  %v9101_v33 = vpack.c.bf16 %v2635_v37, %v2634_v28  ;;  %v2639_v48 = vld [vmem:[#allocation11 + $0x28] sm:$0xff]  ;;  %v12216_v2 = vld [vmem:[%s11308_s5] sm:$0xff] }
 0x3a0   : > { %v2043_v39 = vsel %vm2031_vm7, %v2025_v29, %v2037_v25  ;;  %v2038_v44 = vsub.f32 0.0, %v2026_v42  ;;  %v2028_v63 = vsub.f32 1.0, %v2022_v57  ;;  %v2276_v25 = vld [vmem:[%s1060_s23 + $0x38] sm:$0xff] }
 0x3a1   : > { %v2048_v23 = vsel %vm2036_vm8, %v2030_v10, %v2042_v31  ;;  %v2049_v27 = vadd.f32 1.0, %v2043_v39  ;;  %v2039_v51 = vsub.f32 0.0, %v2027_v45  ;;  %v2023_v1 = vmul.f32 %v10162_v46, %v1993_v41  ;;  %v2273_v10 = vld [vmem:[%s1060_s23 + $0x20] sm:$0xff] }
 0x3a2   : > { %v2044_v50 = vsel %vm2032_vm9, %v2026_v42, %v2038_v44  ;;  %v2054_v11 = vadd.f32 1.0, %v2048_v23  ;;  %v2040_v15 = vsub.f32 0.0, %v2028_v63  ;;  %v2637_v31 = vld [vmem:[#allocation11 + $0x18] sm:$0xff]  ;;  %v2638_v42 = vld [vmem:[#allocation11 + $0x20] sm:$0xff]  ;;  %v2109_v23 = vstv %s7600_s26  ;;  %s14759_s26 = sld [smem:[#allocation178_spill]] }
 0x3a3   : > { %v2050_v9 = vadd.f32 1.0, %v2044_v50  ;;  %v2045_v53 = vsel %vm2033_vm10, %v2027_v45, %v2039_v51  ;;  %v2029_v12 = vsub.f32 1.0, %v2023_v1  ;;  %v2055_v62 = vmul.f32 %v2049_v27, %v1899_v21  ;;  %v2785_v39 = vld [vmem:[#allocation14 + $0x8] sm:$0xff]  ;;  %v1073_v21 = vld [vmem:[%s1055_s20 + $0x8] sm:$0xff] }
 0x3a4   : > { %v2051_v0 = vadd.f32 1.0, %v2045_v53  ;;  %v2060_v18 = vmul.f32 %v2054_v11, %v1904_v13  ;;  %v2046_v14 = vsel %vm2034_vm11, %v2028_v63, %v2040_v15  ;;  %v9105_v40 = vpack.c.bf16 %v2637_v31, %v2636_v36  ;;  %v1072_v46 = vld [vmem:[%s1055_s20] sm:$0xff] }
 0x3a5   : > { %v2056_v4 = vmul.f32 %v2050_v9, %v1900_v59  ;;  %v2041_v38 = vsub.f32 0.0, %v2029_v12  ;;  %v2052_v29 = vadd.f32 1.0, %v2046_v14  ;;  %v9109_v43 = vpack.c.bf16 %v2639_v48, %v2638_v42  ;;  %v7606_v53 = vld [vmem:[%s14681_s8] ss:$0 sm:$0xff]  ;;  %s1061_s8 = sld [smem:[#allocation18]] }
 0x3a6   : > { %v2057_v17 = vmul.f32 %v2051_v0, %v1901_v3  ;;  %v12208_v24 = vpack.c.bf16 %v2785_v39, %v2784_v49  ;;  %v12219_v50 = vand.u32 127, %v1098_v54  ;;  %v1074_v57 = vmul.f32 %v1072_v46, %v12216_v2 }
 0x3a7   : > { %2174 = vmatprep.mubr.f32.mxu1 %v2056_v4  ;;  %v2047_v30 = vsel %vm2035_vm12, %v2029_v12, %v2041_v38  ;;  %v2058_v20 = vmul.f32 %v2052_v29, %v1902_v34  ;;  %v1075_v3 = vmul.f32 %v1073_v21, %v12229_v61 }
 0x3a8   : > { %2175 = vmatmul.mubr.f32.vlgmr.msra.gmra.mrb[12].mxu1 %v2055_v62  ;;  %8390 = vmatprep.mubr.f32.mxu0 %v2057_v17  ;;  %v2053_v19 = vadd.f32 1.0, %v2047_v30  ;;  %vm2266_vm15 = vcmp.eq.s32.totalorder %v12219_v50, 0 }
 0x3a9   : > { %9096 = vmatpush3.bf16.msra.mxu1 %v12095_v47  ;;  %8391 = vmatmul.mubr.f32.vlgmr.msra.gmra.mrb[4].mxu0 %v2060_v18  ;;  %v2270_v47 = vld [vmem:[%s1060_s23 + $0x8] sm:$0xff]  ;;  %vm12384_vm6 = vmneg %vm2266_vm15 }
 0x3aa   : > { %9098 = vmatprep.subr.bf16.mxu1 %v9097_v16  ;;  %v2059_v35 = vmul.f32 %v2053_v19, %v1903_v6  ;;  %vm9138_vm8 = vmpackc.low %vm12384_vm6, %vm12384_vm6 }
 0x3ac   : > { %2179 = vmatprep.mubr.f32.mxu1 %v2059_v35 }
 0x3ad   : > { %9100 = vmatpush3.bf16.msra.mxu1 %v9097_v16 }
 0x3ae   : > { %2180 = vmatmul.mubr.f32.gmra.mrb[14].mxu1 %v2058_v20  ;;  %9102 = vmatprep.subr.bf16.mxu1 %v9101_v33 }
 0x3af   : > { %8401 = vmatprep.mubr.msk.f32.mxu1 %vm2288_vm13, %v2269_v22 }
 0x3b2   : > { %8402 = vmatmul.mubr.msk.f32.vlgmr.msra.gmra.mrb[16].mxu1 %vm2288_vm13, %v2270_v47 }
 0x3b3   : > { %8404 = vmatprep.mubr.msk.f32.mxu1 %vm2288_vm13, %v2271_v32  ;;  %9104 = vmatpush3.bf16.msra.mxu1 %v9101_v33 }
 0x3b4   : > { %9106 = vmatprep.subr.bf16.mxu1 %v9105_v40 }
 0x3b6   : > { %8405 = vmatmul.mubr.msk.f32.gmra.mrb[18].mxu1 %vm2288_vm13, %v2272_v5 }
 0x3b7   : > { %8407 = vmatprep.mubr.msk.f32.mxu1 %vm2288_vm13, %v2273_v10  ;;  %9108 = vmatpush3.bf16.msra.mxu1 %v9105_v40 }
 0x3b8   : > { %9110 = vmatprep.subr.bf16.mxu1 %v9109_v43 }
 0x3ba   : > { %8408 = vmatmul.mubr.msk.f32.gmra.mrb[20].mxu1 %vm2288_vm13, %v2274_v26 }
 0x3bb   : > { %8410 = vmatprep.mubr.msk.f32.mxu1 %vm2288_vm13, %v2275_v52  ;;  %9112 = vmatpush3.bf16.msra.mxu1 %v9109_v43 }
 0x3bc   : > { %9114 = vmatprep.subr.bf16.mxu1 %v12208_v24 }
 0x3be   : > { %8411 = vmatmul.mubr.msk.f32.gmra.mrb[22].mxu1 %vm2288_vm13, %v2276_v25 }
 0x47b   : > { %v7810_v44 = vpop.f32.mrb[12].mxu1 }
 0x47c   : > { %v7811_v45 = vpop.f32.mrb[13].mxu1  ;;  %v8392_v41 = vpop.f32.mrb[4].mxu0 }
 0x47d   : > { %v7812_v27 = vadd.f32 %v7811_v45, %v7810_v44  ;;  %v2251_v51 = vpop.f32.mrb[5].mxu0 }
 0x47f   : > { %v2177_v59 = vadd.f32 %v7812_v27, %v2109_v23 }
 0x481   : > { %v12222_v9 = vadd.f32 %v2251_v51, %v2177_v59  ;;  %v7813_v1 = vpop.f32.mrb[14].mxu1  ;;  %v2787_v59 = vld [vmem:[#allocation14 + $0x18] sm:$0xff] }
 0x482   : > { %v7814_v11 = vpop.f32.mrb[15].mxu1 }
 0x483   : > { %14680 = vst [vmem:[#allocation39_spill] sm:$0xff] %v12222_v9  ;;  %v12226_v60 = vsub.f32 %v1074_v57, %v12222_v9  ;;  %2261 = vst.msk [vmem:[%s1042_s30] sm:$0x1] %vm2260_vm14, %v12222_v9  ;;  %v7815_v54 = vadd.f32 %v7814_v11, %v7813_v1  ;;  %v2786_v57 = vld [vmem:[#allocation14 + $0x10] sm:$0xff] }
 0x485   : > { %v12242_v63 = vsel %vm2266_vm15, 0.0, %v12226_v60  ;;  %v2182_v4 = vadd.f32 %v7815_v54, %v2109_v23  ;;  %v8403_v0 = vpop.f32.mrb[16].mxu1 }
 0x486   : > { %v2385_v12 = vadd.f32 %v8403_v0, %v7606_v53  ;;  %v2379_v62 = vpop.f32.mrb[17].mxu1 }
 0x487   : > { %v2257_v13 = vadd.f32 %v8392_v41, %v2182_v4  ;;  %v12245_v15 = vadd.f32 %v7606_v53, %v2379_v62 }
 0x488   : > { %v12247_v16 = vmul.f32 0.70710677, %v2385_v12  ;;  %v12289_v11 = vmul.f32 0.5, %v2385_v12 }
 0x489   : > { %v12249_v17 = vsub.f32 %v1075_v3, %v2257_v13  ;;  %v12252_v38 = vmul.f32 0.70710677, %v12245_v15  ;;  %v8406_v18 = vpop.f32.mrb[18].mxu1 }
 0x48a   : > { %v2435_v14 = vand.u32 2147483647, %v12247_v16  ;;  %v12255_v30 = vadd.f32 %v8406_v18, %v7606_v53  ;;  %v2389_v29 = vpop.f32.mrb[19].mxu1  ;;  %v12297_v18 = vpack.c.bf16 %v2787_v59, %v2786_v57  ;;  %vm2595_vm1 = vcmp.ge.f32.partialorder %v12247_v16, 0.0 }
 0x48b   : > { %v2434_v6 = vand.u32 2147483647, %v12252_v38  ;;  %v12258_v19 = vadd.f32 %v7606_v53, %v2389_v29  ;;  %v12263_v34 = vsel %vm2266_vm15, 0.0, %v12249_v17  ;;  %vm2594_vm2 = vcmp.ge.f32.partialorder %v12252_v38, 0.0 }
 0x48c   : > { %v2443_v35 = vmul.f32 0.3275911, %v2435_v14  ;;  %v12266_v20 = vmul.f32 0.70710677, %v12255_v30  ;;  %v2547_v37 = vsub.f32 0.0, %v2435_v14 }
 0x48d   : > { %v2442_v22 = vmul.f32 0.3275911, %v2434_v6  ;;  %v12269_v47 = vmul.f32 0.70710677, %v12258_v19  ;;  %v8409_v10 = vpop.f32.mrb[20].mxu1  ;;  %v2546_v31 = vsub.f32 0.0, %v2434_v6 }
 0x48e   : > { %v2451_v32 = vadd.f32 1.0, %v2443_v35  ;;  %v2437_v5 = vand.u32 2147483647, %v12266_v20  ;;  %v2399_v25 = vpop.f32.mrb[21].mxu1  ;;  %v12273_v42 = vadd.f32 %v8409_v10, %v7606_v53  ;;  %v2555_v45 = vmul.f32 %v2547_v37, %v2435_v14 }
 0x48f   : > { %v2450_v26 = vadd.f32 1.0, %v2442_v22  ;;  %v2436_v52 = vand.u32 2147483647, %v12269_v47  ;;  %v12275_v49 = vadd.f32 %v7606_v53, %v2399_v25  ;;  %v2554_v23 = vmul.f32 %v2546_v31, %v2434_v6 }
 0x490   : > { %10163 = vrcp.f32 %v2451_v32  ;;  %v2445_v28 = vmul.f32 0.3275911, %v2437_v5  ;;  %v2549_v39 = vsub.f32 0.0, %v2437_v5  ;;  %v12278_v44 = vmul.f32 0.70710677, %v12273_v42 }
 0x491   : > { %10165 = vrcp.f32 %v2450_v26  ;;  %v2444_v33 = vmul.f32 0.3275911, %v2436_v52  ;;  %v8412_v36 = vpop.f32.mrb[22].mxu1  ;;  %v12281_v46 = vmul.f32 0.70710677, %v12275_v49  ;;  %v2548_v41 = vsub.f32 0.0, %v2436_v52 }
 0x492   : > { %v2453_v40 = vadd.f32 1.0, %v2445_v28  ;;  %v2409_v48 = vpop.f32.mrb[23].mxu1  ;;  %v2439_v27 = vand.u32 2147483647, %v12278_v44  ;;  %v12284_v51 = vadd.f32 %v8412_v36, %v7606_v53  ;;  %v2557_v54 = vmul.f32 %v2549_v39, %v2437_v5 }
 0x493   : > { %v2452_v43 = vadd.f32 1.0, %v2444_v33  ;;  %v2438_v1 = vand.u32 2147483647, %v12281_v46  ;;  %v12287_v21 = vadd.f32 %v7606_v53, %v2409_v48  ;;  %v2564_v0 = vmul.f32 1.442695, %v2555_v45 }
 0x494   : > { %10167 = vrcp.f32 %v2453_v40  ;;  %v2447_v3 = vmul.f32 0.3275911, %v2439_v27  ;;  %v12292_v4 = vmul.f32 0.70710677, %v12284_v51  ;;  %v2562_v29 = vmul.f32 1.442695, %v2554_v23 }
 0x495   : > { %10169 = vrcp.f32 %v2452_v43  ;;  %v2446_v62 = vmul.f32 0.3275911, %v2438_v1  ;;  %v12295_v13 = vmul.f32 0.70710677, %v12287_v21  ;;  %v2556_v6 = vmul.f32 %v2548_v41, %v2436_v52 }
 0x496   : > { %v2455_v53 = vadd.f32 1.0, %v2447_v3  ;;  %v2441_v12 = vand.u32 2147483647, %v12292_v4  ;;  %v2551_v32 = vsub.f32 0.0, %v2439_v27  ;;  %v2568_v25 = vmul.f32 1.442695, %v2557_v54 }
 0x497   : > { %v2454_v5 = vadd.f32 1.0, %v2446_v62  ;;  %v2440_v10 = vand.u32 2147483647, %v12295_v13  ;;  %v2550_v33 = vsub.f32 0.0, %v2438_v1  ;;  %v2566_v23 = vmul.f32 1.442695, %v2556_v6 }
 0x498   : > { %10171 = vrcp.f32 %v2455_v53  ;;  %v2449_v28 = vmul.f32 0.3275911, %v2441_v12  ;;  %v2553_v52 = vsub.f32 0.0, %v2441_v12  ;;  %v2559_v41 = vmul.f32 %v2551_v32, %v2439_v27 }
 0x499   : > { %10173 = vrcp.f32 %v2454_v5  ;;  %v2448_v48 = vmul.f32 0.3275911, %v2440_v10  ;;  %v12318_v32 = vmul.f32 0.5, %v12245_v15  ;;  %vm2597_vm3 = vcmp.ge.f32.partialorder %v12266_v20, 0.0  ;;  %v2788_v20 = vld [vmem:[#allocation14 + $0x20] sm:$0xff] }
 0x49a   : > { %v12299_v14 = vpop.eup %10163  ;;  %10175 = vpow2.f32 %v2564_v0  ;;  %v2457_v40 = vadd.f32 1.0, %v2449_v28  ;;  %v2558_v0 = vmul.f32 %v2550_v33, %v2438_v1  ;;  %v2561_v53 = vmul.f32 %v2553_v52, %v2441_v12 }
 0x49b   : > { %v12302_v35 = vpop.eup %10165  ;;  %v2475_v22 = vmul.f32 1.0614054, %v12299_v14  ;;  %v2456_v54 = vadd.f32 1.0, %v2448_v48  ;;  %v2572_v27 = vmul.f32 1.442695, %v2559_v41  ;;  %vm2596_vm4 = vcmp.ge.f32.partialorder %v12269_v47, 0.0 }
 0x49c   : > { %v2474_v26 = vmul.f32 1.0614054, %v12302_v35  ;;  %10177 = vrcp.f32 %v2457_v40  ;;  %v2570_v33 = vmul.f32 1.442695, %v2558_v0  ;;  %vm2599_vm5 = vcmp.ge.f32.partialorder %v12278_v44, 0.0 }
 0x49d   : > { %v2483_v37 = vadd.f32 -1.4531521, %v2475_v22  ;;  %10179 = vrcp.f32 %v2456_v54  ;;  %vm2598_vm7 = vcmp.ge.f32.partialorder %v12281_v46, 0.0  ;;  %v9137_v46 = vpack.c.bf16 %v12249_v17, %v12226_v60 }
 0x49e   : > { %v12307_v36 = vpop.eup %10167  ;;  %v2482_v31 = vadd.f32 -1.4531521, %v2474_v26  ;;  %v2552_v26 = vsub.f32 0.0, %v2440_v10  ;;  %10181 = vpow2.f32 %v2562_v29  ;;  %v2576_v29 = vmul.f32 1.442695, %v2561_v53 }
 0x49f   : > { %v12309_v43 = vpop.eup %10169  ;;  %v2491_v39 = vmul.f32 %v12299_v14, %v2483_v37  ;;  %v2477_v45 = vmul.f32 1.0614054, %v12307_v36  ;;  %10183 = vpow2.f32 %v2568_v25  ;;  %vm2601_vm9 = vcmp.ge.f32.partialorder %v12292_v4, 0.0 }
 0x4a0   : > { %v2490_v57 = vmul.f32 %v12302_v35, %v2482_v31  ;;  %v2476_v59 = vmul.f32 1.0614054, %v12309_v43  ;;  %v2560_v40 = vmul.f32 %v2552_v26, %v2440_v10  ;;  %10185 = vpow2.f32 %v2566_v23 }
 0x4a1   : > { %v2499_v3 = vadd.f32 1.4214138, %v2491_v39  ;;  %v2485_v62 = vadd.f32 -1.4531521, %v2477_v45  ;;  %10187 = vpow2.f32 %v2572_v27  ;;  %vm2600_vm10 = vcmp.ge.f32.partialorder %v12295_v13, 0.0 }
 0x4a2   : > { %v2498_v22 = vadd.f32 1.4214138, %v2490_v57  ;;  %v2484_v5 = vadd.f32 -1.4531521, %v2476_v59  ;;  %v12322_v52 = vpop.eup %10171  ;;  %10189 = vpow2.f32 %v2570_v33 }
 0x4a3   : > { %v2507_v28 = vmul.f32 %v12299_v14, %v2499_v3  ;;  %v2493_v6 = vmul.f32 %v12307_v36, %v2485_v62  ;;  %v12324_v45 = vpop.eup %10173  ;;  %v2479_v57 = vmul.f32 1.0614054, %v12322_v52  ;;  %v2574_v3 = vmul.f32 1.442695, %v2560_v40 }
 0x4a4   : > { %v2506_v37 = vmul.f32 %v12302_v35, %v2498_v22  ;;  %v2492_v31 = vmul.f32 %v12309_v43, %v2484_v5  ;;  %v10176_v10 = vpop.eup %10175  ;;  %v2478_v54 = vmul.f32 1.0614054, %v12324_v45  ;;  %10191 = vpow2.f32 %v2576_v29 }
 0x4a5   : > { %v2515_v1 = vadd.f32 -0.28449672, %v2507_v28  ;;  %v2501_v12 = vadd.f32 1.4214138, %v2493_v6  ;;  %v2487_v0 = vadd.f32 -1.4531521, %v2479_v57  ;;  %10193 = vpow2.f32 %v2574_v3 }
 0x4a6   : > { %v2514_v48 = vadd.f32 -0.28449672, %v2506_v37  ;;  %v2500_v39 = vadd.f32 1.4214138, %v2492_v31  ;;  %v12332_v53 = vpop.eup %10177  ;;  %v2486_v26 = vadd.f32 -1.4531521, %v2478_v54 }
 0x4a7   : > { %v2523_v15 = vmul.f32 %v12299_v14, %v2515_v1  ;;  %v2509_v41 = vmul.f32 %v12307_v36, %v2501_v12  ;;  %v2495_v27 = vmul.f32 %v12322_v52, %v2487_v0  ;;  %v2481_v37 = vmul.f32 1.0614054, %v12332_v53  ;;  %v12340_v31 = vpop.eup %10179 }
 0x4a8   : > { %v2522_v59 = vmul.f32 %v12302_v35, %v2514_v48  ;;  %v2508_v25 = vmul.f32 %v12309_v43, %v2500_v39  ;;  %v2494_v12 = vmul.f32 %v12324_v45, %v2486_v26  ;;  %v10182_v33 = vpop.eup %10181 }
 0x4a9   : > { %v2531_v62 = vadd.f32 0.2548296, %v2523_v15  ;;  %v2517_v23 = vadd.f32 -0.28449672, %v2509_v41  ;;  %v2503_v39 = vadd.f32 1.4214138, %v2495_v27 }
 0x4aa   : > { %v2530_v22 = vadd.f32 0.2548296, %v2522_v59  ;;  %v2516_v5 = vadd.f32 -0.28449672, %v2508_v25  ;;  %v2489_v29 = vadd.f32 -1.4531521, %v2481_v37  ;;  %v10184_v25 = vpop.eup %10183 }
 0x4ab   : > { %v2539_v28 = vmul.f32 %v12299_v14, %v2531_v62  ;;  %v2525_v6 = vmul.f32 %v12307_v36, %v2517_v23  ;;  %v2502_v57 = vadd.f32 1.4214138, %v2494_v12  ;;  %v2480_v59 = vmul.f32 1.0614054, %v12340_v31  ;;  %v10186_v62 = vpop.eup %10185 }
 0x4ac   : > { %v2538_v40 = vmul.f32 %v12302_v35, %v2530_v22  ;;  %v2524_v1 = vmul.f32 %v12309_v43, %v2516_v5  ;;  %v2511_v3 = vmul.f32 %v12322_v52, %v2503_v39  ;;  %v10188_v26 = vpop.eup %10187 }
 0x4ad   : > { %v2579_v48 = vmul.f32 %v10176_v10, %v2539_v28  ;;  %v2533_v14 = vadd.f32 0.2548296, %v2525_v6  ;;  %v2497_v10 = vmul.f32 %v12332_v53, %v2489_v29  ;;  %v2510_v22 = vmul.f32 %v12324_v45, %v2502_v57 }
 0x4ae   : > { %v2578_v15 = vmul.f32 %v10182_v33, %v2538_v40  ;;  %v2532_v41 = vadd.f32 0.2548296, %v2524_v1  ;;  %v2488_v5 = vadd.f32 -1.4531521, %v2480_v59  ;;  %v2519_v27 = vadd.f32 -0.28449672, %v2511_v3  ;;  %v10190_v33 = vpop.eup %10189 }
 0x4af   : > { %v2587_v54 = vsub.f32 1.0, %v2579_v48  ;;  %v2541_v35 = vmul.f32 %v12307_v36, %v2533_v14  ;;  %v2505_v37 = vadd.f32 1.4214138, %v2497_v10  ;;  %v2518_v1 = vadd.f32 -0.28449672, %v2510_v22  ;;  %v10192_v29 = vpop.eup %10191 }
 0x4b0   : > { %v2586_v23 = vsub.f32 1.0, %v2578_v15  ;;  %v2540_v0 = vmul.f32 %v12309_v43, %v2532_v41  ;;  %v2496_v12 = vmul.f32 %v12340_v31, %v2488_v5  ;;  %v2527_v43 = vmul.f32 %v12322_v52, %v2519_v27 }
 0x4b1   : > { %v2603_v28 = vsub.f32 0.0, %v2587_v54  ;;  %v2581_v6 = vmul.f32 %v10184_v25, %v2541_v35  ;;  %v2513_v39 = vmul.f32 %v12332_v53, %v2505_v37  ;;  %v2526_v59 = vmul.f32 %v12324_v45, %v2518_v1 }
 0x4b2   : > { %v2602_v40 = vsub.f32 0.0, %v2586_v23  ;;  %v2580_v36 = vmul.f32 %v10186_v62, %v2540_v0  ;;  %v2535_v3 = vadd.f32 0.2548296, %v2527_v43  ;;  %v10194_v62 = vpop.eup %10193  ;;  %v2504_v22 = vadd.f32 1.4214138, %v2496_v12  ;;  %v2789_v12 = vld [vmem:[#allocation14 + $0x28] sm:$0xff] }
 0x4b3   : > { %v2611_v48 = vsel %vm2595_vm1, %v2587_v54, %v2603_v28  ;;  %v2589_v14 = vsub.f32 1.0, %v2581_v6  ;;  %v2521_v10 = vadd.f32 -0.28449672, %v2513_v39  ;;  %v2534_v0 = vadd.f32 0.2548296, %v2526_v59 }
 0x4b4   : > { %v2619_v15 = vadd.f32 1.0, %v2611_v48  ;;  %v2610_v41 = vsel %vm2594_vm2, %v2586_v23, %v2602_v40  ;;  %v2588_v57 = vsub.f32 1.0, %v2580_v36  ;;  %v2543_v38 = vmul.f32 %v12322_v52, %v2535_v3 }
 0x4b5   : > { %v2618_v25 = vadd.f32 1.0, %v2610_v41  ;;  %v2605_v35 = vsub.f32 0.0, %v2589_v14  ;;  %v2529_v23 = vmul.f32 %v12332_v53, %v2521_v10  ;;  %v2542_v37 = vmul.f32 %v12324_v45, %v2534_v0 }
 0x4b6   : > { %v2627_v16 = vmul.f32 %v2619_v15, %v12289_v11  ;;  %v2604_v54 = vsub.f32 0.0, %v2588_v57  ;;  %v2512_v11 = vmul.f32 %v12340_v31, %v2504_v22  ;;  %v2420_v40 = vmul.f32 0.5, %v12258_v19 }
 0x4b7   : > { %v2626_v5 = vmul.f32 %v2618_v25, %v12318_v32  ;;  %v2613_v28 = vsel %vm2597_vm3, %v2589_v14, %v2605_v35  ;;  %v2583_v1 = vmul.f32 %v10188_v26, %v2543_v38  ;;  %v2537_v32 = vadd.f32 0.2548296, %v2529_v23  ;;  %v7615_v38 = vld [vmem:[#allocation12] ss:$0 sm:$0xff] }
 0x4b8   : > { %v2621_v6 = vadd.f32 1.0, %v2613_v28  ;;  %v2612_v27 = vsel %vm2596_vm4, %v2588_v57, %v2604_v54  ;;  %v2421_v52 = vmul.f32 0.5, %v12255_v30  ;;  %v2582_v48 = vmul.f32 %v10190_v33, %v2542_v37 }
 0x4b9   : > { %v2620_v36 = vadd.f32 1.0, %v2612_v27  ;;  %8425 = vmatprep.mubr.msk.f32.mxu1 %vm1113_vm0, %v2626_v5  ;;  %v2520_v14 = vadd.f32 -0.28449672, %v2512_v11  ;;  %v2591_v43 = vsub.f32 1.0, %v2583_v1  ;;  %v2545_v45 = vmul.f32 %v12332_v53, %v2537_v32 }
 0x4ba   : > { %8426 = vmatmul.mubr.msk.f32.vlgmr.msra.gmra.mrb[24].mxu1 %vm1113_vm0, %v2627_v16  ;;  %v2629_v19 = vmul.f32 %v2621_v6, %v2421_v52  ;;  %v2590_v39 = vsub.f32 1.0, %v2582_v48  ;;  %v9121_v15 = vpack.c.bf16 %v2789_v12, %v2788_v20  ;;  %v2422_v35 = vmul.f32 0.5, %v12275_v49 }
 0x4bb   : > { %v2628_v47 = vmul.f32 %v2620_v36, %v2420_v40  ;;  %9116 = vmatpush3.bf16.msra.mxu1 %v12208_v24  ;;  %v2528_v26 = vmul.f32 %v12340_v31, %v2520_v14  ;;  %v2607_v41 = vsub.f32 0.0, %v2591_v43  ;;  %v2585_v57 = vmul.f32 %v10192_v29, %v2545_v45  ;;  %v3145_v24 = vld [vmem:[%s14684_s22 + $0x18] sm:$0xff] }
 0x4bc   : > { %9118 = vmatprep.subr.bf16.mxu1 %v12297_v18  ;;  %v2606_v30 = vsub.f32 0.0, %v2590_v39  ;;  %v2423_v16 = vmul.f32 0.5, %v12273_v42  ;;  %v2425_v22 = vmul.f32 0.5, %v12284_v51 }
 0x4bd   : > { %8428 = vmatprep.mubr.msk.f32.mxu1 %vm1113_vm0, %v2628_v47  ;;  %v2536_v33 = vadd.f32 0.2548296, %v2528_v26  ;;  %v2615_v53 = vsel %vm2599_vm5, %v2591_v43, %v2607_v41  ;;  %v2593_v59 = vsub.f32 1.0, %v2585_v57  ;;  %v3142_v41 = vld [vmem:[%s14684_s22] sm:$0xff]  ;;  %v3143_v57 = vld [vmem:[%s14684_s22 + $0x8] sm:$0xff]  ;;  %vm3444_vm5 = vcmask 130048  }
 0x4be   : > { %8429 = vmatmul.mubr.msk.f32.gmra.mrb[26].mxu1 %vm1113_vm0, %v2629_v19  ;;  %v2623_v29 = vadd.f32 1.0, %v2615_v53  ;;  %v2614_v25 = vsel %vm2598_vm7, %v2590_v39, %v2606_v30  ;;  %v9125_v30 = vpack.c.bf16 %v3143_v57, %v3142_v41 }
 0x4bf   : > { %9120 = vmatpush3.bf16.msra.mxu1 %v12297_v18  ;;  %v2544_v44 = vmul.f32 %v12340_v31, %v2536_v33  ;;  %v2622_v3 = vadd.f32 1.0, %v2614_v25  ;;  %v2609_v10 = vsub.f32 0.0, %v2593_v59  ;;  %v3144_v33 = vld [vmem:[%s14684_s22 + $0x10] sm:$0xff] }
 0x4c0   : > { %9122 = vmatprep.subr.bf16.mxu1 %v9121_v15  ;;  %v2631_v0 = vmul.f32 %v2623_v29, %v2423_v16  ;;  %9126 = vmatprep.subr.bf16.mxu0 %v9125_v30  ;;  %v9129_v53 = vpack.c.bf16 %v3145_v24, %v3144_v33  ;;  %v3147_v29 = vld [vmem:[%s14684_s22 + $0x28] sm:$0xff]  ;;  %v3369_v16 = vld [vmem:[%s1047_s25 + $0x18] sm:$0xff] }
 0x4c1   : > { %v2584_v54 = vmul.f32 %v10194_v62, %v2544_v44  ;;  %v2630_v18 = vmul.f32 %v2622_v3, %v2422_v35  ;;  %v2617_v49 = vsel %vm2601_vm9, %v2593_v59, %v2609_v10  ;;  %v2424_v62 = vmul.f32 0.5, %v12287_v21  ;;  %9128 = vmatpush3.bf16.msra.mxu0 %v9125_v30  ;;  %v3146_v59 = vld [vmem:[%s14684_s22 + $0x20] sm:$0xff]  ;;  %v3368_v3 = vld [vmem:[%s1047_s25 + $0x10] sm:$0xff]  ;;  %v3367_v10 = vld [vmem:[%s1047_s25 + $0x8] sm:$0xff] }
 0x4c2   : > { %v2625_v60 = vadd.f32 1.0, %v2617_v49  ;;  %9130 = vmatprep.subr.bf16.mxu0 %v9129_v53  ;;  %v9133_v25 = vpack.c.bf16 %v3147_v29, %v3146_v59  ;;  %v10819_v44 = vmov 0   ;;  %v3366_v35 = vld [vmem:[%s1047_s25] sm:$0xff]  ;;  %v3574_v49 = vsel %vm1113_vm0, %v12216_v2, 0.0 }
 0x4c3   : > { %9124 = vmatpush3.bf16.msra.mxu1 %v9121_v15  ;;  %v2592_v31 = vsub.f32 1.0, %v2584_v54  ;;  %8431 = vmatprep.mubr.msk.f32.mxu1 %vm1113_vm0, %v2630_v18  ;;  %v3370_v54 = vld [vmem:[%s1047_s25 + $0x20] sm:$0xff]  ;;  %v3372_v18 = vld [vmem:[%s1047_s25 + $0x30] sm:$0xff] }
 0x4c4   : > { %9139 = vmatprep.subr.msk.bf16.mxu1 %vm9138_vm8, %v9137_v46  ;;  %8432 = vmatmul.mubr.msk.f32.gmra.mrb[28].mxu1 %vm1113_vm0, %v2631_v0  ;;  %v2633_v28 = vmul.f32 %v2625_v60, %v2425_v22  ;;  %v3373_v0 = vld [vmem:[%s1047_s25 + $0x38] sm:$0xff] }
 0x4c5   : > { %v2608_v42 = vsub.f32 0.0, %v2592_v31  ;;  %9132 = vmatpush3.bf16.msra.mxu0 %v9129_v53  ;;  %10113 = vset.pattern.permute.xlu0 %v10819_v44 }
 0x4c6   : > { %9134 = vmatprep.subr.bf16.mxu0 %v9133_v25  ;;  %10114 = vset.pattern.permute.xlu1 %v10819_v44 }
 0x4c7   : > { %v2616_v17 = vsel %vm2600_vm10, %v2592_v31, %v2608_v42  ;;  %3375 = vperm.xlu0 %10113, %v3366_v35   ;;  %3381 = vperm.xlu1 %10114, %v3368_v3   ;;  %v3577_v31 = vsel %vm1113_vm0, %v12229_v61, 0.0  ;;  %v7624_v42 = vld [vmem:[#allocation15] ss:$0 sm:$0xff] }
 0x4c8   : > { %v2624_v4 = vadd.f32 1.0, %v2616_v17 }
 0x4c9   : > { %9136 = vmatpush3.bf16.msra.mxu0 %v9133_v25 }
 0x4ca   : > { %v2632_v5 = vmul.f32 %v2624_v4, %v2424_v62 }
 0x4cb   : > { %3378 = vperm.xlu0 %10113, %v3367_v10   ;;  %3384 = vperm.xlu1 %10114, %v3369_v16  }
 0x4cc   : > { %8434 = vmatprep.mubr.msk.f32.mxu1 %vm1113_vm0, %v2632_v5 }
 0x4cd   : > { %8435 = vmatmul.mubr.msk.f32.gmra.mrb[30].mxu1 %vm1113_vm0, %v2633_v28 }
 0x4cf   : > { %3387 = vperm.xlu0 %10113, %v3370_v54  }
 0x4d3   : > { %3393 = vperm.xlu0 %10113, %v3372_v18  }
 0x4f2   : > { %3578 = vadd.xlane.f32.xlu0 %v3577_v31 }
 0x58d   : > { %v8427_v23 = vpop.f32.mrb[24].mxu1 }
 0x58e   : > { %v2743_v6 = vadd.f32 %v8427_v23, %v7615_v38  ;;  %v2737_v27 = vpop.f32.mrb[25].mxu1 }
 0x58f   : > { %v2738_v37 = vadd.f32 %v7615_v38, %v2737_v27 }
 0x590   : > { %v2777_v40 = vmax.f32 %v2743_v6, 0.0 }
 0x591   : > { %v2776_v11 = vmax.f32 %v2738_v37, 0.0  ;;  %v8430_v13 = vpop.f32.mrb[26].mxu1 }
 0x592   : > { %v2753_v36 = vadd.f32 %v8430_v13, %v7615_v38  ;;  %v2747_v1 = vpop.f32.mrb[27].mxu1 }
 0x593   : > { %v2748_v21 = vadd.f32 %v7615_v38, %v2747_v1  ;;  %8449 = vmatprep.mubr.msk.f32.mxu1 %vm1113_vm0, %v2776_v11 }
 0x594   : > { %8450 = vmatmul.mubr.msk.f32.vlgmr.msra.gmra.mrb[32].mxu1 %vm1113_vm0, %v2777_v40  ;;  %v2779_v32 = vmax.f32 %v2753_v36, 0.0 }
 0x595   : > { %v2778_v51 = vmax.f32 %v2748_v21, 0.0  ;;  %9142 = vmatpush3.bf16.msk.msra.mxu1 %vm9138_vm8, %v9137_v46  ;;  %v3371_v46 = vld [vmem:[%s1047_s25 + $0x28] sm:$0xff]  ;;  %s7598_s25 = sld [smem:[#allocation18 + $0x3]] }
 0x596   : > { %3390 = vperm.xlu1 %10114, %v3371_v46  }
 0x597   : > { %8452 = vmatprep.mubr.msk.f32.mxu1 %vm1113_vm0, %v2778_v51  ;;  %v8433_v20 = vpop.f32.mrb[28].mxu1 }
 0x598   : > { %8453 = vmatmul.mubr.msk.f32.gmra.mrb[34].mxu1 %vm1113_vm0, %v2779_v32  ;;  %v2763_v12 = vadd.f32 %v8433_v20, %v7615_v38  ;;  %v2757_v52 = vpop.f32.mrb[29].mxu1 }
 0x599   : > { %v2758_v48 = vadd.f32 %v7615_v38, %v2757_v52 }
 0x59a   : > { %v2781_v47 = vmax.f32 %v2763_v12, 0.0  ;;  %3396 = vperm.xlu1 %10114, %v3373_v0  }
 0x59b   : > { %v2780_v14 = vmax.f32 %v2758_v48, 0.0 }
 0x59d   : > { %8455 = vmatprep.mubr.msk.f32.mxu1 %vm1113_vm0, %v2780_v14 }
 0x59e   : > { %8456 = vmatmul.mubr.msk.f32.gmra.mrb[36].mxu1 %vm1113_vm0, %v2781_v47 }
 0x5a0   : > { %v8436_v43 = vpop.f32.mrb[30].mxu1 }
 0x5a1   : > { %v2773_v45 = vadd.f32 %v8436_v43, %v7615_v38  ;;  %v2767_v19 = vpop.f32.mrb[31].mxu1 }
 0x5a2   : > { %v2768_v39 = vadd.f32 %v7615_v38, %v2767_v19 }
 0x5a3   : > { %v2783_v15 = vmax.f32 %v2773_v45, 0.0 }
 0x5a4   : > { %v2782_v26 = vmax.f32 %v2768_v39, 0.0 }
 0x5a6   : > { %8458 = vmatprep.mubr.msk.f32.mxu1 %vm1113_vm0, %v2782_v26 }
 0x5a7   : > { %8459 = vmatmul.mubr.msk.f32.gmra.mrb[38].mxu1 %vm1113_vm0, %v2783_v15 }
 0x5be   : > { %3575 = vadd.xlane.f32.xlu1 %v3574_v49 }
 0x667   : > { %v8451_v60 = vpop.f32.mrb[32].mxu1 }
 0x668   : > { %v2893_v17 = vadd.f32 %v8451_v60, %v7624_v42  ;;  %v2887_v62 = vpop.f32.mrb[33].mxu1 }
 0x669   : > { %v2888_v4 = vadd.f32 %v7624_v42, %v2887_v62 }
 0x66a   : > { %v12451_v22 = vmul.f32 0.70710677, %v2893_v17  ;;  %v12481_v59 = vmul.f32 0.5, %v2893_v17 }
 0x66b   : > { %v12453_v5 = vmul.f32 0.70710677, %v2888_v4  ;;  %v8454_v28 = vpop.f32.mrb[34].mxu1  ;;  %v12492_v60 = vmul.f32 0.5, %v2888_v4 }
 0x66c   : > { %v2943_v38 = vand.u32 2147483647, %v12451_v22  ;;  %v12456_v23 = vadd.f32 %v8454_v28, %v7624_v42  ;;  %v2897_v61 = vpop.f32.mrb[35].mxu1  ;;  %vm3103_vm11 = vcmp.ge.f32.partialorder %v12451_v22, 0.0 }
 0x66d   : > { %v2942_v6 = vand.u32 2147483647, %v12453_v5  ;;  %v12459_v27 = vadd.f32 %v7624_v42, %v2897_v61  ;;  %vm3102_vm12 = vcmp.ge.f32.partialorder %v12453_v5, 0.0 }
 0x66e   : > { %v2951_v2 = vmul.f32 0.3275911, %v2943_v38  ;;  %v12462_v37 = vmul.f32 0.70710677, %v12456_v23  ;;  %v3055_v36 = vsub.f32 0.0, %v2943_v38 }
 0x66f   : > { %v2950_v11 = vmul.f32 0.3275911, %v2942_v6  ;;  %v12465_v13 = vmul.f32 0.70710677, %v12459_v27  ;;  %v3054_v48 = vsub.f32 0.0, %v2942_v6 }
 0x670   : > { %v2959_v40 = vadd.f32 1.0, %v2951_v2  ;;  %v2945_v1 = vand.u32 2147483647, %v12462_v37  ;;  %v3063_v52 = vmul.f32 %v3055_v36, %v2943_v38  ;;  %vm3105_vm13 = vcmp.ge.f32.partialorder %v12462_v37, 0.0 }
 0x671   : > { %v2958_v21 = vadd.f32 1.0, %v2950_v11  ;;  %v2944_v51 = vand.u32 2147483647, %v12465_v13  ;;  %v8457_v12 = vpop.f32.mrb[36].mxu1  ;;  %v3062_v57 = vmul.f32 %v3054_v48, %v2942_v6  ;;  %vm3104_vm15 = vcmp.ge.f32.partialorder %v12465_v13, 0.0 }
 0x672   : > { %10195 = vrcp.f32 %v2959_v40  ;;  %v2953_v32 = vmul.f32 0.3275911, %v2945_v1  ;;  %v12469_v47 = vadd.f32 %v8457_v12, %v7624_v42  ;;  %v2907_v43 = vpop.f32.mrb[37].mxu1  ;;  %v3057_v26 = vsub.f32 0.0, %v2945_v1 }
 0x673   : > { %10197 = vrcp.f32 %v2958_v21  ;;  %v2952_v20 = vmul.f32 0.3275911, %v2944_v51  ;;  %v12471_v19 = vadd.f32 %v7624_v42, %v2907_v43  ;;  %v3072_v41 = vmul.f32 1.442695, %v3063_v52 }
 0x674   : > { %v2961_v14 = vadd.f32 1.0, %v2953_v32  ;;  %v12474_v39 = vmul.f32 0.70710677, %v12469_v47  ;;  %v3056_v33 = vsub.f32 0.0, %v2944_v51  ;;  %v3065_v29 = vmul.f32 %v3057_v26, %v2945_v1 }
 0x675   : > { %v2960_v45 = vadd.f32 1.0, %v2952_v20  ;;  %v12477_v15 = vmul.f32 0.70710677, %v12471_v19  ;;  %v3070_v3 = vmul.f32 1.442695, %v3062_v57 }
 0x676   : > { %10199 = vrcp.f32 %v2961_v14  ;;  %v2947_v30 = vand.u32 2147483647, %v12474_v39  ;;  %v3064_v0 = vmul.f32 %v3056_v33, %v2944_v51  ;;  %v3076_v38 = vmul.f32 1.442695, %v3065_v29 }
 0x677   : > { %10201 = vrcp.f32 %v2960_v45  ;;  %v2946_v24 = vand.u32 2147483647, %v12477_v15  ;;  %vm3107_vm1 = vcmp.ge.f32.partialorder %v12474_v39, 0.0  ;;  %vm3106_vm2 = vcmp.ge.f32.partialorder %v12477_v15, 0.0 }
 0x678   : > { %v2955_v53 = vmul.f32 0.3275911, %v2947_v30  ;;  %10203 = vpow2.f32 %v3072_v41  ;;  %v3059_v62 = vsub.f32 0.0, %v2947_v30  ;;  %v3074_v1 = vmul.f32 1.442695, %v3064_v0 }
 0x679   : > { %v2954_v25 = vmul.f32 0.3275911, %v2946_v24  ;;  %v3058_v11 = vsub.f32 0.0, %v2946_v24 }
 0x67a   : > { %v8460_v44 = vpop.f32.mrb[38].mxu1  ;;  %v2963_v10 = vadd.f32 1.0, %v2955_v53  ;;  %v3067_v20 = vmul.f32 %v3059_v62, %v2947_v30 }
 0x67b   : > { %v12485_v16 = vadd.f32 %v8460_v44, %v7624_v42  ;;  %v2917_v54 = vpop.f32.mrb[39].mxu1  ;;  %v2962_v31 = vadd.f32 1.0, %v2954_v25  ;;  %v3066_v26 = vmul.f32 %v3058_v11, %v2946_v24 }
 0x67c   : > { %v12483_v35 = vpop.eup %10195  ;;  %v12490_v49 = vadd.f32 %v7624_v42, %v2917_v54  ;;  %10205 = vrcp.f32 %v2963_v10 }
 0x67d   : > { %v12487_v46 = vpop.eup %10197  ;;  %v2983_v18 = vmul.f32 1.0614054, %v12483_v35  ;;  %10207 = vrcp.f32 %v2962_v31  ;;  %v12496_v61 = vmul.f32 0.70710677, %v12485_v16 }
 0x67e   : > { %v2982_v17 = vmul.f32 1.0614054, %v12487_v46  ;;  %10209 = vpow2.f32 %v3070_v3  ;;  %v12501_v42 = vmul.f32 0.70710677, %v12490_v49  ;;  %v3080_v3 = vmul.f32 1.442695, %v3067_v20 }
 0x67f   : > { %v2991_v28 = vadd.f32 -1.4531521, %v2983_v18  ;;  %v2949_v21 = vand.u32 2147483647, %v12496_v61  ;;  %10211 = vpow2.f32 %v3076_v38  ;;  %vm3109_vm3 = vcmp.ge.f32.partialorder %v12496_v61, 0.0  ;;  %v3382_v61 = vpop.permute.xlu1 %3381 }
 0x680   : > { %v12498_v6 = vpop.eup %10199  ;;  %v2990_v2 = vadd.f32 -1.4531521, %v2982_v17  ;;  %v2948_v12 = vand.u32 2147483647, %v12501_v42  ;;  %10213 = vpow2.f32 %v3074_v1  ;;  %v3078_v17 = vmul.f32 1.442695, %v3066_v26 }
 0x681   : > { %v12503_v4 = vpop.eup %10201  ;;  %v2999_v40 = vmul.f32 %v12483_v35, %v2991_v28  ;;  %v2985_v36 = vmul.f32 1.0614054, %v12498_v6  ;;  %v2957_v14 = vmul.f32 0.3275911, %v2949_v21  ;;  %v3061_v41 = vsub.f32 0.0, %v2949_v21 }
 0x682   : > { %v2998_v51 = vmul.f32 %v12487_v46, %v2990_v2  ;;  %v2984_v32 = vmul.f32 1.0614054, %v12503_v4  ;;  %v2956_v29 = vmul.f32 0.3275911, %v2948_v12  ;;  %v10204_v25 = vpop.eup %10203  ;;  %vm3108_vm4 = vcmp.ge.f32.partialorder %v12501_v42, 0.0 }
 0x683   : > { %v3007_v52 = vadd.f32 1.4214138, %v2999_v40  ;;  %v2993_v48 = vadd.f32 -1.4531521, %v2985_v36  ;;  %v2965_v53 = vadd.f32 1.0, %v2957_v14  ;;  %v3069_v62 = vmul.f32 %v3061_v41, %v2949_v21 }
 0x684   : > { %v3006_v43 = vadd.f32 1.4214138, %v2998_v51  ;;  %v2992_v45 = vadd.f32 -1.4531521, %v2984_v32  ;;  %v2964_v18 = vadd.f32 1.0, %v2956_v29  ;;  %v3060_v32 = vsub.f32 0.0, %v2948_v12 }
 0x685   : > { %v3015_v57 = vmul.f32 %v12483_v35, %v3007_v52  ;;  %v3001_v33 = vmul.f32 %v12498_v6, %v2993_v48  ;;  %10215 = vrcp.f32 %v2965_v53  ;;  %vm3400_vm7 = vcmp.eq.s32.totalorder %v3382_v61, %v12219_v50 }
 0x686   : > { %v3014_v44 = vmul.f32 %v12487_v46, %v3006_v43  ;;  %v3000_v30 = vmul.f32 %v12503_v4, %v2992_v45  ;;  %v12515_v0 = vpop.eup %10205  ;;  %10217 = vrcp.f32 %v2964_v18  ;;  %v3068_v18 = vmul.f32 %v3060_v32, %v2948_v12 }
 0x687   : > { %v3023_v10 = vadd.f32 -0.28449672, %v3015_v57  ;;  %v3009_v54 = vadd.f32 1.4214138, %v3001_v33  ;;  %v12517_v28 = vpop.eup %10207  ;;  %v2987_v11 = vmul.f32 1.0614054, %v12515_v0  ;;  %10219 = vpow2.f32 %v3080_v3 }
 0x688   : > { %v3022_v24 = vadd.f32 -0.28449672, %v3014_v44  ;;  %v3008_v31 = vadd.f32 1.4214138, %v3000_v30  ;;  %v10210_v40 = vpop.eup %10209  ;;  %v2986_v51 = vmul.f32 1.0614054, %v12517_v28  ;;  %10221 = vpow2.f32 %v3078_v17 }
 0x689   : > { %v3031_v38 = vmul.f32 %v12483_v35, %v3023_v10  ;;  %v3017_v2 = vmul.f32 %v12498_v6, %v3009_v54  ;;  %v2995_v21 = vadd.f32 -1.4531521, %v2987_v11  ;;  %v10212_v45 = vpop.eup %10211  ;;  %v3084_v33 = vmul.f32 1.442695, %v3069_v62 }
 0x68a   : > { %v3030_v36 = vmul.f32 %v12487_v46, %v3022_v24  ;;  %v3016_v1 = vmul.f32 %v12503_v4, %v3008_v31  ;;  %v2994_v43 = vadd.f32 -1.4531521, %v2986_v51  ;;  %v10214_v24 = vpop.eup %10213  ;;  %v3082_v32 = vmul.f32 1.442695, %v3068_v18 }
 0x68b   : > { %v3039_v20 = vadd.f32 0.2548296, %v3031_v38  ;;  %v3025_v52 = vadd.f32 -0.28449672, %v3017_v2  ;;  %v3003_v57 = vmul.f32 %v12515_v0, %v2995_v21  ;;  %10223 = vpow2.f32 %v3084_v33 }
 0x68c   : > { %v3038_v48 = vadd.f32 0.2548296, %v3030_v36  ;;  %v3024_v14 = vadd.f32 -0.28449672, %v3016_v1  ;;  %v3002_v44 = vmul.f32 %v12517_v28, %v2994_v43  ;;  %10225 = vpow2.f32 %v3082_v32 }
 0x68d   : > { %v3047_v26 = vmul.f32 %v12483_v35, %v3039_v20  ;;  %v3033_v41 = vmul.f32 %v12498_v6, %v3025_v52  ;;  %v3011_v54 = vadd.f32 1.4214138, %v3003_v57 }
 0x68e   : > { %v3046_v53 = vmul.f32 %v12487_v46, %v3038_v48  ;;  %v3032_v29 = vmul.f32 %v12503_v4, %v3024_v14  ;;  %v3010_v38 = vadd.f32 1.4214138, %v3002_v44 }
 0x68f   : > { %v3087_v30 = vmul.f32 %v10204_v25, %v3047_v26  ;;  %v3041_v10 = vadd.f32 0.2548296, %v3033_v41  ;;  %v12534_v2 = vpop.eup %10215  ;;  %v3019_v3 = vmul.f32 %v12515_v0, %v3011_v54 }
 0x690   : > { %v3086_v35 = vmul.f32 %v10210_v40, %v3046_v53  ;;  %v3040_v31 = vadd.f32 0.2548296, %v3032_v29  ;;  %v3018_v11 = vmul.f32 %v12517_v28, %v3010_v38  ;;  %v2989_v40 = vmul.f32 1.0614054, %v12534_v2  ;;  %v12542_v36 = vpop.eup %10217 }
 0x691   : > { %v3095_v62 = vsub.f32 1.0, %v3087_v30  ;;  %v3049_v46 = vmul.f32 %v12498_v6, %v3041_v10  ;;  %v3027_v51 = vadd.f32 -0.28449672, %v3019_v3  ;;  %v2988_v43 = vmul.f32 1.0614054, %v12542_v36  ;;  %v10220_v30 = vpop.eup %10219 }
 0x692   : > { %v3094_v25 = vsub.f32 1.0, %v3086_v35  ;;  %v3048_v12 = vmul.f32 %v12503_v4, %v3040_v31  ;;  %v3026_v52 = vadd.f32 -0.28449672, %v3018_v11  ;;  %v2997_v21 = vadd.f32 -1.4531521, %v2989_v40  ;;  %v10222_v38 = vpop.eup %10221 }
 0x693   : > { %v3111_v17 = vsub.f32 0.0, %v3095_v62  ;;  %v3089_v1 = vmul.f32 %v10212_v45, %v3049_v46  ;;  %v3035_v4 = vmul.f32 %v12515_v0, %v3027_v51  ;;  %v2996_v18 = vadd.f32 -1.4531521, %v2988_v43 }
 0x694   : > { %v3110_v20 = vsub.f32 0.0, %v3094_v25  ;;  %v3088_v6 = vmul.f32 %v10214_v24, %v3048_v12  ;;  %v3034_v45 = vmul.f32 %v12517_v28, %v3026_v52  ;;  %v3005_v44 = vmul.f32 %v12534_v2, %v2997_v21 }
 0x695   : > { %v3119_v48 = vsel %vm3103_vm11, %v3095_v62, %v3111_v17  ;;  %v3097_v14 = vsub.f32 1.0, %v3089_v1  ;;  %v3043_v29 = vadd.f32 0.2548296, %v3035_v4  ;;  %v2928_v12 = vmul.f32 0.5, %v12459_v27 }
 0x696   : > { %v3127_v26 = vadd.f32 1.0, %v3119_v48  ;;  %v3118_v41 = vsel %vm3102_vm12, %v3094_v25, %v3110_v20  ;;  %v3096_v57 = vsub.f32 1.0, %v3088_v6  ;;  %v3042_v54 = vadd.f32 0.2548296, %v3034_v45  ;;  %v10224_v25 = vpop.eup %10223 }
 0x697   : > { %v3126_v33 = vadd.f32 1.0, %v3118_v41  ;;  %v3113_v53 = vsub.f32 0.0, %v3097_v14  ;;  %v3051_v35 = vmul.f32 %v12515_v0, %v3043_v29  ;;  %v3013_v31 = vadd.f32 1.4214138, %v3005_v44 }
 0x698   : > { %v3135_v22 = vmul.f32 %v3127_v26, %v12481_v59  ;;  %v3112_v10 = vsub.f32 0.0, %v3096_v57  ;;  %v3050_v3 = vmul.f32 %v12517_v28, %v3042_v54  ;;  %v3004_v59 = vmul.f32 %v12542_v36, %v2996_v18 }
 0x699   : > { %v3134_v24 = vmul.f32 %v3126_v33, %v12492_v60  ;;  %v3121_v5 = vsel %vm3105_vm13, %v3097_v14, %v3113_v53  ;;  %v3091_v60 = vmul.f32 %v10220_v30, %v3051_v35  ;;  %v3021_v37 = vmul.f32 %v12534_v2, %v3013_v31  ;;  %v10226_v30 = vpop.eup %10225 }
 0x69a   : > { %v3129_v62 = vadd.f32 1.0, %v3121_v5  ;;  %v3120_v46 = vsel %vm3104_vm15, %v3096_v57, %v3112_v10  ;;  %v2929_v0 = vmul.f32 0.5, %v12456_v23  ;;  %v3090_v40 = vmul.f32 %v10222_v38, %v3050_v3  ;;  %v3376_v38 = vpop.permute.xlu0 %3375 }
 0x69b   : > { %v3128_v11 = vadd.f32 1.0, %v3120_v46  ;;  %8473 = vmatprep.mubr.msk.f32.mxu0 %vm1113_vm0, %v3134_v24  ;;  %v3012_v17 = vadd.f32 1.4214138, %v3004_v59  ;;  %v3099_v1 = vsub.f32 1.0, %v3091_v60  ;;  %v3029_v28 = vadd.f32 -0.28449672, %v3021_v37 }
 0x69c   : > { %8474 = vmatmul.mubr.msk.f32.vlgmr.msra.gmra.mrb[6].mxu0 %vm1113_vm0, %v3135_v22  ;;  %v3137_v51 = vmul.f32 %v3129_v62, %v2929_v0  ;;  %v3098_v20 = vsub.f32 1.0, %v3090_v40  ;;  %v2930_v26 = vmul.f32 0.5, %v12471_v19  ;;  %v2931_v45 = vmul.f32 0.5, %v12469_v47 }
 0x69d   : > { %v3136_v13 = vmul.f32 %v3128_v11, %v2928_v12  ;;  %v3020_v27 = vmul.f32 %v12542_v36, %v3012_v17  ;;  %v3115_v6 = vsub.f32 0.0, %v3099_v1  ;;  %v3037_v52 = vmul.f32 %v12534_v2, %v3029_v28 }
 0x69e   : > { %v3114_v23 = vsub.f32 0.0, %v3098_v20  ;;  %v2932_v24 = vmul.f32 0.5, %v12490_v49  ;;  %v2933_v5 = vmul.f32 0.5, %v12485_v16  ;;  %vm3398_vm6 = vcmp.eq.s32.totalorder %v3376_v38, %v12219_v50  ;;  %v3379_v16 = vpop.permute.xlu0 %3378  ;;  %v3385_v49 = vpop.permute.xlu1 %3384 }
 0x69f   : > { %8476 = vmatprep.mubr.msk.f32.mxu0 %vm1113_vm0, %v3136_v13  ;;  %v3028_v21 = vadd.f32 -0.28449672, %v3020_v27  ;;  %v3123_v48 = vsel %vm3107_vm1, %v3099_v1, %v3115_v6  ;;  %v3045_v14 = vadd.f32 0.2548296, %v3037_v52  ;;  %v12587_v42 = vsel %vm3398_vm6, 1.0, %v14345_v7 }
 0x6a0   : > { %8477 = vmatmul.mubr.msk.f32.gmra.mrb[8].mxu0 %vm1113_vm0, %v3137_v51  ;;  %v3131_v32 = vadd.f32 1.0, %v3123_v48  ;;  %v3122_v4 = vsel %vm3106_vm2, %v3098_v20, %v3114_v23  ;;  %8489 = vmatprep.mubr.msk.f32.mxu1 %vm3444_vm5, %v12587_v42  ;;  %v12593_v62 = vsel %vm3400_vm7, 1.0, %v14345_v7  ;;  %vm3399_vm8 = vcmp.eq.s32.totalorder %v3379_v16, %v12219_v50 }
 0x6a1   : > { %v3036_v43 = vmul.f32 %v12542_v36, %v3028_v21  ;;  %v3130_v41 = vadd.f32 1.0, %v3122_v4  ;;  %v3053_v57 = vmul.f32 %v12534_v2, %v3045_v14  ;;  %vm3401_vm9 = vcmp.eq.s32.totalorder %v3385_v49, %v12219_v50 }
 0x6a2   : > { %v3139_v29 = vmul.f32 %v3131_v32, %v2931_v45  ;;  %v12598_v46 = vsel %vm3399_vm8, 1.0, %v14345_v7  ;;  %v12603_v3 = vsel %vm3401_vm9, 1.0, %v14345_v7  ;;  %v3388_v59 = vpop.permute.xlu0 %3387  ;;  %v3148_v17 = vstv %s7599_s16 }
 0x6a3   : > { %v3044_v39 = vadd.f32 0.2548296, %v3036_v43  ;;  %v3138_v33 = vmul.f32 %v3130_v41, %v2930_v26  ;;  %v3093_v53 = vmul.f32 %v10224_v25, %v3053_v57  ;;  %8490 = vmatmul.mubr.msk.f32.vlgmr.msra.gmra.mrb[40].mxu1 %vm3444_vm5, %v12598_v46  ;;  %14686 = vst [vmem:[#allocation40_spill] sm:$0xff] %v12603_v3  ;;  %v3391_v25 = vpop.permute.xlu1 %3390  ;;  %vm3402_vm10 = vcmp.eq.s32.totalorder %v3388_v59, %v12219_v50 }
 0x6a4   : > { %8492 = vmatprep.mubr.msk.f32.mxu1 %vm3444_vm5, %v12593_v62  ;;  %vm3403_vm11 = vcmp.eq.s32.totalorder %v3391_v25, %v12219_v50  ;;  %v12610_v12 = vsel %vm3402_vm10, 1.0, %v14345_v7  ;;  %vm3287_vm1 = vcmp.eq.s32.totalorder %v11698_v55, %v12219_v50  ;;  %v3282_v38 = vadd.s32 24, %v11698_v55 }
 0x6a5   : > { %v3052_v44 = vmul.f32 %v12542_v36, %v3044_v39  ;;  %v3101_v15 = vsub.f32 1.0, %v3093_v53  ;;  %8479 = vmatprep.mubr.msk.f32.mxu0 %vm1113_vm0, %v3138_v33  ;;  %14687 = vst [vmem:[#allocation41_spill] sm:$0xff] %v12610_v12  ;;  %v12615_v11 = vsel %vm3403_vm11, 1.0, %v14345_v7  ;;  %v3283_v59 = vadd.s32 32, %v11698_v55 }
 0x6a6   : > { %8480 = vmatmul.mubr.msk.f32.gmra.mrb[10].mxu0 %vm1113_vm0, %v3139_v29  ;;  %14688 = vst [vmem:[#allocation42_spill] sm:$0xff] %v12615_v11  ;;  %v3394_v60 = vpop.permute.xlu0 %3393  ;;  %vm3290_vm7 = vcmp.eq.s32.totalorder %v3282_v38, %v12219_v50 }
 0x6a7   : > { %v3092_v22 = vmul.f32 %v10226_v30, %v3052_v44  ;;  %v3117_v10 = vsub.f32 0.0, %v3101_v15  ;;  %8493 = vmatmul.mubr.msk.f32.gmra.mrb[42].mxu1 %vm3444_vm5, %v12603_v3  ;;  %v3397_v37 = vpop.permute.xlu1 %3396  ;;  %vm3404_vm12 = vcmp.eq.s32.totalorder %v3394_v60, %v12219_v50  ;;  %vm3291_vm8 = vcmp.eq.s32.totalorder %v3283_v59, %v12219_v50 }
 0x6a8   : > { %8495 = vmatprep.mubr.msk.f32.mxu1 %vm3444_vm5, %v12610_v12  ;;  %vm3405_vm13 = vcmp.eq.s32.totalorder %v3397_v37, %v12219_v50  ;;  %v12622_v0 = vsel %vm3404_vm12, 1.0, %v14345_v7  ;;  %v3284_v37 = vadd.s32 40, %v11698_v55 }
 0x6a9   : > { %v3100_v19 = vsub.f32 1.0, %v3092_v22  ;;  %v3125_v2 = vsel %vm3109_vm3, %v3101_v15, %v3117_v10  ;;  %14689 = vst [vmem:[#allocation43_spill] sm:$0xff] %v12622_v0  ;;  %v12627_v40 = vsel %vm3405_vm13, 1.0, %v14345_v7  ;;  %vm3343_vm3 = vcmask 523264  }
 0x6aa   : > { %v3133_v47 = vadd.f32 1.0, %v3125_v2  ;;  %14690 = vst [vmem:[#allocation44_spill] sm:$0xff] %v12627_v40  ;;  %vm3292_vm9 = vcmp.eq.s32.totalorder %v3284_v37, %v12219_v50 }
 0x6ab   : > { %v3116_v54 = vsub.f32 0.0, %v3100_v19  ;;  %8496 = vmatmul.mubr.msk.f32.gmra.mrb[44].mxu1 %vm3444_vm5, %v12615_v11  ;;  %v3576_v2 = vpop.xlane.xlu1 %3575 }
 0x6ac   : > { %v3141_v31 = vmul.f32 %v3133_v47, %v2933_v5  ;;  %8498 = vmatprep.mubr.msk.f32.mxu1 %vm3444_vm5, %v12622_v0 }
 0x6ad   : > { %v3124_v18 = vsel %vm3108_vm4, %v3100_v19, %v3116_v54  ;;  %v3579_v19 = vpop.xlane.xlu0 %3578  ;;  %v12634_v54 = vadd.s32 8, %v11698_v55 }
 0x6ae   : > { %v3132_v36 = vadd.f32 1.0, %v3124_v18  ;;  %v3281_v18 = vadd.s32 16, %v11698_v55 }
 0x6af   : > { %8499 = vmatmul.mubr.msk.f32.gmra.mrb[46].mxu1 %vm3444_vm5, %v12627_v40  ;;  %vm3288_vm15 = vcmp.eq.s32.totalorder %v12634_v54, %v12219_v50 }
 0x6b0   : > { %v3140_v35 = vmul.f32 %v3132_v36, %v2932_v24  ;;  %v7649_v36 = vld [vmem:[%s1050_s7] ss:$0 sm:$0xff]  ;;  %vm3289_vm2 = vcmp.eq.s32.totalorder %v3281_v18, %v12219_v50  ;;  %s7601_s7 = sld [smem:[#allocation18 + $0x6]] }
 0x6b1   : > { %vm3427_vm4 = vcmp.eq.s32.totalorder %v7649_v36, %v11698_v55  ;;  %vm3428_vm6 = vcmp.eq.s32.totalorder %v7649_v36, %v12634_v54 }
 0x6b2   : > { %8482 = vmatprep.mubr.msk.f32.mxu0 %vm1113_vm0, %v3140_v35 }
 0x6b3   : > { %8483 = vmatmul.mubr.msk.f32.gmra.mrb[12].mxu0 %vm1113_vm0, %v3141_v31 }
 0x76f   : > { %v8475_v13 = vpop.f32.mrb[6].mxu0 }
 0x770   : > { %v3245_v1 = vadd.f32 %v8475_v13, %v3148_v17  ;;  %v3239_v28 = vpop.f32.mrb[7].mxu0  ;;  %v12659_v13 = vsel %vm3428_vm6, 1.0, %v14345_v7 }
 0x771   : > { %v3240_v51 = vadd.f32 %v3239_v28, %v3148_v17  ;;  %14693 = vst [vmem:[#allocation46_spill] sm:$0xff] %v12659_v13 }
 0x772   : > { %3302 = vperm.xlu1 %10114, %v3245_v1  }
 0x773   : > { %v8478_v20 = vpop.f32.mrb[8].mxu0  ;;  %3297 = vperm.xlu0 %10113, %v3240_v51  }
 0x774   : > { %v3255_v27 = vadd.f32 %v8478_v20, %v3148_v17  ;;  %v3249_v6 = vpop.f32.mrb[9].mxu0 }
 0x775   : > { %v3250_v52 = vadd.f32 %v3249_v6, %v3148_v17  ;;  %v3581_v6 = vmul.f32 %v12659_v13, %v3579_v19 }
 0x776   : > { %3312 = vperm.xlu1 %10114, %v3255_v27   ;;  %v8491_v41 = vpop.f32.mrb[40].mxu1 }
 0x777   : > { %3307 = vperm.xlu0 %10113, %v3250_v52   ;;  %v3535_v57 = vpop.f32.mrb[41].mxu1 }
 0x778   : > { %v9143_v45 = vpack.c.bf16 %v8491_v41, %v3535_v57 }
 0x779   : > { %v8481_v23 = vpop.f32.mrb[10].mxu0 }
 0x77a   : > { %v3259_v21 = vpop.f32.mrb[11].mxu0  ;;  %v3265_v14 = vadd.f32 %v8481_v23, %v3148_v17  ;;  %v8494_v39 = vpop.f32.mrb[42].mxu1  ;;  %9144 = vmatprep.subr.bf16.mxu0 %v9143_v45 }
 0x77b   : > { %v3260_v48 = vadd.f32 %v3259_v21, %v3148_v17  ;;  %v3545_v33 = vpop.f32.mrb[43].mxu1  ;;  %9146 = vmatpush3.bf16.msra.mxu0 %v9143_v45 }
 0x77c   : > { %v9147_v53 = vpack.c.bf16 %v8494_v39, %v3545_v33  ;;  %v3286_v39 = vadd.s32 56, %v11698_v55 }
 0x77d   : > { %3317 = vperm.xlu0 %10113, %v3260_v48  }
 0x77e   : > { %v8497_v29 = vpop.f32.mrb[44].mxu1  ;;  %9148 = vmatprep.subr.bf16.mxu0 %v9147_v53  ;;  %vm3294_vm11 = vcmp.eq.s32.totalorder %v3286_v39, %v12219_v50  ;;  %v3728_v39 = vld [vmem:[%s14697_s18 + $0x48] sm:$0xff] }
 0x77f   : > { %v3555_v44 = vpop.f32.mrb[45].mxu1  ;;  %9150 = vmatpush3.bf16.msra.mxu0 %v9147_v53 }
 0x780   : > { %v9151_v30 = vpack.c.bf16 %v8497_v29, %v3555_v44 }
 0x781   : > { %3322 = vperm.xlu0 %10113, %v3265_v14  }
 0x782   : > { %v8500_v15 = vpop.f32.mrb[46].mxu1  ;;  %9152 = vmatprep.subr.bf16.mxu0 %v9151_v30 }
 0x783   : > { %v3565_v22 = vpop.f32.mrb[47].mxu1  ;;  %9154 = vmatpush3.bf16.msra.mxu0 %v9151_v30 }
 0x784   : > { %v9155_v10 = vpack.c.bf16 %v8500_v15, %v3565_v22 }
 0x786   : > { %v8484_v32 = vpop.f32.mrb[12].mxu0  ;;  %9156 = vmatprep.subr.bf16.mxu0 %v9155_v10 }
 0x787   : > { %v3269_v4 = vpop.f32.mrb[13].mxu0  ;;  %v3275_v26 = vadd.f32 %v8484_v32, %v3148_v17  ;;  %9158 = vmatpush3.bf16.msra.mxu0 %v9155_v10 }
 0x788   : > { %v3270_v43 = vadd.f32 %v3269_v4, %v3148_v17  ;;  %v12656_v17 = vsel %vm3427_vm4, 1.0, %v14345_v7  ;;  %v3583_v4 = vsel %vm3343_vm3, %v3581_v6, 0.0 }
 0x789   : > { %14692 = vst [vmem:[#allocation45_spill] sm:$0xff] %v12656_v17  ;;  %v3580_v27 = vmul.f32 %v12656_v17, %v3576_v2 }
 0x78a   : > { %3327 = vperm.xlu1 %10114, %v3270_v43  }
 0x78b   : > { %v3582_v32 = vsel %vm3343_vm3, %v3580_v27, 0.0 }
 0x78c   : > { %v3584_v57 = vadd.f32 %v3583_v4, %v3582_v32  ;;  %v3724_v4 = vld [vmem:[%s14697_s18 + $0x28] sm:$0xff] }
 0x78e   : > { %3332 = vperm.xlu1 %10114, %v3275_v26   ;;  %v3285_v26 = vadd.s32 48, %v11698_v55  ;;  %v3585_v29 = vrot.slane %v3584_v57, 4 }
 0x790   : > { %vm3293_vm10 = vcmp.eq.s32.totalorder %v3285_v26, %v12219_v50  ;;  %v3586_v10 = vadd.f32 %v3585_v29, %v3584_v57  ;;  %v3729_v26 = vld [vmem:[%s14697_s18 + $0x50] sm:$0xff]  ;;  %v3730_v29 = vld [vmem:[%s14697_s18 + $0x58] sm:$0xff] }
 0x792   : > { %v3587_v18 = vrot.slane %v3586_v10, 2 }
 0x7f1   : > { %v3303_v24 = vpop.permute.xlu1 %3302 }
 0x7f2   : > { %v3298_v47 = vpop.permute.xlu0 %3297  ;;  %v3336_v35 = vsel %vm3288_vm15, %v3303_v24, 0.0 }
 0x7f3   : > { %v3335_v31 = vsel %vm3287_vm1, %v3298_v47, 0.0  ;;  %v3345_v16 = vsel %vm3343_vm3, %v3336_v35, 0.0 }
 0x7f4   : > { %v3344_v49 = vsel %vm3343_vm3, %v3335_v31, 0.0 }
 0x7f5   : > { %v3313_v25 = vpop.permute.xlu1 %3312  ;;  %v3346_v1 = vadd.f32 %v3345_v16, %v3344_v49 }
 0x7f6   : > { %v3308_v5 = vpop.permute.xlu0 %3307  ;;  %v3338_v51 = vsel %vm3290_vm7, %v3313_v25, 0.0 }
 0x7f7   : > { %v3337_v61 = vsel %vm3289_vm2, %v3308_v5, 0.0  ;;  %v3349_v23 = vsel %vm3343_vm3, %v3338_v51, 0.0  ;;  %v3588_v5 = vadd.f32 %v3587_v18, %v3586_v10  ;;  %v3731_v10 = vld [vmem:[%s14697_s18 + $0x60] sm:$0xff] }
 0x7f8   : > { %v3347_v60 = vsel %vm3343_vm3, %v3337_v61, 0.0 }
 0x7f9   : > { %v3348_v20 = vadd.f32 %v3347_v60, %v3346_v1  ;;  %v3589_v38 = vrot.slane %v3588_v5, 1 }
 0x7fb   : > { %v3350_v48 = vadd.f32 %v3349_v23, %v3348_v20  ;;  %v3590_v49 = vadd.f32 %v3589_v38, %v3588_v5 }
 0x7fc   : > { %v3318_v28 = vpop.permute.xlu0 %3317 }
 0x7fd   : > { %v3339_v52 = vsel %vm3291_vm8, %v3318_v28, 0.0  ;;  %v7652_v28 = vld [vmem:[%s897_s29] ss:$0 sm:$0xff]  ;;  %s14782_s29 = sld [smem:[#allocation180_spill]] }
 0x7fe   : > { %v3351_v43 = vsel %vm3343_vm3, %v3339_v52, 0.0  ;;  %vm3438_vm12 = vcmp.eq.s32.totalorder %v7652_v28, %v11698_v55  ;;  %vm3439_vm13 = vcmp.eq.s32.totalorder %v7652_v28, %v12634_v54  ;;  %v3720_v55 = vld [vmem:[%s14697_s18 + $0x8] sm:$0xff]  ;;  %v3723_v54 = vld [vmem:[%s14697_s18 + $0x20] sm:$0xff] }
 0x7ff   : > { %v3352_v45 = vadd.f32 %v3351_v43, %v3350_v48  ;;  %v12684_v51 = vsel %vm3438_vm12, 1.0, %v14345_v7  ;;  %v12687_v20 = vsel %vm3439_vm13, 1.0, %v14345_v7  ;;  %v12700_v23 = vpack.c.bf16 %v3723_v54, %v3720_v55  ;;  %v3722_v48 = vld [vmem:[%s14697_s18 + $0x18] sm:$0xff] }
 0x800   : > { %v3323_v21 = vpop.permute.xlu0 %3322  ;;  %14695 = vst [vmem:[#allocation48_spill] sm:$0xff] %v12684_v51  ;;  %14696 = vst [vmem:[#allocation49_spill] sm:$0xff] %v12687_v20  ;;  %v3726_v43 = vld [vmem:[%s14697_s18 + $0x38] sm:$0xff] }
 0x801   : > { %v3340_v14 = vsel %vm3292_vm9, %v3323_v21, 0.0  ;;  %14698 = vst [vmem:[#allocation50_spill] sm:$0xff] %v12700_v23  ;;  %v3719_v21 = vld [vmem:[%s14697_s18] sm:$0xff]  ;;  %9160 = vmatprep.subr.bf16.mxu0 %v12700_v23  ;;  %v12725_v57 = vpack.c.bf16 %v3729_v26, %v3726_v43 }
 0x802   : > { %v3353_v41 = vsel %vm3343_vm3, %v3340_v14, 0.0  ;;  %v3721_v14 = vld [vmem:[%s14697_s18 + $0x10] sm:$0xff]  ;;  %v12711_v32 = vpack.c.bf16 %v3722_v48, %v3719_v21  ;;  %v12803_v21 = vstv %s7598_s25  ;;  %s10820_s25 = smov [#allocation20]  }
 0x803   : > { %v3354_v33 = vadd.f32 %v3353_v41, %v3352_v45  ;;  %v12723_v41 = vpack.c.bf16 %v3724_v4, %v3721_v14  ;;  %14700 = vst [vmem:[#allocation52_spill] sm:$0xff] %v12725_v57  ;;  %v3725_v45 = vld [vmem:[%s14697_s18 + $0x30] sm:$0xff]  ;;  %14711 = vst [vmem:[#allocation63_spill] sm:$0xff] %v12803_v21  ;;  %s10688_s16 = sshll.u32 %s10820_s25, 4  ;;  %s10689_s16 = int_to_ptr.vmem [resolvable:$false] %s10688_s16 }
 0x804   : > { %14699 = vst [vmem:[#allocation51_spill] sm:$0xff] %v12711_v32  ;;  %s10690_s23 = scalar_lea.vmem %s10689_s16, 32 }
 0x805   : > { %9172 = vmatprep.subr.bf16.mxu1 %v12723_v41 }
 0x806   : > { %9174 = vmatpush3.bf16.msra.mxu1 %v12723_v41 }
 0x809   : > { %v3328_v53 = vpop.permute.xlu1 %3327 }
 0x80a   : > { %v3341_v44 = vsel %vm3293_vm10, %v3328_v53, 0.0  ;;  %v12737_v53 = vpack.c.bf16 %v3728_v39, %v3725_v45 }
 0x80b   : > { %v3355_v30 = vsel %vm3343_vm3, %v3341_v44, 0.0  ;;  %v3732_v44 = vld [vmem:[%s14697_s18 + $0x68] sm:$0xff] }
 0x80c   : > { %v3356_v15 = vadd.f32 %v3355_v30, %v3354_v33  ;;  %v3727_v33 = vld [vmem:[%s14697_s18 + $0x40] sm:$0xff]  ;;  %14701 = vst [vmem:[#allocation53_spill] sm:$0xff] %v12737_v53 }
 0x80d   : > { %v3333_v22 = vpop.permute.xlu1 %3332  ;;  %v3735_v30 = vld [vmem:[%s14697_s18 + $0x80] sm:$0xff] }
 0x80e   : > { %v3342_v19 = vsel %vm3294_vm11, %v3333_v22, 0.0  ;;  %v12752_v22 = vpack.c.bf16 %v3735_v30, %v3732_v44 }
 0x80f   : > { %v3357_v2 = vsel %vm3343_vm3, %v3342_v19, 0.0  ;;  %v3734_v19 = vld [vmem:[%s14697_s18 + $0x78] sm:$0xff] }
 0x810   : > { %v3358_v47 = vadd.f32 %v3357_v2, %v3356_v15  ;;  %v12750_v15 = vpack.c.bf16 %v3730_v29, %v3727_v33  ;;  %14702 = vst [vmem:[#allocation54_spill] sm:$0xff] %v12752_v22  ;;  %v3733_v2 = vld [vmem:[%s14697_s18 + $0x70] sm:$0xff]  ;;  %v12771_v5 = vpack.c.bf16 %v3734_v19, %v3731_v10 }
 0x812   : > { %v3359_v24 = vrot.slane %v3358_v47, 4  ;;  %9176 = vmatprep.subr.bf16.mxu1 %v12750_v15  ;;  %14703 = vst [vmem:[#allocation55_spill] sm:$0xff] %v12771_v5 }
 0x813   : > { %9178 = vmatpush3.bf16.msra.mxu1 %v12750_v15 }
 0x814   : > { %v3360_v36 = vadd.f32 %v3359_v24, %v3358_v47  ;;  %v3736_v47 = vld [vmem:[%s14697_s18 + $0x88] sm:$0xff] }
 0x815   : > { %v12768_v18 = vpack.c.bf16 %v3736_v47, %v3733_v2  ;;  %v4075_v24 = vld [vmem:[#allocation17 + $0x8] sm:$0xff] }
 0x816   : > { %v3361_v35 = vrot.slane %v3360_v36, 2 }
 0x817   : > { %9180 = vmatprep.subr.bf16.mxu1 %v12768_v18 }
 0x818   : > { %v3362_v31 = vadd.f32 %v3361_v35, %v3360_v36  ;;  %v4078_v36 = vld [vmem:[#allocation17 + $0x20] sm:$0xff]  ;;  %9182 = vmatpush3.bf16.msra.mxu1 %v12768_v18 }
 0x819   : > { %v12774_v35 = vpack.c.bf16 %v4078_v36, %v4075_v24 }
 0x81a   : > { %v3363_v61 = vrot.slane %v3362_v31, 1 }
 0x81b   : > { %14704 = vst [vmem:[#allocation56_spill] sm:$0xff] %v12774_v35 }
 0x81c   : > { %v3364_v16 = vadd.f32 %v3363_v61, %v3362_v31  ;;  %v10407_v31 = vld [vmem:[%s11308_s5 + $0x8] sm:$0xff]  ;;  %v12784_v61 = vstv %s1061_s8  ;;  %s7315_s8 = sshll.u32 %s1042_s30, 4  ;;  %s7316_s8 = int_to_ptr.vmem [resolvable:$true] %s7315_s8 }
 0x81d   : > { %v12782_v38 = vsub.f32 1.0, %v10407_v31  ;;  %14706 = vst [vmem:[#allocation58_spill] sm:$0xff] %v12784_v61  ;;  %p10691_p2 = scmp.lt.s32.totalorder %s7316_s8, %s10689_s16 }
 0x81e   : > { %v12676_v59 = vmul.f32 0.020833334, %v3364_v16  ;;  %v3689_v16 = vstv %s7597_s1  ;;  %s7290_s1 = scalar_lea.sflag [#allocation21], %s11298_s3 }
 0x81f   : > { %14705 = vst [vmem:[#allocation57_spill] sm:$0xff] %v12782_v38  ;;  %v12795_v28 = vmul.f32 %v3689_v16, %v12782_v38 }
 0x820   : > { %14694 = vst [vmem:[#allocation47_spill] sm:$0xff] %v12676_v59  ;;  %v3591_v50 = vmul.f32 %v3590_v49, %v12676_v59  ;;  %v10408_v49 = vld [vmem:[%s11308_s5] sm:$0xff] }
 0x821   : > { %14709 = vst [vmem:[#allocation61_spill] sm:$0xff] %v12795_v28 }
 0x822   : > { %v3592_v25 = vsub.f32 0.0, %v3591_v50  ;;  %v12787_v50 = vsub.f32 1.0, %v10408_v49 }
 0x824   : > { %v3593_v60 = vmul.f32 1.442695, %v3592_v25  ;;  %14707 = vst [vmem:[#allocation59_spill] sm:$0xff] %v12787_v50  ;;  %v12789_v25 = vstv %s7596_s2  ;;  %v12801_v55 = vmul.f32 %v3689_v16, %v12787_v50  ;;  %s10684_s2 = scalar_lea.vmem %s7316_s8, 16 }
 0x825   : > { %14708 = vst [vmem:[#allocation60_spill] sm:$0xff] %v12789_v25  ;;  %p10685_p11 = scmp.ne.s32.totalorder %s7316_s8, %s10684_s2  ;;  %p10692_p9 = scmp.lt.s32.totalorder %s10690_s23, %s10684_s2 }
 0x826   : > { %10227 = vpow2.f32 %v3593_v60  ;;  %14710 = vst [vmem:[#allocation62_spill] sm:$0xff] %v12801_v55 }
 0x827   : > { %p10693_p8 = por %p10692_p9, %p10691_p2 }
 0x830   : > { %v10228_v37 = vpop.eup %10227 }
 0x831   : > { %v3595_v1 = vadd.f32 1.0, %v10228_v37 }
 0x833   : > { %10229 = vrcp.f32 %v3595_v1  ;;  %v3686_v1 = vmul.f32 %v12789_v25, %v12263_v34 }
 0x83d   : > { %v10230_v27 = vpop.eup %10229 }
 0x83e   : > { %v3598_v6 = vmul.f32 %v10230_v27, %v12684_v51  ;;  %v3599_v52 = vmul.f32 %v10230_v27, %v12687_v20 }
 0x840   : > { %8517 = vmatprep.mubr.msk.f32.mxu0 %vm3343_vm3, %v3598_v6 }
 0x841   : > { %8518 = vmatmul.mubr.msk.f32.vlgmr.msra.gmra.mrb[14].mxu0 %vm3343_vm3, %v3599_v52  ;;  %v3685_v52 = vmul.f32 %v12789_v25, %v12242_v63 }
 0x842   : > { %3824 = vmatprep.mubr.f32.mxu0 %v14345_v7  ;;  %9162 = vmatpush1.bf16.msra.mxu0 %v12711_v32 }
 0x843   : > { %9164 = vmatprep.subr.bf16.mxu0 %v12725_v57 }
 0x846   : > { %9166 = vmatpush1.bf16.msra.mxu0 %v12737_v53 }
 0x847   : > { %9168 = vmatprep.subr.bf16.mxu0 %v12752_v22 }
 0x84a   : > { %9170 = vmatpush1.bf16.msra.mxu0 %v12771_v5 }
 0x84b   : > { %9184 = vmatprep.subr.bf16.mxu0 %v12774_v35 }
 0x914   : > { %v8519_v60 = vpop.f32.mrb[14].mxu0 }
 0x915   : > { %v3683_v37 = vmul.f32 %v8519_v60, %v12784_v61  ;;  %v3672_v27 = vpop.f32.mrb[15].mxu0 }
 0x916   : > { %v3682_v6 = vmul.f32 %v12784_v61, %v3672_v27 }
 0x917   : > { %v3688_v54 = vadd.f32 %v3686_v1, %v3683_v37  ;;  %v4074_v1 = vld [vmem:[#allocation17] sm:$0xff] }
 0x918   : > { %v3687_v48 = vadd.f32 %v3685_v52, %v3682_v6  ;;  %v4077_v6 = vld [vmem:[#allocation17 + $0x18] sm:$0xff] }
 0x919   : > { %v3693_v14 = vadd.f32 %v12795_v28, %v3688_v54 }
 0x91a   : > { %v3692_v4 = vadd.f32 %v12801_v55, %v3687_v48  ;;  %v4081_v48 = vld [vmem:[#allocation17 + $0x38] sm:$0xff] }
 0x91b   : > { %v3696_v43 = vadd.f32 %v12803_v21, %v3693_v14  ;;  %v4084_v14 = vld [vmem:[#allocation17 + $0x50] sm:$0xff] }
 0x91c   : > { %v3695_v26 = vadd.f32 %v12803_v21, %v3692_v4 }
 0x91d   : > { %v3698_v45 = vsub.f32 0.0, %v3696_v43  ;;  %v12815_v43 = vpack.c.bf16 %v4077_v6, %v4074_v1  ;;  %v4098_v6 = vld [vmem:[#allocation17 + $0xc0] sm:$0xff] }
 0x91e   : > { %v3697_v39 = vsub.f32 0.0, %v3695_v26 }
 0x91f   : > { %v3701_v33 = vmul.f32 1.442695, %v3698_v45  ;;  %14712 = vst [vmem:[#allocation64_spill] sm:$0xff] %v12815_v43  ;;  %v12819_v45 = vpack.c.bf16 %v4084_v14, %v4081_v48  ;;  %v4105_v48 = vld [vmem:[#allocation17 + $0xf8] sm:$0xff]  ;;  %v4108_v14 = vld [vmem:[#allocation17 + $0x110] sm:$0xff] }
 0x920   : > { %v3699_v29 = vmul.f32 1.442695, %v3697_v39  ;;  %v4080_v39 = vld [vmem:[#allocation17 + $0x30] sm:$0xff] }
 0x921   : > { %10231 = vpow2.f32 %v3701_v33  ;;  %14713 = vst [vmem:[#allocation65_spill] sm:$0xff] %v12819_v45  ;;  %v4083_v33 = vld [vmem:[#allocation17 + $0x48] sm:$0xff] }
 0x922   : > { %10233 = vpow2.f32 %v3699_v29  ;;  %v12829_v29 = vpack.c.bf16 %v4083_v33, %v4080_v39  ;;  %v12853_v39 = vpack.c.bf16 %v4108_v14, %v4105_v48  ;;  %v4104_v33 = vld [vmem:[#allocation17 + $0xf0] sm:$0xff]  ;;  %v4119_v48 = vld [vmem:[#allocation17 + $0x168] sm:$0xff] }
 0x924   : > { %14714 = vst [vmem:[#allocation66_spill] sm:$0xff] %v12829_v29  ;;  %14721 = vst [vmem:[#allocation73_spill] sm:$0xff] %v12853_v39 }
 0x92b   : > { %v10232_v44 = vpop.eup %10231 }
 0x92c   : > { %v10234_v30 = vpop.eup %10233  ;;  %v3704_v10 = vadd.f32 1.0, %v10232_v44 }
 0x92d   : > { %v3703_v19 = vadd.f32 1.0, %v10234_v30  ;;  %v4086_v30 = vld [vmem:[#allocation17 + $0x60] sm:$0xff] }
 0x92e   : > { %10235 = vrcp.f32 %v3704_v10  ;;  %v4089_v10 = vld [vmem:[#allocation17 + $0x78] sm:$0xff] }
 0x92f   : > { %10237 = vrcp.f32 %v3703_v19  ;;  %v12837_v19 = vpack.c.bf16 %v4089_v10, %v4086_v30  ;;  %v4111_v30 = vld [vmem:[#allocation17 + $0x128] sm:$0xff]  ;;  %v4114_v10 = vld [vmem:[#allocation17 + $0x140] sm:$0xff] }
 0x931   : > { %14716 = vst [vmem:[#allocation68_spill] sm:$0xff] %v12837_v19 }
 0x938   : > { %v10236_v2 = vpop.eup %10235 }
 0x939   : > { %v10238_v47 = vpop.eup %10237  ;;  %v3710_v24 = vsub.f32 1.0, %v10236_v2  ;;  %v3714_v36 = vmul.f32 %v10236_v2, %v12782_v38  ;;  %v4093_v2 = vld [vmem:[#allocation17 + $0x98] sm:$0xff] }
 0x93a   : > { %v3709_v31 = vsub.f32 1.0, %v10238_v47  ;;  %v3713_v16 = vmul.f32 %v10238_v47, %v12787_v50  ;;  %v4096_v47 = vld [vmem:[#allocation17 + $0xb0] sm:$0xff] }
 0x93b   : > { %v3712_v49 = vmul.f32 %v3710_v24, %v12263_v34  ;;  %v3716_v37 = vmul.f32 %v8519_v60, %v3714_v36  ;;  %v4087_v60 = vld [vmem:[#allocation17 + $0x68] sm:$0xff]  ;;  %v12841_v24 = vpack.c.bf16 %v4096_v47, %v4093_v2  ;;  %v4092_v36 = vld [vmem:[#allocation17 + $0x90] sm:$0xff]  ;;  %v12859_v2 = vpack.c.bf16 %v4114_v10, %v4111_v30  ;;  %v4110_v47 = vld [vmem:[#allocation17 + $0x120] sm:$0xff] }
 0x93c   : > { %v3711_v52 = vmul.f32 %v3709_v31, %v12242_v63  ;;  %v3715_v54 = vmul.f32 %v3713_v16, %v3672_v27  ;;  %v4090_v27 = vld [vmem:[#allocation17 + $0x80] sm:$0xff]  ;;  %v4095_v31 = vld [vmem:[#allocation17 + $0xa8] sm:$0xff]  ;;  %v4124_v30 = vld [vmem:[#allocation17 + $0x190] sm:$0xff] }
 0x93d   : > { %v12817_v26 = vadd.f32 %v3716_v37, %v3712_v49  ;;  %v12832_v44 = vpack.c.bf16 %v4090_v27, %v4087_v60  ;;  %14717 = vst [vmem:[#allocation69_spill] sm:$0xff] %v12841_v24  ;;  %v12843_v16 = vpack.c.bf16 %v4095_v31, %v4092_v36  ;;  %v4099_v49 = vld [vmem:[#allocation17 + $0xc8] sm:$0xff]  ;;  %v4102_v37 = vld [vmem:[#allocation17 + $0xe0] sm:$0xff]  ;;  %14723 = vst [vmem:[#allocation75_spill] sm:$0xff] %v12859_v2 }
 0x93e   : > { %v12813_v4 = vadd.f32 %v3715_v54, %v3711_v52  ;;  %v12847_v1 = vpack.c.bf16 %v4102_v37, %v4099_v49  ;;  %v4101_v52 = vld [vmem:[#allocation17 + $0xd8] sm:$0xff]  ;;  %v4107_v60 = vld [vmem:[#allocation17 + $0x108] sm:$0xff]  ;;  %v4120_v37 = vld [vmem:[#allocation17 + $0x170] sm:$0xff] }
 0x93f   : > { %14715 = vst [vmem:[#allocation67_spill] sm:$0xff] %v12832_v44  ;;  %14718 = vst [vmem:[#allocation70_spill] sm:$0xff] %v12843_v16  ;;  %v12849_v54 = vpack.c.bf16 %v4101_v52, %v4098_v6  ;;  %v12855_v27 = vpack.c.bf16 %v4107_v60, %v4104_v33  ;;  %v4113_v36 = vld [vmem:[#allocation17 + $0x138] sm:$0xff]  ;;  %v4116_v52 = vld [vmem:[#allocation17 + $0x150] sm:$0xff] }
 0x940   : > { %7669 = vmatmul.mubr.msk.f32.vlgmr.msra.gmra.mrb[16].mxu0 %vm1113_vm0, %v12813_v4  ;;  %8532 = vmatprep.mubr.msk.f32.mxu1 %vm1113_vm0, %v12813_v4  ;;  %14719 = vst [vmem:[#allocation71_spill] sm:$0xff] %v12847_v1  ;;  %v12861_v31 = vpack.c.bf16 %v4113_v36, %v4110_v47  ;;  %v4117_v49 = vld [vmem:[#allocation17 + $0x158] sm:$0xff]  ;;  %v12867_v14 = vpack.c.bf16 %v4119_v48, %v4116_v52  ;;  %v4123_v33 = vld [vmem:[#allocation17 + $0x188] sm:$0xff]  ;;  %v4126_v60 = vld [vmem:[#allocation17 + $0x1a0] sm:$0xff] }
 0x941   : > { %8533 = vmatmul.mubr.msk.f32.vlgmr.msra.gmra.mrb[48].mxu1 %vm1113_vm0, %v12817_v26  ;;  %3830 = vmatprep.mubr.f32.mxu0 %v14345_v7  ;;  %14720 = vst [vmem:[#allocation72_spill] sm:$0xff] %v12849_v54  ;;  %14722 = vst [vmem:[#allocation74_spill] sm:$0xff] %v12855_v27  ;;  %v12865_v6 = vpack.c.bf16 %v4120_v37, %v4117_v49  ;;  %v12871_v10 = vpack.c.bf16 %v4126_v60, %v4123_v33  ;;  %v4127_v47 = vld [vmem:[#allocation17 + $0x1a8] sm:$0xff]  ;;  %v4122_v36 = vld [vmem:[#allocation17 + $0x180] sm:$0xff] }
 0x942   : > { %9186 = vmatpush1.bf16.msra.mxu0 %v12815_v43  ;;  %14724 = vst [vmem:[#allocation76_spill] sm:$0xff] %v12861_v31  ;;  %14726 = vst [vmem:[#allocation78_spill] sm:$0xff] %v12867_v14  ;;  %v4125_v7 = vld [vmem:[#allocation17 + $0x198] sm:$0xff]  ;;  %v12873_v9 = vpack.c.bf16 %v4127_v47, %v4124_v30  ;;  %v4076_v37 = vld [vmem:[#allocation17 + $0x10] sm:$0xff] }
 0x943   : > { %9188 = vmatprep.subr.bf16.mxu0 %v12819_v45  ;;  %14725 = vst [vmem:[#allocation77_spill] sm:$0xff] %v12865_v6  ;;  %14727 = vst [vmem:[#allocation79_spill] sm:$0xff] %v12871_v10  ;;  %v12875_v49 = vpack.c.bf16 %v4125_v7, %v4122_v36  ;;  %v4129_v48 = vld [vmem:[#allocation17 + $0x1b8] sm:$0xff]  ;;  %v4132_v33 = vld [vmem:[#allocation17 + $0x1d0] sm:$0xff] }
 0x944   : > { %7670 = vmatmul.mubr.msk.f32.gmra.mrb[18].mxu0 %vm1113_vm0, %v12817_v26  ;;  %9280 = vmatprep.subr.bf16.mxu1 %v12873_v9  ;;  %v4130_v60 = vld [vmem:[#allocation17 + $0x1c0] sm:$0xff]  ;;  %v4133_v30 = vld [vmem:[#allocation17 + $0x1d8] sm:$0xff]  ;;  %v4128_v7 = vld [vmem:[#allocation17 + $0x1b0] sm:$0xff] }
 0x945   : > { %14728 = vst [vmem:[#allocation80_spill] sm:$0xff] %v12875_v49  ;;  %v4131_v47 = vld [vmem:[#allocation17 + $0x1c8] sm:$0xff]  ;;  %v12885_v36 = vpack.c.bf16 %v4133_v30, %v4130_v60  ;;  %v4134_v30 = vld [vmem:[#allocation17 + $0x1e0] sm:$0xff] }
 0x946   : > { %9190 = vmatpush1.bf16.msra.mxu0 %v12829_v29  ;;  %v4139_v60 = vld [vmem:[#allocation17 + $0x208] sm:$0xff] }
 0x947   : > { %9192 = vmatprep.subr.bf16.mxu0 %v12832_v44  ;;  %14731 = vst [vmem:[#allocation83_spill] sm:$0xff] %v12885_v36 }
 0x94a   : > { %9194 = vmatpush1.bf16.msra.mxu0 %v12837_v19 }
 0x94b   : > { %9196 = vmatprep.subr.bf16.mxu0 %v12841_v24  ;;  %v4166_v24 = vld [vmem:[#allocation17 + $0x2e0] sm:$0xff] }
 0x94e   : > { %9198 = vmatpush1.bf16.msra.mxu0 %v12843_v16 }
 0x94f   : > { %9200 = vmatprep.subr.bf16.mxu0 %v12847_v1 }
 0x952   : > { %9202 = vmatpush1.bf16.msra.mxu0 %v12849_v54 }
 0x953   : > { %9204 = vmatprep.subr.bf16.mxu0 %v12853_v39 }
 0x956   : > { %9206 = vmatpush1.bf16.msra.mxu0 %v12855_v27 }
 0x957   : > { %9208 = vmatprep.subr.bf16.mxu0 %v12859_v2 }
 0x95a   : > { %9210 = vmatpush1.bf16.msra.mxu0 %v12861_v31  ;;  %v4079_v31 = vld [vmem:[#allocation17 + $0x28] sm:$0xff] }
 0x95b   : > { %9212 = vmatprep.subr.bf16.mxu0 %v12865_v6  ;;  %v12878_v52 = vpack.c.bf16 %v4079_v31, %v4076_v37  ;;  %v12887_v6 = vpack.c.bf16 %v4131_v47, %v4128_v7  ;;  %v4082_v31 = vld [vmem:[#allocation17 + $0x40] sm:$0xff]  ;;  %v4085_v37 = vld [vmem:[#allocation17 + $0x58] sm:$0xff] }
 0x95c   : > { %v4137_v7 = vld [vmem:[#allocation17 + $0x1f8] sm:$0xff] }
 0x95d   : > { %14729 = vst [vmem:[#allocation81_spill] sm:$0xff] %v12878_v52  ;;  %9282 = vmatpush3.bf16.msra.mxu1 %v12878_v52  ;;  %14732 = vst [vmem:[#allocation84_spill] sm:$0xff] %v12887_v6  ;;  %v12899_v27 = vpack.c.bf16 %v4137_v7, %v4134_v30  ;;  %v4143_v30 = vld [vmem:[#allocation17 + $0x228] sm:$0xff] }
 0x95e   : > { %9214 = vmatpush1.bf16.msra.mxu0 %v12867_v14  ;;  %v12883_v14 = vpack.c.bf16 %v4132_v33, %v4129_v48  ;;  %9284 = vmatprep.subr.bf16.mxu1 %v12885_v36  ;;  %v4138_v48 = vld [vmem:[#allocation17 + $0x200] sm:$0xff]  ;;  %v4136_v33 = vld [vmem:[#allocation17 + $0x1f0] sm:$0xff] }
 0x95f   : > { %9216 = vmatprep.subr.bf16.mxu0 %v12871_v10  ;;  %v12890_v10 = vpack.c.bf16 %v4085_v37, %v4082_v31  ;;  %v12897_v47 = vpack.c.bf16 %v4139_v60, %v4136_v33  ;;  %14736 = vst [vmem:[#allocation88_spill] sm:$0xff] %v12899_v27  ;;  %v4088_v31 = vld [vmem:[#allocation17 + $0x70] sm:$0xff]  ;;  %v4091_v37 = vld [vmem:[#allocation17 + $0x88] sm:$0xff]  ;;  %v4145_v33 = vld [vmem:[#allocation17 + $0x238] sm:$0xff] }
 0x960   : > { %14730 = vst [vmem:[#allocation82_spill] sm:$0xff] %v12883_v14  ;;  %v4140_v60 = vld [vmem:[#allocation17 + $0x210] sm:$0xff] }
 0x961   : > { %14733 = vst [vmem:[#allocation85_spill] sm:$0xff] %v12890_v10  ;;  %9286 = vmatpush3.bf16.msra.mxu1 %v12890_v10  ;;  %14735 = vst [vmem:[#allocation87_spill] sm:$0xff] %v12897_v47  ;;  %v12911_v54 = vpack.c.bf16 %v4143_v30, %v4140_v60  ;;  %v4149_v60 = vld [vmem:[#allocation17 + $0x258] sm:$0xff] }
 0x962   : > { %9218 = vmatpush1.bf16.msra.mxu0 %v12875_v49  ;;  %v4135_v49 = vld [vmem:[#allocation17 + $0x1e8] sm:$0xff]  ;;  %9288 = vmatprep.subr.bf16.mxu1 %v12897_v47 }
 0x963   : > { %9220 = vmatprep.subr.bf16.mxu0 %v12883_v14  ;;  %v12895_v2 = vpack.c.bf16 %v4138_v48, %v4135_v49  ;;  %v12902_v14 = vpack.c.bf16 %v4091_v37, %v4088_v31  ;;  %v4144_v49 = vld [vmem:[#allocation17 + $0x230] sm:$0xff]  ;;  %v4142_v48 = vld [vmem:[#allocation17 + $0x220] sm:$0xff]  ;;  %14740 = vst [vmem:[#allocation92_spill] sm:$0xff] %v12911_v54  ;;  %v4097_v37 = vld [vmem:[#allocation17 + $0xb8] sm:$0xff] }
 0x964   : > { %v12909_v7 = vpack.c.bf16 %v4145_v33, %v4142_v48  ;;  %v4094_v31 = vld [vmem:[#allocation17 + $0xa0] sm:$0xff]  ;;  %v4151_v48 = vld [vmem:[#allocation17 + $0x268] sm:$0xff] }
 0x965   : > { %14734 = vst [vmem:[#allocation86_spill] sm:$0xff] %v12895_v2  ;;  %14737 = vst [vmem:[#allocation89_spill] sm:$0xff] %v12902_v14  ;;  %9290 = vmatpush3.bf16.msra.mxu1 %v12902_v14  ;;  %v4146_v33 = vld [vmem:[#allocation17 + $0x240] sm:$0xff]  ;;  %v4169_v14 = vld [vmem:[#allocation17 + $0x2f8] sm:$0xff] }
 0x966   : > { %9222 = vmatpush1.bf16.msra.mxu0 %v12887_v6  ;;  %v4141_v6 = vld [vmem:[#allocation17 + $0x218] sm:$0xff]  ;;  %14739 = vst [vmem:[#allocation91_spill] sm:$0xff] %v12909_v7  ;;  %9292 = vmatprep.subr.bf16.mxu1 %v12909_v7  ;;  %v12923_v16 = vpack.c.bf16 %v4149_v60, %v4146_v33  ;;  %v4155_v33 = vld [vmem:[#allocation17 + $0x288] sm:$0xff] }
 0x967   : > { %9224 = vmatprep.subr.bf16.mxu0 %v12895_v2  ;;  %v12907_v39 = vpack.c.bf16 %v4144_v49, %v4141_v6  ;;  %v12914_v2 = vpack.c.bf16 %v4097_v37, %v4094_v31  ;;  %v4150_v6 = vld [vmem:[#allocation17 + $0x260] sm:$0xff]  ;;  %v4148_v49 = vld [vmem:[#allocation17 + $0x250] sm:$0xff]  ;;  %v4103_v37 = vld [vmem:[#allocation17 + $0xe8] sm:$0xff] }
 0x968   : > { %v12921_v30 = vpack.c.bf16 %v4151_v48, %v4148_v49  ;;  %14744 = vst [vmem:[#allocation96_spill] sm:$0xff] %v12923_v16  ;;  %v4100_v31 = vld [vmem:[#allocation17 + $0xd0] sm:$0xff]  ;;  %v4157_v49 = vld [vmem:[#allocation17 + $0x298] sm:$0xff] }
 0x969   : > { %14738 = vst [vmem:[#allocation90_spill] sm:$0xff] %v12907_v39  ;;  %14741 = vst [vmem:[#allocation93_spill] sm:$0xff] %v12914_v2  ;;  %9294 = vmatpush3.bf16.msra.mxu1 %v12914_v2  ;;  %v4152_v48 = vld [vmem:[#allocation17 + $0x270] sm:$0xff] }
 0x96a   : > { %9226 = vmatpush1.bf16.msra.mxu0 %v12899_v27  ;;  %v4147_v27 = vld [vmem:[#allocation17 + $0x248] sm:$0xff]  ;;  %14743 = vst [vmem:[#allocation95_spill] sm:$0xff] %v12921_v30  ;;  %9296 = vmatprep.subr.bf16.mxu1 %v12921_v30  ;;  %v12935_v7 = vpack.c.bf16 %v4155_v33, %v4152_v48  ;;  %v4161_v48 = vld [vmem:[#allocation17 + $0x2b8] sm:$0xff] }
 0x96b   : > { %9228 = vmatprep.subr.bf16.mxu0 %v12907_v39  ;;  %v12919_v1 = vpack.c.bf16 %v4150_v6, %v4147_v27  ;;  %v12926_v39 = vpack.c.bf16 %v4103_v37, %v4100_v31  ;;  %v4156_v27 = vld [vmem:[#allocation17 + $0x290] sm:$0xff]  ;;  %v4154_v6 = vld [vmem:[#allocation17 + $0x280] sm:$0xff]  ;;  %v4109_v37 = vld [vmem:[#allocation17 + $0x118] sm:$0xff] }
 0x96c   : > { %v12933_v60 = vpack.c.bf16 %v4157_v49, %v4154_v6  ;;  %14748 = vst [vmem:[#allocation100_spill] sm:$0xff] %v12935_v7  ;;  %v4106_v31 = vld [vmem:[#allocation17 + $0x100] sm:$0xff]  ;;  %v4163_v6 = vld [vmem:[#allocation17 + $0x2c8] sm:$0xff] }
 0x96d   : > { %14742 = vst [vmem:[#allocation94_spill] sm:$0xff] %v12919_v1  ;;  %14745 = vst [vmem:[#allocation97_spill] sm:$0xff] %v12926_v39  ;;  %9298 = vmatpush3.bf16.msra.mxu1 %v12926_v39  ;;  %v4158_v49 = vld [vmem:[#allocation17 + $0x2a0] sm:$0xff] }
 0x96e   : > { %9230 = vmatpush1.bf16.msra.mxu0 %v12911_v54  ;;  %v4153_v54 = vld [vmem:[#allocation17 + $0x278] sm:$0xff]  ;;  %14747 = vst [vmem:[#allocation99_spill] sm:$0xff] %v12933_v60  ;;  %9300 = vmatprep.subr.bf16.mxu1 %v12933_v60  ;;  %v12947_v30 = vpack.c.bf16 %v4161_v48, %v4158_v49  ;;  %v4168_v60 = vld [vmem:[#allocation17 + $0x2f0] sm:$0xff]  ;;  %v4118_v49 = vld [vmem:[#allocation17 + $0x160] sm:$0xff] }
 0x96f   : > { %9232 = vmatprep.subr.bf16.mxu0 %v12919_v1  ;;  %v12931_v2 = vpack.c.bf16 %v4156_v27, %v4153_v54  ;;  %v12938_v1 = vpack.c.bf16 %v4109_v37, %v4106_v31  ;;  %v4162_v54 = vld [vmem:[#allocation17 + $0x2c0] sm:$0xff]  ;;  %v4160_v27 = vld [vmem:[#allocation17 + $0x2b0] sm:$0xff]  ;;  %v4115_v37 = vld [vmem:[#allocation17 + $0x148] sm:$0xff] }
 0x970   : > { %v12945_v33 = vpack.c.bf16 %v4163_v6, %v4160_v27  ;;  %14752 = vst [vmem:[#allocation104_spill] sm:$0xff] %v12947_v30  ;;  %v4112_v31 = vld [vmem:[#allocation17 + $0x130] sm:$0xff]  ;;  %v4167_v6 = vld [vmem:[#allocation17 + $0x2e8] sm:$0xff] }
 0x971   : > { %14746 = vst [vmem:[#allocation98_spill] sm:$0xff] %v12931_v2  ;;  %14749 = vst [vmem:[#allocation101_spill] sm:$0xff] %v12938_v1  ;;  %9302 = vmatpush3.bf16.msra.mxu1 %v12938_v1  ;;  %v4164_v27 = vld [vmem:[#allocation17 + $0x2d0] sm:$0xff] }
 0x972   : > { %9234 = vmatpush1.bf16.msra.mxu0 %v12923_v16  ;;  %v4159_v16 = vld [vmem:[#allocation17 + $0x2a8] sm:$0xff]  ;;  %14751 = vst [vmem:[#allocation103_spill] sm:$0xff] %v12945_v33  ;;  %9304 = vmatprep.subr.bf16.mxu1 %v12945_v33  ;;  %v12959_v48 = vpack.c.bf16 %v4167_v6, %v4164_v27  ;;  %v3737_v27 = vld [vmem:[%s14759_s26] sm:$0x7] }
 0x973   : > { %9236 = vmatprep.subr.bf16.mxu0 %v12931_v2  ;;  %v12943_v39 = vpack.c.bf16 %v4162_v54, %v4159_v16  ;;  %v4165_v2 = vld [vmem:[#allocation17 + $0x2d8] sm:$0xff]  ;;  %v12956_v54 = vpack.c.bf16 %v4169_v14, %v4166_v24  ;;  %v4172_v24 = vld [vmem:[#allocation17 + $0x310] sm:$0xff]  ;;  %v4175_v14 = vld [vmem:[#allocation17 + $0x328] sm:$0xff]  ;;  %v12977_v6 = vrot.slane %v3737_v27, %v11701_v56 }
 0x974   : > { %v12954_v16 = vpack.c.bf16 %v4168_v60, %v4165_v2  ;;  %14756 = vst [vmem:[#allocation108_spill] sm:$0xff] %v12959_v48  ;;  %v12967_v60 = vpack.c.bf16 %v4175_v14, %v4172_v24 }
 0x975   : > { %14750 = vst [vmem:[#allocation102_spill] sm:$0xff] %v12943_v39  ;;  %14755 = vst [vmem:[#allocation107_spill] sm:$0xff] %v12956_v54 }
 0x976   : > { %9238 = vmatpush1.bf16.msra.mxu0 %v12935_v7  ;;  %v12950_v7 = vpack.c.bf16 %v4115_v37, %v4112_v31  ;;  %14754 = vst [vmem:[#allocation106_spill] sm:$0xff] %v12954_v16  ;;  %v4121_v31 = vld [vmem:[#allocation17 + $0x178] sm:$0xff]  ;;  %v4171_v37 = vld [vmem:[#allocation17 + $0x308] sm:$0xff]  ;;  %14760 = vst [vmem:[#allocation111_spill] sm:$0xff] %v12977_v6 }
 0x977   : > { %9240 = vmatprep.subr.bf16.mxu0 %v12943_v39  ;;  %v4174_v39 = vld [vmem:[#allocation17 + $0x320] sm:$0xff]  ;;  %v12963_v33 = vpack.c.bf16 %v4121_v31, %v4118_v49  ;;  %v12983_v49 = vrot.slane %v3737_v27, %v11725_v8 }
 0x978   : > { %14753 = vst [vmem:[#allocation105_spill] sm:$0xff] %v12950_v7  ;;  %9306 = vmatpush3.bf16.msra.mxu1 %v12950_v7  ;;  %v12965_v2 = vpack.c.bf16 %v4174_v39, %v4171_v37  ;;  %v12980_v39 = vrot.slane %v3737_v27, %v11707_v58 }
 0x979   : > { %9308 = vmatprep.subr.bf16.mxu1 %v12956_v54  ;;  %14757 = vst [vmem:[#allocation109_spill] sm:$0xff] %v12963_v33  ;;  %14762 = vst [vmem:[#allocation113_spill] sm:$0xff] %v12983_v49 }
 0x97a   : > { %9242 = vmatpush1.bf16.msra.mxu0 %v12947_v30  ;;  %14758 = vst [vmem:[#allocation110_spill] sm:$0xff] %v12965_v2  ;;  %14761 = vst [vmem:[#allocation112_spill] sm:$0xff] %v12980_v39 }
 0x97b   : > { %9244 = vmatprep.subr.bf16.mxu0 %v12954_v16 }
 0x97c   : > { %9310 = vmatpush3.bf16.msra.mxu1 %v12963_v33 }
 0x97d   : > { %9312 = vmatprep.subr.bf16.mxu1 %v12967_v60 }
 0x97e   : > { %9246 = vmatpush1.bf16.msra.mxu0 %v12959_v48 }
 0x97f   : > { %9248 = vmatprep.subr.bf16.mxu0 %v12965_v2 }
 0xa13   : > { %v3826_v31 = vpop.f32.mrb[16].mxu0 }
 0xa14   : > { %v12986_v37 = vadd.f32 %v3826_v31, %v12977_v6  ;;  %v3828_v24 = vpop.f32.mrb[17].mxu0  ;;  %v8534_v14 = vpop.f32.mrb[48].mxu1 }
 0xa15   : > { %v12989_v2 = vadd.f32 %v3828_v24, %v12980_v39  ;;  %v12992_v48 = vadd.f32 %v8534_v14, %v12983_v49  ;;  %v3903_v16 = vpop.f32.mrb[49].mxu1 }
 0xa16   : > { %v12995_v30 = vmul.f32 0.70710677, %v12986_v37  ;;  %v12998_v33 = vadd.f32 %v3903_v16, %v12983_v49 }
 0xa17   : > { %v13001_v27 = vmul.f32 0.70710677, %v12989_v2  ;;  %v13004_v31 = vmul.f32 0.70710677, %v12992_v48  ;;  %v3832_v10 = vpop.f32.mrb[18].mxu0 }
 0xa18   : > { %v3924_v54 = vand.u32 2147483647, %v12995_v30  ;;  %v13008_v24 = vmul.f32 0.70710677, %v12998_v33  ;;  %v3834_v36 = vpop.f32.mrb[19].mxu0  ;;  %v13017_v52 = vadd.f32 %v3832_v10, %v12977_v6  ;;  %vm4044_vm15 = vcmp.ge.f32.partialorder %v12995_v30, 0.0 }
 0xa19   : > { %v3925_v14 = vand.u32 2147483647, %v13001_v27  ;;  %v13012_v7 = vand.u32 2147483647, %v13004_v31  ;;  %v13020_v50 = vadd.f32 %v3834_v36, %v12980_v39  ;;  %vm4045_vm1 = vcmp.ge.f32.partialorder %v13001_v27, 0.0 }
 0xa1a   : > { %v3930_v1 = vmul.f32 0.3275911, %v3924_v54  ;;  %v3926_v16 = vand.u32 2147483647, %v13008_v24  ;;  %v13023_v38 = vmul.f32 0.70710677, %v13017_v52 }
 0xa1b   : > { %v3931_v49 = vmul.f32 0.3275911, %v3925_v14  ;;  %v3935_v19 = vmul.f32 0.3275911, %v13012_v7  ;;  %v13026_v21 = vmul.f32 0.70710677, %v13020_v50 }
 0xa1c   : > { %v3936_v47 = vadd.f32 1.0, %v3930_v1  ;;  %v3932_v44 = vmul.f32 0.3275911, %v3926_v16  ;;  %v3927_v1 = vand.u32 2147483647, %v13023_v38  ;;  %v4010_v61 = vsub.f32 0.0, %v3926_v16 }
 0xa1d   : > { %v3937_v29 = vadd.f32 1.0, %v3931_v49  ;;  %v3941_v45 = vadd.f32 1.0, %v3935_v19  ;;  %v4008_v49 = vsub.f32 0.0, %v3924_v54  ;;  %v4009_v19 = vsub.f32 0.0, %v3925_v14 }
 0xa1e   : > { %10239 = vrcp.f32 %v3936_v47  ;;  %v3938_v43 = vadd.f32 1.0, %v3932_v44  ;;  %v3933_v10 = vmul.f32 0.3275911, %v3927_v1  ;;  %v4016_v23 = vmul.f32 %v4010_v61, %v3926_v16 }
 0xa1f   : > { %10241 = vrcp.f32 %v3937_v29  ;;  %v3928_v29 = vand.u32 2147483647, %v13026_v21  ;;  %v4014_v36 = vmul.f32 %v4008_v49, %v3924_v54  ;;  %v4015_v25 = vmul.f32 %v4009_v19, %v3925_v14 }
 0xa20   : > { %10243 = vrcp.f32 %v3941_v45  ;;  %v3939_v44 = vadd.f32 1.0, %v3933_v10  ;;  %v4011_v54 = vsub.f32 0.0, %v3927_v1  ;;  %v3913_v27 = vmul.f32 0.5, %v12989_v2 }
 0xa21   : > { %10245 = vrcp.f32 %v3938_v43  ;;  %v3934_v47 = vmul.f32 0.3275911, %v3928_v29  ;;  %v4020_v5 = vmul.f32 1.442695, %v4014_v36  ;;  %v4022_v57 = vmul.f32 1.442695, %v4015_v25 }
 0xa22   : > { %10247 = vrcp.f32 %v3939_v44  ;;  %v4012_v19 = vsub.f32 0.0, %v3928_v29  ;;  %v4024_v44 = vmul.f32 1.442695, %v4016_v23  ;;  %v4017_v25 = vmul.f32 %v4011_v54, %v3927_v1 }
 0xa23   : > { %v3940_v39 = vadd.f32 1.0, %v3934_v47  ;;  %vm4046_vm2 = vcmp.ge.f32.partialorder %v13008_v24, 0.0  ;;  %vm4047_vm4 = vcmp.ge.f32.partialorder %v13023_v38, 0.0  ;;  %vm4048_vm6 = vcmp.ge.f32.partialorder %v13026_v21, 0.0  ;;  %v4193_v21 = vld [vmem:[#allocation17 + $0x3b8] sm:$0xff] }
 0xa24   : > { %vm4049_vm7 = vcmp.ge.f32.partialorder %v13004_v31, 0.0 }
 0xa25   : > { %10249 = vrcp.f32 %v3940_v39 }
 0xa26   : > { %10251 = vpow2.f32 %v4020_v5 }
 0xa27   : > { %10253 = vpow2.f32 %v4022_v57 }
 0xa28   : > { %v10240_v6 = vpop.eup %10239  ;;  %10255 = vpow2.f32 %v4024_v44 }
 0xa29   : > { %v10242_v55 = vpop.eup %10241  ;;  %v3954_v28 = vmul.f32 1.0614054, %v10240_v6 }
 0xa2a   : > { %v3955_v45 = vmul.f32 1.0614054, %v10242_v55  ;;  %v13030_v43 = vpop.eup %10243 }
 0xa2b   : > { %v3960_v35 = vadd.f32 -1.4531521, %v3954_v28  ;;  %v10246_v32 = vpop.eup %10245  ;;  %v3959_v14 = vmul.f32 1.0614054, %v13030_v43 }
 0xa2c   : > { %v3961_v22 = vadd.f32 -1.4531521, %v3955_v45  ;;  %v3956_v49 = vmul.f32 1.0614054, %v10246_v32  ;;  %v13033_v45 = vpop.eup %10247 }
 0xa2d   : > { %v3966_v53 = vmul.f32 %v10240_v6, %v3960_v35  ;;  %v3957_v5 = vmul.f32 1.0614054, %v13033_v45 }
 0xa2e   : > { %v3967_v10 = vmul.f32 %v10242_v55, %v3961_v22  ;;  %v3962_v28 = vadd.f32 -1.4531521, %v3956_v49  ;;  %v4018_v22 = vmul.f32 %v4012_v19, %v3928_v29 }
 0xa2f   : > { %v3972_v20 = vadd.f32 1.4214138, %v3966_v53  ;;  %v13035_v61 = vpop.eup %10249  ;;  %v3965_v53 = vadd.f32 -1.4531521, %v3959_v14  ;;  %v3963_v23 = vadd.f32 -1.4531521, %v3957_v5 }
 0xa30   : > { %v3973_v47 = vadd.f32 1.4214138, %v3967_v10  ;;  %v3968_v51 = vmul.f32 %v10246_v32, %v3962_v28  ;;  %v3958_v10 = vmul.f32 1.0614054, %v13035_v61  ;;  %v4028_v54 = vmul.f32 1.442695, %v4018_v22 }
 0xa31   : > { %v3978_v39 = vmul.f32 %v10240_v6, %v3972_v20  ;;  %v3971_v1 = vmul.f32 %v13030_v43, %v3965_v53  ;;  %v3969_v29 = vmul.f32 %v13033_v45, %v3963_v23 }
 0xa32   : > { %v3979_v36 = vmul.f32 %v10242_v55, %v3973_v47  ;;  %v3974_v20 = vadd.f32 1.4214138, %v3968_v51  ;;  %v4026_v47 = vmul.f32 1.442695, %v4017_v25  ;;  %v3964_v13 = vadd.f32 -1.4531521, %v3958_v10 }
 0xa33   : > { %v3984_v35 = vadd.f32 -0.28449672, %v3978_v39  ;;  %v3975_v51 = vadd.f32 1.4214138, %v3969_v29  ;;  %v3977_v5 = vadd.f32 1.4214138, %v3971_v1 }
 0xa34   : > { %v3985_v16 = vadd.f32 -0.28449672, %v3979_v36  ;;  %v3980_v39 = vmul.f32 %v10246_v32, %v3974_v20  ;;  %v3970_v19 = vmul.f32 %v13035_v61, %v3964_v13  ;;  %10257 = vpow2.f32 %v4026_v47 }
 0xa35   : > { %v3990_v59 = vmul.f32 %v10240_v6, %v3984_v35  ;;  %v10252_v35 = vpop.eup %10251  ;;  %10259 = vpow2.f32 %v4028_v54  ;;  %v3981_v53 = vmul.f32 %v13033_v45, %v3975_v51  ;;  %v4013_v20 = vsub.f32 0.0, %v13012_v7 }
 0xa36   : > { %v3991_v57 = vmul.f32 %v10242_v55, %v3985_v16  ;;  %v3986_v36 = vadd.f32 -0.28449672, %v3980_v39  ;;  %v10254_v44 = vpop.eup %10253 }
 0xa37   : > { %v3996_v49 = vadd.f32 0.2548296, %v3990_v59  ;;  %v3976_v59 = vadd.f32 1.4214138, %v3970_v19  ;;  %v3987_v23 = vadd.f32 -0.28449672, %v3981_v53  ;;  %v10256_v39 = vpop.eup %10255  ;;  %v4019_v29 = vmul.f32 %v4013_v20, %v13012_v7 }
 0xa38   : > { %v3997_v28 = vadd.f32 0.2548296, %v3991_v57  ;;  %v3992_v25 = vmul.f32 %v10246_v32, %v3986_v36  ;;  %v4173_v19 = vld [vmem:[#allocation17 + $0x318] sm:$0xff] }
 0xa39   : > { %v4002_v14 = vmul.f32 %v10240_v6, %v3996_v49  ;;  %v3982_v6 = vmul.f32 %v13035_v61, %v3976_v59  ;;  %v3993_v54 = vmul.f32 %v13033_v45, %v3987_v23 }
 0xa3a   : > { %v4003_v17 = vmul.f32 %v10242_v55, %v3997_v28  ;;  %v3998_v13 = vadd.f32 0.2548296, %v3992_v25 }
 0xa3b   : > { %v4032_v16 = vmul.f32 %v10252_v35, %v4002_v14  ;;  %v3988_v49 = vadd.f32 -0.28449672, %v3982_v6  ;;  %v4170_v14 = vld [vmem:[#allocation17 + $0x300] sm:$0xff]  ;;  %v3999_v59 = vadd.f32 0.2548296, %v3993_v54  ;;  %v4176_v54 = vld [vmem:[#allocation17 + $0x330] sm:$0xff] }
 0xa3c   : > { %v4033_v10 = vmul.f32 %v10254_v44, %v4003_v17  ;;  %v4004_v47 = vmul.f32 %v10246_v32, %v3998_v13  ;;  %v3983_v17 = vmul.f32 %v13030_v43, %v3977_v5  ;;  %v4177_v44 = vld [vmem:[#allocation17 + $0x338] sm:$0xff]  ;;  %v4180_v32 = vld [vmem:[#allocation17 + $0x350] sm:$0xff]  ;;  %v4030_v13 = vmul.f32 1.442695, %v4019_v29  ;;  %v4186_v29 = vld [vmem:[#allocation17 + $0x380] sm:$0xff] }
 0xa3d   : > { %v4038_v22 = vsub.f32 1.0, %v4032_v16  ;;  %v3994_v36 = vmul.f32 %v13035_v61, %v3988_v49  ;;  %v4178_v16 = vld [vmem:[#allocation17 + $0x340] sm:$0xff]  ;;  %v4005_v20 = vmul.f32 %v13033_v45, %v3999_v59  ;;  %v4185_v59 = vld [vmem:[#allocation17 + $0x378] sm:$0xff] }
 0xa3e   : > { %v4039_v57 = vsub.f32 1.0, %v4033_v10  ;;  %v4034_v35 = vmul.f32 %v10256_v39, %v4004_v47  ;;  %v4181_v10 = vld [vmem:[#allocation17 + $0x358] sm:$0xff]  ;;  %v3989_v7 = vadd.f32 -0.28449672, %v3983_v17  ;;  %v10258_v6 = vpop.eup %10257  ;;  %v13057_v39 = vpack.c.bf16 %v4180_v32, %v4177_v44 }
 0xa3f   : > { %v4050_v55 = vsub.f32 0.0, %v4038_v22  ;;  %v4000_v5 = vadd.f32 0.2548296, %v3994_v36  ;;  %v10260_v49 = vpop.eup %10259  ;;  %v13059_v2 = vpack.c.bf16 %v4181_v10, %v4178_v16  ;;  %v4184_v36 = vld [vmem:[#allocation17 + $0x370] sm:$0xff]  ;;  %10261 = vpow2.f32 %v4030_v13  ;;  %v4182_v16 = vld [vmem:[#allocation17 + $0x360] sm:$0xff] }
 0xa40   : > { %v4051_v1 = vsub.f32 0.0, %v4039_v57  ;;  %v4040_v53 = vsub.f32 1.0, %v4034_v35  ;;  %v4190_v13 = vld [vmem:[#allocation17 + $0x3a0] sm:$0xff] }
 0xa41   : > { %v4056_v28 = vsel %vm4044_vm15, %v4038_v22, %v4050_v55  ;;  %v3912_v22 = vmul.f32 0.5, %v12986_v37  ;;  %v13054_v55 = vpack.c.bf16 %v4173_v19, %v4170_v14  ;;  %v4183_v37 = vld [vmem:[#allocation17 + $0x368] sm:$0xff]  ;;  %v3995_v19 = vmul.f32 %v13030_v43, %v3989_v7 }
 0xa42   : > { %v4062_v30 = vadd.f32 1.0, %v4056_v28  ;;  %v4057_v51 = vsel %vm4045_vm1, %v4039_v57, %v4051_v1  ;;  %v4006_v57 = vmul.f32 %v13035_v61, %v4000_v5  ;;  %v4035_v1 = vmul.f32 %v10258_v6, %v4005_v20  ;;  %v4179_v28 = vld [vmem:[#allocation17 + $0x348] sm:$0xff]  ;;  %v4189_v20 = vld [vmem:[#allocation17 + $0x398] sm:$0xff]  ;;  %v4192_v6 = vld [vmem:[#allocation17 + $0x3b0] sm:$0xff] }
 0xa43   : > { %v4063_v25 = vadd.f32 1.0, %v4057_v51  ;;  %v4052_v17 = vsub.f32 0.0, %v4040_v53  ;;  %v4187_v14 = vld [vmem:[#allocation17 + $0x388] sm:$0xff]  ;;  %v13069_v44 = vpack.c.bf16 %v4186_v29, %v4183_v37  ;;  %v4001_v5 = vadd.f32 0.2548296, %v3995_v19 }
 0xa44   : > { %v4068_v47 = vmul.f32 %v4062_v30, %v3912_v22  ;;  %v4036_v45 = vmul.f32 %v10260_v49, %v4006_v57  ;;  %v4041_v61 = vsub.f32 1.0, %v4035_v1  ;;  %v13064_v30 = vpack.c.bf16 %v4179_v28, %v4176_v54  ;;  %v4191_v49 = vld [vmem:[#allocation17 + $0x3a8] sm:$0xff]  ;;  %v4198_v54 = vld [vmem:[#allocation17 + $0x3e0] sm:$0xff] }
 0xa45   : > { %v4069_v23 = vmul.f32 %v4063_v25, %v3913_v27  ;;  %14763 = vst [vmem:[#allocation114_spill] sm:$0xff] %v13069_v44  ;;  %v13071_v32 = vpack.c.bf16 %v4187_v14, %v4184_v36  ;;  %v4058_v25 = vsel %vm4046_vm2, %v4040_v53, %v4052_v17  ;;  %v13077_v7 = vpack.c.bf16 %v4185_v59, %v4182_v16  ;;  %v4188_v53 = vld [vmem:[#allocation17 + $0x390] sm:$0xff]  ;;  %v4195_v1 = vld [vmem:[#allocation17 + $0x3c8] sm:$0xff]  ;;  %v4201_v16 = vld [vmem:[#allocation17 + $0x3f8] sm:$0xff] }
 0xa46   : > { %v4042_v35 = vsub.f32 1.0, %v4036_v45  ;;  %v4053_v51 = vsub.f32 0.0, %v4041_v61  ;;  %v4064_v57 = vadd.f32 1.0, %v4058_v25  ;;  %v4007_v28 = vmul.f32 %v13030_v43, %v4001_v5  ;;  %v4199_v29 = vld [vmem:[#allocation17 + $0x3e8] sm:$0xff]  ;;  %v4204_v59 = vld [vmem:[#allocation17 + $0x410] sm:$0xff]  ;;  %v4202_v25 = vld [vmem:[#allocation17 + $0x400] sm:$0xff] }
 0xa47   : > { %4299 = vmatprep.mubr.f32.mxu0 %v4069_v23  ;;  %4453 = vmatprep.mubr.f32.mxu1 %v4069_v23  ;;  %14764 = vst [vmem:[#allocation115_spill] sm:$0xff] %v13071_v32  ;;  %14765 = vst [vmem:[#allocation116_spill] sm:$0xff] %v13077_v7  ;;  %v3916_v23 = vmul.f32 0.5, %v13020_v50  ;;  %v3914_v37 = vmul.f32 0.5, %v12998_v33  ;;  %v13085_v17 = vpack.c.bf16 %v4192_v6, %v4189_v20  ;;  %v4196_v50 = vld [vmem:[#allocation17 + $0x3d0] sm:$0xff]  ;;  %v4194_v33 = vld [vmem:[#allocation17 + $0x3c0] sm:$0xff] }
 0xa48   : > { %4300 = vmatmul.mubr.f32.vlgmr.msra.gmra.mrb[20].mxu0 %v4068_v47  ;;  %4454 = vmatmul.mubr.f32.vlgmr.msra.gmra.mrb[50].mxu1 %v4068_v47  ;;  %v4054_v27 = vsub.f32 0.0, %v4042_v35  ;;  %v4059_v10 = vsel %vm4047_vm4, %v4041_v61, %v4053_v51  ;;  %v3915_v47 = vmul.f32 0.5, %v13017_v52  ;;  %v13089_v14 = vpack.c.bf16 %v4193_v21, %v4190_v13  ;;  %v4197_v61 = vld [vmem:[#allocation17 + $0x3d8] sm:$0xff]  ;;  %v4203_v20 = vld [vmem:[#allocation17 + $0x408] sm:$0xff]  ;;  %v4208_v21 = vld [vmem:[#allocation17 + $0x430] sm:$0xff] }
 0xa49   : > { %9250 = vmatpush1.bf16.msra.mxu0 %v13054_v55  ;;  %9314 = vmatpush3.bf16.msra.mxu1 %v12967_v60  ;;  %v4065_v22 = vadd.f32 1.0, %v4059_v10  ;;  %14766 = vst [vmem:[#allocation117_spill] sm:$0xff] %v13085_v17  ;;  %v13091_v19 = vpack.c.bf16 %v4191_v49, %v4188_v53  ;;  %v13093_v52 = vmul.f32 %v4064_v57, %v3914_v37  ;;  %v4205_v5 = vld [vmem:[#allocation17 + $0x418] sm:$0xff]  ;;  %v4207_v13 = vld [vmem:[#allocation17 + $0x428] sm:$0xff] }
 0xa4a   : > { %9252 = vmatprep.subr.bf16.mxu0 %v13057_v39  ;;  %9316 = vmatprep.subr.bf16.mxu1 %v13059_v2  ;;  %v4060_v24 = vsel %vm4048_vm6, %v4042_v35, %v4054_v27  ;;  %14767 = vst [vmem:[#allocation118_spill] sm:$0xff] %v13089_v14  ;;  %v13095_v43 = vpack.c.bf16 %v4198_v54, %v4195_v1  ;;  %v10262_v35 = vpop.eup %10261  ;;  %v4211_v53 = vld [vmem:[#allocation17 + $0x448] sm:$0xff]  ;;  %v4206_v1 = vld [vmem:[#allocation17 + $0x420] sm:$0xff]  ;;  %v4209_v54 = vld [vmem:[#allocation17 + $0x438] sm:$0xff] }
 0xa4b   : > { %v4066_v38 = vadd.f32 1.0, %v4060_v24  ;;  %v4071_v36 = vmul.f32 %v4065_v22, %v3915_v47  ;;  %14768 = vst [vmem:[#allocation119_spill] sm:$0xff] %v13091_v19  ;;  %v13097_v51 = vpack.c.bf16 %v4199_v29, %v4196_v50  ;;  %v4037_v27 = vmul.f32 %v10262_v35, %v4007_v28  ;;  %v4200_v22 = vld [vmem:[#allocation17 + $0x3f0] sm:$0xff]  ;;  %v4213_v37 = vld [vmem:[#allocation17 + $0x458] sm:$0xff]  ;;  %v4214_v29 = vld [vmem:[#allocation17 + $0x460] sm:$0xff] }
 0xa4c   : > { %14769 = vst [vmem:[#allocation120_spill] sm:$0xff] %v13095_v43  ;;  %v13103_v10 = vpack.c.bf16 %v4197_v61, %v4194_v33  ;;  %v13107_v24 = vpack.c.bf16 %v4204_v59, %v4201_v16  ;;  %v13110_v6 = vpack.c.bf16 %v4205_v5, %v4202_v25  ;;  %v13114_v49 = vpack.c.bf16 %v4203_v20, %v4200_v22  ;;  %v4212_v35 = vld [vmem:[#allocation17 + $0x450] sm:$0xff]  ;;  %v4215_v16 = vld [vmem:[#allocation17 + $0x468] sm:$0xff]  ;;  %v4717_v20 = vld [vmem:[%s14782_s29 + $0x80] sm:$0xff] }
 0xa4d   : > { %9254 = vmatpush1.bf16.msra.mxu0 %v13064_v30  ;;  %9318 = vmatpush3.bf16.msra.mxu1 %v13059_v2  ;;  %v4072_v45 = vmul.f32 %v4066_v38, %v3916_v23  ;;  %14770 = vst [vmem:[#allocation121_spill] sm:$0xff] %v13097_v51  ;;  %v4210_v23 = vld [vmem:[#allocation17 + $0x440] sm:$0xff]  ;;  %v14774_v38 = vmov 0.0   ;;  %v4043_v57 = vsub.f32 1.0, %v4037_v27  ;;  %v13121_v28 = vpack.c.bf16 %v4211_v53, %v4208_v21 }
 0xa4e   : > { %9256 = vmatprep.subr.bf16.mxu0 %v13069_v44  ;;  %9320 = vmatprep.subr.bf16.mxu1 %v13071_v32  ;;  %14771 = vst [vmem:[#allocation122_spill] sm:$0xff] %v13103_v10  ;;  %14772 = vst [vmem:[#allocation123_spill] sm:$0xff] %v13107_v24  ;;  %v13118_v47 = vpack.c.bf16 %v4210_v23, %v4207_v13  ;;  %v13124_v33 = vpack.c.bf16 %v4209_v54, %v4206_v1  ;;  %v3917_v22 = vmul.f32 0.5, %v12992_v48  ;;  %v4718_v13 = vld [vmem:[%s14782_s29 + $0x88] sm:$0xff]  ;;  %v4733_v48 = vld [vmem:[%s14782_s29 + $0x100] sm:$0xff] }
 0xa4f   : > { %4305 = vmatprep.mubr.f32.mxu0 %v4072_v45  ;;  %4458 = vmatprep.mubr.f32.mxu1 %v4072_v45  ;;  %14773 = vst [vmem:[#allocation124_spill] sm:$0xff] %v13110_v6  ;;  %14775 = vst [vmem:[#allocation125_spill] sm:$0xff] %v13114_v49  ;;  %v4216_v45 = vld [vmem:[#allocation17 + $0x470] sm:$0xff]  ;;  %v4055_v50 = vsub.f32 0.0, %v4043_v57  ;;  %v13135_v25 = vpack.c.bf16 %v4215_v16, %v4212_v35  ;;  %v13154_v23 = vpack.c.bf16 %v4718_v13, %v4717_v20  ;;  %v4702_v21 = vld [vmem:[%s14782_s29 + $0x8] sm:$0xff] }
 0xa50   : > { %4306 = vmatmul.mubr.f32.gmra.mrb[22].mxu0 %v4071_v36  ;;  %4459 = vmatmul.mubr.f32.gmra.mrb[52].mxu1 %v4071_v36  ;;  %14776 = vst [vmem:[#allocation126_spill] sm:$0xff] %v13118_v47  ;;  %14777 = vst [vmem:[#allocation127_spill] sm:$0xff] %v13121_v28  ;;  %v4217_v36 = vld [vmem:[#allocation17 + $0x478] sm:$0xff]  ;;  %v13128_v61 = vpack.c.bf16 %v4216_v45, %v4213_v37  ;;  %v4719_v54 = vld [vmem:[%s14782_s29 + $0x90] sm:$0xff] }
 0xa51   : > { %9258 = vmatpush1.bf16.msra.mxu0 %v13077_v7  ;;  %9322 = vmatpush3.bf16.msra.mxu1 %v13071_v32  ;;  %14778 = vst [vmem:[#allocation128_spill] sm:$0xff] %v13124_v33  ;;  %v13132_v59 = vpack.c.bf16 %v4217_v36, %v4214_v29  ;;  %v4061_v27 = vsel %vm4049_vm7, %v4043_v57, %v4055_v50  ;;  %14781 = vst [vmem:[#allocation131_spill] sm:$0xff] %v13135_v25  ;;  %v4701_v57 = vld [vmem:[%s14782_s29] sm:$0xff]  ;;  %v4720_v37 = vld [vmem:[%s14782_s29 + $0x98] sm:$0xff] }
 0xa52   : > { %8567 = vmatprep.mubr.f32.mxu1 %v13093_v52  ;;  %9260 = vmatprep.subr.bf16.mxu0 %v13085_v17  ;;  %14779 = vst [vmem:[#allocation129_spill] sm:$0xff] %v13128_v61  ;;  %v4067_v5 = vadd.f32 1.0, %v4061_v27  ;;  %14783 = vst [vmem:[#allocation132_spill] sm:$0xff] %v13154_v23  ;;  %v13167_v1 = vpack.c.bf16 %v4702_v21, %v4701_v57  ;;  %v4735_v45 = vld [vmem:[%s14782_s29 + $0x110] sm:$0xff]  ;;  %v13182_v50 = vpack.c.bf16 %v4720_v37, %v4719_v54  ;;  %v4736_v29 = vld [vmem:[%s14782_s29 + $0x118] sm:$0xff] }
 0xa53   : > { %9324 = vmatprep.subr.bf16.mxu1 %v13089_v14  ;;  %4376 = vmatprep.mubr.f32.mxu0 %v14774_v38  ;;  %14780 = vst [vmem:[#allocation130_spill] sm:$0xff] %v13132_v59  ;;  %v4703_v36 = vld [vmem:[%s14782_s29 + $0x10] sm:$0xff]  ;;  %v4704_v35 = vld [vmem:[%s14782_s29 + $0x18] sm:$0xff]  ;;  %v13193_v16 = vpack.c.bf16 %v4736_v29, %v4735_v45  ;;  %v4738_v13 = vld [vmem:[%s14782_s29 + $0x128] sm:$0xff] }
 0xa54   : > { %v4073_v31 = vmul.f32 %v4067_v5, %v3917_v22  ;;  %14785 = vst [vmem:[#allocation134_spill] sm:$0xff] %v13167_v1  ;;  %14786 = vst [vmem:[#allocation135_spill] sm:$0xff] %v13182_v50  ;;  %v13195_v27 = vpack.c.bf16 %v4704_v35, %v4703_v36  ;;  %v4721_v5 = vld [vmem:[%s14782_s29 + $0xa0] sm:$0xff]  ;;  %v4722_v22 = vld [vmem:[%s14782_s29 + $0xa8] sm:$0xff] }
 0xa55   : > { %9262 = vmatpush1.bf16.msra.mxu0 %v13091_v19  ;;  %9326 = vmatpush3.bf16.msra.mxu1 %v13089_v14  ;;  %14787 = vst [vmem:[#allocation136_spill] sm:$0xff] %v13193_v16  ;;  %v13210_v20 = vpack.c.bf16 %v4722_v22, %v4721_v5  ;;  %v4723_v54 = vld [vmem:[%s14782_s29 + $0xb0] sm:$0xff]  ;;  %v4724_v37 = vld [vmem:[%s14782_s29 + $0xb8] sm:$0xff] }
 0xa56   : > { %9264 = vmatprep.subr.bf16.mxu0 %v13095_v43  ;;  %9328 = vmatprep.subr.bf16.mxu1 %v13097_v51  ;;  %14788 = vst [vmem:[#allocation137_spill] sm:$0xff] %v13195_v27  ;;  %v4739_v45 = vld [vmem:[%s14782_s29 + $0x130] sm:$0xff]  ;;  %v13238_v29 = vpack.c.bf16 %v4724_v37, %v4723_v54  ;;  %v4740_v36 = vld [vmem:[%s14782_s29 + $0x138] sm:$0xff]  ;;  %v4742_v37 = vld [vmem:[%s14782_s29 + $0x148] sm:$0xff] }
 0xa57   : > { %14789 = vst [vmem:[#allocation138_spill] sm:$0xff] %v13210_v20  ;;  %v4707_v35 = vld [vmem:[%s14782_s29 + $0x30] sm:$0xff]  ;;  %v4708_v5 = vld [vmem:[%s14782_s29 + $0x38] sm:$0xff]  ;;  %v13249_v22 = vpack.c.bf16 %v4740_v36, %v4739_v45  ;;  %v4709_v45 = vld [vmem:[%s14782_s29 + $0x40] sm:$0xff] }
 0xa58   : > { %14792 = vst [vmem:[#allocation141_spill] sm:$0xff] %v13238_v29  ;;  %v4710_v36 = vld [vmem:[%s14782_s29 + $0x48] sm:$0xff] }
 0xa59   : > { %9266 = vmatpush1.bf16.msra.mxu0 %v13103_v10  ;;  %9330 = vmatpush3.bf16.msra.mxu1 %v13097_v51  ;;  %14793 = vst [vmem:[#allocation142_spill] sm:$0xff] %v13249_v22 }
 0xa5a   : > { %9268 = vmatprep.subr.bf16.mxu0 %v13107_v24  ;;  %9332 = vmatprep.subr.bf16.mxu1 %v13110_v6 }
 0xa5d   : > { %9270 = vmatpush1.bf16.msra.mxu0 %v13114_v49  ;;  %9334 = vmatpush3.bf16.msra.mxu1 %v13110_v6 }
 0xa5e   : > { %9272 = vmatprep.subr.bf16.mxu0 %v13118_v47  ;;  %9336 = vmatprep.subr.bf16.mxu1 %v13121_v28 }
 0xa61   : > { %9274 = vmatpush1.bf16.msra.mxu0 %v13124_v33  ;;  %9338 = vmatpush3.bf16.msra.mxu1 %v13121_v28 }
 0xa62   : > { %9276 = vmatprep.subr.bf16.mxu0 %v13128_v61  ;;  %9340 = vmatprep.subr.bf16.mxu1 %v13132_v59 }
 0xa65   : > { %9278 = vmatpush1.bf16.msra.mxu0 %v13135_v25  ;;  %9342 = vmatpush3.bf16.msra.mxu1 %v13132_v59 }
 0xa66   : > { %9344 = vmatprep.subr.bf16.mxu1 %v13154_v23 }
 0xa68   : > { %4377 = vmatmul.mubr.f32.vlgmr.msra.gmra.mrb[20].mxu0 %v13093_v52  ;;  %8568 = vmatmul.mubr.f32.vlgmr.msra.gmra.mrb[54].mxu1 %v4073_v31  ;;  %v4734_v52 = vld [vmem:[%s14782_s29 + $0x108] sm:$0xff] }
 0xa69   : > { %4382 = vmatprep.mubr.f32.mxu0 %v14774_v38  ;;  %v13165_v53 = vpack.c.bf16 %v4734_v52, %v4733_v48  ;;  %9346 = vmatpush3.bf16.msra.mxu1 %v13167_v1  ;;  %v4705_v48 = vld [vmem:[%s14782_s29 + $0x20] sm:$0xff]  ;;  %v4706_v52 = vld [vmem:[%s14782_s29 + $0x28] sm:$0xff] }
 0xa6a   : > { %9348 = vmatprep.subr.bf16.mxu1 %v13182_v50  ;;  %v13223_v21 = vpack.c.bf16 %v4706_v52, %v4705_v48  ;;  %v4726_v48 = vld [vmem:[%s14782_s29 + $0xc8] sm:$0xff]  ;;  %v4741_v52 = vld [vmem:[%s14782_s29 + $0x140] sm:$0xff] }
 0xa6b   : > { %14784 = vst [vmem:[#allocation133_spill] sm:$0xff] %v13165_v53  ;;  %9376 = vmatprep.subr.bf16.mxu0 %v13165_v53 }
 0xa6c   : > { %4383 = vmatmul.mubr.f32.gmra.mrb[22].mxu0 %v4073_v31  ;;  %v4737_v31 = vld [vmem:[%s14782_s29 + $0x120] sm:$0xff]  ;;  %14791 = vst [vmem:[#allocation140_spill] sm:$0xff] %v13223_v21 }
 0xa6d   : > { %9378 = vmatpush3.bf16.msra.mxu0 %v13165_v53  ;;  %9350 = vmatpush3.bf16.msra.mxu1 %v13195_v27  ;;  %v13221_v57 = vpack.c.bf16 %v4738_v13, %v4737_v31  ;;  %v13251_v31 = vpack.c.bf16 %v4708_v5, %v4707_v35  ;;  %v4725_v13 = vld [vmem:[%s14782_s29 + $0xc0] sm:$0xff]  ;;  %v13277_v35 = vpack.c.bf16 %v4742_v37, %v4741_v52  ;;  %v4743_v52 = vld [vmem:[%s14782_s29 + $0x150] sm:$0xff] }
 0xa6e   : > { %9380 = vmatprep.subr.bf16.mxu0 %v13193_v16  ;;  %9352 = vmatprep.subr.bf16.mxu1 %v13210_v20  ;;  %v13266_v54 = vpack.c.bf16 %v4726_v48, %v4725_v13  ;;  %v13279_v5 = vpack.c.bf16 %v4710_v36, %v4709_v45  ;;  %v4727_v13 = vld [vmem:[%s14782_s29 + $0xd0] sm:$0xff]  ;;  %v4728_v48 = vld [vmem:[%s14782_s29 + $0xd8] sm:$0xff] }
 0xa6f   : > { %14790 = vst [vmem:[#allocation139_spill] sm:$0xff] %v13221_v57  ;;  %14794 = vst [vmem:[#allocation143_spill] sm:$0xff] %v13251_v31  ;;  %v13294_v37 = vpack.c.bf16 %v4728_v48, %v4727_v13  ;;  %v4744_v45 = vld [vmem:[%s14782_s29 + $0x158] sm:$0xff]  ;;  %v4711_v36 = vld [vmem:[%s14782_s29 + $0x50] sm:$0xff] }
 0xa70   : > { %14795 = vst [vmem:[#allocation144_spill] sm:$0xff] %v13266_v54  ;;  %14796 = vst [vmem:[#allocation145_spill] sm:$0xff] %v13277_v35  ;;  %v4729_v13 = vld [vmem:[%s14782_s29 + $0xe0] sm:$0xff]  ;;  %v4730_v48 = vld [vmem:[%s14782_s29 + $0xe8] sm:$0xff] }
 0xa71   : > { %9382 = vmatpush3.bf16.msra.mxu0 %v13193_v16  ;;  %9354 = vmatpush3.bf16.msra.mxu1 %v13223_v21  ;;  %14797 = vst [vmem:[#allocation146_spill] sm:$0xff] %v13279_v5  ;;  %14798 = vst [vmem:[#allocation147_spill] sm:$0xff] %v13294_v37 }
 0xa72   : > { %9384 = vmatprep.subr.bf16.mxu0 %v13221_v57  ;;  %9356 = vmatprep.subr.bf16.mxu1 %v13238_v29  ;;  %v4747_v29 = vld [vmem:[%s14782_s29 + $0x170] sm:$0xff] }
 0xa75   : > { %9386 = vmatpush3.bf16.msra.mxu0 %v13221_v57  ;;  %9358 = vmatpush3.bf16.msra.mxu1 %v13251_v31 }
 0xa76   : > { %9388 = vmatprep.subr.bf16.mxu0 %v13249_v22  ;;  %9360 = vmatprep.subr.bf16.mxu1 %v13266_v54  ;;  %v13305_v54 = vpack.c.bf16 %v4744_v45, %v4743_v52  ;;  %v4713_v52 = vld [vmem:[%s14782_s29 + $0x60] sm:$0xff]  ;;  %v4714_v45 = vld [vmem:[%s14782_s29 + $0x68] sm:$0xff] }
 0xa78   : > { %14799 = vst [vmem:[#allocation148_spill] sm:$0xff] %v13305_v54 }
 0xa79   : > { %9390 = vmatpush3.bf16.msra.mxu0 %v13249_v22  ;;  %9362 = vmatpush3.bf16.msra.mxu1 %v13279_v5  ;;  %v4712_v5 = vld [vmem:[%s14782_s29 + $0x58] sm:$0xff]  ;;  %v13319_v22 = vpack.c.bf16 %v4730_v48, %v4729_v13  ;;  %v13334_v13 = vpack.c.bf16 %v4714_v45, %v4713_v52  ;;  %v4731_v48 = vld [vmem:[%s14782_s29 + $0xf0] sm:$0xff] }
 0xa7a   : > { %9392 = vmatprep.subr.bf16.mxu0 %v13277_v35  ;;  %v13307_v31 = vpack.c.bf16 %v4712_v5, %v4711_v36  ;;  %9364 = vmatprep.subr.bf16.mxu1 %v13294_v37  ;;  %v4746_v5 = vld [vmem:[%s14782_s29 + $0x168] sm:$0xff]  ;;  %v4732_v37 = vld [vmem:[%s14782_s29 + $0xf8] sm:$0xff]  ;;  %v4715_v52 = vld [vmem:[%s14782_s29 + $0x70] sm:$0xff] }
 0xa7b   : > { %14801 = vst [vmem:[#allocation150_spill] sm:$0xff] %v13319_v22  ;;  %14803 = vst [vmem:[#allocation152_spill] sm:$0xff] %v13334_v13  ;;  %v4716_v45 = vld [vmem:[%s14782_s29 + $0x78] sm:$0xff] }
 0xa7c   : > { %14800 = vst [vmem:[#allocation149_spill] sm:$0xff] %v13307_v31 }
 0xa7d   : > { %9394 = vmatpush3.bf16.msra.mxu0 %v13277_v35  ;;  %v4745_v35 = vld [vmem:[%s14782_s29 + $0x160] sm:$0xff]  ;;  %9366 = vmatpush3.bf16.msra.mxu1 %v13307_v31 }
 0xa7e   : > { %9396 = vmatprep.subr.bf16.mxu0 %v13305_v54  ;;  %v13332_v36 = vpack.c.bf16 %v4746_v5, %v4745_v35  ;;  %9368 = vmatprep.subr.bf16.mxu1 %v13319_v22  ;;  %v13347_v35 = vpack.c.bf16 %v4732_v37, %v4731_v48  ;;  %v4748_v5 = vld [vmem:[%s14782_s29 + $0x178] sm:$0xff]  ;;  %v13362_v37 = vpack.c.bf16 %v4716_v45, %v4715_v52  ;;  %v4218_v52 = vld [vmem:[%s14807_s27] sm:$0x7] }
 0xa7f   : > { %v13359_v31 = vpack.c.bf16 %v4748_v5, %v4747_v29  ;;  %v13374_v45 = vrot.slane %v4218_v52, %v11725_v8 }
 0xa80   : > { %14802 = vst [vmem:[#allocation151_spill] sm:$0xff] %v13332_v36  ;;  %14804 = vst [vmem:[#allocation153_spill] sm:$0xff] %v13347_v35 }
 0xa81   : > { %9398 = vmatpush3.bf16.msra.mxu0 %v13305_v54  ;;  %14805 = vst [vmem:[#allocation154_spill] sm:$0xff] %v13359_v31  ;;  %9370 = vmatpush3.bf16.msra.mxu1 %v13334_v13  ;;  %14806 = vst [vmem:[#allocation155_spill] sm:$0xff] %v13362_v37 }
 0xa82   : > { %9400 = vmatprep.subr.bf16.mxu0 %v13332_v36  ;;  %9372 = vmatprep.subr.bf16.mxu1 %v13347_v35  ;;  %14808 = vst [vmem:[#allocation156_spill] sm:$0xff] %v13374_v45  ;;  %v13377_v35 = vrot.slane %v4218_v52, %v11701_v56 }
 0xa84   : > { %14809 = vst [vmem:[#allocation157_spill] sm:$0xff] %v13377_v35 }
 0xa85   : > { %9402 = vmatpush3.bf16.msra.mxu0 %v13332_v36  ;;  %9374 = vmatpush3.bf16.msra.mxu1 %v13362_v37  ;;  %v13380_v37 = vrot.slane %v4218_v52, %v11707_v58 }
 0xa86   : > { %9404 = vmatprep.subr.bf16.mxu0 %v13359_v31 }
 0xa87   : > { %14810 = vst [vmem:[#allocation158_spill] sm:$0xff] %v13380_v37 }
 0xa89   : > { %9406 = vmatpush3.bf16.msra.mxu0 %v13359_v31 }
 0xa8a   : > { %9440 = vmatprep.subr.bf16.mxu0 %v12723_v41 }
 0xb1b   : > { %v7948_v48 = vpop.f32.mrb[50].mxu1 }
 0xb1c   : > { %v7949_v22 = vpop.f32.mrb[51].mxu1 }
 0xb1d   : > { %v7950_v29 = vadd.f32 %v7949_v22, %v7948_v48 }
 0xb23   : > { %v7951_v5 = vpop.f32.mrb[52].mxu1 }
 0xb24   : > { %v7952_v54 = vpop.f32.mrb[53].mxu1 }
 0xb25   : > { %v7953_v13 = vadd.f32 %v7952_v54, %v7951_v5  ;;  %v4456_v5 = vadd.f32 %v7950_v29, %v13374_v45 }
 0xb27   : > { %v4461_v36 = vadd.f32 %v7953_v13, %v13374_v45 }
 0xb3b   : > { %v4378_v31 = vpop.f32.mrb[20].mxu0  ;;  %v8569_v54 = vpop.f32.mrb[54].mxu1 }
 0xb3c   : > { %v13384_v22 = vadd.f32 %v4378_v31, %v13377_v35  ;;  %v4380_v48 = vpop.f32.mrb[21].mxu0  ;;  %v13387_v21 = vadd.f32 %v8569_v54, %v4461_v36  ;;  %v4530_v56 = vpop.f32.mrb[55].mxu1 }
 0xb3d   : > { %v13390_v8 = vadd.f32 %v4380_v48, %v13380_v37  ;;  %v13395_v58 = vadd.f32 %v4530_v56, %v4456_v5 }
 0xb3e   : > { %v13393_v57 = vmul.f32 0.70710677, %v13384_v22  ;;  %v13398_v13 = vmul.f32 0.70710677, %v13387_v21 }
 0xb3f   : > { %v13401_v31 = vmul.f32 0.70710677, %v13390_v8  ;;  %v13405_v36 = vmul.f32 0.70710677, %v13395_v58  ;;  %v4384_v16 = vpop.f32.mrb[22].mxu0 }
 0xb40   : > { %v4551_v52 = vand.u32 2147483647, %v13393_v57  ;;  %v4556_v29 = vand.u32 2147483647, %v13398_v13  ;;  %v4386_v1 = vpop.f32.mrb[23].mxu0  ;;  %v13411_v53 = vadd.f32 %v4384_v16, %v13377_v35  ;;  %vm4671_vm8 = vcmp.ge.f32.partialorder %v13393_v57, 0.0 }
 0xb41   : > { %v4552_v54 = vand.u32 2147483647, %v13401_v31  ;;  %v4553_v45 = vand.u32 2147483647, %v13405_v36  ;;  %v13414_v59 = vadd.f32 %v4386_v1, %v13380_v37  ;;  %vm4676_vm9 = vcmp.ge.f32.partialorder %v13398_v13, 0.0 }
 0xb42   : > { %v4557_v48 = vmul.f32 0.3275911, %v4551_v52  ;;  %v4562_v5 = vmul.f32 0.3275911, %v4556_v29  ;;  %v13417_v61 = vmul.f32 0.70710677, %v13411_v53 }
 0xb43   : > { %v4558_v56 = vmul.f32 0.3275911, %v4552_v54  ;;  %v4559_v27 = vmul.f32 0.3275911, %v4553_v45  ;;  %v4635_v33 = vsub.f32 0.0, %v4551_v52  ;;  %v4636_v37 = vsub.f32 0.0, %v4552_v54 }
 0xb44   : > { %v4563_v20 = vadd.f32 1.0, %v4557_v48  ;;  %v4568_v50 = vadd.f32 1.0, %v4562_v5  ;;  %v13420_v48 = vmul.f32 0.70710677, %v13414_v59  ;;  %v4554_v5 = vand.u32 2147483647, %v13417_v61 }
 0xb45   : > { %v4564_v23 = vadd.f32 1.0, %v4558_v56  ;;  %v4565_v25 = vadd.f32 1.0, %v4559_v27  ;;  %v4641_v1 = vmul.f32 %v4635_v33, %v4551_v52  ;;  %v4637_v24 = vsub.f32 0.0, %v4553_v45 }
 0xb46   : > { %10263 = vrcp.f32 %v4563_v20  ;;  %v4640_v20 = vsub.f32 0.0, %v4556_v29  ;;  %v4560_v16 = vmul.f32 0.3275911, %v4554_v5  ;;  %v4642_v19 = vmul.f32 %v4636_v37, %v4552_v54 }
 0xb47   : > { %10265 = vrcp.f32 %v4568_v50  ;;  %v4555_v50 = vand.u32 2147483647, %v13420_v48  ;;  %v4638_v7 = vsub.f32 0.0, %v4554_v5  ;;  %vm4672_vm10 = vcmp.ge.f32.partialorder %v13401_v31, 0.0 }
 0xb48   : > { %10267 = vrcp.f32 %v4564_v23  ;;  %v4566_v27 = vadd.f32 1.0, %v4560_v16  ;;  %v4646_v23 = vmul.f32 %v4640_v20, %v4556_v29  ;;  %vm4673_vm11 = vcmp.ge.f32.partialorder %v13405_v36, 0.0 }
 0xb49   : > { %10269 = vrcp.f32 %v4565_v25  ;;  %v4561_v56 = vmul.f32 0.3275911, %v4555_v50  ;;  %v4647_v25 = vmul.f32 1.442695, %v4641_v1  ;;  %v4639_v32 = vsub.f32 0.0, %v4555_v50 }
 0xb4a   : > { %10271 = vrcp.f32 %v4566_v27  ;;  %v4657_v17 = vmul.f32 1.442695, %v4646_v23  ;;  %v4644_v23 = vmul.f32 %v4638_v7, %v4554_v5  ;;  %v4541_v31 = vmul.f32 0.5, %v13395_v58 }
 0xb4b   : > { %v4567_v28 = vadd.f32 1.0, %v4561_v56  ;;  %v4643_v56 = vmul.f32 %v4637_v24, %v4553_v45  ;;  %vm4674_vm12 = vcmp.ge.f32.partialorder %v13417_v61, 0.0  ;;  %vm4675_vm13 = vcmp.ge.f32.partialorder %v13420_v48, 0.0 }
 0xb4c   : > { %v4653_v5 = vmul.f32 1.442695, %v4644_v23  ;;  %v13472_v48 = vstv %s7601_s7 }
 0xb4d   : > { %10273 = vrcp.f32 %v4567_v28  ;;  %v4649_v28 = vmul.f32 1.442695, %v4642_v19  ;;  %v4651_v54 = vmul.f32 1.442695, %v4643_v56  ;;  %v4645_v19 = vmul.f32 %v4639_v32, %v4555_v50 }
 0xb4e   : > { %10275 = vpow2.f32 %v4647_v25 }
 0xb4f   : > { %10277 = vpow2.f32 %v4657_v17 }
 0xb50   : > { %v10264_v35 = vpop.eup %10263  ;;  %10279 = vpow2.f32 %v4649_v28  ;;  %v4655_v28 = vmul.f32 1.442695, %v4645_v19 }
 0xb51   : > { %v10266_v47 = vpop.eup %10265  ;;  %v4581_v49 = vmul.f32 1.0614054, %v10264_v35  ;;  %10281 = vpow2.f32 %v4651_v54 }
 0xb52   : > { %v4586_v6 = vmul.f32 1.0614054, %v10266_v47  ;;  %v13424_v51 = vpop.eup %10267  ;;  %10283 = vpow2.f32 %v4653_v5 }
 0xb53   : > { %v4587_v10 = vadd.f32 -1.4531521, %v4581_v49  ;;  %v4582_v16 = vmul.f32 1.0614054, %v13424_v51  ;;  %v13427_v33 = vpop.eup %10269  ;;  %10285 = vpow2.f32 %v4655_v28 }
 0xb54   : > { %v4592_v43 = vadd.f32 -1.4531521, %v4586_v6  ;;  %v4583_v27 = vmul.f32 1.0614054, %v13427_v33  ;;  %v13431_v44 = vpop.eup %10271 }
 0xb55   : > { %v4593_v14 = vmul.f32 %v10264_v35, %v4587_v10  ;;  %v4588_v20 = vadd.f32 -1.4531521, %v4582_v16  ;;  %v4584_v16 = vmul.f32 1.0614054, %v13431_v44 }
 0xb56   : > { %v4598_v52 = vmul.f32 %v10266_v47, %v4592_v43  ;;  %v4589_v6 = vadd.f32 -1.4531521, %v4583_v27 }
 0xb57   : > { %v4599_v29 = vadd.f32 1.4214138, %v4593_v14  ;;  %v4594_v10 = vmul.f32 %v13424_v51, %v4588_v20  ;;  %v13434_v45 = vpop.eup %10273  ;;  %v4590_v20 = vadd.f32 -1.4531521, %v4584_v16 }
 0xb58   : > { %v4604_v49 = vadd.f32 1.4214138, %v4598_v52  ;;  %v4595_v14 = vmul.f32 %v13427_v33, %v4589_v6  ;;  %v4585_v56 = vmul.f32 1.0614054, %v13434_v45 }
 0xb59   : > { %v4605_v1 = vmul.f32 %v10264_v35, %v4599_v29  ;;  %v4600_v24 = vadd.f32 1.4214138, %v4594_v10  ;;  %v4596_v32 = vmul.f32 %v13431_v44, %v4590_v20 }
 0xb5a   : > { %v4610_v37 = vmul.f32 %v10266_v47, %v4604_v49  ;;  %v4601_v29 = vadd.f32 1.4214138, %v4595_v14  ;;  %v4591_v10 = vadd.f32 -1.4531521, %v4585_v56  ;;  %v10276_v14 = vpop.eup %10275 }
 0xb5b   : > { %v4611_v43 = vadd.f32 -0.28449672, %v4605_v1  ;;  %v4606_v52 = vmul.f32 %v13424_v51, %v4600_v24  ;;  %v4602_v54 = vadd.f32 1.4214138, %v4596_v32  ;;  %v10278_v23 = vpop.eup %10277 }
 0xb5c   : > { %v4616_v25 = vadd.f32 -0.28449672, %v4610_v37  ;;  %v4607_v1 = vmul.f32 %v13427_v33, %v4601_v29  ;;  %v4597_v24 = vmul.f32 %v13434_v45, %v4591_v10 }
 0xb5d   : > { %v4617_v17 = vmul.f32 %v10264_v35, %v4611_v43  ;;  %v4612_v49 = vadd.f32 -0.28449672, %v4606_v52  ;;  %v4608_v19 = vmul.f32 %v13431_v44, %v4602_v54 }
 0xb5e   : > { %v4622_v7 = vmul.f32 %v10266_v47, %v4616_v25  ;;  %v4613_v43 = vadd.f32 -0.28449672, %v4607_v1  ;;  %v4603_v29 = vadd.f32 1.4214138, %v4597_v24 }
 0xb5f   : > { %v4623_v27 = vadd.f32 0.2548296, %v4617_v17  ;;  %v4618_v37 = vmul.f32 %v13424_v51, %v4612_v49  ;;  %v10280_v49 = vpop.eup %10279  ;;  %v4614_v5 = vadd.f32 -0.28449672, %v4608_v19 }
 0xb60   : > { %v4628_v6 = vadd.f32 0.2548296, %v4622_v7  ;;  %v4619_v52 = vmul.f32 %v13427_v33, %v4613_v43 }
 0xb61   : > { %v4629_v50 = vmul.f32 %v10264_v35, %v4623_v27  ;;  %v4624_v17 = vadd.f32 0.2548296, %v4618_v37  ;;  %v4609_v27 = vmul.f32 %v13434_v45, %v4603_v29  ;;  %v4620_v28 = vmul.f32 %v13431_v44, %v4614_v5 }
 0xb62   : > { %v4634_v25 = vmul.f32 %v10266_v47, %v4628_v6  ;;  %v4625_v20 = vadd.f32 0.2548296, %v4619_v52 }
 0xb63   : > { %v4659_v16 = vmul.f32 %v10276_v14, %v4629_v50  ;;  %v4630_v7 = vmul.f32 %v13424_v51, %v4624_v17  ;;  %v4615_v32 = vadd.f32 -0.28449672, %v4609_v27  ;;  %v10282_v50 = vpop.eup %10281  ;;  %v4539_v27 = vmul.f32 0.5, %v13384_v22 }
 0xb64   : > { %v4664_v56 = vmul.f32 %v10278_v23, %v4634_v25  ;;  %v4631_v6 = vmul.f32 %v13427_v33, %v4625_v20  ;;  %v4626_v25 = vadd.f32 0.2548296, %v4620_v28  ;;  %v10284_v17 = vpop.eup %10283 }
 0xb65   : > { %v4665_v35 = vsub.f32 1.0, %v4659_v16  ;;  %v4660_v10 = vmul.f32 %v10280_v49, %v4630_v7  ;;  %v4621_v51 = vmul.f32 %v13434_v45, %v4615_v32  ;;  %v10286_v7 = vpop.eup %10285 }
 0xb66   : > { %v4670_v47 = vsub.f32 1.0, %v4664_v56  ;;  %v4661_v24 = vmul.f32 %v10282_v50, %v4631_v6  ;;  %v4632_v52 = vmul.f32 %v13431_v44, %v4626_v25 }
 0xb67   : > { %v4677_v1 = vsub.f32 0.0, %v4665_v35  ;;  %v4666_v43 = vsub.f32 1.0, %v4660_v10  ;;  %v4627_v16 = vadd.f32 0.2548296, %v4621_v51 }
 0xb68   : > { %v4682_v37 = vsub.f32 0.0, %v4670_v47  ;;  %v4667_v23 = vsub.f32 1.0, %v4661_v24  ;;  %v4662_v20 = vmul.f32 %v10284_v17, %v4632_v52  ;;  %v10409_v52 = vld [vmem:[%s11308_s5] sm:$0xff] }
 0xb69   : > { %v4683_v14 = vsel %vm4671_vm8, %v4665_v35, %v4677_v1  ;;  %v4678_v54 = vsub.f32 0.0, %v4666_v43  ;;  %v4633_v19 = vmul.f32 %v13434_v45, %v4627_v16  ;;  %v4540_v35 = vmul.f32 0.5, %v13390_v8 }
 0xb6a   : > { %v4688_v33 = vsel %vm4676_vm9, %v4670_v47, %v4682_v37  ;;  %v4689_v29 = vadd.f32 1.0, %v4683_v14  ;;  %v4679_v57 = vsub.f32 0.0, %v4667_v23  ;;  %v4668_v10 = vsub.f32 1.0, %v4662_v20 }
 0xb6b   : > { %v4684_v56 = vsel %vm4672_vm10, %v4666_v43, %v4678_v54  ;;  %v4694_v49 = vadd.f32 1.0, %v4688_v33  ;;  %v4663_v5 = vmul.f32 %v10286_v7, %v4633_v19  ;;  %v4544_v45 = vmul.f32 0.5, %v13387_v21 }
 0xb6c   : > { %v4690_v13 = vadd.f32 1.0, %v4684_v56  ;;  %v4685_v47 = vsel %vm4673_vm11, %v4667_v23, %v4679_v57  ;;  %v4695_v6 = vmul.f32 %v4689_v29, %v4539_v27  ;;  %v4680_v50 = vsub.f32 0.0, %v4668_v10 }
 0xb6d   : > { %v4691_v1 = vadd.f32 1.0, %v4685_v47  ;;  %v4669_v32 = vsub.f32 1.0, %v4663_v5  ;;  %v4700_v36 = vmul.f32 %v4694_v49, %v4544_v45  ;;  %v4543_v43 = vmul.f32 0.5, %v13414_v59  ;;  %v14811_v47 = vld [vmem:[#allocation45_spill] sm:$0xff] }
 0xb6e   : > { %v4696_v44 = vmul.f32 %v4690_v13, %v4540_v35  ;;  %v4686_v37 = vsel %vm4674_vm12, %v4668_v10, %v4680_v50  ;;  %v4542_v21 = vmul.f32 0.5, %v13411_v53  ;;  %vm4904_vm15 = vcmp.gt.f32.partialorder %v10409_v52, 0.0  ;;  %v10410_v13 = vld [vmem:[%s11308_s5 + $0x8] sm:$0xff]  ;;  %s15042_s5 = sld [smem:[#allocation37_spill]] }
 0xb6f   : > { %v4697_v8 = vmul.f32 %v4691_v1, %v4541_v31  ;;  %v4681_v22 = vsub.f32 0.0, %v4669_v32  ;;  %v4692_v28 = vadd.f32 1.0, %v4686_v37  ;;  %vm4905_vm4 = vcmp.gt.f32.partialorder %v10410_v13, 0.0  ;;  %v14815_v13 = vld [vmem:[#allocation49_spill] sm:$0xff] }
 0xb70   : > { %4814 = vmatprep.mubr.f32.mxu1 %v4696_v44  ;;  %v14812_v44 = vld [vmem:[#allocation46_spill] sm:$0xff] }
 0xb71   : > { %4815 = vmatmul.mubr.f32.vlgmr.msra.gmra.mrb[56].mxu1 %v4695_v6  ;;  %8602 = vmatprep.mubr.f32.mxu0 %v4697_v8  ;;  %v4687_v58 = vsel %vm4675_vm13, %v4669_v32, %v4681_v22  ;;  %v4698_v61 = vmul.f32 %v4692_v28, %v4542_v21 }
 0xb72   : > { %8603 = vmatmul.mubr.f32.vlgmr.msra.gmra.mrb[24].mxu0 %v4700_v36  ;;  %v4693_v24 = vadd.f32 1.0, %v4687_v58  ;;  %v14813_v58 = vld [vmem:[#allocation47_spill] sm:$0xff] }
 0xb73   : > { %9442 = vmatpush3.bf16.msra.mxu0 %v12723_v41 }
 0xb74   : > { %9444 = vmatprep.subr.bf16.mxu0 %v12750_v15  ;;  %v4699_v51 = vmul.f32 %v4693_v24, %v4543_v43  ;;  %p15044_p6 = scmp.ne.s32.totalorder %s15042_s5, 0 }
 0xb76   : > { %4819 = vmatprep.mubr.f32.mxu1 %v4699_v51  ;;  %p10686_p0 = pnand %p10685_p11, %p15044_p6 }
 0xb77   : > { %9446 = vmatpush3.bf16.msra.mxu0 %v12750_v15  ;;  %4820 = vmatmul.mubr.f32.gmra.mrb[58].mxu1 %v4698_v61 }
 0xb78   : > { %9448 = vmatprep.subr.bf16.mxu0 %v12768_v18  ;;  %8609 = vmatprep.mubr.msk.f32.mxu1 %vm3444_vm5, %v12587_v42  ;;  %p10687_p12 = pneg %p10686_p0 }
 0xb7a   : > { %p10694_p4 = pnand %p10693_p8, %p10687_p12 }
 0xb7b   : > { %9450 = vmatpush3.bf16.msra.mxu0 %v12768_v18 }
 0xb7c   : > { %9548 = vmatprep.subr.bf16.mxu0 %v12873_v9 }
 0xc44   : > { %v8004_v59 = vpop.f32.mrb[56].mxu1 }
 0xc45   : > { %v8005_v53 = vpop.f32.mrb[57].mxu1  ;;  %v8604_v14 = vpop.f32.mrb[24].mxu0 }
 0xc46   : > { %v8006_v25 = vadd.f32 %v8005_v53, %v8004_v59  ;;  %v4891_v54 = vpop.f32.mrb[25].mxu0  ;;  %v14814_v59 = vld [vmem:[#allocation48_spill] sm:$0xff] }
 0xc48   : > { %v4817_v23 = vadd.f32 %v8006_v25, %v13472_v48 }
 0xc4a   : > { %v4892_v16 = vadd.f32 %v4891_v54, %v4817_v23  ;;  %v8007_v33 = vpop.f32.mrb[58].mxu1 }
 0xc4b   : > { %v8008_v29 = vpop.f32.mrb[59].mxu1 }
 0xc4c   : > { %v13476_v17 = vadd.f32 %v4892_v16, %v12813_v4  ;;  %v8009_v56 = vadd.f32 %v8008_v29, %v8007_v33 }
 0xc4e   : > { %vm4902_vm1 = vcmp.ne.f32.partialorder %v12242_v63, %v13476_v17  ;;  %v4822_v57 = vadd.f32 %v8009_v56, %v13472_v48 }
 0xc4f   : > { %vm4906_vm2 = vmor %vm4902_vm1, %vm4904_vm15 }
 0xc50   : > { %v13483_v19 = vsel %vm4906_vm2, 1.0, %v14774_v38  ;;  %v4897_v35 = vadd.f32 %v8604_v14, %v4822_v57 }
 0xc51   : > { %v5017_v7 = vsel %vm1113_vm0, %v13483_v19, 0.0 }
 0xc52   : > { %5018 = vadd.xlane.f32.xlu0 %v5017_v7  ;;  %v13488_v4 = vadd.f32 %v4897_v35, %v12817_v26 }
 0xc54   : > { %v9407_v20 = vpack.c.bf16 %v13488_v4, %v13476_v17  ;;  %vm4903_vm6 = vcmp.ne.f32.partialorder %v12263_v34, %v13488_v4 }
 0xc55   : > { %vm4907_vm7 = vmor %vm4903_vm6, %vm4905_vm4 }
 0xc56   : > { %9408 = vmatprep.subr.bf16.mxu1 %v9407_v20  ;;  %v13496_v27 = vsel %vm4907_vm7, 1.0, %v14774_v38 }
 0xc57   : > { %9410 = vmatpush3.bf16.msra.mxu1 %v9407_v20  ;;  %v5020_v49 = vsel %vm1113_vm0, %v13496_v27, 0.0 }
 0xc58   : > { %5021 = vadd.xlane.f32.xlu1 %v5020_v49  ;;  %v14816_v49 = vld [vmem:[#allocation50_spill] sm:$0xff] }
 0xc5a   : > { %8610 = vmatmul.mubr.msk.f32.vlgmr.msra.gmra.mrb[60].mxu1 %vm3444_vm5, %v12598_v46 }
 0xc5b   : > { %8612 = vmatprep.mubr.msk.f32.mxu1 %vm3444_vm5, %v12593_v62 }
 0xc5e   : > { %8613 = vmatmul.mubr.msk.f32.gmra.mrb[62].mxu1 %vm3444_vm5, %v12603_v3 }
 0xc5f   : > { %8615 = vmatprep.mubr.msk.f32.mxu1 %vm3444_vm5, %v12610_v12 }
 0xc62   : > { %8616 = vmatmul.mubr.msk.f32.gmra.mrb[64].mxu1 %vm3444_vm5, %v12615_v11 }
 0xc63   : > { %8618 = vmatprep.mubr.msk.f32.mxu1 %vm3444_vm5, %v12622_v0 }
 0xc66   : > { %8619 = vmatmul.mubr.msk.f32.gmra.mrb[66].mxu1 %vm3444_vm5, %v12627_v40 }
 0xcdf   : > { %v5019_v26 = vpop.xlane.xlu0 %5018 }
 0xce0   : > { %v5023_v5 = vmul.f32 %v14811_v47, %v5019_v26  ;;  %v14817_v26 = vld [vmem:[#allocation51_spill] sm:$0xff] }
 0xce2   : > { %v5025_v10 = vsel %vm3343_vm3, %v5023_v5, 0.0  ;;  %v14818_v5 = vld [vmem:[#allocation52_spill] sm:$0xff] }
 0xce5   : > { %v5022_v31 = vpop.xlane.xlu1 %5021 }
 0xce6   : > { %v5024_v1 = vmul.f32 %v14812_v44, %v5022_v31  ;;  %v14819_v31 = vld [vmem:[#allocation53_spill] sm:$0xff] }
 0xce8   : > { %v5026_v6 = vsel %vm3343_vm3, %v5024_v1, 0.0  ;;  %v14820_v1 = vld [vmem:[#allocation54_spill] sm:$0xff] }
 0xce9   : > { %v5027_v45 = vadd.f32 %v5026_v6, %v5025_v10  ;;  %v14821_v10 = vld [vmem:[#allocation55_spill] sm:$0xff]  ;;  %v14822_v6 = vld [vmem:[#allocation56_spill] sm:$0xff] }
 0xceb   : > { %v5028_v32 = vrot.slane %v5027_v45, 4 }
 0xced   : > { %v5029_v8 = vadd.f32 %v5028_v32, %v5027_v45  ;;  %v14823_v32 = vld [vmem:[#allocation58_spill] sm:$0xff] }
 0xcef   : > { %v5030_v50 = vrot.slane %v5029_v8, 2 }
 0xcf1   : > { %v5031_v36 = vadd.f32 %v5030_v50, %v5029_v8  ;;  %v14824_v50 = vld [vmem:[#allocation60_spill] sm:$0xff] }
 0xcf3   : > { %v5032_v22 = vrot.slane %v5031_v36, 1 }
 0xcf5   : > { %v5033_v37 = vadd.f32 %v5032_v22, %v5031_v36  ;;  %v5127_v36 = vmul.f32 %v13488_v4, %v14824_v50 }
 0xcf7   : > { %v5034_v28 = vmul.f32 %v5033_v37, %v14813_v58 }
 0xcf9   : > { %v5035_v43 = vsub.f32 0.0, %v5034_v28  ;;  %v5126_v28 = vmul.f32 %v13476_v17, %v14824_v50 }
 0xcfb   : > { %v5036_v24 = vmul.f32 1.442695, %v5035_v43 }
 0xcfd   : > { %10287 = vpow2.f32 %v5036_v24 }
 0xd07   : > { %v10288_v21 = vpop.eup %10287 }
 0xd08   : > { %v5038_v51 = vadd.f32 1.0, %v10288_v21  ;;  %v14825_v21 = vld [vmem:[#allocation61_spill] sm:$0xff] }
 0xd0a   : > { %10289 = vrcp.f32 %v5038_v51 }
 0xd14   : > { %v10290_v61 = vpop.eup %10289 }
 0xd15   : > { %v5041_v53 = vmul.f32 %v10290_v61, %v14814_v59  ;;  %v5042_v20 = vmul.f32 %v10290_v61, %v14815_v13  ;;  %v14826_v61 = vld [vmem:[#allocation62_spill] sm:$0xff] }
 0xd17   : > { %8637 = vmatprep.mubr.msk.f32.mxu1 %vm3343_vm3, %v5041_v53 }
 0xd2d   : > { %v8611_v14 = vpop.f32.mrb[60].mxu1 }
 0xd2e   : > { %v4978_v25 = vpop.f32.mrb[61].mxu1 }
 0xd2f   : > { %v9411_v54 = vpack.c.bf16 %v8611_v14, %v4978_v25  ;;  %v14827_v14 = vld [vmem:[#allocation63_spill] sm:$0xff] }
 0xd31   : > { %v8614_v23 = vpop.f32.mrb[62].mxu1  ;;  %9412 = vmatprep.subr.bf16.mxu1 %v9411_v54 }
 0xd32   : > { %v4988_v16 = vpop.f32.mrb[63].mxu1  ;;  %9414 = vmatpush3.bf16.msra.mxu1 %v9411_v54 }
 0xd33   : > { %v9415_v33 = vpack.c.bf16 %v8614_v23, %v4988_v16 }
 0xd35   : > { %v8617_v52 = vpop.f32.mrb[64].mxu1  ;;  %9416 = vmatprep.subr.bf16.mxu1 %v9415_v33 }
 0xd36   : > { %v4998_v29 = vpop.f32.mrb[65].mxu1  ;;  %9418 = vmatpush3.bf16.msra.mxu1 %v9415_v33 }
 0xd37   : > { %v9419_v56 = vpack.c.bf16 %v8617_v52, %v4998_v29 }
 0xd39   : > { %v8620_v57 = vpop.f32.mrb[66].mxu1  ;;  %9420 = vmatprep.subr.bf16.mxu1 %v9419_v56 }
 0xd3a   : > { %v5008_v7 = vpop.f32.mrb[67].mxu1  ;;  %9422 = vmatpush3.bf16.msra.mxu1 %v9419_v56 }
 0xd3b   : > { %v9423_v35 = vpack.c.bf16 %v8620_v57, %v5008_v7 }
 0xd3d   : > { %9424 = vmatprep.subr.bf16.mxu1 %v9423_v35 }
 0xd3e   : > { %9426 = vmatpush3.bf16.msra.mxu1 %v9423_v35 }
 0xd3f   : > { %9428 = vmatprep.subr.bf16.mxu1 %v14816_v49 }
 0xd41   : > { %8638 = vmatmul.mubr.msk.f32.vlgmr.msra.gmra.mrb[68].mxu1 %vm3343_vm3, %v5042_v20 }
 0xd42   : > { %9430 = vmatpush1.bf16.msra.mxu1 %v14817_v26  ;;  %5226 = vmatprep.mubr.f32.mxu1 %v14774_v38 }
 0xd43   : > { %9432 = vmatprep.subr.bf16.mxu1 %v14818_v5 }
 0xd46   : > { %9434 = vmatpush1.bf16.msra.mxu1 %v14819_v31 }
 0xd47   : > { %9436 = vmatprep.subr.bf16.mxu1 %v14820_v1 }
 0xd4a   : > { %9438 = vmatpush1.bf16.msra.mxu1 %v14821_v10 }
 0xd4b   : > { %9452 = vmatprep.subr.bf16.mxu1 %v14822_v6 }
 0xe14   : > { %v8639_v45 = vpop.f32.mrb[68].mxu1 }
 0xe15   : > { %v5125_v8 = vmul.f32 %v8639_v45, %v14823_v32  ;;  %v5115_v22 = vpop.f32.mrb[69].mxu1 }
 0xe16   : > { %v5124_v37 = vmul.f32 %v5115_v22, %v14823_v32 }
 0xe17   : > { %v5129_v43 = vadd.f32 %v5127_v36, %v5125_v8  ;;  %v14828_v36 = vld [vmem:[#allocation57_spill] sm:$0xff] }
 0xe18   : > { %v5128_v24 = vadd.f32 %v5126_v28, %v5124_v37 }
 0xe19   : > { %v5131_v51 = vadd.f32 %v5129_v43, %v14825_v21  ;;  %v14829_v43 = vld [vmem:[#allocation59_spill] sm:$0xff] }
 0xe1a   : > { %v5130_v53 = vadd.f32 %v5128_v24, %v14826_v61 }
 0xe1b   : > { %v5133_v25 = vadd.f32 %v5131_v51, %v14827_v14 }
 0xe1c   : > { %v5132_v54 = vadd.f32 %v5130_v53, %v14827_v14 }
 0xe1d   : > { %v5135_v23 = vsub.f32 0.0, %v5133_v25 }
 0xe1e   : > { %v5134_v16 = vsub.f32 0.0, %v5132_v54 }
 0xe1f   : > { %v5138_v33 = vmul.f32 1.442695, %v5135_v23 }
 0xe20   : > { %v5136_v52 = vmul.f32 1.442695, %v5134_v16 }
 0xe21   : > { %10291 = vpow2.f32 %v5138_v33  ;;  %v14834_v33 = vld [vmem:[#allocation66_spill] sm:$0xff] }
 0xe22   : > { %10293 = vpow2.f32 %v5136_v52  ;;  %v14835_v52 = vld [vmem:[#allocation85_spill] sm:$0xff] }
 0xe2b   : > { %v10292_v29 = vpop.eup %10291 }
 0xe2c   : > { %v10294_v56 = vpop.eup %10293  ;;  %v5141_v57 = vadd.f32 1.0, %v10292_v29  ;;  %v14836_v29 = vld [vmem:[#allocation67_spill] sm:$0xff] }
 0xe2d   : > { %v5140_v7 = vadd.f32 1.0, %v10294_v56  ;;  %v14837_v56 = vld [vmem:[#allocation87_spill] sm:$0xff] }
 0xe2e   : > { %10295 = vrcp.f32 %v5141_v57  ;;  %v14838_v57 = vld [vmem:[#allocation68_spill] sm:$0xff] }
 0xe2f   : > { %10297 = vrcp.f32 %v5140_v7  ;;  %v14839_v7 = vld [vmem:[#allocation89_spill] sm:$0xff] }
 0xe38   : > { %v10296_v35 = vpop.eup %10295 }
 0xe39   : > { %v10298_v20 = vpop.eup %10297  ;;  %v5147_v8 = vsub.f32 1.0, %v10296_v35  ;;  %v5151_v37 = vmul.f32 %v10296_v35, %v14828_v36  ;;  %v14840_v35 = vld [vmem:[#allocation69_spill] sm:$0xff] }
 0xe3a   : > { %v5146_v28 = vsub.f32 1.0, %v10298_v20  ;;  %v5150_v24 = vmul.f32 %v10298_v20, %v14829_v43  ;;  %v14841_v20 = vld [vmem:[#allocation91_spill] sm:$0xff] }
 0xe3b   : > { %v5149_v51 = vmul.f32 %v5147_v8, %v13488_v4  ;;  %v5153_v53 = vmul.f32 %v8639_v45, %v5151_v37  ;;  %v14830_v4 = vld [vmem:[#allocation64_spill] sm:$0xff]  ;;  %v14831_v45 = vld [vmem:[#allocation81_spill] sm:$0xff]  ;;  %v14842_v8 = vld [vmem:[#allocation70_spill] sm:$0xff] }
 0xe3c   : > { %v5148_v25 = vmul.f32 %v5146_v28, %v13476_v17  ;;  %v5152_v54 = vmul.f32 %v5150_v24, %v5115_v22  ;;  %v14832_v17 = vld [vmem:[#allocation65_spill] sm:$0xff]  ;;  %v14833_v22 = vld [vmem:[#allocation83_spill] sm:$0xff] }
 0xe3d   : > { %v13547_v16 = vadd.f32 %v5153_v53, %v5149_v51  ;;  %v14843_v37 = vld [vmem:[#allocation93_spill] sm:$0xff]  ;;  %v14844_v28 = vld [vmem:[#allocation71_spill] sm:$0xff]  ;;  %v14846_v51 = vld [vmem:[#allocation72_spill] sm:$0xff] }
 0xe3e   : > { %v13545_v23 = vadd.f32 %v5152_v54, %v5148_v25  ;;  %v14845_v24 = vld [vmem:[#allocation95_spill] sm:$0xff]  ;;  %v14847_v53 = vld [vmem:[#allocation97_spill] sm:$0xff] }
 0xe3f   : > { %v14848_v25 = vld [vmem:[#allocation73_spill] sm:$0xff]  ;;  %v14849_v54 = vld [vmem:[#allocation99_spill] sm:$0xff] }
 0xe40   : > { %7685 = vmatmul.mubr.msk.f32.vlgmr.msra.gmra.mrb[70].mxu1 %vm1113_vm0, %v13545_v23  ;;  %8652 = vmatprep.mubr.msk.f32.mxu0 %vm1113_vm0, %v13545_v23 }
 0xe41   : > { %8653 = vmatmul.mubr.msk.f32.vlgmr.msra.gmra.mrb[26].mxu0 %vm1113_vm0, %v13547_v16  ;;  %5232 = vmatprep.mubr.f32.mxu1 %v14774_v38 }
 0xe42   : > { %9454 = vmatpush1.bf16.msra.mxu1 %v14830_v4  ;;  %9550 = vmatpush3.bf16.msra.mxu0 %v14831_v45 }
 0xe43   : > { %9456 = vmatprep.subr.bf16.mxu1 %v14832_v17  ;;  %9552 = vmatprep.subr.bf16.mxu0 %v14833_v22 }
 0xe44   : > { %7686 = vmatmul.mubr.msk.f32.gmra.mrb[72].mxu1 %vm1113_vm0, %v13547_v16 }
 0xe46   : > { %9458 = vmatpush1.bf16.msra.mxu1 %v14834_v33  ;;  %9554 = vmatpush3.bf16.msra.mxu0 %v14835_v52 }
 0xe47   : > { %9460 = vmatprep.subr.bf16.mxu1 %v14836_v29  ;;  %9556 = vmatprep.subr.bf16.mxu0 %v14837_v56  ;;  %v14878_v56 = vld [vmem:[#allocation112_spill] sm:$0xff] }
 0xe4a   : > { %9462 = vmatpush1.bf16.msra.mxu1 %v14838_v57  ;;  %9558 = vmatpush3.bf16.msra.mxu0 %v14839_v7  ;;  %v14850_v7 = vld [vmem:[#allocation74_spill] sm:$0xff] }
 0xe4b   : > { %9464 = vmatprep.subr.bf16.mxu1 %v14840_v35  ;;  %9560 = vmatprep.subr.bf16.mxu0 %v14841_v20  ;;  %v14851_v35 = vld [vmem:[#allocation101_spill] sm:$0xff]  ;;  %v14852_v20 = vld [vmem:[#allocation75_spill] sm:$0xff] }
 0xe4e   : > { %9466 = vmatpush1.bf16.msra.mxu1 %v14842_v8  ;;  %9562 = vmatpush3.bf16.msra.mxu0 %v14843_v37  ;;  %v14853_v8 = vld [vmem:[#allocation103_spill] sm:$0xff]  ;;  %v14854_v37 = vld [vmem:[#allocation76_spill] sm:$0xff] }
 0xe4f   : > { %9468 = vmatprep.subr.bf16.mxu1 %v14844_v28  ;;  %9564 = vmatprep.subr.bf16.mxu0 %v14845_v24  ;;  %v14855_v28 = vld [vmem:[#allocation105_spill] sm:$0xff] }
 0xe50   : > { %v14856_v24 = vld [vmem:[#allocation77_spill] sm:$0xff] }
 0xe52   : > { %9470 = vmatpush1.bf16.msra.mxu1 %v14846_v51  ;;  %9566 = vmatpush3.bf16.msra.mxu0 %v14847_v53  ;;  %v14857_v51 = vld [vmem:[#allocation107_spill] sm:$0xff]  ;;  %v14858_v53 = vld [vmem:[#allocation78_spill] sm:$0xff] }
 0xe53   : > { %9472 = vmatprep.subr.bf16.mxu1 %v14848_v25  ;;  %9568 = vmatprep.subr.bf16.mxu0 %v14849_v54  ;;  %v14859_v25 = vld [vmem:[#allocation109_spill] sm:$0xff]  ;;  %v14860_v54 = vld [vmem:[#allocation79_spill] sm:$0xff] }
 0xe56   : > { %9474 = vmatpush1.bf16.msra.mxu1 %v14850_v7  ;;  %9570 = vmatpush3.bf16.msra.mxu0 %v14851_v35  ;;  %v14861_v35 = vld [vmem:[#allocation80_spill] sm:$0xff] }
 0xe57   : > { %9476 = vmatprep.subr.bf16.mxu1 %v14852_v20  ;;  %9572 = vmatprep.subr.bf16.mxu0 %v14853_v8  ;;  %v14862_v20 = vld [vmem:[#allocation82_spill] sm:$0xff]  ;;  %v14863_v8 = vld [vmem:[#allocation84_spill] sm:$0xff] }
 0xe58   : > { %v14871_v7 = vld [vmem:[#allocation100_spill] sm:$0xff] }
 0xe5a   : > { %9478 = vmatpush1.bf16.msra.mxu1 %v14854_v37  ;;  %9574 = vmatpush3.bf16.msra.mxu0 %v14855_v28  ;;  %v14864_v37 = vld [vmem:[#allocation86_spill] sm:$0xff]  ;;  %v14865_v28 = vld [vmem:[#allocation88_spill] sm:$0xff] }
 0xe5b   : > { %9480 = vmatprep.subr.bf16.mxu1 %v14856_v24  ;;  %9576 = vmatprep.subr.bf16.mxu0 %v14857_v51  ;;  %v14866_v24 = vld [vmem:[#allocation90_spill] sm:$0xff]  ;;  %v14867_v51 = vld [vmem:[#allocation92_spill] sm:$0xff] }
 0xe5e   : > { %9482 = vmatpush1.bf16.msra.mxu1 %v14858_v53  ;;  %9578 = vmatpush3.bf16.msra.mxu0 %v14859_v25  ;;  %v14868_v53 = vld [vmem:[#allocation94_spill] sm:$0xff]  ;;  %v14869_v25 = vld [vmem:[#allocation96_spill] sm:$0xff] }
 0xe5f   : > { %9484 = vmatprep.subr.bf16.mxu1 %v14860_v54  ;;  %9580 = vmatprep.subr.bf16.mxu0 %v12967_v60  ;;  %v14870_v54 = vld [vmem:[#allocation98_spill] sm:$0xff] }
 0xe62   : > { %9486 = vmatpush1.bf16.msra.mxu1 %v14861_v35  ;;  %v14872_v35 = vld [vmem:[#allocation102_spill] sm:$0xff] }
 0xe63   : > { %9488 = vmatprep.subr.bf16.mxu1 %v14862_v20  ;;  %v14873_v20 = vld [vmem:[#allocation104_spill] sm:$0xff] }
 0xe66   : > { %9490 = vmatpush1.bf16.msra.mxu1 %v14863_v8  ;;  %v14874_v8 = vld [vmem:[#allocation106_spill] sm:$0xff] }
 0xe67   : > { %9492 = vmatprep.subr.bf16.mxu1 %v14864_v37  ;;  %v14875_v37 = vld [vmem:[#allocation108_spill] sm:$0xff] }
 0xe6a   : > { %9494 = vmatpush1.bf16.msra.mxu1 %v14865_v28  ;;  %v14876_v28 = vld [vmem:[#allocation110_spill] sm:$0xff] }
 0xe6b   : > { %9496 = vmatprep.subr.bf16.mxu1 %v14866_v24 }
 0xe6e   : > { %9498 = vmatpush1.bf16.msra.mxu1 %v14867_v51  ;;  %v14877_v51 = vld [vmem:[#allocation111_spill] sm:$0xff] }
 0xe6f   : > { %9500 = vmatprep.subr.bf16.mxu1 %v14868_v53 }
 0xe72   : > { %9502 = vmatpush1.bf16.msra.mxu1 %v14869_v25 }
 0xe73   : > { %9504 = vmatprep.subr.bf16.mxu1 %v14870_v54 }
 0xe76   : > { %9506 = vmatpush1.bf16.msra.mxu1 %v14871_v7  ;;  %v14879_v7 = vld [vmem:[#allocation113_spill] sm:$0xff] }
 0xe77   : > { %9508 = vmatprep.subr.bf16.mxu1 %v14872_v35 }
 0xe7a   : > { %9510 = vmatpush1.bf16.msra.mxu1 %v14873_v20 }
 0xe7b   : > { %9512 = vmatprep.subr.bf16.mxu1 %v14874_v8 }
 0xe7e   : > { %9514 = vmatpush1.bf16.msra.mxu1 %v14875_v37 }
 0xe7f   : > { %9516 = vmatprep.subr.bf16.mxu1 %v14876_v28 }
 0xf13   : > { %v5228_v24 = vpop.f32.mrb[70].mxu1 }
 0xf14   : > { %v13607_v57 = vadd.f32 %v5228_v24, %v14877_v51  ;;  %v5230_v53 = vpop.f32.mrb[71].mxu1  ;;  %v8654_v25 = vpop.f32.mrb[26].mxu0 }
 0xf15   : > { %v13610_v54 = vadd.f32 %v5230_v53, %v14878_v56  ;;  %v13613_v29 = vadd.f32 %v8654_v25, %v14879_v7  ;;  %v5305_v35 = vpop.f32.mrb[27].mxu0 }
 0xf16   : > { %v13616_v20 = vmul.f32 0.70710677, %v13607_v57  ;;  %v13619_v37 = vadd.f32 %v5305_v35, %v14879_v7 }
 0xf17   : > { %v13622_v28 = vmul.f32 0.70710677, %v13610_v54  ;;  %v13625_v24 = vmul.f32 0.70710677, %v13613_v29  ;;  %v5234_v4 = vpop.f32.mrb[72].mxu1 }
 0xf18   : > { %v5326_v8 = vand.u32 2147483647, %v13616_v20  ;;  %v13629_v53 = vmul.f32 0.70710677, %v13619_v37  ;;  %v5236_v36 = vpop.f32.mrb[73].mxu1  ;;  %v13638_v61 = vadd.f32 %v5234_v4, %v14877_v51  ;;  %vm5446_vm8 = vcmp.ge.f32.partialorder %v13616_v20, 0.0 }
 0xf19   : > { %v5327_v25 = vand.u32 2147483647, %v13622_v28  ;;  %v13633_v52 = vand.u32 2147483647, %v13625_v24  ;;  %v13641_v50 = vadd.f32 %v5236_v36, %v14878_v56  ;;  %vm5447_vm9 = vcmp.ge.f32.partialorder %v13622_v28, 0.0 }
 0xf1a   : > { %v5332_v33 = vmul.f32 0.3275911, %v5326_v8  ;;  %v5328_v35 = vand.u32 2147483647, %v13629_v53  ;;  %v13644_v32 = vmul.f32 0.70710677, %v13638_v61 }
 0xf1b   : > { %v5333_v7 = vmul.f32 0.3275911, %v5327_v25  ;;  %v5337_v22 = vmul.f32 0.3275911, %v13633_v52  ;;  %v13647_v6 = vmul.f32 0.70710677, %v13641_v50 }
 0xf1c   : > { %v5338_v17 = vadd.f32 1.0, %v5332_v33  ;;  %v5334_v45 = vmul.f32 0.3275911, %v5328_v35  ;;  %v5329_v33 = vand.u32 2147483647, %v13644_v32  ;;  %v5412_v5 = vsub.f32 0.0, %v5328_v35 }
 0xf1d   : > { %v5339_v43 = vadd.f32 1.0, %v5333_v7  ;;  %v5343_v14 = vadd.f32 1.0, %v5337_v22  ;;  %v5410_v7 = vsub.f32 0.0, %v5326_v8  ;;  %v5314_v28 = vmul.f32 0.5, %v13607_v57 }
 0xf1e   : > { %10299 = vrcp.f32 %v5338_v17  ;;  %v5340_v21 = vadd.f32 1.0, %v5334_v45  ;;  %v5411_v17 = vsub.f32 0.0, %v5327_v25  ;;  %v5335_v4 = vmul.f32 0.3275911, %v5329_v33 }
 0xf1f   : > { %10301 = vrcp.f32 %v5339_v43  ;;  %v5330_v43 = vand.u32 2147483647, %v13647_v6  ;;  %v5416_v36 = vmul.f32 %v5410_v7, %v5326_v8  ;;  %v5418_v47 = vmul.f32 %v5412_v5, %v5328_v35 }
 0xf20   : > { %10303 = vrcp.f32 %v5343_v14  ;;  %v5341_v45 = vadd.f32 1.0, %v5335_v4  ;;  %v5417_v31 = vmul.f32 %v5411_v17, %v5327_v25  ;;  %v5413_v8 = vsub.f32 0.0, %v5329_v33 }
 0xf21   : > { %10305 = vrcp.f32 %v5340_v21  ;;  %v5336_v22 = vmul.f32 0.3275911, %v5330_v43  ;;  %v5422_v49 = vmul.f32 1.442695, %v5416_v36  ;;  %v5414_v17 = vsub.f32 0.0, %v5330_v43 }
 0xf22   : > { %10307 = vrcp.f32 %v5341_v45  ;;  %v5424_v58 = vmul.f32 1.442695, %v5417_v31  ;;  %v5426_v45 = vmul.f32 1.442695, %v5418_v47  ;;  %v5419_v31 = vmul.f32 %v5413_v8, %v5329_v33 }
 0xf23   : > { %v5342_v56 = vadd.f32 1.0, %v5336_v22  ;;  %vm5448_vm10 = vcmp.ge.f32.partialorder %v13629_v53, 0.0  ;;  %vm5449_vm11 = vcmp.ge.f32.partialorder %v13644_v32, 0.0  ;;  %vm5450_vm12 = vcmp.ge.f32.partialorder %v13647_v6, 0.0 }
 0xf24   : > { %v5318_v53 = vmul.f32 0.5, %v13641_v50  ;;  %v5317_v32 = vmul.f32 0.5, %v13638_v61  ;;  %v5316_v6 = vmul.f32 0.5, %v13619_v37  ;;  %v14884_v61 = vld [vmem:[#allocation118_spill] sm:$0xff]  ;;  %v14886_v37 = vld [vmem:[#allocation120_spill] sm:$0xff]  ;;  %vm5451_vm13 = vcmp.ge.f32.partialorder %v13625_v24, 0.0 }
 0xf25   : > { %10309 = vrcp.f32 %v5342_v56 }
 0xf26   : > { %10311 = vpow2.f32 %v5422_v49 }
 0xf27   : > { %10313 = vpow2.f32 %v5424_v58 }
 0xf28   : > { %v10300_v51 = vpop.eup %10299  ;;  %10315 = vpow2.f32 %v5426_v45 }
 0xf29   : > { %v10302_v10 = vpop.eup %10301  ;;  %v5356_v1 = vmul.f32 1.0614054, %v10300_v51 }
 0xf2a   : > { %v5357_v14 = vmul.f32 1.0614054, %v10302_v10  ;;  %v13651_v21 = vpop.eup %10303 }
 0xf2b   : > { %v5362_v26 = vadd.f32 -1.4531521, %v5356_v1  ;;  %v10306_v44 = vpop.eup %10305  ;;  %v5361_v25 = vmul.f32 1.0614054, %v13651_v21 }
 0xf2c   : > { %v5363_v13 = vadd.f32 -1.4531521, %v5357_v14  ;;  %v5358_v7 = vmul.f32 1.0614054, %v10306_v44  ;;  %v13654_v14 = vpop.eup %10307 }
 0xf2d   : > { %v5368_v59 = vmul.f32 %v10300_v51, %v5362_v26  ;;  %v5359_v49 = vmul.f32 1.0614054, %v13654_v14 }
 0xf2e   : > { %v5369_v4 = vmul.f32 %v10302_v10, %v5363_v13  ;;  %v5364_v1 = vadd.f32 -1.4531521, %v5358_v7  ;;  %v5420_v13 = vmul.f32 %v5414_v17, %v5330_v43 }
 0xf2f   : > { %v5374_v40 = vadd.f32 1.4214138, %v5368_v59  ;;  %v13656_v5 = vpop.eup %10309  ;;  %v5367_v59 = vadd.f32 -1.4531521, %v5361_v25  ;;  %v5365_v47 = vadd.f32 -1.4531521, %v5359_v49 }
 0xf30   : > { %v5375_v22 = vadd.f32 1.4214138, %v5369_v4  ;;  %v5370_v0 = vmul.f32 %v10306_v44, %v5364_v1  ;;  %v5360_v4 = vmul.f32 1.0614054, %v13656_v5  ;;  %v5430_v8 = vmul.f32 1.442695, %v5420_v13 }
 0xf31   : > { %v5380_v56 = vmul.f32 %v10300_v51, %v5374_v40  ;;  %v5373_v33 = vmul.f32 %v13651_v21, %v5367_v59  ;;  %v5371_v43 = vmul.f32 %v13654_v14, %v5365_v47 }
 0xf32   : > { %v5381_v36 = vmul.f32 %v10302_v10, %v5375_v22  ;;  %v5376_v40 = vadd.f32 1.4214138, %v5370_v0  ;;  %v5428_v22 = vmul.f32 1.442695, %v5419_v31  ;;  %v5366_v12 = vadd.f32 -1.4531521, %v5360_v4 }
 0xf33   : > { %v5386_v26 = vadd.f32 -0.28449672, %v5380_v56  ;;  %v5377_v0 = vadd.f32 1.4214138, %v5371_v43  ;;  %v5379_v49 = vadd.f32 1.4214138, %v5373_v33 }
 0xf34   : > { %v5387_v35 = vadd.f32 -0.28449672, %v5381_v36  ;;  %v5382_v56 = vmul.f32 %v10306_v44, %v5376_v40  ;;  %v5372_v17 = vmul.f32 %v13656_v5, %v5366_v12  ;;  %10317 = vpow2.f32 %v5428_v22 }
 0xf35   : > { %v5392_v11 = vmul.f32 %v10300_v51, %v5386_v26  ;;  %v10312_v26 = vpop.eup %10311  ;;  %10319 = vpow2.f32 %v5430_v8  ;;  %v5383_v59 = vmul.f32 %v13654_v14, %v5377_v0  ;;  %v5415_v40 = vsub.f32 0.0, %v13633_v52 }
 0xf36   : > { %v5393_v58 = vmul.f32 %v10302_v10, %v5387_v35  ;;  %v5388_v36 = vadd.f32 -0.28449672, %v5382_v56  ;;  %v10314_v45 = vpop.eup %10313  ;;  %v5315_v0 = vmul.f32 0.5, %v13610_v54 }
 0xf37   : > { %v5398_v7 = vadd.f32 0.2548296, %v5392_v11  ;;  %v5378_v11 = vadd.f32 1.4214138, %v5372_v17  ;;  %v5389_v47 = vadd.f32 -0.28449672, %v5383_v59  ;;  %v10316_v56 = vpop.eup %10315  ;;  %v5421_v43 = vmul.f32 %v5415_v40, %v13633_v52 }
 0xf38   : > { %v5399_v1 = vadd.f32 0.2548296, %v5393_v58  ;;  %v5394_v31 = vmul.f32 %v10306_v44, %v5388_v36 }
 0xf39   : > { %v5404_v25 = vmul.f32 %v10300_v51, %v5398_v7  ;;  %v5384_v51 = vmul.f32 %v13656_v5, %v5378_v11  ;;  %v5395_v8 = vmul.f32 %v13654_v14, %v5389_v47 }
 0xf3a   : > { %v5405_v3 = vmul.f32 %v10302_v10, %v5399_v1  ;;  %v5400_v12 = vadd.f32 0.2548296, %v5394_v31 }
 0xf3b   : > { %v5434_v35 = vmul.f32 %v10312_v26, %v5404_v25  ;;  %v5390_v7 = vadd.f32 -0.28449672, %v5384_v51  ;;  %v5401_v20 = vadd.f32 0.2548296, %v5395_v8 }
 0xf3c   : > { %v5435_v4 = vmul.f32 %v10314_v45, %v5405_v3  ;;  %v5406_v22 = vmul.f32 %v10306_v44, %v5400_v12  ;;  %v5385_v3 = vmul.f32 %v13651_v21, %v5379_v49 }
 0xf3d   : > { %v5440_v13 = vsub.f32 1.0, %v5434_v35  ;;  %v5396_v25 = vmul.f32 %v13656_v5, %v5390_v7  ;;  %v5407_v31 = vmul.f32 %v13654_v14, %v5401_v20 }
 0xf3e   : > { %v5441_v58 = vsub.f32 1.0, %v5435_v4  ;;  %v5436_v17 = vmul.f32 %v10316_v56, %v5406_v22  ;;  %v5391_v11 = vadd.f32 -0.28449672, %v5385_v3  ;;  %v10318_v49 = vpop.eup %10317  ;;  %v5432_v4 = vmul.f32 1.442695, %v5421_v43  ;;  %v14881_v43 = vld [vmem:[#allocation115_spill] sm:$0xff] }
 0xf3f   : > { %v5452_v10 = vsub.f32 0.0, %v5440_v13  ;;  %v5402_v45 = vadd.f32 0.2548296, %v5396_v25  ;;  %v5437_v51 = vmul.f32 %v10318_v49, %v5407_v31  ;;  %v14890_v31 = vld [vmem:[#allocation124_spill] sm:$0xff] }
 0xf40   : > { %v5453_v33 = vsub.f32 0.0, %v5441_v58  ;;  %v5442_v35 = vsub.f32 1.0, %v5436_v17  ;;  %10321 = vpow2.f32 %v5432_v4  ;;  %v14891_v4 = vld [vmem:[#allocation125_spill] sm:$0xff] }
 0xf41   : > { %v5458_v1 = vsel %vm5446_vm8, %v5440_v13, %v5452_v10  ;;  %v5408_v52 = vmul.f32 %v13656_v5, %v5402_v45  ;;  %v10320_v13 = vpop.eup %10319  ;;  %v5443_v57 = vsub.f32 1.0, %v5437_v51  ;;  %v14887_v45 = vld [vmem:[#allocation121_spill] sm:$0xff]  ;;  %vm6096_vm8 = vcmp.gt.f32.partialorder %v13483_v19, 0.0 }
 0xf42   : > { %v5464_v36 = vadd.f32 1.0, %v5458_v1  ;;  %v5459_v26 = vsel %vm5447_vm9, %v5441_v58, %v5453_v33  ;;  %v5454_v54 = vsub.f32 0.0, %v5442_v35  ;;  %v5397_v58 = vmul.f32 %v13651_v21, %v5391_v11  ;;  %v14880_v1 = vld [vmem:[#allocation114_spill] sm:$0xff]  ;;  %v14889_v11 = vld [vmem:[#allocation123_spill] sm:$0xff]  ;;  %v14895_v51 = vld [vmem:[#allocation129_spill] sm:$0xff] }
 0xf43   : > { %v5465_v44 = vadd.f32 1.0, %v5459_v26  ;;  %v5438_v12 = vmul.f32 %v10320_v13, %v5408_v52  ;;  %v5455_v5 = vsub.f32 0.0, %v5443_v57  ;;  %v14882_v26 = vld [vmem:[#allocation116_spill] sm:$0xff]  ;;  %v14893_v52 = vld [vmem:[#allocation127_spill] sm:$0xff] }
 0xf44   : > { %v5470_v40 = vmul.f32 %v5464_v36, %v5314_v28  ;;  %v5460_v10 = vsel %vm5448_vm10, %v5442_v35, %v5454_v54  ;;  %v5403_v7 = vadd.f32 0.2548296, %v5397_v58  ;;  %v14888_v28 = vld [vmem:[#allocation122_spill] sm:$0xff]  ;;  %v5319_v58 = vmul.f32 0.5, %v13613_v29  ;;  %v14902_v29 = vld [vmem:[#allocation136_spill] sm:$0xff] }
 0xf45   : > { %v5471_v59 = vmul.f32 %v5465_v44, %v5315_v0  ;;  %v5444_v14 = vsub.f32 1.0, %v5438_v12  ;;  %v5461_v22 = vsel %vm5449_vm11, %v5443_v57, %v5455_v5  ;;  %v5466_v8 = vadd.f32 1.0, %v5460_v10  ;;  %v14883_v44 = vld [vmem:[#allocation117_spill] sm:$0xff]  ;;  %v14896_v54 = vld [vmem:[#allocation130_spill] sm:$0xff]  ;;  %v14897_v57 = vld [vmem:[#allocation131_spill] sm:$0xff] }
 0xf46   : > { %v5467_v3 = vadd.f32 1.0, %v5461_v22  ;;  %v5409_v25 = vmul.f32 %v13651_v21, %v5403_v7  ;;  %v14885_v21 = vld [vmem:[#allocation119_spill] sm:$0xff]  ;;  %v14899_v5 = vld [vmem:[#allocation132_spill] sm:$0xff]  ;;  %v14903_v7 = vld [vmem:[#allocation137_spill] sm:$0xff]  ;;  %vm6097_vm11 = vcmp.gt.f32.partialorder %v13496_v27, 0.0 }
 0xf47   : > { %5540 = vmatprep.mubr.f32.mxu1 %v5471_v59  ;;  %5694 = vmatprep.mubr.f32.mxu0 %v5471_v59  ;;  %v5456_v47 = vsub.f32 0.0, %v5444_v14  ;;  %v5472_v50 = vmul.f32 %v5466_v8, %v5316_v6  ;;  %v14892_v59 = vld [vmem:[#allocation126_spill] sm:$0xff]  ;;  %v14901_v10 = vld [vmem:[#allocation135_spill] sm:$0xff]  ;;  %v14925_v27 = vld [vmem:[#allocation40_spill] sm:$0xff] }
 0xf48   : > { %5541 = vmatmul.mubr.f32.vlgmr.msra.gmra.mrb[74].mxu1 %v5470_v40  ;;  %5695 = vmatmul.mubr.f32.vlgmr.msra.gmra.mrb[28].mxu0 %v5470_v40  ;;  %v5473_v36 = vmul.f32 %v5467_v3, %v5317_v32  ;;  %v14894_v40 = vld [vmem:[#allocation128_spill] sm:$0xff]  ;;  %v14904_v22 = vld [vmem:[#allocation138_spill] sm:$0xff]  ;;  %v14909_v8 = vld [vmem:[#allocation143_spill] sm:$0xff] }
 0xf49   : > { %9518 = vmatpush1.bf16.msra.mxu1 %v13054_v55  ;;  %9582 = vmatpush3.bf16.msra.mxu0 %v12967_v60  ;;  %v5462_v56 = vsel %vm5450_vm12, %v5444_v14, %v5456_v47  ;;  %v14898_v14 = vld [vmem:[#allocation133_spill] sm:$0xff]  ;;  %v14900_v47 = vld [vmem:[#allocation134_spill] sm:$0xff]  ;;  %v14906_v3 = vld [vmem:[#allocation140_spill] sm:$0xff] }
 0xf4a   : > { %9520 = vmatprep.subr.bf16.mxu1 %v13057_v39  ;;  %9584 = vmatprep.subr.bf16.mxu0 %v13059_v2  ;;  %v5468_v33 = vadd.f32 1.0, %v5462_v56  ;;  %v10322_v20 = vpop.eup %10321  ;;  %v14905_v56 = vld [vmem:[#allocation139_spill] sm:$0xff]  ;;  %v14910_v32 = vld [vmem:[#allocation144_spill] sm:$0xff]  ;;  %v14912_v6 = vld [vmem:[#allocation146_spill] sm:$0xff] }
 0xf4b   : > { %v5439_v0 = vmul.f32 %v10322_v20, %v5409_v25  ;;  %v14911_v25 = vld [vmem:[#allocation145_spill] sm:$0xff]  ;;  %v14916_v20 = vld [vmem:[#allocation150_spill] sm:$0xff] }
 0xf4c   : > { %v5474_v17 = vmul.f32 %v5468_v33, %v5318_v53  ;;  %v14907_v53 = vld [vmem:[#allocation141_spill] sm:$0xff]  ;;  %v14908_v33 = vld [vmem:[#allocation142_spill] sm:$0xff] }
 0xf4d   : > { %9522 = vmatpush1.bf16.msra.mxu1 %v13064_v30  ;;  %9586 = vmatpush3.bf16.msra.mxu0 %v13059_v2  ;;  %v5445_v35 = vsub.f32 1.0, %v5439_v0  ;;  %v14917_v0 = vld [vmem:[#allocation151_spill] sm:$0xff] }
 0xf4e   : > { %9524 = vmatprep.subr.bf16.mxu1 %v14880_v1  ;;  %9588 = vmatprep.subr.bf16.mxu0 %v14881_v43 }
 0xf4f   : > { %5546 = vmatprep.mubr.f32.mxu1 %v5474_v17  ;;  %5699 = vmatprep.mubr.f32.mxu0 %v5474_v17  ;;  %v5457_v49 = vsub.f32 0.0, %v5445_v35  ;;  %v14913_v17 = vld [vmem:[#allocation147_spill] sm:$0xff] }
 0xf50   : > { %5547 = vmatmul.mubr.f32.gmra.mrb[76].mxu1 %v5473_v36  ;;  %5700 = vmatmul.mubr.f32.gmra.mrb[30].mxu0 %v5473_v36  ;;  %v14914_v36 = vld [vmem:[#allocation148_spill] sm:$0xff] }
 0xf51   : > { %9526 = vmatpush1.bf16.msra.mxu1 %v14882_v26  ;;  %9590 = vmatpush3.bf16.msra.mxu0 %v14881_v43  ;;  %v5463_v13 = vsel %vm5451_vm13, %v5445_v35, %v5457_v49  ;;  %v14918_v35 = vld [vmem:[#allocation152_spill] sm:$0xff]  ;;  %v14919_v49 = vld [vmem:[#allocation153_spill] sm:$0xff] }
 0xf52   : > { %8687 = vmatprep.mubr.f32.mxu0 %v5472_v50  ;;  %9528 = vmatprep.subr.bf16.mxu1 %v14883_v44  ;;  %v5469_v12 = vadd.f32 1.0, %v5463_v13  ;;  %v14920_v13 = vld [vmem:[#allocation154_spill] sm:$0xff] }
 0xf53   : > { %9592 = vmatprep.subr.bf16.mxu0 %v14884_v61  ;;  %5617 = vmatprep.mubr.f32.mxu1 %v14774_v38 }
 0xf54   : > { %v5475_v24 = vmul.f32 %v5469_v12, %v5319_v58  ;;  %v14921_v12 = vld [vmem:[#allocation155_spill] sm:$0xff] }
 0xf55   : > { %9530 = vmatpush1.bf16.msra.mxu1 %v14885_v21  ;;  %9594 = vmatpush3.bf16.msra.mxu0 %v14884_v61 }
 0xf56   : > { %9532 = vmatprep.subr.bf16.mxu1 %v14886_v37  ;;  %9596 = vmatprep.subr.bf16.mxu0 %v14887_v45 }
 0xf59   : > { %9534 = vmatpush1.bf16.msra.mxu1 %v14888_v28  ;;  %9598 = vmatpush3.bf16.msra.mxu0 %v14887_v45 }
 0xf5a   : > { %9536 = vmatprep.subr.bf16.mxu1 %v14889_v11  ;;  %9600 = vmatprep.subr.bf16.mxu0 %v14890_v31 }
 0xf5d   : > { %9538 = vmatpush1.bf16.msra.mxu1 %v14891_v4  ;;  %9602 = vmatpush3.bf16.msra.mxu0 %v14890_v31 }
 0xf5e   : > { %9540 = vmatprep.subr.bf16.mxu1 %v14892_v59  ;;  %9604 = vmatprep.subr.bf16.mxu0 %v14893_v52 }
 0xf61   : > { %9542 = vmatpush1.bf16.msra.mxu1 %v14894_v40  ;;  %9606 = vmatpush3.bf16.msra.mxu0 %v14893_v52 }
 0xf62   : > { %9544 = vmatprep.subr.bf16.mxu1 %v14895_v51  ;;  %9608 = vmatprep.subr.bf16.mxu0 %v14896_v54 }
 0xf65   : > { %9546 = vmatpush1.bf16.msra.mxu1 %v14897_v57  ;;  %9610 = vmatpush3.bf16.msra.mxu0 %v14896_v54 }
 0xf66   : > { %9644 = vmatprep.subr.bf16.mxu1 %v14898_v14  ;;  %9612 = vmatprep.subr.bf16.mxu0 %v14899_v5 }
 0xf68   : > { %5618 = vmatmul.mubr.f32.vlgmr.msra.gmra.mrb[74].mxu1 %v5472_v50  ;;  %8688 = vmatmul.mubr.f32.vlgmr.msra.gmra.mrb[32].mxu0 %v5475_v24  ;;  %v14915_v50 = vld [vmem:[#allocation149_spill] sm:$0xff] }
 0xf69   : > { %5623 = vmatprep.mubr.f32.mxu1 %v14774_v38  ;;  %9614 = vmatpush3.bf16.msra.mxu0 %v14900_v47 }
 0xf6a   : > { %9646 = vmatpush3.bf16.msra.mxu1 %v14898_v14  ;;  %9616 = vmatprep.subr.bf16.mxu0 %v14901_v10 }
 0xf6b   : > { %9648 = vmatprep.subr.bf16.mxu1 %v14902_v29 }
 0xf6c   : > { %5624 = vmatmul.mubr.f32.gmra.mrb[76].mxu1 %v5475_v24 }
 0xf6d   : > { %9618 = vmatpush3.bf16.msra.mxu0 %v14903_v7 }
 0xf6e   : > { %9650 = vmatpush3.bf16.msra.mxu1 %v14902_v29  ;;  %9620 = vmatprep.subr.bf16.mxu0 %v14904_v22 }
 0xf6f   : > { %9652 = vmatprep.subr.bf16.mxu1 %v14905_v56 }
 0xf71   : > { %9622 = vmatpush3.bf16.msra.mxu0 %v14906_v3 }
 0xf72   : > { %9654 = vmatpush3.bf16.msra.mxu1 %v14905_v56  ;;  %9624 = vmatprep.subr.bf16.mxu0 %v14907_v53 }
 0xf73   : > { %9656 = vmatprep.subr.bf16.mxu1 %v14908_v33 }
 0xf75   : > { %9626 = vmatpush3.bf16.msra.mxu0 %v14909_v8 }
 0xf76   : > { %9658 = vmatpush3.bf16.msra.mxu1 %v14908_v33  ;;  %9628 = vmatprep.subr.bf16.mxu0 %v14910_v32 }
 0xf77   : > { %9660 = vmatprep.subr.bf16.mxu1 %v14911_v25 }
 0xf79   : > { %9630 = vmatpush3.bf16.msra.mxu0 %v14912_v6 }
 0xf7a   : > { %9662 = vmatpush3.bf16.msra.mxu1 %v14911_v25  ;;  %9632 = vmatprep.subr.bf16.mxu0 %v14913_v17 }
 0xf7b   : > { %9664 = vmatprep.subr.bf16.mxu1 %v14914_v36 }
 0xf7d   : > { %9634 = vmatpush3.bf16.msra.mxu0 %v14915_v50 }
 0xf7e   : > { %9666 = vmatpush3.bf16.msra.mxu1 %v14914_v36  ;;  %9636 = vmatprep.subr.bf16.mxu0 %v14916_v20 }
 0xf7f   : > { %9668 = vmatprep.subr.bf16.mxu1 %v14917_v0 }
 0xf81   : > { %9638 = vmatpush3.bf16.msra.mxu0 %v14918_v35  ;;  %v14922_v35 = vld [vmem:[#allocation156_spill] sm:$0xff] }
 0xf82   : > { %9670 = vmatpush3.bf16.msra.mxu1 %v14917_v0  ;;  %9640 = vmatprep.subr.bf16.mxu0 %v14919_v49  ;;  %v14923_v0 = vld [vmem:[#allocation157_spill] sm:$0xff] }
 0xf83   : > { %9672 = vmatprep.subr.bf16.mxu1 %v14920_v13 }
 0xf85   : > { %9642 = vmatpush3.bf16.msra.mxu0 %v14921_v12 }
 0xf86   : > { %9674 = vmatpush3.bf16.msra.mxu1 %v14920_v13  ;;  %v14924_v13 = vld [vmem:[#allocation158_spill] sm:$0xff] }
 0xf87   : > { %9708 = vmatprep.subr.bf16.mxu1 %v12723_v41 }
0x101b   : > { %v8088_v58 = vpop.f32.mrb[28].mxu0 }
0x101c   : > { %v8089_v24 = vpop.f32.mrb[29].mxu0 }
0x101d   : > { %v8090_v50 = vadd.f32 %v8089_v24, %v8088_v58 }
0x101f   : > { %v5697_v12 = vadd.f32 %v8090_v50, %v14922_v35 }
0x1023   : > { %v8091_v20 = vpop.f32.mrb[30].mxu0 }
0x1024   : > { %v8092_v36 = vpop.f32.mrb[31].mxu0 }
0x1025   : > { %v8093_v17 = vadd.f32 %v8092_v36, %v8091_v20 }
0x1027   : > { %v5702_v25 = vadd.f32 %v8093_v17, %v14922_v35 }
0x103b   : > { %v5619_v6 = vpop.f32.mrb[74].mxu1  ;;  %v8689_v49 = vpop.f32.mrb[32].mxu0 }
0x103c   : > { %v13753_v32 = vadd.f32 %v5619_v6, %v14923_v0  ;;  %v5621_v8 = vpop.f32.mrb[75].mxu1  ;;  %v13756_v33 = vadd.f32 %v8689_v49, %v5702_v25  ;;  %v5771_v3 = vpop.f32.mrb[33].mxu0 }
0x103d   : > { %v13759_v53 = vadd.f32 %v5621_v8, %v14924_v13  ;;  %v13764_v36 = vadd.f32 %v5771_v3, %v5697_v12 }
0x103e   : > { %v13762_v58 = vmul.f32 0.70710677, %v13753_v32  ;;  %v13767_v17 = vmul.f32 0.70710677, %v13756_v33 }
0x103f   : > { %v13770_v6 = vmul.f32 0.70710677, %v13759_v53  ;;  %v13774_v25 = vmul.f32 0.70710677, %v13764_v36  ;;  %v5625_v22 = vpop.f32.mrb[76].mxu1 }
0x1040   : > { %v5792_v20 = vand.u32 2147483647, %v13762_v58  ;;  %v5797_v8 = vand.u32 2147483647, %v13767_v17  ;;  %v5627_v29 = vpop.f32.mrb[77].mxu1  ;;  %v13780_v47 = vadd.f32 %v5625_v22, %v14923_v0  ;;  %vm5912_vm15 = vcmp.ge.f32.partialorder %v13762_v58, 0.0 }
0x1041   : > { %v5793_v50 = vand.u32 2147483647, %v13770_v6  ;;  %v5794_v24 = vand.u32 2147483647, %v13774_v25  ;;  %v13783_v14 = vadd.f32 %v5627_v29, %v14924_v13  ;;  %vm5917_vm1 = vcmp.ge.f32.partialorder %v13767_v17, 0.0 }
0x1042   : > { %v5798_v49 = vmul.f32 0.3275911, %v5792_v20  ;;  %v5803_v3 = vmul.f32 0.3275911, %v5797_v8  ;;  %v13786_v57 = vmul.f32 0.70710677, %v13780_v47 }
0x1043   : > { %v5799_v12 = vmul.f32 0.3275911, %v5793_v50  ;;  %v5800_v56 = vmul.f32 0.3275911, %v5794_v24  ;;  %v5876_v54 = vsub.f32 0.0, %v5792_v20  ;;  %v5877_v13 = vsub.f32 0.0, %v5793_v50 }
0x1044   : > { %v5804_v35 = vadd.f32 1.0, %v5798_v49  ;;  %v5809_v7 = vadd.f32 1.0, %v5803_v3  ;;  %v13789_v49 = vmul.f32 0.70710677, %v13783_v14  ;;  %v5795_v3 = vand.u32 2147483647, %v13786_v57 }
0x1045   : > { %v5805_v10 = vadd.f32 1.0, %v5799_v12  ;;  %v5806_v5 = vadd.f32 1.0, %v5800_v56  ;;  %v5882_v29 = vmul.f32 %v5876_v54, %v5792_v20  ;;  %v5878_v4 = vsub.f32 0.0, %v5794_v24 }
0x1046   : > { %10323 = vrcp.f32 %v5804_v35  ;;  %v5881_v35 = vsub.f32 0.0, %v5797_v8  ;;  %v5801_v22 = vmul.f32 0.3275911, %v5795_v3  ;;  %v5883_v45 = vmul.f32 %v5877_v13, %v5793_v50 }
0x1047   : > { %10325 = vrcp.f32 %v5809_v7  ;;  %v5796_v7 = vand.u32 2147483647, %v13789_v49  ;;  %v5879_v61 = vsub.f32 0.0, %v5795_v3  ;;  %vm5913_vm2 = vcmp.ge.f32.partialorder %v13770_v6, 0.0 }
0x1048   : > { %10327 = vrcp.f32 %v5805_v10  ;;  %v5807_v56 = vadd.f32 1.0, %v5801_v22  ;;  %v5887_v10 = vmul.f32 %v5881_v35, %v5797_v8  ;;  %vm5914_vm4 = vcmp.ge.f32.partialorder %v13774_v25, 0.0 }
0x1049   : > { %10329 = vrcp.f32 %v5806_v5  ;;  %v5802_v12 = vmul.f32 0.3275911, %v5796_v7  ;;  %v5888_v5 = vmul.f32 1.442695, %v5882_v29  ;;  %v5880_v44 = vsub.f32 0.0, %v5796_v7 }
0x104a   : > { %10331 = vrcp.f32 %v5807_v56  ;;  %v5898_v21 = vmul.f32 1.442695, %v5887_v10  ;;  %v5885_v10 = vmul.f32 %v5879_v61, %v5795_v3  ;;  %v5782_v6 = vmul.f32 0.5, %v13764_v36 }
0x104b   : > { %v5808_v51 = vadd.f32 1.0, %v5802_v12  ;;  %v5884_v12 = vmul.f32 %v5878_v4, %v5794_v24  ;;  %vm5915_vm6 = vcmp.ge.f32.partialorder %v13786_v57, 0.0  ;;  %vm5916_vm7 = vcmp.ge.f32.partialorder %v13789_v49, 0.0 }
0x104c   : > { %v5894_v3 = vmul.f32 1.442695, %v5885_v10 }
0x104d   : > { %10333 = vrcp.f32 %v5808_v51  ;;  %v5890_v51 = vmul.f32 1.442695, %v5883_v45  ;;  %v5892_v50 = vmul.f32 1.442695, %v5884_v12  ;;  %v5886_v45 = vmul.f32 %v5880_v44, %v5796_v7 }
0x104e   : > { %10335 = vpow2.f32 %v5888_v5 }
0x104f   : > { %10337 = vpow2.f32 %v5898_v21 }
0x1050   : > { %v10324_v0 = vpop.eup %10323  ;;  %10339 = vpow2.f32 %v5890_v51  ;;  %v5896_v51 = vmul.f32 1.442695, %v5886_v45 }
0x1051   : > { %v10326_v40 = vpop.eup %10325  ;;  %v5822_v52 = vmul.f32 1.0614054, %v10324_v0  ;;  %10341 = vpow2.f32 %v5892_v50 }
0x1052   : > { %v5827_v59 = vmul.f32 1.0614054, %v10326_v40  ;;  %v13793_v11 = vpop.eup %10327  ;;  %10343 = vpow2.f32 %v5894_v3 }
0x1053   : > { %v5828_v31 = vadd.f32 -1.4531521, %v5822_v52  ;;  %v5823_v22 = vmul.f32 1.0614054, %v13793_v11  ;;  %v13796_v54 = vpop.eup %10329  ;;  %10345 = vpow2.f32 %v5896_v51 }
0x1054   : > { %v5833_v28 = vadd.f32 -1.4531521, %v5827_v59  ;;  %v5824_v56 = vmul.f32 1.0614054, %v13796_v54  ;;  %v13800_v26 = vpop.eup %10331 }
0x1055   : > { %v5834_v37 = vmul.f32 %v10324_v0, %v5828_v31  ;;  %v5829_v35 = vadd.f32 -1.4531521, %v5823_v22  ;;  %v5825_v22 = vmul.f32 1.0614054, %v13800_v26 }
0x1056   : > { %v5839_v20 = vmul.f32 %v10326_v40, %v5833_v28  ;;  %v5830_v59 = vadd.f32 -1.4531521, %v5824_v56 }
0x1057   : > { %v5840_v8 = vadd.f32 1.4214138, %v5834_v37  ;;  %v5835_v31 = vmul.f32 %v13793_v11, %v5829_v35  ;;  %v13803_v24 = vpop.eup %10333  ;;  %v5831_v35 = vadd.f32 -1.4531521, %v5825_v22 }
0x1058   : > { %v5845_v52 = vadd.f32 1.4214138, %v5839_v20  ;;  %v5836_v37 = vmul.f32 %v13796_v54, %v5830_v59  ;;  %v5826_v12 = vmul.f32 1.0614054, %v13803_v24 }
0x1059   : > { %v5846_v29 = vmul.f32 %v10324_v0, %v5840_v8  ;;  %v5841_v4 = vadd.f32 1.4214138, %v5835_v31  ;;  %v5837_v44 = vmul.f32 %v13800_v26, %v5831_v35 }
0x105a   : > { %v5851_v13 = vmul.f32 %v10326_v40, %v5845_v52  ;;  %v5842_v8 = vadd.f32 1.4214138, %v5836_v37  ;;  %v5832_v31 = vadd.f32 -1.4531521, %v5826_v12  ;;  %v10336_v37 = vpop.eup %10335 }
0x105b   : > { %v5852_v28 = vadd.f32 -0.28449672, %v5846_v29  ;;  %v5847_v20 = vmul.f32 %v13793_v11, %v5841_v4  ;;  %v5843_v50 = vadd.f32 1.4214138, %v5837_v44  ;;  %v10338_v10 = vpop.eup %10337 }
0x105c   : > { %v5857_v5 = vadd.f32 -0.28449672, %v5851_v13  ;;  %v5848_v29 = vmul.f32 %v13796_v54, %v5842_v8  ;;  %v5838_v4 = vmul.f32 %v13803_v24, %v5832_v31 }
0x105d   : > { %v5858_v21 = vmul.f32 %v10324_v0, %v5852_v28  ;;  %v5853_v52 = vadd.f32 -0.28449672, %v5847_v20  ;;  %v5849_v45 = vmul.f32 %v13800_v26, %v5843_v50 }
0x105e   : > { %v5863_v61 = vmul.f32 %v10326_v40, %v5857_v5  ;;  %v5854_v28 = vadd.f32 -0.28449672, %v5848_v29  ;;  %v5844_v8 = vadd.f32 1.4214138, %v5838_v4 }
0x105f   : > { %v5864_v56 = vadd.f32 0.2548296, %v5858_v21  ;;  %v5859_v13 = vmul.f32 %v13793_v11, %v5853_v52  ;;  %v10340_v52 = vpop.eup %10339  ;;  %v5855_v3 = vadd.f32 -0.28449672, %v5849_v45 }
0x1060   : > { %v5869_v59 = vadd.f32 0.2548296, %v5863_v61  ;;  %v5860_v20 = vmul.f32 %v13796_v54, %v5854_v28 }
0x1061   : > { %v5870_v7 = vmul.f32 %v10324_v0, %v5864_v56  ;;  %v5865_v21 = vadd.f32 0.2548296, %v5859_v13  ;;  %v5850_v56 = vmul.f32 %v13803_v24, %v5844_v8  ;;  %v5861_v51 = vmul.f32 %v13800_v26, %v5855_v3 }
0x1062   : > { %v5875_v5 = vmul.f32 %v10326_v40, %v5869_v59  ;;  %v5866_v35 = vadd.f32 0.2548296, %v5860_v20 }
0x1063   : > { %v5900_v22 = vmul.f32 %v10336_v37, %v5870_v7  ;;  %v5871_v61 = vmul.f32 %v13793_v11, %v5865_v21  ;;  %v5856_v44 = vadd.f32 -0.28449672, %v5850_v56  ;;  %v10342_v7 = vpop.eup %10341  ;;  %v5780_v56 = vmul.f32 0.5, %v13753_v32 }
0x1064   : > { %v5905_v12 = vmul.f32 %v10338_v10, %v5875_v5  ;;  %v5872_v59 = vmul.f32 %v13796_v54, %v5866_v35  ;;  %v5867_v5 = vadd.f32 0.2548296, %v5861_v51  ;;  %v10344_v21 = vpop.eup %10343 }
0x1065   : > { %v5906_v0 = vsub.f32 1.0, %v5900_v22  ;;  %v5901_v31 = vmul.f32 %v10340_v52, %v5871_v61  ;;  %v5862_v11 = vmul.f32 %v13803_v24, %v5856_v44  ;;  %v10346_v61 = vpop.eup %10345 }
0x1066   : > { %v5911_v40 = vsub.f32 1.0, %v5905_v12  ;;  %v5902_v4 = vmul.f32 %v10342_v7, %v5872_v59  ;;  %v5873_v20 = vmul.f32 %v13800_v26, %v5867_v5 }
0x1067   : > { %v5918_v29 = vsub.f32 0.0, %v5906_v0  ;;  %v5907_v28 = vsub.f32 1.0, %v5901_v31  ;;  %v5868_v22 = vadd.f32 0.2548296, %v5862_v11 }
0x1068   : > { %v5923_v13 = vsub.f32 0.0, %v5911_v40  ;;  %v5908_v10 = vsub.f32 1.0, %v5902_v4  ;;  %v5903_v35 = vmul.f32 %v10344_v21, %v5873_v20 }
0x1069   : > { %v5924_v37 = vsel %vm5912_vm15, %v5906_v0, %v5918_v29  ;;  %v5919_v50 = vsub.f32 0.0, %v5907_v28  ;;  %v5874_v45 = vmul.f32 %v13803_v24, %v5868_v22  ;;  %v5781_v0 = vmul.f32 0.5, %v13759_v53 }
0x106a   : > { %v5929_v54 = vsel %vm5917_vm1, %v5911_v40, %v5923_v13  ;;  %v5930_v8 = vadd.f32 1.0, %v5924_v37  ;;  %v5920_v58 = vsub.f32 0.0, %v5908_v10  ;;  %v5909_v31 = vsub.f32 1.0, %v5903_v35 }
0x106b   : > { %v5925_v12 = vsel %vm5913_vm2, %v5907_v28, %v5919_v50  ;;  %v5935_v52 = vadd.f32 1.0, %v5929_v54  ;;  %v5904_v3 = vmul.f32 %v10346_v61, %v5874_v45  ;;  %v5785_v24 = vmul.f32 0.5, %v13756_v33 }
0x106c   : > { %v5931_v17 = vadd.f32 1.0, %v5925_v12  ;;  %v5926_v40 = vsel %vm5914_vm4, %v5908_v10, %v5920_v58  ;;  %v5936_v59 = vmul.f32 %v5930_v8, %v5780_v56  ;;  %v5921_v7 = vsub.f32 0.0, %v5909_v31  ;;  %v14928_v8 = vld [vmem:[#allocation43_spill] sm:$0xff]  ;;  %v14929_v12 = vld [vmem:[#allocation44_spill] sm:$0xff] }
0x106d   : > { %v5932_v29 = vadd.f32 1.0, %v5926_v40  ;;  %v5910_v44 = vsub.f32 1.0, %v5904_v3  ;;  %v5941_v25 = vmul.f32 %v5935_v52, %v5785_v24  ;;  %v5784_v28 = vmul.f32 0.5, %v13783_v14 }
0x106e   : > { %v5937_v26 = vmul.f32 %v5931_v17, %v5781_v0  ;;  %v5927_v13 = vsel %vm5915_vm6, %v5909_v31, %v5921_v7  ;;  %v5783_v33 = vmul.f32 0.5, %v13780_v47  ;;  %v14932_v31 = vld [vmem:[#allocation47_spill] sm:$0xff] }
0x106f   : > { %v5938_v53 = vmul.f32 %v5932_v29, %v5782_v6  ;;  %v5922_v32 = vsub.f32 0.0, %v5910_v44  ;;  %v5933_v51 = vadd.f32 1.0, %v5927_v13 }
0x1070   : > { %6006 = vmatprep.mubr.f32.mxu0 %v5937_v26 }
0x1071   : > { %6007 = vmatmul.mubr.f32.vlgmr.msra.gmra.mrb[34].mxu0 %v5936_v59  ;;  %8722 = vmatprep.mubr.f32.mxu1 %v5938_v53  ;;  %v5928_v36 = vsel %vm5916_vm7, %v5910_v44, %v5922_v32  ;;  %v5939_v57 = vmul.f32 %v5933_v51, %v5783_v33  ;;  %v14933_v32 = vld [vmem:[#allocation48_spill] sm:$0xff] }
0x1072   : > { %8723 = vmatmul.mubr.f32.vlgmr.msra.gmra.mrb[78].mxu1 %v5941_v25  ;;  %v5934_v4 = vadd.f32 1.0, %v5928_v36 }
0x1073   : > { %9710 = vmatpush3.bf16.msra.mxu1 %v12723_v41 }
0x1074   : > { %9712 = vmatprep.subr.bf16.mxu1 %v12750_v15  ;;  %v5940_v11 = vmul.f32 %v5934_v4, %v5784_v28 }
0x1076   : > { %6011 = vmatprep.mubr.f32.mxu0 %v5940_v11 }
0x1077   : > { %9714 = vmatpush3.bf16.msra.mxu1 %v12750_v15  ;;  %6012 = vmatmul.mubr.f32.gmra.mrb[36].mxu0 %v5939_v57 }
0x1078   : > { %9716 = vmatprep.subr.bf16.mxu1 %v12768_v18  ;;  %8729 = vmatprep.mubr.msk.f32.mxu0 %vm3444_vm5, %v12587_v42 }
0x107b   : > { %9718 = vmatpush3.bf16.msra.mxu1 %v12768_v18 }
0x107c   : > { %9816 = vmatprep.subr.bf16.mxu1 %v12873_v9 }
0x1144   : > { %v8144_v41 = vpop.f32.mrb[34].mxu0 }
0x1145   : > { %v8145_v14 = vpop.f32.mrb[35].mxu0  ;;  %v8724_v47 = vpop.f32.mrb[78].mxu1 }
0x1146   : > { %v8146_v49 = vadd.f32 %v8145_v14, %v8144_v41  ;;  %v6083_v37 = vpop.f32.mrb[79].mxu1 }
0x1148   : > { %v6009_v5 = vadd.f32 %v8146_v49, %v13472_v48 }
0x114a   : > { %v6084_v50 = vadd.f32 %v6083_v37, %v6009_v5  ;;  %v8147_v10 = vpop.f32.mrb[36].mxu0  ;;  %v14934_v5 = vld [vmem:[#allocation49_spill] sm:$0xff] }
0x114b   : > { %v8148_v22 = vpop.f32.mrb[37].mxu0 }
0x114c   : > { %v13843_v15 = vadd.f32 %v6084_v50, %v13545_v23  ;;  %v8149_v42 = vadd.f32 %v8148_v22, %v8147_v10  ;;  %v14935_v10 = vld [vmem:[#allocation50_spill] sm:$0xff]  ;;  %v14936_v22 = vld [vmem:[#allocation51_spill] sm:$0xff] }
0x114e   : > { %vm6094_vm9 = vcmp.ne.f32.partialorder %v12242_v63, %v13843_v15  ;;  %v6014_v9 = vadd.f32 %v8149_v42, %v13472_v48  ;;  %v14937_v42 = vld [vmem:[#allocation52_spill] sm:$0xff] }
0x114f   : > { %vm6098_vm10 = vmor %vm6094_vm9, %vm6096_vm8 }
0x1150   : > { %v7689_v18 = vsel %vm6098_vm10, 1.0, %v14774_v38  ;;  %v6089_v54 = vadd.f32 %v8724_v47, %v6014_v9  ;;  %v14938_v9 = vld [vmem:[#allocation53_spill] sm:$0xff] }
0x1151   : > { %v6209_v21 = vsel %vm1113_vm0, %v7689_v18, 0.0  ;;  %v14939_v18 = vld [vmem:[#allocation54_spill] sm:$0xff] }
0x1152   : > { %6210 = vadd.xlane.f32.xlu0 %v6209_v21  ;;  %v13852_v23 = vadd.f32 %v6089_v54, %v13547_v16  ;;  %v14926_v16 = vld [vmem:[#allocation41_spill] sm:$0xff]  ;;  %v14940_v21 = vld [vmem:[#allocation55_spill] sm:$0xff]  ;;  %v14941_v54 = vld [vmem:[#allocation56_spill] sm:$0xff] }
0x1154   : > { %v9675_v19 = vpack.c.bf16 %v13852_v23, %v13843_v15  ;;  %vm6095_vm12 = vcmp.ne.f32.partialorder %v12263_v34, %v13852_v23  ;;  %v14927_v34 = vld [vmem:[#allocation42_spill] sm:$0xff] }
0x1155   : > { %vm6099_vm13 = vmor %vm6095_vm12, %vm6097_vm11 }
0x1156   : > { %9676 = vmatprep.subr.bf16.mxu0 %v9675_v19  ;;  %v7690_v63 = vsel %vm6099_vm13, 1.0, %v14774_v38 }
0x1157   : > { %9678 = vmatpush3.bf16.msra.mxu0 %v9675_v19  ;;  %v6212_v20 = vsel %vm1113_vm0, %v7690_v63, 0.0  ;;  %v14942_v63 = vld [vmem:[#allocation58_spill] sm:$0xff] }
0x1158   : > { %6213 = vadd.xlane.f32.xlu0 %v6212_v20 }
0x115a   : > { %8730 = vmatmul.mubr.msk.f32.vlgmr.msra.gmra.mrb[38].mxu0 %vm3444_vm5, %v12598_v46  ;;  %v14930_v46 = vld [vmem:[#allocation45_spill] sm:$0xff] }
0x115b   : > { %8732 = vmatprep.mubr.msk.f32.mxu0 %vm3444_vm5, %v12593_v62  ;;  %v14931_v62 = vld [vmem:[#allocation46_spill] sm:$0xff] }
0x115e   : > { %8733 = vmatmul.mubr.msk.f32.gmra.mrb[40].mxu0 %vm3444_vm5, %v14925_v27  ;;  %v14943_v27 = vld [vmem:[#allocation60_spill] sm:$0xff] }
0x115f   : > { %8735 = vmatprep.mubr.msk.f32.mxu0 %vm3444_vm5, %v14926_v16  ;;  %v6319_v16 = vmul.f32 %v13852_v23, %v14943_v27 }
0x1162   : > { %8736 = vmatmul.mubr.msk.f32.gmra.mrb[42].mxu0 %vm3444_vm5, %v14927_v34 }
0x1163   : > { %8738 = vmatprep.mubr.msk.f32.mxu0 %vm3444_vm5, %v14928_v8 }
0x1166   : > { %8739 = vmatmul.mubr.msk.f32.gmra.mrb[44].mxu0 %vm3444_vm5, %v14929_v12  ;;  %v6318_v12 = vmul.f32 %v13843_v15, %v14943_v27  ;;  %v14968_v27 = vld [vmem:[#allocation99_spill] sm:$0xff] }
0x11df   : > { %v6211_v58 = vpop.xlane.xlu0 %6210 }
0x11e0   : > { %v6215_v45 = vmul.f32 %v14930_v46, %v6211_v58 }
0x11e2   : > { %v6217_v17 = vsel %vm3343_vm3, %v6215_v45, 0.0  ;;  %v14944_v45 = vld [vmem:[#allocation61_spill] sm:$0xff] }
0x11e5   : > { %v6214_v61 = vpop.xlane.xlu0 %6213 }
0x11e6   : > { %v6216_v0 = vmul.f32 %v14931_v62, %v6214_v61  ;;  %v14945_v62 = vld [vmem:[#allocation62_spill] sm:$0xff] }
0x11e8   : > { %v6218_v35 = vsel %vm3343_vm3, %v6216_v0, 0.0 }
0x11e9   : > { %v6219_v56 = vadd.f32 %v6218_v35, %v6217_v17  ;;  %v14946_v17 = vld [vmem:[#allocation63_spill] sm:$0xff] }
0x11eb   : > { %v6220_v52 = vrot.slane %v6219_v56, 4 }
0x11ed   : > { %v6221_v40 = vadd.f32 %v6220_v52, %v6219_v56 }
0x11ef   : > { %v6222_v3 = vrot.slane %v6221_v40, 2 }
0x11f1   : > { %v6223_v6 = vadd.f32 %v6222_v3, %v6221_v40 }
0x11f3   : > { %v6224_v26 = vrot.slane %v6223_v6, 1 }
0x11f5   : > { %v6225_v29 = vadd.f32 %v6224_v26, %v6223_v6 }
0x11f7   : > { %v6226_v59 = vmul.f32 %v6225_v29, %v14932_v31 }
0x11f9   : > { %v6227_v24 = vsub.f32 0.0, %v6226_v59 }
0x11fb   : > { %v6228_v44 = vmul.f32 1.442695, %v6227_v24 }
0x11fd   : > { %10347 = vpow2.f32 %v6228_v44 }
0x1207   : > { %v10348_v53 = vpop.eup %10347 }
0x1208   : > { %v6230_v7 = vadd.f32 1.0, %v10348_v53 }
0x120a   : > { %10349 = vrcp.f32 %v6230_v7  ;;  %v14947_v7 = vld [vmem:[#allocation57_spill] sm:$0xff] }
0x1214   : > { %v10350_v25 = vpop.eup %10349 }
0x1215   : > { %v6233_v13 = vmul.f32 %v10350_v25, %v14933_v32  ;;  %v6234_v50 = vmul.f32 %v10350_v25, %v14934_v5  ;;  %v14956_v5 = vld [vmem:[#allocation87_spill] sm:$0xff] }
0x1217   : > { %8757 = vmatprep.mubr.msk.f32.mxu0 %vm3343_vm3, %v6233_v13  ;;  %v14948_v13 = vld [vmem:[#allocation59_spill] sm:$0xff] }
0x122d   : > { %v8731_v36 = vpop.f32.mrb[38].mxu0 }
0x122e   : > { %v6170_v51 = vpop.f32.mrb[39].mxu0 }
0x122f   : > { %v9679_v28 = vpack.c.bf16 %v8731_v36, %v6170_v51 }
0x1231   : > { %v8734_v4 = vpop.f32.mrb[40].mxu0  ;;  %9680 = vmatprep.subr.bf16.mxu0 %v9679_v28 }
0x1232   : > { %v6180_v33 = vpop.f32.mrb[41].mxu0  ;;  %9682 = vmatpush3.bf16.msra.mxu0 %v9679_v28 }
0x1233   : > { %v9683_v11 = vpack.c.bf16 %v8734_v4, %v6180_v33 }
0x1235   : > { %v8737_v57 = vpop.f32.mrb[42].mxu0  ;;  %9684 = vmatprep.subr.bf16.mxu0 %v9683_v11 }
0x1236   : > { %v6190_v41 = vpop.f32.mrb[43].mxu0  ;;  %9686 = vmatpush3.bf16.msra.mxu0 %v9683_v11 }
0x1237   : > { %v9687_v14 = vpack.c.bf16 %v8737_v57, %v6190_v41  ;;  %v14949_v41 = vld [vmem:[#allocation64_spill] sm:$0xff] }
0x1239   : > { %v8740_v47 = vpop.f32.mrb[44].mxu0  ;;  %9688 = vmatprep.subr.bf16.mxu0 %v9687_v14 }
0x123a   : > { %v6200_v49 = vpop.f32.mrb[45].mxu0  ;;  %9690 = vmatpush3.bf16.msra.mxu0 %v9687_v14  ;;  %v14951_v14 = vld [vmem:[#allocation65_spill] sm:$0xff] }
0x123b   : > { %v9691_v37 = vpack.c.bf16 %v8740_v47, %v6200_v49  ;;  %v14953_v47 = vld [vmem:[#allocation66_spill] sm:$0xff]  ;;  %v14954_v49 = vld [vmem:[#allocation85_spill] sm:$0xff] }
0x123d   : > { %9692 = vmatprep.subr.bf16.mxu0 %v9691_v37 }
0x123e   : > { %9694 = vmatpush3.bf16.msra.mxu0 %v9691_v37  ;;  %v14955_v37 = vld [vmem:[#allocation67_spill] sm:$0xff] }
0x123f   : > { %9696 = vmatprep.subr.bf16.mxu0 %v14935_v10  ;;  %v14958_v10 = vld [vmem:[#allocation89_spill] sm:$0xff] }
0x1241   : > { %8758 = vmatmul.mubr.msk.f32.vlgmr.msra.gmra.mrb[46].mxu0 %vm3343_vm3, %v6234_v50  ;;  %v14957_v50 = vld [vmem:[#allocation68_spill] sm:$0xff] }
0x1242   : > { %9698 = vmatpush1.bf16.msra.mxu0 %v14936_v22  ;;  %6418 = vmatprep.mubr.f32.mxu0 %v14774_v38  ;;  %v14959_v22 = vld [vmem:[#allocation69_spill] sm:$0xff] }
0x1243   : > { %9700 = vmatprep.subr.bf16.mxu0 %v14937_v42  ;;  %v14960_v42 = vld [vmem:[#allocation91_spill] sm:$0xff] }
0x1246   : > { %9702 = vmatpush1.bf16.msra.mxu0 %v14938_v9  ;;  %v14961_v9 = vld [vmem:[#allocation70_spill] sm:$0xff] }
0x1247   : > { %9704 = vmatprep.subr.bf16.mxu0 %v14939_v18  ;;  %v14962_v18 = vld [vmem:[#allocation93_spill] sm:$0xff] }
0x124a   : > { %9706 = vmatpush1.bf16.msra.mxu0 %v14940_v21  ;;  %v14963_v21 = vld [vmem:[#allocation71_spill] sm:$0xff] }
0x124b   : > { %9720 = vmatprep.subr.bf16.mxu0 %v14941_v54  ;;  %v14964_v54 = vld [vmem:[#allocation95_spill] sm:$0xff] }
0x1314   : > { %v8759_v19 = vpop.f32.mrb[46].mxu0 }
0x1315   : > { %v6317_v20 = vmul.f32 %v8759_v19, %v14942_v63  ;;  %v6307_v34 = vpop.f32.mrb[47].mxu0 }
0x1316   : > { %v6316_v8 = vmul.f32 %v6307_v34, %v14942_v63  ;;  %v14966_v63 = vld [vmem:[#allocation97_spill] sm:$0xff] }
0x1317   : > { %v6321_v58 = vadd.f32 %v6319_v16, %v6317_v20  ;;  %v14967_v20 = vld [vmem:[#allocation73_spill] sm:$0xff]  ;;  %v14969_v16 = vld [vmem:[#allocation74_spill] sm:$0xff] }
0x1318   : > { %v6320_v46 = vadd.f32 %v6318_v12, %v6316_v8  ;;  %v14971_v8 = vld [vmem:[#allocation75_spill] sm:$0xff] }
0x1319   : > { %v6323_v61 = vadd.f32 %v6321_v58, %v14944_v45  ;;  %v14972_v12 = vld [vmem:[#allocation103_spill] sm:$0xff]  ;;  %v14973_v58 = vld [vmem:[#allocation76_spill] sm:$0xff]  ;;  %v14975_v45 = vld [vmem:[#allocation77_spill] sm:$0xff] }
0x131a   : > { %v6322_v0 = vadd.f32 %v6320_v46, %v14945_v62  ;;  %v14974_v46 = vld [vmem:[#allocation105_spill] sm:$0xff]  ;;  %v14977_v62 = vld [vmem:[#allocation78_spill] sm:$0xff] }
0x131b   : > { %v6325_v35 = vadd.f32 %v6323_v61, %v14946_v17  ;;  %v14976_v61 = vld [vmem:[#allocation107_spill] sm:$0xff] }
0x131c   : > { %v6324_v56 = vadd.f32 %v6322_v0, %v14946_v17  ;;  %v14978_v0 = vld [vmem:[#allocation109_spill] sm:$0xff]  ;;  %v14979_v17 = vld [vmem:[#allocation79_spill] sm:$0xff] }
0x131d   : > { %v6327_v52 = vsub.f32 0.0, %v6325_v35  ;;  %v14980_v35 = vld [vmem:[#allocation80_spill] sm:$0xff] }
0x131e   : > { %v6326_v40 = vsub.f32 0.0, %v6324_v56  ;;  %v14981_v56 = vld [vmem:[#allocation82_spill] sm:$0xff] }
0x131f   : > { %v6330_v3 = vmul.f32 1.442695, %v6327_v52  ;;  %v14982_v52 = vld [vmem:[#allocation84_spill] sm:$0xff] }
0x1320   : > { %v6328_v6 = vmul.f32 1.442695, %v6326_v40  ;;  %v14983_v40 = vld [vmem:[#allocation86_spill] sm:$0xff] }
0x1321   : > { %10351 = vpow2.f32 %v6330_v3  ;;  %v14984_v3 = vld [vmem:[#allocation88_spill] sm:$0xff] }
0x1322   : > { %10353 = vpow2.f32 %v6328_v6  ;;  %v14985_v6 = vld [vmem:[#allocation90_spill] sm:$0xff] }
0x132b   : > { %v10352_v26 = vpop.eup %10351 }
0x132c   : > { %v10354_v29 = vpop.eup %10353  ;;  %v6333_v31 = vadd.f32 1.0, %v10352_v26  ;;  %v14986_v26 = vld [vmem:[#allocation92_spill] sm:$0xff] }
0x132d   : > { %v6332_v59 = vadd.f32 1.0, %v10354_v29  ;;  %v14987_v29 = vld [vmem:[#allocation94_spill] sm:$0xff] }
0x132e   : > { %10355 = vrcp.f32 %v6333_v31  ;;  %v14988_v31 = vld [vmem:[#allocation96_spill] sm:$0xff] }
0x132f   : > { %10357 = vrcp.f32 %v6332_v59  ;;  %v14989_v59 = vld [vmem:[#allocation98_spill] sm:$0xff] }
0x1338   : > { %v10356_v24 = vpop.eup %10355 }
0x1339   : > { %v10358_v44 = vpop.eup %10357  ;;  %v6339_v53 = vsub.f32 1.0, %v10356_v24  ;;  %v6343_v25 = vmul.f32 %v10356_v24, %v14947_v7  ;;  %v14990_v24 = vld [vmem:[#allocation100_spill] sm:$0xff]  ;;  %v14993_v7 = vld [vmem:[#allocation106_spill] sm:$0xff] }
0x133a   : > { %v6338_v32 = vsub.f32 1.0, %v10358_v44  ;;  %v6342_v36 = vmul.f32 %v10358_v44, %v14948_v13  ;;  %v14991_v44 = vld [vmem:[#allocation102_spill] sm:$0xff] }
0x133b   : > { %v6341_v51 = vmul.f32 %v6339_v53, %v13852_v23  ;;  %v6345_v28 = vmul.f32 %v8759_v19, %v6343_v25  ;;  %v14950_v23 = vld [vmem:[#allocation81_spill] sm:$0xff]  ;;  %v14965_v19 = vld [vmem:[#allocation72_spill] sm:$0xff] }
0x133c   : > { %v6340_v4 = vmul.f32 %v6338_v32, %v13843_v15  ;;  %v6344_v33 = vmul.f32 %v6342_v36, %v6307_v34  ;;  %v14952_v15 = vld [vmem:[#allocation83_spill] sm:$0xff]  ;;  %v14970_v34 = vld [vmem:[#allocation101_spill] sm:$0xff]  ;;  %v14992_v53 = vld [vmem:[#allocation104_spill] sm:$0xff] }
0x133d   : > { %v6347_v57 = vadd.f32 %v6345_v28, %v6341_v51  ;;  %v14994_v25 = vld [vmem:[#allocation108_spill] sm:$0xff]  ;;  %v14995_v32 = vld [vmem:[#allocation110_spill] sm:$0xff]  ;;  %v14996_v36 = vld [vmem:[#allocation111_spill] sm:$0xff] }
0x133e   : > { %v13906_v11 = vadd.f32 %v6344_v33, %v6340_v4  ;;  %v14997_v33 = vld [vmem:[#allocation112_spill] sm:$0xff] }
0x1340   : > { %7701 = vmatmul.mubr.msk.f32.vlgmr.msra.gmra.mrb[48].mxu0 %vm1113_vm0, %v13906_v11  ;;  %8772 = vmatprep.mubr.msk.f32.mxu1 %vm1113_vm0, %v13906_v11 }
0x1341   : > { %8773 = vmatmul.mubr.msk.f32.vlgmr.msra.gmra.mrb[80].mxu1 %vm1113_vm0, %v6347_v57  ;;  %6424 = vmatprep.mubr.f32.mxu0 %v14774_v38 }
0x1342   : > { %9722 = vmatpush1.bf16.msra.mxu0 %v14949_v41  ;;  %9818 = vmatpush3.bf16.msra.mxu1 %v14950_v23  ;;  %v14998_v41 = vld [vmem:[#allocation113_spill] sm:$0xff] }
0x1343   : > { %9724 = vmatprep.subr.bf16.mxu0 %v14951_v14  ;;  %9820 = vmatprep.subr.bf16.mxu1 %v14952_v15 }
0x1344   : > { %7702 = vmatmul.mubr.msk.f32.gmra.mrb[50].mxu0 %vm1113_vm0, %v6347_v57 }
0x1346   : > { %9726 = vmatpush1.bf16.msra.mxu0 %v14953_v47  ;;  %9822 = vmatpush3.bf16.msra.mxu1 %v14954_v49 }
0x1347   : > { %9728 = vmatprep.subr.bf16.mxu0 %v14955_v37  ;;  %9824 = vmatprep.subr.bf16.mxu1 %v14956_v5 }
0x134a   : > { %9730 = vmatpush1.bf16.msra.mxu0 %v14957_v50  ;;  %9826 = vmatpush3.bf16.msra.mxu1 %v14958_v10 }
0x134b   : > { %9732 = vmatprep.subr.bf16.mxu0 %v14959_v22  ;;  %9828 = vmatprep.subr.bf16.mxu1 %v14960_v42 }
0x134e   : > { %9734 = vmatpush1.bf16.msra.mxu0 %v14961_v9  ;;  %9830 = vmatpush3.bf16.msra.mxu1 %v14962_v18 }
0x134f   : > { %9736 = vmatprep.subr.bf16.mxu0 %v14963_v21  ;;  %9832 = vmatprep.subr.bf16.mxu1 %v14964_v54 }
0x1352   : > { %9738 = vmatpush1.bf16.msra.mxu0 %v14965_v19  ;;  %9834 = vmatpush3.bf16.msra.mxu1 %v14966_v63 }
0x1353   : > { %9740 = vmatprep.subr.bf16.mxu0 %v14967_v20  ;;  %9836 = vmatprep.subr.bf16.mxu1 %v14968_v27 }
0x1356   : > { %9742 = vmatpush1.bf16.msra.mxu0 %v14969_v16  ;;  %9838 = vmatpush3.bf16.msra.mxu1 %v14970_v34 }
0x1357   : > { %9744 = vmatprep.subr.bf16.mxu0 %v14971_v8  ;;  %9840 = vmatprep.subr.bf16.mxu1 %v14972_v12 }
0x135a   : > { %9746 = vmatpush1.bf16.msra.mxu0 %v14973_v58  ;;  %9842 = vmatpush3.bf16.msra.mxu1 %v14974_v46 }
0x135b   : > { %9748 = vmatprep.subr.bf16.mxu0 %v14975_v45  ;;  %9844 = vmatprep.subr.bf16.mxu1 %v14976_v61 }
0x135e   : > { %9750 = vmatpush1.bf16.msra.mxu0 %v14977_v62  ;;  %9846 = vmatpush3.bf16.msra.mxu1 %v14978_v0 }
0x135f   : > { %9752 = vmatprep.subr.bf16.mxu0 %v14979_v17  ;;  %9848 = vmatprep.subr.bf16.mxu1 %v12967_v60 }
0x1362   : > { %9754 = vmatpush1.bf16.msra.mxu0 %v14980_v35 }
0x1363   : > { %9756 = vmatprep.subr.bf16.mxu0 %v14981_v56 }
0x1366   : > { %9758 = vmatpush1.bf16.msra.mxu0 %v14982_v52 }
0x1367   : > { %9760 = vmatprep.subr.bf16.mxu0 %v14983_v40 }
0x136a   : > { %9762 = vmatpush1.bf16.msra.mxu0 %v14984_v3 }
0x136b   : > { %9764 = vmatprep.subr.bf16.mxu0 %v14985_v6 }
0x136e   : > { %9766 = vmatpush1.bf16.msra.mxu0 %v14986_v26 }
0x136f   : > { %9768 = vmatprep.subr.bf16.mxu0 %v14987_v29 }
0x1372   : > { %9770 = vmatpush1.bf16.msra.mxu0 %v14988_v31 }
0x1373   : > { %9772 = vmatprep.subr.bf16.mxu0 %v14989_v59 }
0x1376   : > { %9774 = vmatpush1.bf16.msra.mxu0 %v14990_v24 }
0x1377   : > { %9776 = vmatprep.subr.bf16.mxu0 %v14991_v44 }
0x137a   : > { %9778 = vmatpush1.bf16.msra.mxu0 %v14992_v53 }
0x137b   : > { %9780 = vmatprep.subr.bf16.mxu0 %v14993_v7 }
0x137e   : > { %9782 = vmatpush1.bf16.msra.mxu0 %v14994_v25 }
0x137f   : > { %9784 = vmatprep.subr.bf16.mxu0 %v14995_v32 }
0x1413   : > { %v6420_v13 = vpop.f32.mrb[48].mxu0 }
0x1414   : > { %v13964_v51 = vadd.f32 %v6420_v13, %v14996_v36  ;;  %v6422_v28 = vpop.f32.mrb[49].mxu0  ;;  %v8774_v4 = vpop.f32.mrb[80].mxu1 }
0x1415   : > { %v13967_v57 = vadd.f32 %v6422_v28, %v14997_v33  ;;  %v13970_v23 = vadd.f32 %v8774_v4, %v14998_v41  ;;  %v6497_v14 = vpop.f32.mrb[81].mxu1 }
0x1416   : > { %v13973_v15 = vmul.f32 0.70710677, %v13964_v51  ;;  %v13976_v47 = vadd.f32 %v6497_v14, %v14998_v41 }
0x1417   : > { %v13979_v49 = vmul.f32 0.70710677, %v13967_v57  ;;  %v13982_v37 = vmul.f32 0.70710677, %v13970_v23  ;;  %v6426_v63 = vpop.f32.mrb[50].mxu0 }
0x1418   : > { %v6518_v5 = vand.u32 2147483647, %v13973_v15  ;;  %v13986_v50 = vmul.f32 0.70710677, %v13976_v47  ;;  %v6428_v27 = vpop.f32.mrb[51].mxu0  ;;  %v13995_v34 = vadd.f32 %v6426_v63, %v14996_v36  ;;  %vm6638_vm0 = vcmp.ge.f32.partialorder %v13973_v15, 0.0 }
0x1419   : > { %v6519_v10 = vand.u32 2147483647, %v13979_v49  ;;  %v13990_v22 = vand.u32 2147483647, %v13982_v37  ;;  %v13998_v12 = vadd.f32 %v6428_v27, %v14997_v33  ;;  %vm6639_vm5 = vcmp.ge.f32.partialorder %v13979_v49, 0.0 }
0x141a   : > { %v6524_v42 = vmul.f32 0.3275911, %v6518_v5  ;;  %v6520_v9 = vand.u32 2147483647, %v13986_v50  ;;  %v14001_v58 = vmul.f32 0.70710677, %v13995_v34 }
0x141b   : > { %v6525_v18 = vmul.f32 0.3275911, %v6519_v10  ;;  %v6529_v21 = vmul.f32 0.3275911, %v13990_v22  ;;  %v14004_v46 = vmul.f32 0.70710677, %v13998_v12 }
0x141c   : > { %v6530_v54 = vadd.f32 1.0, %v6524_v42  ;;  %v6526_v19 = vmul.f32 0.3275911, %v6520_v9  ;;  %v6521_v45 = vand.u32 2147483647, %v14001_v58  ;;  %v6602_v61 = vsub.f32 0.0, %v6518_v5 }
0x141d   : > { %v6531_v20 = vadd.f32 1.0, %v6525_v18  ;;  %v6535_v16 = vadd.f32 1.0, %v6529_v21  ;;  %v6522_v62 = vand.u32 2147483647, %v14004_v46  ;;  %v6603_v0 = vsub.f32 0.0, %v6519_v10 }
0x141e   : > { %10359 = vrcp.f32 %v6530_v54  ;;  %v6532_v8 = vadd.f32 1.0, %v6526_v19  ;;  %v6527_v17 = vmul.f32 0.3275911, %v6521_v45  ;;  %v6608_v40 = vmul.f32 %v6602_v61, %v6518_v5 }
0x141f   : > { %10361 = vrcp.f32 %v6531_v20  ;;  %v6528_v35 = vmul.f32 0.3275911, %v6522_v62  ;;  %v6609_v29 = vmul.f32 %v6603_v0, %v6519_v10  ;;  %v6604_v31 = vsub.f32 0.0, %v6520_v9 }
0x1420   : > { %10363 = vrcp.f32 %v6535_v16  ;;  %v6533_v56 = vadd.f32 1.0, %v6527_v17  ;;  %v6614_v44 = vmul.f32 1.442695, %v6608_v40  ;;  %v6605_v33 = vsub.f32 0.0, %v6521_v45 }
0x1421   : > { %10365 = vrcp.f32 %v6532_v8  ;;  %v6534_v3 = vadd.f32 1.0, %v6528_v35  ;;  %v6616_v32 = vmul.f32 1.442695, %v6609_v29  ;;  %v6610_v36 = vmul.f32 %v6604_v31, %v6520_v9 }
0x1422   : > { %10367 = vrcp.f32 %v6533_v56  ;;  %v6606_v5 = vsub.f32 0.0, %v6522_v62  ;;  %v6611_v20 = vmul.f32 %v6605_v33, %v6521_v45  ;;  %v6506_v49 = vmul.f32 0.5, %v13964_v51 }
0x1423   : > { %10369 = vrcp.f32 %v6534_v3  ;;  %v6618_v21 = vmul.f32 1.442695, %v6610_v36  ;;  %vm6640_vm3 = vcmp.ge.f32.partialorder %v13986_v50, 0.0  ;;  %vm6641_vm15 = vcmp.ge.f32.partialorder %v14001_v58, 0.0 }
0x1424   : > { %10371 = vpow2.f32 %v6614_v44  ;;  %v6612_v8 = vmul.f32 %v6606_v5, %v6522_v62  ;;  %v6620_v29 = vmul.f32 1.442695, %v6611_v20  ;;  %vm6642_vm1 = vcmp.ge.f32.partialorder %v14004_v46, 0.0 }
0x1425   : > { %10373 = vpow2.f32 %v6616_v32  ;;  %v6509_v58 = vmul.f32 0.5, %v13995_v34  ;;  %v6508_v46 = vmul.f32 0.5, %v13976_v47  ;;  %v15001_v34 = vld [vmem:[#allocation118_spill] sm:$0xff]  ;;  %v15003_v47 = vld [vmem:[#allocation120_spill] sm:$0xff]  ;;  %vm6643_vm2 = vcmp.ge.f32.partialorder %v13982_v37, 0.0 }
0x1426   : > { %10375 = vpow2.f32 %v6618_v21 }
0x1427   : > { %10377 = vpow2.f32 %v6620_v29 }
0x1428   : > { %v10360_v52 = vpop.eup %10359 }
0x1429   : > { %v10362_v6 = vpop.eup %10361  ;;  %v6548_v26 = vmul.f32 1.0614054, %v10360_v52 }
0x142a   : > { %v6549_v59 = vmul.f32 1.0614054, %v10362_v6  ;;  %v14008_v7 = vpop.eup %10363 }
0x142b   : > { %v6554_v24 = vadd.f32 -1.4531521, %v6548_v26  ;;  %v10366_v13 = vpop.eup %10365  ;;  %v6553_v14 = vmul.f32 1.0614054, %v14008_v7 }
0x142c   : > { %v6555_v53 = vadd.f32 -1.4531521, %v6549_v59  ;;  %v6550_v41 = vmul.f32 1.0614054, %v10366_v13  ;;  %v14011_v19 = vpop.eup %10367 }
0x142d   : > { %v6560_v25 = vmul.f32 %v10360_v52, %v6554_v24  ;;  %v14013_v9 = vpop.eup %10369  ;;  %v6559_v16 = vadd.f32 -1.4531521, %v6553_v14  ;;  %v6551_v0 = vmul.f32 1.0614054, %v14011_v19  ;;  %v6622_v24 = vmul.f32 1.442695, %v6612_v8 }
0x142e   : > { %v6561_v28 = vmul.f32 %v10362_v6, %v6555_v53  ;;  %v6556_v18 = vadd.f32 -1.4531521, %v6550_v41  ;;  %v6552_v35 = vmul.f32 1.0614054, %v14013_v9  ;;  %v10372_v36 = vpop.eup %10371 }
0x142f   : > { %v6566_v4 = vadd.f32 1.4214138, %v6560_v25  ;;  %v6557_v3 = vadd.f32 -1.4531521, %v6551_v0  ;;  %v6565_v45 = vmul.f32 %v14008_v7, %v6559_v16  ;;  %v10374_v33 = vpop.eup %10373  ;;  %10379 = vpow2.f32 %v6622_v24 }
0x1430   : > { %v6567_v10 = vadd.f32 1.4214138, %v6561_v28  ;;  %v6562_v27 = vmul.f32 %v10366_v13, %v6556_v18  ;;  %v6558_v31 = vadd.f32 -1.4531521, %v6552_v35 }
0x1431   : > { %v6572_v42 = vmul.f32 %v10360_v52, %v6566_v4  ;;  %v6563_v62 = vmul.f32 %v14011_v19, %v6557_v3 }
0x1432   : > { %v6573_v54 = vmul.f32 %v10362_v6, %v6567_v10  ;;  %v6568_v56 = vadd.f32 1.4214138, %v6562_v27  ;;  %v6564_v25 = vmul.f32 %v14013_v9, %v6558_v31  ;;  %v6571_v10 = vadd.f32 1.4214138, %v6565_v45 }
0x1433   : > { %v6578_v63 = vadd.f32 -0.28449672, %v6572_v42  ;;  %v6569_v4 = vadd.f32 1.4214138, %v6563_v62 }
0x1434   : > { %v6579_v61 = vadd.f32 -0.28449672, %v6573_v54  ;;  %v6574_v59 = vmul.f32 %v10366_v13, %v6568_v56  ;;  %v6570_v14 = vadd.f32 1.4214138, %v6564_v25  ;;  %v6607_v54 = vsub.f32 0.0, %v13990_v22 }
0x1435   : > { %v6584_v17 = vmul.f32 %v10360_v52, %v6578_v63  ;;  %v6575_v18 = vmul.f32 %v14011_v19, %v6569_v4  ;;  %v6577_v0 = vmul.f32 %v14008_v7, %v6571_v10 }
0x1436   : > { %v6585_v40 = vmul.f32 %v10362_v6, %v6579_v61  ;;  %v6580_v32 = vadd.f32 -0.28449672, %v6574_v59  ;;  %v10376_v61 = vpop.eup %10375  ;;  %v6507_v59 = vmul.f32 0.5, %v13967_v57 }
0x1437   : > { %v6590_v26 = vadd.f32 0.2548296, %v6584_v17  ;;  %v6581_v27 = vadd.f32 -0.28449672, %v6575_v18 }
0x1438   : > { %v6591_v44 = vadd.f32 0.2548296, %v6585_v40  ;;  %v6586_v5 = vmul.f32 %v10366_v13, %v6580_v32  ;;  %v6613_v40 = vmul.f32 %v6607_v54, %v13990_v22 }
0x1439   : > { %v6596_v53 = vmul.f32 %v10360_v52, %v6590_v26  ;;  %v6576_v52 = vmul.f32 %v14013_v9, %v6570_v14  ;;  %v6587_v35 = vmul.f32 %v14011_v19, %v6581_v27  ;;  %v15005_v27 = vld [vmem:[#allocation122_spill] sm:$0xff] }
0x143a   : > { %v6597_v28 = vmul.f32 %v10362_v6, %v6591_v44  ;;  %v6592_v63 = vadd.f32 0.2548296, %v6586_v5  ;;  %v6583_v44 = vadd.f32 -0.28449672, %v6577_v0  ;;  %v6624_v25 = vmul.f32 1.442695, %v6613_v40 }
0x143b   : > { %v6626_v41 = vmul.f32 %v10372_v36, %v6596_v53  ;;  %v6582_v16 = vadd.f32 -0.28449672, %v6576_v52  ;;  %v6593_v15 = vadd.f32 0.2548296, %v6587_v35  ;;  %v10378_v53 = vpop.eup %10377  ;;  %v15009_v0 = vld [vmem:[#allocation126_spill] sm:$0xff]  ;;  %v15012_v40 = vld [vmem:[#allocation129_spill] sm:$0xff] }
0x143c   : > { %v6627_v42 = vmul.f32 %v10374_v33, %v6597_v28  ;;  %v6598_v8 = vmul.f32 %v10366_v13, %v6592_v63  ;;  %v10380_v36 = vpop.eup %10379  ;;  %10381 = vpow2.f32 %v6624_v25  ;;  %v14999_v63 = vld [vmem:[#allocation116_spill] sm:$0xff]  ;;  %v15026_v25 = vld [vmem:[#allocation143_spill] sm:$0xff] }
0x143d   : > { %v6632_v21 = vsub.f32 1.0, %v6626_v41  ;;  %v6588_v3 = vmul.f32 %v14013_v9, %v6582_v16  ;;  %v6599_v62 = vmul.f32 %v14011_v19, %v6593_v15  ;;  %v6589_v41 = vmul.f32 %v14008_v7, %v6583_v44  ;;  %v15007_v16 = vld [vmem:[#allocation124_spill] sm:$0xff]  ;;  %v15015_v15 = vld [vmem:[#allocation133_spill] sm:$0xff]  ;;  %v15022_v44 = vld [vmem:[#allocation139_spill] sm:$0xff] }
0x143e   : > { %v6633_v20 = vsub.f32 1.0, %v6627_v42  ;;  %v6628_v26 = vmul.f32 %v10376_v61, %v6598_v8  ;;  %v15008_v61 = vld [vmem:[#allocation125_spill] sm:$0xff] }
0x143f   : > { %v6644_v6 = vsub.f32 0.0, %v6632_v21  ;;  %v6594_v45 = vadd.f32 0.2548296, %v6588_v3  ;;  %v6629_v4 = vmul.f32 %v10378_v53, %v6599_v62  ;;  %v6595_v10 = vadd.f32 0.2548296, %v6589_v41  ;;  %v15023_v62 = vld [vmem:[#allocation140_spill] sm:$0xff] }
0x1440   : > { %v6645_v17 = vsub.f32 0.0, %v6633_v20  ;;  %v6634_v24 = vsub.f32 1.0, %v6628_v26  ;;  %v15013_v26 = vld [vmem:[#allocation130_spill] sm:$0xff]  ;;  %v15034_v41 = vld [vmem:[#allocation151_spill] sm:$0xff] }
0x1441   : > { %v6650_v56 = vsel %vm6638_vm0, %v6632_v21, %v6644_v6  ;;  %v6600_v22 = vmul.f32 %v14013_v9, %v6594_v45  ;;  %v6635_v51 = vsub.f32 1.0, %v6629_v4  ;;  %v6601_v21 = vmul.f32 %v14008_v7, %v6595_v10  ;;  %v15002_v7 = vld [vmem:[#allocation119_spill] sm:$0xff]  ;;  %v15025_v53 = vld [vmem:[#allocation142_spill] sm:$0xff]  ;;  %v15031_v4 = vld [vmem:[#allocation148_spill] sm:$0xff] }
0x1442   : > { %v6656_v29 = vadd.f32 1.0, %v6650_v56  ;;  %v6651_v31 = vsel %vm6639_vm5, %v6633_v20, %v6645_v17  ;;  %v6646_v57 = vsub.f32 0.0, %v6634_v24  ;;  %v15004_v20 = vld [vmem:[#allocation121_spill] sm:$0xff]  ;;  %v15006_v6 = vld [vmem:[#allocation123_spill] sm:$0xff]  ;;  %v15011_v56 = vld [vmem:[#allocation128_spill] sm:$0xff] }
0x1443   : > { %v6657_v13 = vadd.f32 1.0, %v6651_v31  ;;  %v6630_v33 = vmul.f32 %v10380_v36, %v6600_v22  ;;  %v6647_v9 = vsub.f32 0.0, %v6635_v51  ;;  %v15010_v17 = vld [vmem:[#allocation127_spill] sm:$0xff]  ;;  %v15028_v22 = vld [vmem:[#allocation145_spill] sm:$0xff]  ;;  %v15029_v36 = vld [vmem:[#allocation146_spill] sm:$0xff] }
0x1444   : > { %v6662_v28 = vmul.f32 %v6656_v29, %v6506_v49  ;;  %v6652_v5 = vsel %vm6640_vm3, %v6634_v24, %v6646_v57  ;;  %v6511_v29 = vmul.f32 0.5, %v13970_v23  ;;  %v15014_v31 = vld [vmem:[#allocation131_spill] sm:$0xff]  ;;  %v15019_v23 = vld [vmem:[#allocation136_spill] sm:$0xff]  ;;  %v15020_v24 = vld [vmem:[#allocation137_spill] sm:$0xff] }
0x1445   : > { %v6663_v32 = vmul.f32 %v6657_v13, %v6507_v59  ;;  %v6636_v19 = vsub.f32 1.0, %v6630_v33  ;;  %v6653_v42 = vsel %vm6641_vm15, %v6635_v51, %v6647_v9  ;;  %v6658_v50 = vadd.f32 1.0, %v6652_v5  ;;  %v15016_v59 = vld [vmem:[#allocation132_spill] sm:$0xff]  ;;  %v15017_v13 = vld [vmem:[#allocation134_spill] sm:$0xff]  ;;  %v15018_v45 = vld [vmem:[#allocation135_spill] sm:$0xff] }
0x1446   : > { %v15021_v49 = vld [vmem:[#allocation138_spill] sm:$0xff]  ;;  %v15032_v33 = vld [vmem:[#allocation149_spill] sm:$0xff]  ;;  %v15035_v51 = vld [vmem:[#allocation152_spill] sm:$0xff] }
0x1447   : > { %6732 = vmatprep.mubr.f32.mxu0 %v6663_v32  ;;  %6886 = vmatprep.mubr.f32.mxu1 %v6663_v32  ;;  %v6648_v14 = vsub.f32 0.0, %v6636_v19  ;;  %v15027_v32 = vld [vmem:[#allocation144_spill] sm:$0xff]  ;;  %v15033_v57 = vld [vmem:[#allocation150_spill] sm:$0xff] }
0x1448   : > { %6733 = vmatmul.mubr.f32.vlgmr.msra.gmra.mrb[52].mxu0 %v6662_v28  ;;  %6887 = vmatmul.mubr.f32.vlgmr.msra.gmra.mrb[82].mxu1 %v6662_v28  ;;  %v15030_v28 = vld [vmem:[#allocation147_spill] sm:$0xff]  ;;  %v15037_v9 = vld [vmem:[#allocation154_spill] sm:$0xff] }
0x1449   : > { %9786 = vmatpush1.bf16.msra.mxu0 %v13054_v55  ;;  %9850 = vmatpush3.bf16.msra.mxu1 %v12967_v60  ;;  %v6654_v18 = vsel %vm6642_vm1, %v6636_v19, %v6648_v14  ;;  %v6659_v55 = vadd.f32 1.0, %v6653_v42  ;;  %v6510_v60 = vmul.f32 0.5, %v13998_v12  ;;  %v15000_v12 = vld [vmem:[#allocation117_spill] sm:$0xff]  ;;  %v15038_v14 = vld [vmem:[#allocation155_spill] sm:$0xff] }
0x144a   : > { %9788 = vmatprep.subr.bf16.mxu0 %v13057_v39  ;;  %9852 = vmatprep.subr.bf16.mxu1 %v13059_v2  ;;  %v6660_v39 = vadd.f32 1.0, %v6654_v18  ;;  %v15036_v19 = vld [vmem:[#allocation153_spill] sm:$0xff] }
0x144b   : > { %v6665_v52 = vmul.f32 %v6659_v55, %v6509_v58 }
0x144c   : > { %v6666_v54 = vmul.f32 %v6660_v39, %v6510_v60 }
0x144d   : > { %9790 = vmatpush1.bf16.msra.mxu0 %v13064_v30  ;;  %9854 = vmatpush3.bf16.msra.mxu1 %v13059_v2  ;;  %v6664_v2 = vmul.f32 %v6658_v50, %v6508_v46  ;;  %v10382_v30 = vpop.eup %10381  ;;  %v15039_v50 = vld [vmem:[#allocation156_spill] sm:$0xff] }
0x144e   : > { %9792 = vmatprep.subr.bf16.mxu0 %v14880_v1  ;;  %9856 = vmatprep.subr.bf16.mxu1 %v14881_v43  ;;  %v6631_v1 = vmul.f32 %v10382_v30, %v6601_v21  ;;  %v15040_v21 = vld [vmem:[#allocation157_spill] sm:$0xff]  ;;  %v15041_v30 = vld [vmem:[#allocation158_spill] sm:$0xff] }
0x144f   : > { %6738 = vmatprep.mubr.f32.mxu0 %v6666_v54  ;;  %6891 = vmatprep.mubr.f32.mxu1 %v6666_v54 }
0x1450   : > { %6739 = vmatmul.mubr.f32.gmra.mrb[54].mxu0 %v6665_v52  ;;  %6892 = vmatmul.mubr.f32.gmra.mrb[84].mxu1 %v6665_v52 }
0x1451   : > { %9794 = vmatpush1.bf16.msra.mxu0 %v14999_v63  ;;  %9858 = vmatpush3.bf16.msra.mxu1 %v14881_v43  ;;  %v6637_v43 = vsub.f32 1.0, %v6631_v1 }
0x1452   : > { %8807 = vmatprep.mubr.f32.mxu1 %v6664_v2  ;;  %9796 = vmatprep.subr.bf16.mxu0 %v15000_v12 }
0x1453   : > { %9860 = vmatprep.subr.bf16.mxu1 %v15001_v34  ;;  %6809 = vmatprep.mubr.f32.mxu0 %v14774_v38  ;;  %v6649_v8 = vsub.f32 0.0, %v6637_v43 }
0x1455   : > { %9798 = vmatpush1.bf16.msra.mxu0 %v15002_v7  ;;  %9862 = vmatpush3.bf16.msra.mxu1 %v15001_v34  ;;  %v6655_v35 = vsel %vm6643_vm2, %v6637_v43, %v6649_v8 }
0x1456   : > { %9800 = vmatprep.subr.bf16.mxu0 %v15003_v47  ;;  %9864 = vmatprep.subr.bf16.mxu1 %v15004_v20  ;;  %v6661_v3 = vadd.f32 1.0, %v6655_v35 }
0x1458   : > { %v6667_v37 = vmul.f32 %v6661_v3, %v6511_v29 }
0x1459   : > { %9802 = vmatpush1.bf16.msra.mxu0 %v15005_v27  ;;  %9866 = vmatpush3.bf16.msra.mxu1 %v15004_v20 }
0x145a   : > { %9804 = vmatprep.subr.bf16.mxu0 %v15006_v6  ;;  %9868 = vmatprep.subr.bf16.mxu1 %v15007_v16 }
0x145d   : > { %9806 = vmatpush1.bf16.msra.mxu0 %v15008_v61  ;;  %9870 = vmatpush3.bf16.msra.mxu1 %v15007_v16 }
0x145e   : > { %9808 = vmatprep.subr.bf16.mxu0 %v15009_v0  ;;  %9872 = vmatprep.subr.bf16.mxu1 %v15010_v17 }
0x1461   : > { %9810 = vmatpush1.bf16.msra.mxu0 %v15011_v56  ;;  %9874 = vmatpush3.bf16.msra.mxu1 %v15010_v17 }
0x1462   : > { %9812 = vmatprep.subr.bf16.mxu0 %v15012_v40  ;;  %9876 = vmatprep.subr.bf16.mxu1 %v15013_v26 }
0x1465   : > { %9814 = vmatpush1.bf16.msra.mxu0 %v15014_v31  ;;  %9878 = vmatpush3.bf16.msra.mxu1 %v15013_v26 }
0x1466   : > { %9912 = vmatprep.subr.bf16.mxu0 %v15015_v15  ;;  %9880 = vmatprep.subr.bf16.mxu1 %v15016_v59 }
0x1468   : > { %6810 = vmatmul.mubr.f32.vlgmr.msra.gmra.mrb[52].mxu0 %v6664_v2  ;;  %8808 = vmatmul.mubr.f32.vlgmr.msra.gmra.mrb[86].mxu1 %v6667_v37 }
0x1469   : > { %6815 = vmatprep.mubr.f32.mxu0 %v14774_v38  ;;  %9882 = vmatpush3.bf16.msra.mxu1 %v15017_v13  ;;  %v15024_v38 = vld [vmem:[#allocation141_spill] sm:$0xff] }
0x146a   : > { %9914 = vmatpush3.bf16.msra.mxu0 %v15015_v15  ;;  %9884 = vmatprep.subr.bf16.mxu1 %v15018_v45 }
0x146b   : > { %9916 = vmatprep.subr.bf16.mxu0 %v15019_v23 }
0x146c   : > { %6816 = vmatmul.mubr.f32.gmra.mrb[54].mxu0 %v6667_v37 }
0x146d   : > { %9886 = vmatpush3.bf16.msra.mxu1 %v15020_v24 }
0x146e   : > { %9918 = vmatpush3.bf16.msra.mxu0 %v15019_v23  ;;  %9888 = vmatprep.subr.bf16.mxu1 %v15021_v49 }
0x146f   : > { %9920 = vmatprep.subr.bf16.mxu0 %v15022_v44 }
0x1471   : > { %9890 = vmatpush3.bf16.msra.mxu1 %v15023_v62 }
0x1472   : > { %9922 = vmatpush3.bf16.msra.mxu0 %v15022_v44  ;;  %9892 = vmatprep.subr.bf16.mxu1 %v15024_v38 }
0x1473   : > { %9924 = vmatprep.subr.bf16.mxu0 %v15025_v53 }
0x1475   : > { %9894 = vmatpush3.bf16.msra.mxu1 %v15026_v25 }
0x1476   : > { %9926 = vmatpush3.bf16.msra.mxu0 %v15025_v53  ;;  %9896 = vmatprep.subr.bf16.mxu1 %v15027_v32 }
0x1477   : > { %9928 = vmatprep.subr.bf16.mxu0 %v15028_v22 }
0x1479   : > { %9898 = vmatpush3.bf16.msra.mxu1 %v15029_v36 }
0x147a   : > { %9930 = vmatpush3.bf16.msra.mxu0 %v15028_v22  ;;  %9900 = vmatprep.subr.bf16.mxu1 %v15030_v28 }
0x147b   : > { %9932 = vmatprep.subr.bf16.mxu0 %v15031_v4 }
0x147d   : > { %9902 = vmatpush3.bf16.msra.mxu1 %v15032_v33 }
0x147e   : > { %9934 = vmatpush3.bf16.msra.mxu0 %v15031_v4  ;;  %9904 = vmatprep.subr.bf16.mxu1 %v15033_v57 }
0x147f   : > { %9936 = vmatprep.subr.bf16.mxu0 %v15034_v41 }
0x1481   : > { %9906 = vmatpush3.bf16.msra.mxu1 %v15035_v51 }
0x1482   : > { %9938 = vmatpush3.bf16.msra.mxu0 %v15034_v41  ;;  %9908 = vmatprep.subr.bf16.mxu1 %v15036_v19 }
0x1483   : > { %9940 = vmatprep.subr.bf16.mxu0 %v15037_v9 }
0x1485   : > { %9910 = vmatpush3.bf16.msra.mxu1 %v15038_v14 }
0x1486   : > { %9942 = vmatpush3.bf16.msra.mxu0 %v15037_v9 }
0x151b   : > { %v8228_v5 = vpop.f32.mrb[82].mxu1 }
0x151c   : > { %v8229_v10 = vpop.f32.mrb[83].mxu1 }
0x151d   : > { %v8230_v42 = vadd.f32 %v8229_v10, %v8228_v5 }
0x151f   : > { %v6889_v63 = vadd.f32 %v8230_v42, %v15039_v50 }
0x1523   : > { %v8231_v18 = vpop.f32.mrb[84].mxu1 }
0x1524   : > { %v8232_v55 = vpop.f32.mrb[85].mxu1 }
0x1525   : > { %v8233_v60 = vadd.f32 %v8232_v55, %v8231_v18 }
0x1527   : > { %v6894_v58 = vadd.f32 %v8233_v60, %v15039_v50 }
0x153b   : > { %v6811_v39 = vpop.f32.mrb[52].mxu0  ;;  %v8809_v54 = vpop.f32.mrb[86].mxu1 }
0x153c   : > { %v14109_v46 = vadd.f32 %v6811_v39, %v15040_v21  ;;  %v6813_v52 = vpop.f32.mrb[53].mxu0  ;;  %v14112_v2 = vadd.f32 %v8809_v54, %v6894_v58  ;;  %v6963_v12 = vpop.f32.mrb[87].mxu1 }
0x153d   : > { %v14115_v1 = vadd.f32 %v6813_v52, %v15041_v30  ;;  %v14120_v7 = vadd.f32 %v6963_v12, %v6889_v63 }
0x153e   : > { %v14118_v34 = vmul.f32 0.70710677, %v14109_v46  ;;  %v14123_v47 = vmul.f32 0.70710677, %v14112_v2 }
0x153f   : > { %v14126_v20 = vmul.f32 0.70710677, %v14115_v1  ;;  %v14130_v27 = vmul.f32 0.70710677, %v14120_v7  ;;  %v6817_v40 = vpop.f32.mrb[54].mxu0 }
0x1540   : > { %v6984_v43 = vand.u32 2147483647, %v14118_v34  ;;  %v6989_v6 = vand.u32 2147483647, %v14123_v47  ;;  %v6819_v26 = vpop.f32.mrb[55].mxu0  ;;  %v14136_v31 = vadd.f32 %v6817_v40, %v15040_v21  ;;  %vm7104_vm4 = vcmp.ge.f32.partialorder %v14118_v34, 0.0 }
0x1541   : > { %v6985_v16 = vand.u32 2147483647, %v14126_v20  ;;  %v6986_v61 = vand.u32 2147483647, %v14130_v27  ;;  %v14139_v37 = vadd.f32 %v6819_v26, %v15041_v30  ;;  %vm7109_vm6 = vcmp.ge.f32.partialorder %v14123_v47, 0.0 }
0x1542   : > { %v6990_v8 = vmul.f32 0.3275911, %v6984_v43  ;;  %v6995_v0 = vmul.f32 0.3275911, %v6989_v6  ;;  %v14142_v59 = vmul.f32 0.70710677, %v14136_v31 }
0x1543   : > { %v6991_v17 = vmul.f32 0.3275911, %v6985_v16  ;;  %v6992_v56 = vmul.f32 0.3275911, %v6986_v61  ;;  %v14145_v13 = vmul.f32 0.70710677, %v14139_v37 }
0x1544   : > { %v6996_v35 = vadd.f32 1.0, %v6990_v8  ;;  %v7001_v3 = vadd.f32 1.0, %v6995_v0  ;;  %v6987_v45 = vand.u32 2147483647, %v14142_v59  ;;  %v7068_v23 = vsub.f32 0.0, %v6984_v43 }
0x1545   : > { %v6997_v29 = vadd.f32 1.0, %v6991_v17  ;;  %v6998_v15 = vadd.f32 1.0, %v6992_v56  ;;  %v6988_v24 = vand.u32 2147483647, %v14145_v13  ;;  %v7073_v49 = vsub.f32 0.0, %v6989_v6 }
0x1546   : > { %10383 = vrcp.f32 %v6996_v35  ;;  %v6993_v44 = vmul.f32 0.3275911, %v6987_v45  ;;  %v7074_v25 = vmul.f32 %v7068_v23, %v6984_v43  ;;  %v7069_v32 = vsub.f32 0.0, %v6985_v16 }
0x1547   : > { %10385 = vrcp.f32 %v7001_v3  ;;  %v6994_v62 = vmul.f32 0.3275911, %v6988_v24  ;;  %v7079_v4 = vmul.f32 %v7073_v49, %v6989_v6  ;;  %v7070_v57 = vsub.f32 0.0, %v6986_v61 }
0x1548   : > { %10387 = vrcp.f32 %v6997_v29  ;;  %v6999_v38 = vadd.f32 1.0, %v6993_v44  ;;  %v7080_v19 = vmul.f32 1.442695, %v7074_v25  ;;  %v7075_v14 = vmul.f32 %v7069_v32, %v6985_v16 }
0x1549   : > { %10389 = vrcp.f32 %v6998_v15  ;;  %v7000_v22 = vadd.f32 1.0, %v6994_v62  ;;  %v7090_v10 = vmul.f32 1.442695, %v7079_v4  ;;  %v7076_v60 = vmul.f32 %v7070_v57, %v6986_v61 }
0x154a   : > { %10391 = vrcp.f32 %v6999_v38  ;;  %v7071_v39 = vsub.f32 0.0, %v6987_v45  ;;  %v7082_v52 = vmul.f32 1.442695, %v7075_v14  ;;  %v7072_v63 = vsub.f32 0.0, %v6988_v24 }
0x154b   : > { %10393 = vrcp.f32 %v7000_v22  ;;  %v7084_v16 = vmul.f32 1.442695, %v7076_v60  ;;  %vm7105_vm7 = vcmp.ge.f32.partialorder %v14126_v20, 0.0  ;;  %vm7106_vm8 = vcmp.ge.f32.partialorder %v14130_v27, 0.0 }
0x154c   : > { %10395 = vpow2.f32 %v7080_v19  ;;  %v7077_v8 = vmul.f32 %v7071_v39, %v6987_v45  ;;  %v7078_v3 = vmul.f32 %v7072_v63, %v6988_v24  ;;  %v6974_v20 = vmul.f32 0.5, %v14120_v7 }
0x154d   : > { %10397 = vpow2.f32 %v7090_v10  ;;  %vm7107_vm9 = vcmp.ge.f32.partialorder %v14142_v59, 0.0  ;;  %vm7108_vm10 = vcmp.ge.f32.partialorder %v14145_v13, 0.0 }
0x154e   : > { %10399 = vpow2.f32 %v7082_v52  ;;  %v7086_v44 = vmul.f32 1.442695, %v7077_v8  ;;  %v7088_v4 = vmul.f32 1.442695, %v7078_v3 }
0x154f   : > { %10401 = vpow2.f32 %v7084_v16 }
0x1550   : > { %v10384_v53 = vpop.eup %10383  ;;  %10403 = vpow2.f32 %v7086_v44 }
0x1551   : > { %v10386_v36 = vpop.eup %10385  ;;  %v7014_v28 = vmul.f32 1.0614054, %v10384_v53  ;;  %10405 = vpow2.f32 %v7088_v4 }
0x1552   : > { %v7019_v33 = vmul.f32 1.0614054, %v10386_v36  ;;  %v14149_v51 = vpop.eup %10387 }
0x1553   : > { %v7020_v41 = vadd.f32 -1.4531521, %v7014_v28  ;;  %v7015_v42 = vmul.f32 1.0614054, %v14149_v51  ;;  %v14152_v18 = vpop.eup %10389 }
0x1554   : > { %v7025_v9 = vadd.f32 -1.4531521, %v7019_v33  ;;  %v7016_v21 = vmul.f32 1.0614054, %v14152_v18  ;;  %v14156_v0 = vpop.eup %10391 }
0x1555   : > { %v7026_v5 = vmul.f32 %v10384_v53, %v7020_v41  ;;  %v7021_v58 = vadd.f32 -1.4531521, %v7015_v42  ;;  %v14159_v56 = vpop.eup %10393  ;;  %v7017_v26 = vmul.f32 1.0614054, %v14156_v0 }
0x1556   : > { %v7031_v55 = vmul.f32 %v10386_v36, %v7025_v9  ;;  %v7022_v43 = vadd.f32 -1.4531521, %v7016_v21  ;;  %v7018_v49 = vmul.f32 1.0614054, %v14159_v56  ;;  %v10396_v9 = vpop.eup %10395 }
0x1557   : > { %v7032_v50 = vadd.f32 1.4214138, %v7026_v5  ;;  %v7027_v12 = vmul.f32 %v14149_v51, %v7021_v58  ;;  %v7023_v62 = vadd.f32 -1.4531521, %v7017_v26  ;;  %v10398_v10 = vpop.eup %10397 }
0x1558   : > { %v7037_v54 = vadd.f32 1.4214138, %v7031_v55  ;;  %v7028_v35 = vmul.f32 %v14152_v18, %v7022_v43  ;;  %v7024_v22 = vadd.f32 -1.4531521, %v7018_v49  ;;  %v10400_v63 = vpop.eup %10399 }
0x1559   : > { %v7038_v30 = vmul.f32 %v10384_v53, %v7032_v50  ;;  %v7033_v17 = vadd.f32 1.4214138, %v7027_v12  ;;  %v7029_v24 = vmul.f32 %v14156_v0, %v7023_v62  ;;  %v10402_v8 = vpop.eup %10401 }
0x155a   : > { %v7043_v6 = vmul.f32 %v10386_v36, %v7037_v54  ;;  %v7034_v23 = vadd.f32 1.4214138, %v7028_v35  ;;  %v7030_v19 = vmul.f32 %v14159_v56, %v7024_v22  ;;  %v10404_v49 = vpop.eup %10403 }
0x155b   : > { %v7044_v61 = vadd.f32 -0.28449672, %v7038_v30  ;;  %v7039_v15 = vmul.f32 %v14149_v51, %v7033_v17  ;;  %v7035_v5 = vadd.f32 1.4214138, %v7029_v24 }
0x155c   : > { %v7049_v40 = vadd.f32 -0.28449672, %v7043_v6  ;;  %v7040_v32 = vmul.f32 %v14152_v18, %v7034_v23  ;;  %v7036_v39 = vadd.f32 1.4214138, %v7030_v19 }
0x155d   : > { %v7050_v29 = vmul.f32 %v10384_v53, %v7044_v61  ;;  %v7045_v25 = vadd.f32 -0.28449672, %v7039_v15  ;;  %v7041_v58 = vmul.f32 %v14156_v0, %v7035_v5 }
0x155e   : > { %v7055_v45 = vmul.f32 %v10386_v36, %v7049_v40  ;;  %v7046_v41 = vadd.f32 -0.28449672, %v7040_v32  ;;  %v7042_v52 = vmul.f32 %v14159_v56, %v7036_v39  ;;  %v6973_v32 = vmul.f32 0.5, %v14115_v1 }
0x155f   : > { %v7056_v38 = vadd.f32 0.2548296, %v7050_v29  ;;  %v7051_v57 = vmul.f32 %v14149_v51, %v7045_v25  ;;  %v7047_v30 = vadd.f32 -0.28449672, %v7041_v58  ;;  %v10406_v25 = vpop.eup %10405 }
0x1560   : > { %v7061_v28 = vadd.f32 0.2548296, %v7055_v45  ;;  %v7052_v60 = vmul.f32 %v14152_v18, %v7046_v41  ;;  %v7048_v16 = vadd.f32 -0.28449672, %v7042_v52 }
0x1561   : > { %v7062_v33 = vmul.f32 %v10384_v53, %v7056_v38  ;;  %v7057_v55 = vadd.f32 0.2548296, %v7051_v57  ;;  %v7053_v17 = vmul.f32 %v14156_v0, %v7047_v30 }
0x1562   : > { %v7067_v14 = vmul.f32 %v10386_v36, %v7061_v28  ;;  %v7058_v54 = vadd.f32 0.2548296, %v7052_v60  ;;  %v6972_v28 = vmul.f32 0.5, %v14109_v46 }
0x1563   : > { %v7092_v42 = vmul.f32 %v10396_v9, %v7062_v33  ;;  %v7063_v21 = vmul.f32 %v14149_v51, %v7057_v55  ;;  %v7054_v51 = vmul.f32 %v14159_v56, %v7048_v16  ;;  %v7059_v26 = vadd.f32 0.2548296, %v7053_v17 }
0x1564   : > { %v7097_v50 = vmul.f32 %v10398_v10, %v7067_v14  ;;  %v7064_v6 = vmul.f32 %v14152_v18, %v7058_v54  ;;  %v6976_v10 = vmul.f32 0.5, %v14139_v37  ;;  %v6975_v55 = vmul.f32 0.5, %v14136_v31 }
0x1565   : > { %v7098_v53 = vsub.f32 1.0, %v7092_v42  ;;  %v7093_v43 = vmul.f32 %v10400_v63, %v7063_v21  ;;  %v7060_v23 = vadd.f32 0.2548296, %v7054_v51  ;;  %v7065_v45 = vmul.f32 %v14156_v0, %v7059_v26 }
0x1566   : > { %v7103_v36 = vsub.f32 1.0, %v7097_v50  ;;  %v7094_v40 = vmul.f32 %v10402_v8, %v7064_v6 }
0x1567   : > { %v7110_v12 = vsub.f32 0.0, %v7098_v53  ;;  %v7099_v35 = vsub.f32 1.0, %v7093_v43  ;;  %v7066_v38 = vmul.f32 %v14159_v56, %v7060_v23  ;;  %v7095_v22 = vmul.f32 %v10404_v49, %v7065_v45 }
0x1568   : > { %v7115_v61 = vsub.f32 0.0, %v7103_v36  ;;  %v7100_v15 = vsub.f32 1.0, %v7094_v40  ;;  %v6977_v56 = vmul.f32 0.5, %v14112_v2 }
0x1569   : > { %v7116_v3 = vsel %vm7104_vm4, %v7098_v53, %v7110_v12  ;;  %v7111_v29 = vsub.f32 0.0, %v7099_v35  ;;  %v7096_v33 = vmul.f32 %v10406_v25, %v7066_v38  ;;  %v7101_v41 = vsub.f32 1.0, %v7095_v22 }
0x156a   : > { %v7121_v18 = vsel %vm7109_vm6, %v7103_v36, %v7115_v61  ;;  %v7122_v44 = vadd.f32 1.0, %v7116_v3  ;;  %v7112_v34 = vsub.f32 0.0, %v7100_v15 }
0x156b   : > { %v7117_v62 = vsel %vm7105_vm7, %v7099_v35, %v7111_v29  ;;  %v7127_v4 = vadd.f32 1.0, %v7121_v18  ;;  %v7102_v9 = vsub.f32 1.0, %v7096_v33  ;;  %v7113_v14 = vsub.f32 0.0, %v7101_v41 }
0x156c   : > { %v7123_v47 = vadd.f32 1.0, %v7117_v62  ;;  %v7118_v24 = vsel %vm7106_vm8, %v7100_v15, %v7112_v34  ;;  %v7128_v19 = vmul.f32 %v7122_v44, %v6972_v28 }
0x156d   : > { %v7124_v57 = vadd.f32 1.0, %v7118_v24  ;;  %v7133_v27 = vmul.f32 %v7127_v4, %v6977_v56  ;;  %v7114_v46 = vsub.f32 0.0, %v7102_v9  ;;  %v7119_v7 = vsel %vm7107_vm9, %v7101_v41, %v7113_v14 }
0x156e   : > { %v7129_v0 = vmul.f32 %v7123_v47, %v6973_v32  ;;  %v7125_v2 = vadd.f32 1.0, %v7119_v7 }
0x156f   : > { %v7130_v1 = vmul.f32 %v7124_v57, %v6974_v20  ;;  %v7120_v5 = vsel %vm7108_vm10, %v7102_v9, %v7114_v46 }
0x1570   : > { %7198 = vmatprep.mubr.f32.mxu1 %v7129_v0  ;;  %v7126_v42 = vadd.f32 1.0, %v7120_v5  ;;  %v7131_v60 = vmul.f32 %v7125_v2, %v6975_v55 }
0x1571   : > { %7199 = vmatmul.mubr.f32.vlgmr.msra.gmra.mrb[88].mxu1 %v7128_v19  ;;  %8842 = vmatprep.mubr.f32.mxu0 %v7130_v1 }
0x1572   : > { %8843 = vmatmul.mubr.f32.vlgmr.msra.gmra.mrb[56].mxu0 %v7133_v27  ;;  %v7132_v59 = vmul.f32 %v7126_v42, %v6976_v10 }
0x1574   : > { %7203 = vmatprep.mubr.f32.mxu1 %v7132_v59 }
0x1575   : > { %7204 = vmatmul.mubr.f32.gmra.mrb[90].mxu1 %v7131_v60 }
0x1576   : > { %10697 = shalt.err (!%p10694_p4)
}
0x1577   : > { %s10698_s30 = scalar_lea.hbm %s14195_s13, 16  ;;  %s10702_s7 = scalar_lea.hbm %s15043_s0, 32 }
0x1578   : > { %p10699_p10 = scmp.ne.s32.totalorder %s14195_s13, %s10698_s30  ;;  %p10703_p13 = scmp.lt.u32.totalorder %s14195_s13, %s15043_s0 }
0x1579   : > { %p10704_p1 = scmp.lt.u32.totalorder %s10702_s7, %s10698_s30  ;;  %p10706_p11 = scmp.lt.u32.totalorder %s10698_s30, %s14195_s13 }
0x157a   : > { %p10700_p7 = pnand %p10699_p10, %p15044_p6 }
0x157b   : > { %p10705_p5 = por %p10704_p1, %p10703_p13 }
0x157c   : > { %p10701_p3 = pneg %p10700_p7 }
0x157d   : > { %p10707_p0 = por %p10706_p11, %p10705_p5 }
0x157f   : > { %p10708_p12 = pnand %p10707_p0, %p10701_p3 }
0x1581   : > { %10711 = shalt.err (!%p10708_p12)
}
0x1582   : > { %10010 = dma.vmem_to_hbm [thread:$0]  (%p15044_p6), %s7316_s8, 16, %s14195_s13, %s7290_s1   ;;  %v15045_v63 = vld [vmem:[#allocation39_spill] sm:$0xff] }
0x1583   : > { %s1036_s2 = scalar_lea.vmem [#allocation19], %s11298_s3  ;;  %s15046_s1 = sld [smem:[#allocation181_spill]] }
0x1584   : > { %s7302_s25 = sshll.u32 %s1036_s2, 4  ;;  %s7286_s23 = scalar_lea.sflag [#allocation4], %s11298_s3  ;;  %s14228_s25 = int_to_ptr.vmem [resolvable:$true] %s7302_s25 }
0x1585   : > { %s10712_s30 = scalar_lea.vmem %s14228_s25, 16  ;;  %s10821_s26 = smov [#allocation19]  }
0x1586   : > { %p10713_p2 = scmp.ne.s32.totalorder %s14228_s25, %s10712_s30  ;;  %s10716_s17 = sshll.u32 %s10821_s26, 4  ;;  %s10717_s17 = int_to_ptr.vmem [resolvable:$false] %s10716_s17 }
0x1587   : > { %s10718_s27 = scalar_lea.vmem %s10717_s17, 32  ;;  %p10719_p4 = scmp.lt.s32.totalorder %s14228_s25, %s10717_s17 }
0x1588   : > { %p10714_p9 = pnand %p10713_p2, %p15044_p6  ;;  %p10720_p10 = scmp.lt.s32.totalorder %s10718_s27, %s10712_s30 }
0x1589   : > { %s14226_s16 = scalar_lea.hbm %s15046_s1, %s7705_s6 }
0x158a   : > { %p10715_p8 = pneg %p10714_p9  ;;  %p10721_p7 = por %p10720_p10, %p10719_p4 }
0x158c   : > { %p10722_p3 = pnand %p10721_p7, %p10715_p8 }
0x1644   : > { %v8284_v31 = vpop.f32.mrb[88].mxu1 }
0x1645   : > { %v8285_v37 = vpop.f32.mrb[89].mxu1  ;;  %v8844_v13 = vpop.f32.mrb[56].mxu0 }
0x1646   : > { %v8286_v39 = vadd.f32 %v8285_v37, %v8284_v31  ;;  %v7274_v50 = vpop.f32.mrb[57].mxu0 }
0x1648   : > { %v7201_v58 = vadd.f32 %v8286_v39, %v13472_v48  ;;  %v8287_v54 = vpop.f32.mrb[90].mxu1 }
0x1649   : > { %v8288_v52 = vpop.f32.mrb[91].mxu1 }
0x164a   : > { %v7275_v53 = vadd.f32 %v7274_v50, %v7201_v58 }
0x164c   : > { %v7282_v21 = vadd.f32 %v7275_v53, %v13906_v11 }
0x164e   : > { %v7283_v36 = vadd.f32 %v7282_v21, %v15045_v63 }
0x1650   : > { %7284 = vst.msk [vmem:[%s1036_s2] sm:$0x1] %vm2260_vm14, %v7283_v36 }
0x1651   : > { %10725 = shalt.err (!%p10722_p3)
}
0x1652   : > { %s10726_s3 = scalar_lea.hbm %s14226_s16, 16  ;;  %s10730_s4 = scalar_lea.hbm %s15046_s1, 32 }
0x1653   : > { %p10727_p13 = scmp.ne.s32.totalorder %s14226_s16, %s10726_s3  ;;  %p10731_p11 = scmp.lt.u32.totalorder %s14226_s16, %s15046_s1 }
0x1654   : > { %p10732_p0 = scmp.lt.u32.totalorder %s10730_s4, %s10726_s3  ;;  %p10734_p2 = scmp.lt.u32.totalorder %s10726_s3, %s14226_s16 }
0x1655   : > { %p10728_p1 = pnand %p10727_p13, %p15044_p6 }
0x1656   : > { %p10733_p12 = por %p10732_p0, %p10731_p11 }
0x1657   : > { %p10729_p5 = pneg %p10728_p1 }
0x1658   : > { %p10735_p9 = por %p10734_p2, %p10733_p12 }
0x165a   : > { %p10736_p8 = pnand %p10735_p9, %p10729_p5 }
0x165c   : > { %10739 = shalt.err (!%p10736_p8)
}
0x165d   : > { %10009 = dma.vmem_to_hbm [thread:$0]  (%p15044_p6), %s14228_s25, 16, %s14226_s16, %s7286_s23  }
0x165e PF: > { %s15047_s13 = sld [smem:[#allocation30_spill]]  ;;  %s15048_s8 = sld [smem:[#allocation38_spill]] }
0x165f   : > { %p15050_p10 = scmp.ge.s32.totalorder %s10802_s28, 2 }
0x1664   : > { %s7327_s30 = sand.u32 1, %s15047_s13   ;;  %p15049_p4 = scmp.ne.s32.totalorder %s15048_s8, 0 }
0x1665   : > { %s7328_s26 = scalar_lea.sflag [#allocation4], %s7327_s30 }
0x1666   : > { %p10046_p7 = pnand %p15050_p10, %p15049_p4 }
0x1668   : > { %10781 = dma.done.wait (!%p10046_p7), %s7328_s26, 16  }
0x1669   : > { %10783 = vsyncadd (!%p10046_p7), %s7328_s26, 4294967280  ;;  %s7336_s17 = scalar_lea.sflag [#allocation21], %s7327_s30 }
0x166a   : > { %10785 = dma.done.wait (!%p10046_p7), %s7336_s17, 16  }
0x166b   : > { %10787 = vsyncadd (!%p10046_p7), %s7336_s17, 4294967280  ;;  %s15051_s28 = sld [smem:[#allocation34_spill]]  ;;  %s15052_s27 = sld [smem:[#allocation31_spill]] }
0x166c   : > { %s15053_s3 = sld [smem:[#allocation32_spill]]  ;;  %s15054_s7 = sld [smem:[#allocation35_spill]] }
0x1671   : > { %p50_p6 = scmp.ge.s32.totalorder %s15051_s28, 4  }
0x1673   :  { %52 = sbr.rel (!%p50_p6) target bundleno = 38 (0x26), region = 247 }
0x167a   :  { %7340 = vsyncpa [#allocation3], 1 }
0x167b   :  { %7342 = vsyncpa [#allocation3 + $0x1], 1 }
0x167c   :  { %7343 = vsyncpa [#allocation7], 1 }
0x167d   :  { %7345 = vsyncpa [#allocation7 + $0x1], 1 }
0x167e   :  { %7346 = vsyncpa [#allocation10], 1 }
0x167f   :  { %7347 = vsyncpa [#allocation13], 1 }
0x1680   :  { %7348 = vsyncpa [#allocation16], 1 }
0x1681   :  { %7349 = vsyncpa [#allocation4], 1 }
0x1682   :  { %7351 = vsyncpa [#allocation4 + $0x1], 1 }
0x1683   :  { %7352 = vsyncpa [#allocation21], 1 }
0x1684   :  { %7354 = vsyncpa [#allocation21 + $0x1], 1 }
0x1685   :  { %7355 = vsyncpa [#allocation5], 1 }
0x1686   :  { %7357 = vsyncpa [#allocation5 + $0x1], 1 }

</bundles_post_ra>
